<compile_context>
chip_gen: v7x
topology: tpu7x:2x2x1
jax: 0.10.0
libtpu: 0.0.40
codegen_flags: <defaults>
</compile_context>

<pallas_src>
import jax
import jax.numpy as jnp
from jax import lax
from jax.experimental import pallas as pl
from jax.experimental.pallas import tpu as pltpu

N_BUFFER = 3                 # buffer = [ffx, latent, img_zf]
CC = 1                       # coil-combined image channel count
C4 = CC * (1 + N_BUFFER)     # complex channels seen by the inner model (= 4)
CIN = 2 * C4                 # real channels after complex_to_chan_dim (= 8)

_CPARAMS = pltpu.CompilerParams(
    dimension_semantics=("parallel",),
    # 32 MiB: v7x-safe (64 MiB/TC) and still overrides v5e's 16 MiB scoped default.
    vmem_limit_bytes=32 * 1024 * 1024,
)


# ----------------------------- FFT helpers (plain JAX) -----------------------------
# TODO(synk): centered orthonormal 2D FFT (fft2c / ifft2c) has no clean Pallas
# equivalent; computed with jnp.fft on complex arrays built straight from the
# planar planes (no stride-2 interleave between kernels).
def fft2c_c(xc):
    xc = jnp.fft.ifftshift(xc, axes=(-2, -1))
    xc = jnp.fft.fftn(xc, axes=(-2, -1), norm="ortho")
    return jnp.fft.fftshift(xc, axes=(-2, -1))


def ifft2c_c(xc):
    xc = jnp.fft.ifftshift(xc, axes=(-2, -1))
    xc = jnp.fft.ifftn(xc, axes=(-2, -1), norm="ortho")
    return jnp.fft.fftshift(xc, axes=(-2, -1))


# ---------------------------------- tiling helper ----------------------------------
def _choose_tn(n_rows, row_bytes, target_bytes=2 * 1024 * 1024):
    """Sublane-dense (multiple-of-8) divisor of n_rows within a byte budget,
    preferring >=2 grid steps (v7x megacore).  Falls back to the full extent for
    small / odd row counts (full-dim blocks are always layout-legal)."""
    if n_rows % 8:
        return n_rows
    cap = max(8, int(target_bytes // max(row_bytes, 1)))
    if n_rows >= 16:
        cap = min(cap, n_rows // 2)          # keep >=2 grid steps when possible
    cap = max(8, min(cap, n_rows, 1024))
    tn = (cap // 8) * 8
    while n_rows % tn:
        tn -= 8
    return tn


# ----------------------------------- kernels -----------------------------------
def _sens_reduce_kernel(xr_ref, xi_ref, sr_ref, si_ref, yr_ref, yi_ref, st_ref):
    """sum_c x * conj(s): coil axis is the leading ref dim -> c full-slab VPU adds.
    Also emits per-sample (sum, sumsq) over {re, im} for the NormUnet statistics."""
    c = xr_ref.shape[0]
    yr = None
    yi = None
    for k in range(c):
        xr = xr_ref[k]
        xi = xi_ref[k]
        sr = sr_ref[k]
        si = si_ref[k]
        re = xr * sr + xi * si
        im = xi * sr - xr * si
        yr = re if yr is None else yr + re
        yi = im if yi is None else yi + im
    yr_ref[...] = yr
    yi_ref[...] = yi
    s0 = jnp.sum(yr, -1, keepdims=True) + jnp.sum(yi, -1, keepdims=True)
    s1 = jnp.sum(yr * yr, -1, keepdims=True) + jnp.sum(yi * yi, -1, keepdims=True)
    st_ref[:, 0:1] = s0
    st_ref[:, 1:2] = s1


def _sens_expand_kernel(xr_ref, xi_ref, sr_ref, si_ref, yr_ref, yi_ref):
    c = sr_ref.shape[0]
    xr = xr_ref[...]            # (TN, HW), reused against every coil slab
    xi = xi_ref[...]
    for k in range(c):
        sr = sr_ref[k]
        si = si_ref[k]
        yr_ref[k] = xr * sr - xi * si
        yi_ref[k] = xr * si + xi * sr


def _sens_norm_kernel(xr_ref, xi_ref, or_ref, oi_ref):
    c = xr_ref.shape[0]
    ssq = None
    for k in range(c):
        xr = xr_ref[k]
        xi = xi_ref[k]
        t = xr * xr + xi * xi
        ssq = t if ssq is None else ssq + t
    inv = lax.rsqrt(ssq + 1e-12)             # EUP rsqrt; synthetic sens-net eps
    for k in range(c):
        or_ref[k] = xr_ref[k] * inv
        oi_ref[k] = xi_ref[k] * inv


def _rss_kernel(xr_ref, xi_ref, sr_ref, si_ref, o_ref):
    c = sr_ref.shape[0]
    cx = xr_ref.shape[0]
    xr0 = xr_ref[0] if cx == 1 else None     # broadcast over coils inside the kernel
    xi0 = xi_ref[0] if cx == 1 else None
    acc = None
    for k in range(c):
        xr = xr0 if cx == 1 else xr_ref[k]
        xi = xi0 if cx == 1 else xi_ref[k]
        sr = sr_ref[k]
        si = si_ref[k]
        re = xr * sr - xi * si
        im = xr * si + xi * sr
        t = re * re + im * im
        acc = t if acc is None else acc + t
    o_ref[...] = jnp.sqrt(acc)


def _cascade_fused_kernel(mean_ref, std_ref,
                          cr_ref, ci_ref, fr_ref, fi_ref,
                          lr_ref, li_ref, zr_ref, zi_ref,
                          dcw_ref, w1_ref, b1_ref, w2_ref, b2_ref,
                          pr_ref, pi_ref, olr_ref, oli_ref, st_ref):
    """Fused NormUnet (norm -> channel MLP -> unnorm -> split) + data consistency
    for a block of TN samples.  No VMEM scratch round trip; layer 2 only produces
    the 4 consumed rows (model re/im, latent re/im, pre-sliced in the wrapper)."""
    cr = cr_ref[...]
    ci = ci_ref[...]
    fr = fr_ref[...]
    fi = fi_ref[...]
    lr = lr_ref[...]
    li = li_ref[...]
    zr = zr_ref[...]
    zi = zi_ref[...]

    shape = cr.shape
    mean = jnp.broadcast_to(mean_ref[...], shape)          # hoisted broadcasts
    stdv = jnp.broadcast_to(std_ref[...], shape)
    # NOTE: reference NormUnet divides by the raw std; eps only guards the
    # degenerate all-constant-batch case (numerically identical otherwise).
    inv_std = 1.0 / jnp.maximum(stdv, 1e-12)
    dcw = dcw_ref[0]

    # complex_to_chan_dim on cat([cur, ffx, latent, zf], dim=-4):
    #   channels = [cur_re, ffx_re, lat_re, zf_re, cur_im, ffx_im, lat_im, zf_im]
    xn = [(p - mean) * inv_std for p in (cr, fr, lr, zr, ci, fi, li, zi)]

    # Channel MLP as VPU broadcast-FMAs (weights in SMEM; with K = 8 the MXU would
    # be <1% utilized).  Each hidden slab is consumed into the 4 output
    # accumulators immediately, so hidden slabs are never all live at once.
    hidden = w1_ref.shape[0]
    y = [None, None, None, None]
    for j in range(hidden):
        h = xn[0] * w1_ref[j, 0]
        for k in range(1, CIN):
            h = h + xn[k] * w1_ref[j, k]
        h = jnp.maximum(h + b1_ref[j], 0.0)
        for r in range(4):
            term = h * w2_ref[r, j]
            y[r] = term if y[r] is None else y[r] + term

    # un-normalize only the consumed rows
    model_re = (y[0] + b2_ref[0]) * stdv + mean
    lat_re = (y[1] + b2_ref[1]) * stdv + mean
    model_im = (y[2] + b2_ref[2]) * stdv + mean
    lat_im = (y[3] + b2_ref[3]) * stdv + mean

    # img_pred = current - (ffx - img_zf) * dc_weight - model_term
    pr = cr - (fr - zr) * dcw - model_re
    pi = ci - (fi - zi) * dcw - model_im
    pr_ref[...] = pr
    pi_ref[...] = pi
    olr_ref[...] = lat_re
    oli_ref[...] = lat_im

    # per-sample (sum, sumsq) over {img_pred, latent} (re+im) so the next
    # cascade's NormUnet statistics need no extra HBM pass over these planes.
    s0 = (jnp.sum(pr, -1, keepdims=True) + jnp.sum(pi, -1, keepdims=True)
          + jnp.sum(lat_re, -1, keepdims=True) + jnp.sum(lat_im, -1, keepdims=True))
    s1 = (jnp.sum(pr * pr, -1, keepdims=True) + jnp.sum(pi * pi, -1, keepdims=True)
          + jnp.sum(lat_re * lat_re, -1, keepdims=True)
          + jnp.sum(lat_im * lat_im, -1, keepdims=True))
    st_ref[:, 0:1] = s0
    st_ref[:, 1:2] = s1


# ----------------------------------- wrappers -----------------------------------
def sens_reduce_planar(xr, xi, sr, si):
    c, N, HW = sr.shape
    tn = _choose_tn(N, c * HW * 4)
    coil = pl.BlockSpec((c, tn, HW), lambda g: (0, g, 0))
    img = pl.BlockSpec((tn, HW), lambda g: (g, 0))
    stat = pl.BlockSpec((tn, 2), lambda g: (g, 0))
    return pl.pallas_call(
        _sens_reduce_kernel,
        out_shape=[jax.ShapeDtypeStruct((N, HW), jnp.float32)] * 2
        + [jax.ShapeDtypeStruct((N, 2), jnp.float32)],
        grid=(N // tn,),
        in_specs=[coil] * 4,
        out_specs=[img, img, stat],
        compiler_params=_CPARAMS,
    )(xr, xi, sr, si)


def sens_expand_planar(xr, xi, sr, si):
    c, N, HW = sr.shape
    tn = _choose_tn(N, c * HW * 4)
    img = pl.BlockSpec((tn, HW), lambda g: (g, 0))
    coil = pl.BlockSpec((c, tn, HW), lambda g: (0, g, 0))
    return pl.pallas_call(
        _sens_expand_kernel,
        out_shape=[jax.ShapeDtypeStruct((c, N, HW), jnp.float32)] * 2,
        grid=(N // tn,),
        in_specs=[img, img, coil, coil],
        out_specs=[coil, coil],
        compiler_params=_CPARAMS,
    )(xr, xi, sr, si)


def sens_normalize_planar(xr, xi):
    c, N, HW = xr.shape
    tn = _choose_tn(N, c * HW * 4)
    coil = pl.BlockSpec((c, tn, HW), lambda g: (0, g, 0))
    return pl.pallas_call(
        _sens_norm_kernel,
        out_shape=[jax.ShapeDtypeStruct((c, N, HW), jnp.float32)] * 2,
        grid=(N // tn,),
        in_specs=[coil] * 2,
        out_specs=[coil] * 2,
        compiler_params=_CPARAMS,
    )(xr, xi)


def rss_planar(xr, xi, sr, si):
    cx, B, HW = xr.shape
    c = sr.shape[0]
    tb = _choose_tn(B, c * HW * 4)
    x_spec = pl.BlockSpec((cx, tb, HW), lambda g: (0, g, 0))
    s_spec = pl.BlockSpec((c, tb, HW), lambda g: (0, g, 0))
    o_spec = pl.BlockSpec((tb, HW), lambda g: (g, 0))
    return pl.pallas_call(
        _rss_kernel,
        out_shape=jax.ShapeDtypeStruct((B, HW), jnp.float32),
        grid=(B // tb,),
        in_specs=[x_spec, x_spec, s_spec, s_spec],
        out_specs=o_spec,
        compiler_params=_CPARAMS,
    )(xr, xi, sr, si)


def cascade_fused_pallas(params, cr, ci, fr, fi, lr, li, zr, zi, mean_n, std_n,
                         alias=False):
    N, HW = cr.shape
    # Only output rows {0, 2, 4, 6} (model re, latent re, model im, latent im) are
    # ever consumed -> pre-slice the second MLP layer to those rows.
    w2s = params["w2"][::2]
    b2s = params["b2"][::2]
    tn = _choose_tn(N, HW * 4, target_bytes=32 * 1024)
    plane = pl.BlockSpec((tn, HW), lambda g: (g, 0))
    col = pl.BlockSpec((tn, 1), lambda g: (g, 0))
    stat = pl.BlockSpec((tn, 2), lambda g: (g, 0))
    smem = pl.BlockSpec(memory_space=pltpu.MemorySpace.SMEM)
    # Donate cr/ci/lr/li buffers to pr/pi/olr/oli (safe once they are fresh outputs
    # of the previous cascade; the first cascade reuses zr/zi so no aliasing there).
    io_alias = {2: 0, 3: 1, 6: 2, 7: 3} if alias else {}
    return pl.pallas_call(
        _cascade_fused_kernel,
        out_shape=[jax.ShapeDtypeStruct((N, HW), jnp.float32)] * 4
        + [jax.ShapeDtypeStruct((N, 2), jnp.float32)],
        grid=(N // tn,),
        in_specs=[col, col] + [plane] * 8 + [smem] * 5,
        out_specs=[plane] * 4 + [stat],
        input_output_aliases=io_alias,
        compiler_params=_CPARAMS,
    )(mean_n, std_n, cr, ci, fr, fi, lr, li, zr, zi,
      params["dc_weight"], params["w1"], params["b1"], w2s, b2s)


# ------------------------------- model components -------------------------------
def sens_net_forward(kr, ki, num_low_frequencies, shape):
    """Synthetic sensitivity-map estimator: ACS-only inverse FFT, RSS-normalized.
    TODO(synk): real SensitivityModel is external to the spec; this is a stand-in."""
    b, t, s, c, h, w = shape
    N, HW = b * t * s, h * w
    nlf = num_low_frequencies.astype(jnp.int32)                  # (b,)
    pad = (w - nlf + 1) // 2
    cols = jnp.arange(w)
    acs = ((cols[None, :] >= pad[:, None]) &
           (cols[None, :] < pad[:, None] + nlf[:, None])).astype(jnp.float32)
    acs = acs[:, None, None, None, None, :]                      # (b,1,1,1,1,w)
    coil_c = ifft2c_c((kr * acs) + 1j * (ki * acs))              # (b,t,s,c,h,w) complex
    xr = jnp.moveaxis(jnp.real(coil_c), 3, 0).reshape(c, N, HW)
    xi = jnp.moveaxis(jnp.imag(coil_c), 3, 0).reshape(c, N, HW)
    return sens_normalize_planar(xr, xi)


def vve_forward(params_list, masked_kspace, mask, num_low_frequencies):
    b, t, s, c, h, w, _ = masked_kspace.shape
    if mask.shape[2] != s:
        mask = jnp.broadcast_to(mask, mask.shape[:2] + (s,) + mask.shape[3:])
    N, HW, ts = b * t * s, h * w, t * s

    # deinterleave once; everything downstream is planar
    kr = masked_kspace[..., 0]                                   # (b,t,s,c,h,w)
    ki = masked_kspace[..., 1]
    m_re = mask[..., 0]                                          # (b,1,s,1,h,w)
    m_im = mask[..., 1]

    # sensitivity maps in planar coil layout (c, N, HW)
    sr, si = sens_net_forward(kr, ki, num_low_frequencies, (b, t, s, c, h, w))

    # zero-filled image: ifft2c + coil-combine (stats of {zr, zi} come for free)
    img_c = ifft2c_c(kr + 1j * ki)
    xr = jnp.moveaxis(jnp.real(img_c), 3, 0).reshape(c, N, HW)
    xi = jnp.moveaxis(jnp.imag(img_c), 3, 0).reshape(c, N, HW)
    zr, zi, zf_st = sens_reduce_planar(xr, xi, sr, si)
    zf_b = zf_st.reshape(b, ts, 2).sum(axis=1)                   # (b,2) sum/sumsq {zr,zi}
    cur_lat_b = 2.0 * zf_b                                       # img_pred = latent = img_zf
    cr, ci = zr, zi                                              # current image
    lr, li = zr, zi                                              # latent

    count = float(CIN * ts * HW)                                 # per-batch element count

    for idx, p in enumerate(params_list):
        # sens_expand (Pallas, planar) + fft2c (JAX)
        er, ei = sens_expand_planar(cr, ci, sr, si)              # (c,N,HW)
        ksp_c = fft2c_c(jnp.moveaxis((er + 1j * ei).reshape(c, b, t, s, h, w), 0, 3))
        # k-space masking (real/imag masked like the reference elementwise product)
        fkr = jnp.real(ksp_c) * m_re
        fki = jnp.imag(ksp_c) * m_im
        # ifft2c (JAX) + coil-combine with conj(sens) (Pallas) -> ffx (+ its stats)
        ffx_c = ifft2c_c(fkr + 1j * fki)
        fr_in = jnp.moveaxis(jnp.real(ffx_c), 3, 0).reshape(c, N, HW)
        fi_in = jnp.moveaxis(jnp.imag(ffx_c), 3, 0).reshape(c, N, HW)
        fr, fi, ffx_st = sens_reduce_planar(fr_in, fi_in, sr, si)
        ffx_b = ffx_st.reshape(b, ts, 2).sum(axis=1)

        # NormUnet per-batch mean / unbiased std of the stacked [cur,ffx,lat,zf]
        # channels, assembled from the fused per-sample kernel statistics.
        tot = cur_lat_b + zf_b + ffx_b                           # (b,2)
        mean_b = tot[:, 0] / count
        var_b = (tot[:, 1] - count * mean_b * mean_b) / (count - 1.0)
        std_b = jnp.sqrt(jnp.maximum(var_b, 0.0))
        mean_n = jnp.repeat(mean_b, ts)[:, None]                 # (N,1)
        std_n = jnp.repeat(std_b, ts)[:, None]

        # NOTE: NormUnet's pad-to-multiple-of-8 is a numerical no-op for the
        # pointwise synthetic inner model.
        cr, ci, lr, li, cl_st = cascade_fused_pallas(
            p, cr, ci, fr, fi, lr, li, zr, zi, mean_n, std_n, alias=(idx > 0))
        cur_lat_b = cl_st.reshape(b, ts, 2).sum(axis=1)

    # center (t//2, s//2) slice, RSS outputs
    t2, s2 = t // 2, s // 2
    pr_c = cr.reshape(b, t, s, HW)[:, t2, s2][None]              # (1,b,HW)
    pi_c = ci.reshape(b, t, s, HW)[:, t2, s2][None]
    sr_c = sr.reshape(c, b, t, s, HW)[:, :, t2, s2]              # (c,b,HW)
    si_c = si.reshape(c, b, t, s, HW)[:, :, t2, s2]
    img_pred_rss = rss_planar(pr_c, pi_c, sr_c, si_c).reshape(b, h, w)
    # Reference applies rss directly to the raw center-slice masked k-space
    # (no ifft2c) -- reproduced as-is to match the PyTorch module.
    kr_c = jnp.moveaxis(kr[:, t2, s2], 1, 0).reshape(c, b, HW)
    ki_c = jnp.moveaxis(ki[:, t2, s2], 1, 0).reshape(c, b, HW)
    img_zf_rss = rss_planar(kr_c, ki_c, sr_c, si_c).reshape(b, h, w)
    sens_complex = jnp.moveaxis(sr_c + 1j * si_c, 0, 1).reshape(b, c, h, w)
    return {"img_pred": img_pred_rss, "img_zf": img_zf_rss, "sens_maps": sens_complex}


# ------------------------------------- main -------------------------------------
if __name__ == "__main__":
    b, t, s, c, h, w = 1, 2, 2, 4, 16, 16
    hidden = 16
    n_cascades = 2

    key = jax.random.PRNGKey(0)
    k_ks, k_mask, *k_params = jax.random.split(key, 2 + n_cascades)

    # column undersampling mask with a preserved low-frequency (ACS) center
    nlf = 8
    col_keep = jax.random.uniform(k_mask, (w,)) < 0.4
    start = (w - nlf) // 2
    col_keep = col_keep.at[start:start + nlf].set(True)
    mask = jnp.broadcast_to(
        col_keep.astype(jnp.float32)[None, None, None, None, None, :, None],
        (b, 1, 1, 1, h, w, 2),
    )

    masked_kspace = jax.random.normal(k_ks, (b, t, s, c, h, w, 2), jnp.float32) * mask
    num_low_frequencies = jnp.full((b,), nlf, jnp.int32)

    params_list = []
    for i in range(n_cascades):
        kk = jax.random.split(k_params[i], 4)
        params_list.append({
            "w1": 0.1 * jax.random.normal(kk[0], (hidden, CIN), jnp.float32),
            "b1": 0.1 * jax.random.normal(kk[1], (hidden,), jnp.float32),
            "w2": 0.1 * jax.random.normal(kk[2], (CIN, hidden), jnp.float32),
            "b2": 0.1 * jax.random.normal(kk[3], (CIN,), jnp.float32),
            "dc_weight": jnp.ones((1,), jnp.float32),  # nn.Parameter(torch.ones(1))
        })

    out = jax.jit(vve_forward)(params_list, masked_kspace, mask, num_low_frequencies)
    out = jax.block_until_ready(out)

    assert out["img_pred"].shape == (b, h, w)
    assert out["img_zf"].shape == (b, h, w)
    assert out["sens_maps"].shape == (b, c, h, w) and jnp.iscomplexobj(out["sens_maps"])
    assert all(bool(jnp.all(jnp.isfinite(out[k_]))) for k_ in ("img_pred", "img_zf"))
    print("KERNEL_OK")
</pallas_src>

<mosaic_0001>
module attributes {stable_mosaic.version = 11 : i64} {
  func.func @_rss_kernel(%arg0: i32, %arg1: memref<4x1x256xf32, #tpu.memory_space<vmem>>, %arg2: memref<4x1x256xf32, #tpu.memory_space<vmem>>, %arg3: memref<4x1x256xf32, #tpu.memory_space<vmem>>, %arg4: memref<4x1x256xf32, #tpu.memory_space<vmem>>, %arg5: memref<1x256xf32, #tpu.memory_space<vmem>>) attributes {dimension_semantics = [#tpu.dimension_semantics<parallel>], iteration_bounds = array<i64: 1>, scalar_prefetch = 0 : i64, scratch_operands = 0 : i64, tpu.core_type = #tpu.core_type<tc>, window_params = [{transform_indices = @transform_0, window_bounds = array<i64: 4, 1, 256>}, {transform_indices = @transform_1, window_bounds = array<i64: 4, 1, 256>}, {transform_indices = @transform_2, window_bounds = array<i64: 4, 1, 256>}, {transform_indices = @transform_3, window_bounds = array<i64: 4, 1, 256>}, {transform_indices = @transform_4, window_bounds = array<i64: 1, 256>}]} {
    %c0 = arith.constant 0 : index
    %c0_0 = arith.constant 0 : index
    %c0_1 = arith.constant 0 : index
    %0 = vector.load %arg1[%c0, %c0_0, %c0_1] : memref<4x1x256xf32, #tpu.memory_space<vmem>>, vector<1x1x256xf32>
    %1 = vector.shape_cast %0 : vector<1x1x256xf32> to vector<1x256xf32>
    %c0_2 = arith.constant 0 : index
    %c0_3 = arith.constant 0 : index
    %c0_4 = arith.constant 0 : index
    %2 = vector.load %arg2[%c0_2, %c0_3, %c0_4] : memref<4x1x256xf32, #tpu.memory_space<vmem>>, vector<1x1x256xf32>
    %3 = vector.shape_cast %2 : vector<1x1x256xf32> to vector<1x256xf32>
    %c0_5 = arith.constant 0 : index
    %c0_6 = arith.constant 0 : index
    %c0_7 = arith.constant 0 : index
    %4 = vector.load %arg3[%c0_5, %c0_6, %c0_7] : memref<4x1x256xf32, #tpu.memory_space<vmem>>, vector<1x1x256xf32>
    %5 = vector.shape_cast %4 : vector<1x1x256xf32> to vector<1x256xf32>
    %c0_8 = arith.constant 0 : index
    %c0_9 = arith.constant 0 : index
    %c0_10 = arith.constant 0 : index
    %6 = vector.load %arg4[%c0_8, %c0_9, %c0_10] : memref<4x1x256xf32, #tpu.memory_space<vmem>>, vector<1x1x256xf32>
    %7 = vector.shape_cast %6 : vector<1x1x256xf32> to vector<1x256xf32>
    %8 = arith.mulf %1, %5 : vector<1x256xf32>
    %9 = arith.mulf %3, %7 : vector<1x256xf32>
    %10 = arith.subf %8, %9 : vector<1x256xf32>
    %11 = arith.mulf %1, %7 : vector<1x256xf32>
    %12 = arith.mulf %3, %5 : vector<1x256xf32>
    %13 = arith.addf %11, %12 : vector<1x256xf32>
    %14 = arith.mulf %10, %10 : vector<1x256xf32>
    %15 = arith.mulf %13, %13 : vector<1x256xf32>
    %16 = arith.addf %14, %15 : vector<1x256xf32>
    %c1 = arith.constant 1 : index
    %c0_11 = arith.constant 0 : index
    %c0_12 = arith.constant 0 : index
    %17 = vector.load %arg1[%c1, %c0_11, %c0_12] : memref<4x1x256xf32, #tpu.memory_space<vmem>>, vector<1x1x256xf32>
    %18 = vector.shape_cast %17 : vector<1x1x256xf32> to vector<1x256xf32>
    %c1_13 = arith.constant 1 : index
    %c0_14 = arith.constant 0 : index
    %c0_15 = arith.constant 0 : index
    %19 = vector.load %arg2[%c1_13, %c0_14, %c0_15] : memref<4x1x256xf32, #tpu.memory_space<vmem>>, vector<1x1x256xf32>
    %20 = vector.shape_cast %19 : vector<1x1x256xf32> to vector<1x256xf32>
    %c1_16 = arith.constant 1 : index
    %c0_17 = arith.constant 0 : index
    %c0_18 = arith.constant 0 : index
    %21 = vector.load %arg3[%c1_16, %c0_17, %c0_18] : memref<4x1x256xf32, #tpu.memory_space<vmem>>, vector<1x1x256xf32>
    %22 = vector.shape_cast %21 : vector<1x1x256xf32> to vector<1x256xf32>
    %c1_19 = arith.constant 1 : index
    %c0_20 = arith.constant 0 : index
    %c0_21 = arith.constant 0 : index
    %23 = vector.load %arg4[%c1_19, %c0_20, %c0_21] : memref<4x1x256xf32, #tpu.memory_space<vmem>>, vector<1x1x256xf32>
    %24 = vector.shape_cast %23 : vector<1x1x256xf32> to vector<1x256xf32>
    %25 = arith.mulf %18, %22 : vector<1x256xf32>
    %26 = arith.mulf %20, %24 : vector<1x256xf32>
    %27 = arith.subf %25, %26 : vector<1x256xf32>
    %28 = arith.mulf %18, %24 : vector<1x256xf32>
    %29 = arith.mulf %20, %22 : vector<1x256xf32>
    %30 = arith.addf %28, %29 : vector<1x256xf32>
    %31 = arith.mulf %27, %27 : vector<1x256xf32>
    %32 = arith.mulf %30, %30 : vector<1x256xf32>
    %33 = arith.addf %31, %32 : vector<1x256xf32>
    %34 = arith.addf %16, %33 : vector<1x256xf32>
    %c2 = arith.constant 2 : index
    %c0_22 = arith.constant 0 : index
    %c0_23 = arith.constant 0 : index
    %35 = vector.load %arg1[%c2, %c0_22, %c0_23] : memref<4x1x256xf32, #tpu.memory_space<vmem>>, vector<1x1x256xf32>
    %36 = vector.shape_cast %35 : vector<1x1x256xf32> to vector<1x256xf32>
    %c2_24 = arith.constant 2 : index
    %c0_25 = arith.constant 0 : index
    %c0_26 = arith.constant 0 : index
    %37 = vector.load %arg2[%c2_24, %c0_25, %c0_26] : memref<4x1x256xf32, #tpu.memory_space<vmem>>, vector<1x1x256xf32>
    %38 = vector.shape_cast %37 : vector<1x1x256xf32> to vector<1x256xf32>
    %c2_27 = arith.constant 2 : index
    %c0_28 = arith.constant 0 : index
    %c0_29 = arith.constant 0 : index
    %39 = vector.load %arg3[%c2_27, %c0_28, %c0_29] : memref<4x1x256xf32, #tpu.memory_space<vmem>>, vector<1x1x256xf32>
    %40 = vector.shape_cast %39 : vector<1x1x256xf32> to vector<1x256xf32>
    %c2_30 = arith.constant 2 : index
    %c0_31 = arith.constant 0 : index
    %c0_32 = arith.constant 0 : index
    %41 = vector.load %arg4[%c2_30, %c0_31, %c0_32] : memref<4x1x256xf32, #tpu.memory_space<vmem>>, vector<1x1x256xf32>
    %42 = vector.shape_cast %41 : vector<1x1x256xf32> to vector<1x256xf32>
    %43 = arith.mulf %36, %40 : vector<1x256xf32>
    %44 = arith.mulf %38, %42 : vector<1x256xf32>
    %45 = arith.subf %43, %44 : vector<1x256xf32>
    %46 = arith.mulf %36, %42 : vector<1x256xf32>
    %47 = arith.mulf %38, %40 : vector<1x256xf32>
    %48 = arith.addf %46, %47 : vector<1x256xf32>
    %49 = arith.mulf %45, %45 : vector<1x256xf32>
    %50 = arith.mulf %48, %48 : vector<1x256xf32>
    %51 = arith.addf %49, %50 : vector<1x256xf32>
    %52 = arith.addf %34, %51 : vector<1x256xf32>
    %c3 = arith.constant 3 : index
    %c0_33 = arith.constant 0 : index
    %c0_34 = arith.constant 0 : index
    %53 = vector.load %arg1[%c3, %c0_33, %c0_34] : memref<4x1x256xf32, #tpu.memory_space<vmem>>, vector<1x1x256xf32>
    %54 = vector.shape_cast %53 : vector<1x1x256xf32> to vector<1x256xf32>
    %c3_35 = arith.constant 3 : index
    %c0_36 = arith.constant 0 : index
    %c0_37 = arith.constant 0 : index
    %55 = vector.load %arg2[%c3_35, %c0_36, %c0_37] : memref<4x1x256xf32, #tpu.memory_space<vmem>>, vector<1x1x256xf32>
    %56 = vector.shape_cast %55 : vector<1x1x256xf32> to vector<1x256xf32>
    %c3_38 = arith.constant 3 : index
    %c0_39 = arith.constant 0 : index
    %c0_40 = arith.constant 0 : index
    %57 = vector.load %arg3[%c3_38, %c0_39, %c0_40] : memref<4x1x256xf32, #tpu.memory_space<vmem>>, vector<1x1x256xf32>
    %58 = vector.shape_cast %57 : vector<1x1x256xf32> to vector<1x256xf32>
    %c3_41 = arith.constant 3 : index
    %c0_42 = arith.constant 0 : index
    %c0_43 = arith.constant 0 : index
    %59 = vector.load %arg4[%c3_41, %c0_42, %c0_43] : memref<4x1x256xf32, #tpu.memory_space<vmem>>, vector<1x1x256xf32>
    %60 = vector.shape_cast %59 : vector<1x1x256xf32> to vector<1x256xf32>
    %61 = arith.mulf %54, %58 : vector<1x256xf32>
    %62 = arith.mulf %56, %60 : vector<1x256xf32>
    %63 = arith.subf %61, %62 : vector<1x256xf32>
    %64 = arith.mulf %54, %60 : vector<1x256xf32>
    %65 = arith.mulf %56, %58 : vector<1x256xf32>
    %66 = arith.addf %64, %65 : vector<1x256xf32>
    %67 = arith.mulf %63, %63 : vector<1x256xf32>
    %68 = arith.mulf %66, %66 : vector<1x256xf32>
    %69 = arith.addf %67, %68 : vector<1x256xf32>
    %70 = arith.addf %52, %69 : vector<1x256xf32>
    %71 = math.sqrt %70 : vector<1x256xf32>
    %c0_44 = arith.constant 0 : index
    %c0_45 = arith.constant 0 : index
    %72 = vector.load %arg5[%c0_44, %c0_45] : memref<1x256xf32, #tpu.memory_space<vmem>>, vector<1x256xf32>
    tpu.vector_store %arg5[%c0_44, %c0_45], %71 {strides = array<i32>} : memref<1x256xf32, #tpu.memory_space<vmem>>, vector<1x256xf32>,
    return
  }
  func.func @transform_0(%arg0: i32) -> (i32, i32, i32) {
    %c0_i32 = arith.constant 0 : i32
    %c0_i32_0 = arith.constant 0 : i32
    %c0_i32_1 = arith.constant 0 : i32
    return %c0_i32, %arg0, %c0_i32_0 : i32, i32, i32
  }
  func.func @transform_1(%arg0: i32) -> (i32, i32, i32) {
    %c0_i32 = arith.constant 0 : i32
    %c0_i32_0 = arith.constant 0 : i32
    %c0_i32_1 = arith.constant 0 : i32
    return %c0_i32, %arg0, %c0_i32_0 : i32, i32, i32
  }
  func.func @transform_2(%arg0: i32) -> (i32, i32, i32) {
    %c0_i32 = arith.constant 0 : i32
    %c0_i32_0 = arith.constant 0 : i32
    %c0_i32_1 = arith.constant 0 : i32
    return %c0_i32, %arg0, %c0_i32_0 : i32, i32, i32
  }
  func.func @transform_3(%arg0: i32) -> (i32, i32, i32) {
    %c0_i32 = arith.constant 0 : i32
    %c0_i32_0 = arith.constant 0 : i32
    %c0_i32_1 = arith.constant 0 : i32
    return %c0_i32, %arg0, %c0_i32_0 : i32, i32, i32
  }
  func.func @transform_4(%arg0: i32) -> (i32, i32) {
    %c0_i32 = arith.constant 0 : i32
    %c0_i32_0 = arith.constant 0 : i32
    return %arg0, %c0_i32 : i32, i32
  }
}

module attributes {stable_mosaic.version = 11 : i64} {
  func.func @_sens_norm_kernel(%arg0: i32, %arg1: memref<4x4x256xf32, #tpu.memory_space<vmem>>, %arg2: memref<4x4x256xf32, #tpu.memory_space<vmem>>, %arg3: memref<4x4x256xf32, #tpu.memory_space<vmem>>, %arg4: memref<4x4x256xf32, #tpu.memory_space<vmem>>) attributes {dimension_semantics = [#tpu.dimension_semantics<parallel>], iteration_bounds = array<i64: 1>, scalar_prefetch = 0 : i64, scratch_operands = 0 : i64, tpu.core_type = #tpu.core_type<tc>, window_params = [{transform_indices = @transform_0, window_bounds = array<i64: 4, 4, 256>}, {transform_indices = @transform_1, window_bounds = array<i64: 4, 4, 256>}, {transform_indices = @transform_2, window_bounds = array<i64: 4, 4, 256>}, {transform_indices = @transform_3, window_bounds = array<i64: 4, 4, 256>}]} {
    %c0 = arith.constant 0 : index
    %c0_0 = arith.constant 0 : index
    %c0_1 = arith.constant 0 : index
    %0 = vector.load %arg1[%c0, %c0_0, %c0_1] : memref<4x4x256xf32, #tpu.memory_space<vmem>>, vector<1x4x256xf32>
    %1 = vector.shape_cast %0 : vector<1x4x256xf32> to vector<4x256xf32>
    %c0_2 = arith.constant 0 : index
    %c0_3 = arith.constant 0 : index
    %c0_4 = arith.constant 0 : index
    %2 = vector.load %arg2[%c0_2, %c0_3, %c0_4] : memref<4x4x256xf32, #tpu.memory_space<vmem>>, vector<1x4x256xf32>
    %3 = vector.shape_cast %2 : vector<1x4x256xf32> to vector<4x256xf32>
    %4 = arith.mulf %1, %1 : vector<4x256xf32>
    %5 = arith.mulf %3, %3 : vector<4x256xf32>
    %6 = arith.addf %4, %5 : vector<4x256xf32>
    %c1 = arith.constant 1 : index
    %c0_5 = arith.constant 0 : index
    %c0_6 = arith.constant 0 : index
    %7 = vector.load %arg1[%c1, %c0_5, %c0_6] : memref<4x4x256xf32, #tpu.memory_space<vmem>>, vector<1x4x256xf32>
    %8 = vector.shape_cast %7 : vector<1x4x256xf32> to vector<4x256xf32>
    %c1_7 = arith.constant 1 : index
    %c0_8 = arith.constant 0 : index
    %c0_9 = arith.constant 0 : index
    %9 = vector.load %arg2[%c1_7, %c0_8, %c0_9] : memref<4x4x256xf32, #tpu.memory_space<vmem>>, vector<1x4x256xf32>
    %10 = vector.shape_cast %9 : vector<1x4x256xf32> to vector<4x256xf32>
    %11 = arith.mulf %8, %8 : vector<4x256xf32>
    %12 = arith.mulf %10, %10 : vector<4x256xf32>
    %13 = arith.addf %11, %12 : vector<4x256xf32>
    %14 = arith.addf %6, %13 : vector<4x256xf32>
    %c2 = arith.constant 2 : index
    %c0_10 = arith.constant 0 : index
    %c0_11 = arith.constant 0 : index
    %15 = vector.load %arg1[%c2, %c0_10, %c0_11] : memref<4x4x256xf32, #tpu.memory_space<vmem>>, vector<1x4x256xf32>
    %16 = vector.shape_cast %15 : vector<1x4x256xf32> to vector<4x256xf32>
    %c2_12 = arith.constant 2 : index
    %c0_13 = arith.constant 0 : index
    %c0_14 = arith.constant 0 : index
    %17 = vector.load %arg2[%c2_12, %c0_13, %c0_14] : memref<4x4x256xf32, #tpu.memory_space<vmem>>, vector<1x4x256xf32>
    %18 = vector.shape_cast %17 : vector<1x4x256xf32> to vector<4x256xf32>
    %19 = arith.mulf %16, %16 : vector<4x256xf32>
    %20 = arith.mulf %18, %18 : vector<4x256xf32>
    %21 = arith.addf %19, %20 : vector<4x256xf32>
    %22 = arith.addf %14, %21 : vector<4x256xf32>
    %c3 = arith.constant 3 : index
    %c0_15 = arith.constant 0 : index
    %c0_16 = arith.constant 0 : index
    %23 = vector.load %arg1[%c3, %c0_15, %c0_16] : memref<4x4x256xf32, #tpu.memory_space<vmem>>, vector<1x4x256xf32>
    %24 = vector.shape_cast %23 : vector<1x4x256xf32> to vector<4x256xf32>
    %c3_17 = arith.constant 3 : index
    %c0_18 = arith.constant 0 : index
    %c0_19 = arith.constant 0 : index
    %25 = vector.load %arg2[%c3_17, %c0_18, %c0_19] : memref<4x4x256xf32, #tpu.memory_space<vmem>>, vector<1x4x256xf32>
    %26 = vector.shape_cast %25 : vector<1x4x256xf32> to vector<4x256xf32>
    %27 = arith.mulf %24, %24 : vector<4x256xf32>
    %28 = arith.mulf %26, %26 : vector<4x256xf32>
    %29 = arith.addf %27, %28 : vector<4x256xf32>
    %30 = arith.addf %22, %29 : vector<4x256xf32>
    %cst = arith.constant 9.99999996E-13 : f32
    %31 = vector.broadcast %cst : f32 to vector<4x256xf32>
    %32 = arith.addf %30, %31 : vector<4x256xf32>
    %33 = math.rsqrt %32 : vector<4x256xf32>
    %c0_20 = arith.constant 0 : index
    %c0_21 = arith.constant 0 : index
    %c0_22 = arith.constant 0 : index
    %34 = vector.load %arg1[%c0_20, %c0_21, %c0_22] : memref<4x4x256xf32, #tpu.memory_space<vmem>>, vector<1x4x256xf32>
    %35 = vector.shape_cast %34 : vector<1x4x256xf32> to vector<4x256xf32>
    %36 = arith.mulf %35, %33 : vector<4x256xf32>
    %c0_23 = arith.constant 0 : index
    %c0_24 = arith.constant 0 : index
    %c0_25 = arith.constant 0 : index
    %37 = vector.load %arg3[%c0_23, %c0_24, %c0_25] : memref<4x4x256xf32, #tpu.memory_space<vmem>>, vector<1x4x256xf32>
    %38 = vector.shape_cast %37 : vector<1x4x256xf32> to vector<4x256xf32>
    %39 = vector.shape_cast %36 : vector<4x256xf32> to vector<1x4x256xf32>
    tpu.vector_store %arg3[%c0_23, %c0_24, %c0_25], %39 {strides = array<i32>} : memref<4x4x256xf32, #tpu.memory_space<vmem>>, vector<1x4x256xf32>,
    %c0_26 = arith.constant 0 : index
    %c0_27 = arith.constant 0 : index
    %c0_28 = arith.constant 0 : index
    %40 = vector.load %arg2[%c0_26, %c0_27, %c0_28] : memref<4x4x256xf32, #tpu.memory_space<vmem>>, vector<1x4x256xf32>
    %41 = vector.shape_cast %40 : vector<1x4x256xf32> to vector<4x256xf32>
    %42 = arith.mulf %41, %33 : vector<4x256xf32>
    %c0_29 = arith.constant 0 : index
    %c0_30 = arith.constant 0 : index
    %c0_31 = arith.constant 0 : index
    %43 = vector.load %arg4[%c0_29, %c0_30, %c0_31] : memref<4x4x256xf32, #tpu.memory_space<vmem>>, vector<1x4x256xf32>
    %44 = vector.shape_cast %43 : vector<1x4x256xf32> to vector<4x256xf32>
    %45 = vector.shape_cast %42 : vector<4x256xf32> to vector<1x4x256xf32>
    tpu.vector_store %arg4[%c0_29, %c0_30, %c0_31], %45 {strides = array<i32>} : memref<4x4x256xf32, #tpu.memory_space<vmem>>, vector<1x4x256xf32>,
    %c1_32 = arith.constant 1 : index
    %c0_33 = arith.constant 0 : index
    %c0_34 = arith.constant 0 : index
    %46 = vector.load %arg1[%c1_32, %c0_33, %c0_34] : memref<4x4x256xf32, #tpu.memory_space<vmem>>, vector<1x4x256xf32>
    %47 = vector.shape_cast %46 : vector<1x4x256xf32> to vector<4x256xf32>
    %48 = arith.mulf %47, %33 : vector<4x256xf32>
    %c1_35 = arith.constant 1 : index
    %c0_36 = arith.constant 0 : index
    %c0_37 = arith.constant 0 : index
    %49 = vector.load %arg3[%c1_35, %c0_36, %c0_37] : memref<4x4x256xf32, #tpu.memory_space<vmem>>, vector<1x4x256xf32>
    %50 = vector.shape_cast %49 : vector<1x4x256xf32> to vector<4x256xf32>
    %51 = vector.shape_cast %48 : vector<4x256xf32> to vector<1x4x256xf32>
    tpu.vector_store %arg3[%c1_35, %c0_36, %c0_37], %51 {strides = array<i32>} : memref<4x4x256xf32, #tpu.memory_space<vmem>>, vector<1x4x256xf32>,
    %c1_38 = arith.constant 1 : index
    %c0_39 = arith.constant 0 : index
    %c0_40 = arith.constant 0 : index
    %52 = vector.load %arg2[%c1_38, %c0_39, %c0_40] : memref<4x4x256xf32, #tpu.memory_space<vmem>>, vector<1x4x256xf32>
    %53 = vector.shape_cast %52 : vector<1x4x256xf32> to vector<4x256xf32>
    %54 = arith.mulf %53, %33 : vector<4x256xf32>
    %c1_41 = arith.constant 1 : index
    %c0_42 = arith.constant 0 : index
    %c0_43 = arith.constant 0 : index
    %55 = vector.load %arg4[%c1_41, %c0_42, %c0_43] : memref<4x4x256xf32, #tpu.memory_space<vmem>>, vector<1x4x256xf32>
    %56 = vector.shape_cast %55 : vector<1x4x256xf32> to vector<4x256xf32>
    %57 = vector.shape_cast %54 : vector<4x256xf32> to vector<1x4x256xf32>
    tpu.vector_store %arg4[%c1_41, %c0_42, %c0_43], %57 {strides = array<i32>} : memref<4x4x256xf32, #tpu.memory_space<vmem>>, vector<1x4x256xf32>,
    %c2_44 = arith.constant 2 : index
    %c0_45 = arith.constant 0 : index
    %c0_46 = arith.constant 0 : index
    %58 = vector.load %arg1[%c2_44, %c0_45, %c0_46] : memref<4x4x256xf32, #tpu.memory_space<vmem>>, vector<1x4x256xf32>
    %59 = vector.shape_cast %58 : vector<1x4x256xf32> to vector<4x256xf32>
    %60 = arith.mulf %59, %33 : vector<4x256xf32>
    %c2_47 = arith.constant 2 : index
    %c0_48 = arith.constant 0 : index
    %c0_49 = arith.constant 0 : index
    %61 = vector.load %arg3[%c2_47, %c0_48, %c0_49] : memref<4x4x256xf32, #tpu.memory_space<vmem>>, vector<1x4x256xf32>
    %62 = vector.shape_cast %61 : vector<1x4x256xf32> to vector<4x256xf32>
    %63 = vector.shape_cast %60 : vector<4x256xf32> to vector<1x4x256xf32>
    tpu.vector_store %arg3[%c2_47, %c0_48, %c0_49], %63 {strides = array<i32>} : memref<4x4x256xf32, #tpu.memory_space<vmem>>, vector<1x4x256xf32>,
    %c2_50 = arith.constant 2 : index
    %c0_51 = arith.constant 0 : index
    %c0_52 = arith.constant 0 : index
    %64 = vector.load %arg2[%c2_50, %c0_51, %c0_52] : memref<4x4x256xf32, #tpu.memory_space<vmem>>, vector<1x4x256xf32>
    %65 = vector.shape_cast %64 : vector<1x4x256xf32> to vector<4x256xf32>
    %66 = arith.mulf %65, %33 : vector<4x256xf32>
    %c2_53 = arith.constant 2 : index
    %c0_54 = arith.constant 0 : index
    %c0_55 = arith.constant 0 : index
    %67 = vector.load %arg4[%c2_53, %c0_54, %c0_55] : memref<4x4x256xf32, #tpu.memory_space<vmem>>, vector<1x4x256xf32>
    %68 = vector.shape_cast %67 : vector<1x4x256xf32> to vector<4x256xf32>
    %69 = vector.shape_cast %66 : vector<4x256xf32> to vector<1x4x256xf32>
    tpu.vector_store %arg4[%c2_53, %c0_54, %c0_55], %69 {strides = array<i32>} : memref<4x4x256xf32, #tpu.memory_space<vmem>>, vector<1x4x256xf32>,
    %c3_56 = arith.constant 3 : index
    %c0_57 = arith.constant 0 : index
    %c0_58 = arith.constant 0 : index
    %70 = vector.load %arg1[%c3_56, %c0_57, %c0_58] : memref<4x4x256xf32, #tpu.memory_space<vmem>>, vector<1x4x256xf32>
    %71 = vector.shape_cast %70 : vector<1x4x256xf32> to vector<4x256xf32>
    %72 = arith.mulf %71, %33 : vector<4x256xf32>
    %c3_59 = arith.constant 3 : index
    %c0_60 = arith.constant 0 : index
    %c0_61 = arith.constant 0 : index
    %73 = vector.load %arg3[%c3_59, %c0_60, %c0_61] : memref<4x4x256xf32, #tpu.memory_space<vmem>>, vector<1x4x256xf32>
    %74 = vector.shape_cast %73 : vector<1x4x256xf32> to vector<4x256xf32>
    %75 = vector.shape_cast %72 : vector<4x256xf32> to vector<1x4x256xf32>
    tpu.vector_store %arg3[%c3_59, %c0_60, %c0_61], %75 {strides = array<i32>} : memref<4x4x256xf32, #tpu.memory_space<vmem>>, vector<1x4x256xf32>,
    %c3_62 = arith.constant 3 : index
    %c0_63 = arith.constant 0 : index
    %c0_64 = arith.constant 0 : index
    %76 = vector.load %arg2[%c3_62, %c0_63, %c0_64] : memref<4x4x256xf32, #tpu.memory_space<vmem>>, vector<1x4x256xf32>
    %77 = vector.shape_cast %76 : vector<1x4x256xf32> to vector<4x256xf32>
    %78 = arith.mulf %77, %33 : vector<4x256xf32>
    %c3_65 = arith.constant 3 : index
    %c0_66 = arith.constant 0 : index
    %c0_67 = arith.constant 0 : index
    %79 = vector.load %arg4[%c3_65, %c0_66, %c0_67] : memref<4x4x256xf32, #tpu.memory_space<vmem>>, vector<1x4x256xf32>
    %80 = vector.shape_cast %79 : vector<1x4x256xf32> to vector<4x256xf32>
    %81 = vector.shape_cast %78 : vector<4x256xf32> to vector<1x4x256xf32>
    tpu.vector_store %arg4[%c3_65, %c0_66, %c0_67], %81 {strides = array<i32>} : memref<4x4x256xf32, #tpu.memory_space<vmem>>, vector<1x4x256xf32>,
    return
  }
  func.func @transform_0(%arg0: i32) -> (i32, i32, i32) {
    %c0_i32 = arith.constant 0 : i32
    %c0_i32_0 = arith.constant 0 : i32
    %c0_i32_1 = arith.constant 0 : i32
    return %c0_i32, %arg0, %c0_i32_0 : i32, i32, i32
  }
  func.func @transform_1(%arg0: i32) -> (i32, i32, i32) {
    %c0_i32 = arith.constant 0 : i32
    %c0_i32_0 = arith.constant 0 : i32
    %c0_i32_1 = arith.constant 0 : i32
    return %c0_i32, %arg0, %c0_i32_0 : i32, i32, i32
  }
  func.func @transform_2(%arg0: i32) -> (i32, i32, i32) {
    %c0_i32 = arith.constant 0 : i32
    %c0_i32_0 = arith.constant 0 : i32
    %c0_i32_1 = arith.constant 0 : i32
    return %c0_i32, %arg0, %c0_i32_0 : i32, i32, i32
  }
  func.func @transform_3(%arg0: i32) -> (i32, i32, i32) {
    %c0_i32 = arith.constant 0 : i32
    %c0_i32_0 = arith.constant 0 : i32
    %c0_i32_1 = arith.constant 0 : i32
    return %c0_i32, %arg0, %c0_i32_0 : i32, i32, i32
  }
}

module attributes {stable_mosaic.version = 11 : i64} {
  func.func @_sens_expand_kernel(%arg0: i32, %arg1: memref<4x256xf32, #tpu.memory_space<vmem>>, %arg2: memref<4x256xf32, #tpu.memory_space<vmem>>, %arg3: memref<4x4x256xf32, #tpu.memory_space<vmem>>, %arg4: memref<4x4x256xf32, #tpu.memory_space<vmem>>, %arg5: memref<4x4x256xf32, #tpu.memory_space<vmem>>, %arg6: memref<4x4x256xf32, #tpu.memory_space<vmem>>) attributes {dimension_semantics = [#tpu.dimension_semantics<parallel>], iteration_bounds = array<i64: 1>, scalar_prefetch = 0 : i64, scratch_operands = 0 : i64, tpu.core_type = #tpu.core_type<tc>, window_params = [{transform_indices = @transform_0, window_bounds = array<i64: 4, 256>}, {transform_indices = @transform_1, window_bounds = array<i64: 4, 256>}, {transform_indices = @transform_2, window_bounds = array<i64: 4, 4, 256>}, {transform_indices = @transform_3, window_bounds = array<i64: 4, 4, 256>}, {transform_indices = @transform_4, window_bounds = array<i64: 4, 4, 256>}, {transform_indices = @transform_5, window_bounds = array<i64: 4, 4, 256>}]} {
    %c0 = arith.constant 0 : index
    %c0_0 = arith.constant 0 : index
    %0 = vector.load %arg1[%c0, %c0_0] : memref<4x256xf32, #tpu.memory_space<vmem>>, vector<4x256xf32>
    %c0_1 = arith.constant 0 : index
    %c0_2 = arith.constant 0 : index
    %1 = vector.load %arg2[%c0_1, %c0_2] : memref<4x256xf32, #tpu.memory_space<vmem>>, vector<4x256xf32>
    %c0_3 = arith.constant 0 : index
    %c0_4 = arith.constant 0 : index
    %c0_5 = arith.constant 0 : index
    %2 = vector.load %arg3[%c0_3, %c0_4, %c0_5] : memref<4x4x256xf32, #tpu.memory_space<vmem>>, vector<1x4x256xf32>
    %3 = vector.shape_cast %2 : vector<1x4x256xf32> to vector<4x256xf32>
    %c0_6 = arith.constant 0 : index
    %c0_7 = arith.constant 0 : index
    %c0_8 = arith.constant 0 : index
    %4 = vector.load %arg4[%c0_6, %c0_7, %c0_8] : memref<4x4x256xf32, #tpu.memory_space<vmem>>, vector<1x4x256xf32>
    %5 = vector.shape_cast %4 : vector<1x4x256xf32> to vector<4x256xf32>
    %6 = arith.mulf %0, %3 : vector<4x256xf32>
    %7 = arith.mulf %1, %5 : vector<4x256xf32>
    %8 = arith.subf %6, %7 : vector<4x256xf32>
    %c0_9 = arith.constant 0 : index
    %c0_10 = arith.constant 0 : index
    %c0_11 = arith.constant 0 : index
    %9 = vector.load %arg5[%c0_9, %c0_10, %c0_11] : memref<4x4x256xf32, #tpu.memory_space<vmem>>, vector<1x4x256xf32>
    %10 = vector.shape_cast %9 : vector<1x4x256xf32> to vector<4x256xf32>
    %11 = vector.shape_cast %8 : vector<4x256xf32> to vector<1x4x256xf32>
    tpu.vector_store %arg5[%c0_9, %c0_10, %c0_11], %11 {strides = array<i32>} : memref<4x4x256xf32, #tpu.memory_space<vmem>>, vector<1x4x256xf32>,
    %12 = arith.mulf %0, %5 : vector<4x256xf32>
    %13 = arith.mulf %1, %3 : vector<4x256xf32>
    %14 = arith.addf %12, %13 : vector<4x256xf32>
    %c0_12 = arith.constant 0 : index
    %c0_13 = arith.constant 0 : index
    %c0_14 = arith.constant 0 : index
    %15 = vector.load %arg6[%c0_12, %c0_13, %c0_14] : memref<4x4x256xf32, #tpu.memory_space<vmem>>, vector<1x4x256xf32>
    %16 = vector.shape_cast %15 : vector<1x4x256xf32> to vector<4x256xf32>
    %17 = vector.shape_cast %14 : vector<4x256xf32> to vector<1x4x256xf32>
    tpu.vector_store %arg6[%c0_12, %c0_13, %c0_14], %17 {strides = array<i32>} : memref<4x4x256xf32, #tpu.memory_space<vmem>>, vector<1x4x256xf32>,
    %c1 = arith.constant 1 : index
    %c0_15 = arith.constant 0 : index
    %c0_16 = arith.constant 0 : index
    %18 = vector.load %arg3[%c1, %c0_15, %c0_16] : memref<4x4x256xf32, #tpu.memory_space<vmem>>, vector<1x4x256xf32>
    %19 = vector.shape_cast %18 : vector<1x4x256xf32> to vector<4x256xf32>
    %c1_17 = arith.constant 1 : index
    %c0_18 = arith.constant 0 : index
    %c0_19 = arith.constant 0 : index
    %20 = vector.load %arg4[%c1_17, %c0_18, %c0_19] : memref<4x4x256xf32, #tpu.memory_space<vmem>>, vector<1x4x256xf32>
    %21 = vector.shape_cast %20 : vector<1x4x256xf32> to vector<4x256xf32>
    %22 = arith.mulf %0, %19 : vector<4x256xf32>
    %23 = arith.mulf %1, %21 : vector<4x256xf32>
    %24 = arith.subf %22, %23 : vector<4x256xf32>
    %c1_20 = arith.constant 1 : index
    %c0_21 = arith.constant 0 : index
    %c0_22 = arith.constant 0 : index
    %25 = vector.load %arg5[%c1_20, %c0_21, %c0_22] : memref<4x4x256xf32, #tpu.memory_space<vmem>>, vector<1x4x256xf32>
    %26 = vector.shape_cast %25 : vector<1x4x256xf32> to vector<4x256xf32>
    %27 = vector.shape_cast %24 : vector<4x256xf32> to vector<1x4x256xf32>
    tpu.vector_store %arg5[%c1_20, %c0_21, %c0_22], %27 {strides = array<i32>} : memref<4x4x256xf32, #tpu.memory_space<vmem>>, vector<1x4x256xf32>,
    %28 = arith.mulf %0, %21 : vector<4x256xf32>
    %29 = arith.mulf %1, %19 : vector<4x256xf32>
    %30 = arith.addf %28, %29 : vector<4x256xf32>
    %c1_23 = arith.constant 1 : index
    %c0_24 = arith.constant 0 : index
    %c0_25 = arith.constant 0 : index
    %31 = vector.load %arg6[%c1_23, %c0_24, %c0_25] : memref<4x4x256xf32, #tpu.memory_space<vmem>>, vector<1x4x256xf32>
    %32 = vector.shape_cast %31 : vector<1x4x256xf32> to vector<4x256xf32>
    %33 = vector.shape_cast %30 : vector<4x256xf32> to vector<1x4x256xf32>
    tpu.vector_store %arg6[%c1_23, %c0_24, %c0_25], %33 {strides = array<i32>} : memref<4x4x256xf32, #tpu.memory_space<vmem>>, vector<1x4x256xf32>,
    %c2 = arith.constant 2 : index
    %c0_26 = arith.constant 0 : index
    %c0_27 = arith.constant 0 : index
    %34 = vector.load %arg3[%c2, %c0_26, %c0_27] : memref<4x4x256xf32, #tpu.memory_space<vmem>>, vector<1x4x256xf32>
    %35 = vector.shape_cast %34 : vector<1x4x256xf32> to vector<4x256xf32>
    %c2_28 = arith.constant 2 : index
    %c0_29 = arith.constant 0 : index
    %c0_30 = arith.constant 0 : index
    %36 = vector.load %arg4[%c2_28, %c0_29, %c0_30] : memref<4x4x256xf32, #tpu.memory_space<vmem>>, vector<1x4x256xf32>
    %37 = vector.shape_cast %36 : vector<1x4x256xf32> to vector<4x256xf32>
    %38 = arith.mulf %0, %35 : vector<4x256xf32>
    %39 = arith.mulf %1, %37 : vector<4x256xf32>
    %40 = arith.subf %38, %39 : vector<4x256xf32>
    %c2_31 = arith.constant 2 : index
    %c0_32 = arith.constant 0 : index
    %c0_33 = arith.constant 0 : index
    %41 = vector.load %arg5[%c2_31, %c0_32, %c0_33] : memref<4x4x256xf32, #tpu.memory_space<vmem>>, vector<1x4x256xf32>
    %42 = vector.shape_cast %41 : vector<1x4x256xf32> to vector<4x256xf32>
    %43 = vector.shape_cast %40 : vector<4x256xf32> to vector<1x4x256xf32>
    tpu.vector_store %arg5[%c2_31, %c0_32, %c0_33], %43 {strides = array<i32>} : memref<4x4x256xf32, #tpu.memory_space<vmem>>, vector<1x4x256xf32>,
    %44 = arith.mulf %0, %37 : vector<4x256xf32>
    %45 = arith.mulf %1, %35 : vector<4x256xf32>
    %46 = arith.addf %44, %45 : vector<4x256xf32>
    %c2_34 = arith.constant 2 : index
    %c0_35 = arith.constant 0 : index
    %c0_36 = arith.constant 0 : index
    %47 = vector.load %arg6[%c2_34, %c0_35, %c0_36] : memref<4x4x256xf32, #tpu.memory_space<vmem>>, vector<1x4x256xf32>
    %48 = vector.shape_cast %47 : vector<1x4x256xf32> to vector<4x256xf32>
    %49 = vector.shape_cast %46 : vector<4x256xf32> to vector<1x4x256xf32>
    tpu.vector_store %arg6[%c2_34, %c0_35, %c0_36], %49 {strides = array<i32>} : memref<4x4x256xf32, #tpu.memory_space<vmem>>, vector<1x4x256xf32>,
    %c3 = arith.constant 3 : index
    %c0_37 = arith.constant 0 : index
    %c0_38 = arith.constant 0 : index
    %50 = vector.load %arg3[%c3, %c0_37, %c0_38] : memref<4x4x256xf32, #tpu.memory_space<vmem>>, vector<1x4x256xf32>
    %51 = vector.shape_cast %50 : vector<1x4x256xf32> to vector<4x256xf32>
    %c3_39 = arith.constant 3 : index
    %c0_40 = arith.constant 0 : index
    %c0_41 = arith.constant 0 : index
    %52 = vector.load %arg4[%c3_39, %c0_40, %c0_41] : memref<4x4x256xf32, #tpu.memory_space<vmem>>, vector<1x4x256xf32>
    %53 = vector.shape_cast %52 : vector<1x4x256xf32> to vector<4x256xf32>
    %54 = arith.mulf %0, %51 : vector<4x256xf32>
    %55 = arith.mulf %1, %53 : vector<4x256xf32>
    %56 = arith.subf %54, %55 : vector<4x256xf32>
    %c3_42 = arith.constant 3 : index
    %c0_43 = arith.constant 0 : index
    %c0_44 = arith.constant 0 : index
    %57 = vector.load %arg5[%c3_42, %c0_43, %c0_44] : memref<4x4x256xf32, #tpu.memory_space<vmem>>, vector<1x4x256xf32>
    %58 = vector.shape_cast %57 : vector<1x4x256xf32> to vector<4x256xf32>
    %59 = vector.shape_cast %56 : vector<4x256xf32> to vector<1x4x256xf32>
    tpu.vector_store %arg5[%c3_42, %c0_43, %c0_44], %59 {strides = array<i32>} : memref<4x4x256xf32, #tpu.memory_space<vmem>>, vector<1x4x256xf32>,
    %60 = arith.mulf %0, %53 : vector<4x256xf32>
    %61 = arith.mulf %1, %51 : vector<4x256xf32>
    %62 = arith.addf %60, %61 : vector<4x256xf32>
    %c3_45 = arith.constant 3 : index
    %c0_46 = arith.constant 0 : index
    %c0_47 = arith.constant 0 : index
    %63 = vector.load %arg6[%c3_45, %c0_46, %c0_47] : memref<4x4x256xf32, #tpu.memory_space<vmem>>, vector<1x4x256xf32>
    %64 = vector.shape_cast %63 : vector<1x4x256xf32> to vector<4x256xf32>
    %65 = vector.shape_cast %62 : vector<4x256xf32> to vector<1x4x256xf32>
    tpu.vector_store %arg6[%c3_45, %c0_46, %c0_47], %65 {strides = array<i32>} : memref<4x4x256xf32, #tpu.memory_space<vmem>>, vector<1x4x256xf32>,
    return
  }
  func.func @transform_0(%arg0: i32) -> (i32, i32) {
    %c0_i32 = arith.constant 0 : i32
    %c0_i32_0 = arith.constant 0 : i32
    return %arg0, %c0_i32 : i32, i32
  }
  func.func @transform_1(%arg0: i32) -> (i32, i32) {
    %c0_i32 = arith.constant 0 : i32
    %c0_i32_0 = arith.constant 0 : i32
    return %arg0, %c0_i32 : i32, i32
  }
  func.func @transform_2(%arg0: i32) -> (i32, i32, i32) {
    %c0_i32 = arith.constant 0 : i32
    %c0_i32_0 = arith.constant 0 : i32
    %c0_i32_1 = arith.constant 0 : i32
    return %c0_i32, %arg0, %c0_i32_0 : i32, i32, i32
  }
  func.func @transform_3(%arg0: i32) -> (i32, i32, i32) {
    %c0_i32 = arith.constant 0 : i32
    %c0_i32_0 = arith.constant 0 : i32
    %c0_i32_1 = arith.constant 0 : i32
    return %c0_i32, %arg0, %c0_i32_0 : i32, i32, i32
  }
  func.func @transform_4(%arg0: i32) -> (i32, i32, i32) {
    %c0_i32 = arith.constant 0 : i32
    %c0_i32_0 = arith.constant 0 : i32
    %c0_i32_1 = arith.constant 0 : i32
    return %c0_i32, %arg0, %c0_i32_0 : i32, i32, i32
  }
  func.func @transform_5(%arg0: i32) -> (i32, i32, i32) {
    %c0_i32 = arith.constant 0 : i32
    %c0_i32_0 = arith.constant 0 : i32
    %c0_i32_1 = arith.constant 0 : i32
    return %c0_i32, %arg0, %c0_i32_0 : i32, i32, i32
  }
}

module attributes {stable_mosaic.version = 11 : i64} {
  func.func @_sens_reduce_kernel(%arg0: i32, %arg1: memref<4x4x256xf32, #tpu.memory_space<vmem>>, %arg2: memref<4x4x256xf32, #tpu.memory_space<vmem>>, %arg3: memref<4x4x256xf32, #tpu.memory_space<vmem>>, %arg4: memref<4x4x256xf32, #tpu.memory_space<vmem>>, %arg5: memref<4x256xf32, #tpu.memory_space<vmem>>, %arg6: memref<4x256xf32, #tpu.memory_space<vmem>>, %arg7: memref<4x2xf32, #tpu.memory_space<vmem>>) attributes {dimension_semantics = [#tpu.dimension_semantics<parallel>], iteration_bounds = array<i64: 1>, scalar_prefetch = 0 : i64, scratch_operands = 0 : i64, tpu.core_type = #tpu.core_type<tc>, window_params = [{transform_indices = @transform_0, window_bounds = array<i64: 4, 4, 256>}, {transform_indices = @transform_1, window_bounds = array<i64: 4, 4, 256>}, {transform_indices = @transform_2, window_bounds = array<i64: 4, 4, 256>}, {transform_indices = @transform_3, window_bounds = array<i64: 4, 4, 256>}, {transform_indices = @transform_4, window_bounds = array<i64: 4, 256>}, {transform_indices = @transform_5, window_bounds = array<i64: 4, 256>}, {transform_indices = @transform_6, window_bounds = array<i64: 4, 2>}]} {
    %c0 = arith.constant 0 : index
    %c0_0 = arith.constant 0 : index
    %c0_1 = arith.constant 0 : index
    %0 = vector.load %arg1[%c0, %c0_0, %c0_1] : memref<4x4x256xf32, #tpu.memory_space<vmem>>, vector<1x4x256xf32>
    %1 = vector.shape_cast %0 : vector<1x4x256xf32> to vector<4x256xf32>
    %c0_2 = arith.constant 0 : index
    %c0_3 = arith.constant 0 : index
    %c0_4 = arith.constant 0 : index
    %2 = vector.load %arg2[%c0_2, %c0_3, %c0_4] : memref<4x4x256xf32, #tpu.memory_space<vmem>>, vector<1x4x256xf32>
    %3 = vector.shape_cast %2 : vector<1x4x256xf32> to vector<4x256xf32>
    %c0_5 = arith.constant 0 : index
    %c0_6 = arith.constant 0 : index
    %c0_7 = arith.constant 0 : index
    %4 = vector.load %arg3[%c0_5, %c0_6, %c0_7] : memref<4x4x256xf32, #tpu.memory_space<vmem>>, vector<1x4x256xf32>
    %5 = vector.shape_cast %4 : vector<1x4x256xf32> to vector<4x256xf32>
    %c0_8 = arith.constant 0 : index
    %c0_9 = arith.constant 0 : index
    %c0_10 = arith.constant 0 : index
    %6 = vector.load %arg4[%c0_8, %c0_9, %c0_10] : memref<4x4x256xf32, #tpu.memory_space<vmem>>, vector<1x4x256xf32>
    %7 = vector.shape_cast %6 : vector<1x4x256xf32> to vector<4x256xf32>
    %8 = arith.mulf %1, %5 : vector<4x256xf32>
    %9 = arith.mulf %3, %7 : vector<4x256xf32>
    %10 = arith.addf %8, %9 : vector<4x256xf32>
    %11 = arith.mulf %3, %5 : vector<4x256xf32>
    %12 = arith.mulf %1, %7 : vector<4x256xf32>
    %13 = arith.subf %11, %12 : vector<4x256xf32>
    %c1 = arith.constant 1 : index
    %c0_11 = arith.constant 0 : index
    %c0_12 = arith.constant 0 : index
    %14 = vector.load %arg1[%c1, %c0_11, %c0_12] : memref<4x4x256xf32, #tpu.memory_space<vmem>>, vector<1x4x256xf32>
    %15 = vector.shape_cast %14 : vector<1x4x256xf32> to vector<4x256xf32>
    %c1_13 = arith.constant 1 : index
    %c0_14 = arith.constant 0 : index
    %c0_15 = arith.constant 0 : index
    %16 = vector.load %arg2[%c1_13, %c0_14, %c0_15] : memref<4x4x256xf32, #tpu.memory_space<vmem>>, vector<1x4x256xf32>
    %17 = vector.shape_cast %16 : vector<1x4x256xf32> to vector<4x256xf32>
    %c1_16 = arith.constant 1 : index
    %c0_17 = arith.constant 0 : index
    %c0_18 = arith.constant 0 : index
    %18 = vector.load %arg3[%c1_16, %c0_17, %c0_18] : memref<4x4x256xf32, #tpu.memory_space<vmem>>, vector<1x4x256xf32>
    %19 = vector.shape_cast %18 : vector<1x4x256xf32> to vector<4x256xf32>
    %c1_19 = arith.constant 1 : index
    %c0_20 = arith.constant 0 : index
    %c0_21 = arith.constant 0 : index
    %20 = vector.load %arg4[%c1_19, %c0_20, %c0_21] : memref<4x4x256xf32, #tpu.memory_space<vmem>>, vector<1x4x256xf32>
    %21 = vector.shape_cast %20 : vector<1x4x256xf32> to vector<4x256xf32>
    %22 = arith.mulf %15, %19 : vector<4x256xf32>
    %23 = arith.mulf %17, %21 : vector<4x256xf32>
    %24 = arith.addf %22, %23 : vector<4x256xf32>
    %25 = arith.mulf %17, %19 : vector<4x256xf32>
    %26 = arith.mulf %15, %21 : vector<4x256xf32>
    %27 = arith.subf %25, %26 : vector<4x256xf32>
    %28 = arith.addf %10, %24 : vector<4x256xf32>
    %29 = arith.addf %13, %27 : vector<4x256xf32>
    %c2 = arith.constant 2 : index
    %c0_22 = arith.constant 0 : index
    %c0_23 = arith.constant 0 : index
    %30 = vector.load %arg1[%c2, %c0_22, %c0_23] : memref<4x4x256xf32, #tpu.memory_space<vmem>>, vector<1x4x256xf32>
    %31 = vector.shape_cast %30 : vector<1x4x256xf32> to vector<4x256xf32>
    %c2_24 = arith.constant 2 : index
    %c0_25 = arith.constant 0 : index
    %c0_26 = arith.constant 0 : index
    %32 = vector.load %arg2[%c2_24, %c0_25, %c0_26] : memref<4x4x256xf32, #tpu.memory_space<vmem>>, vector<1x4x256xf32>
    %33 = vector.shape_cast %32 : vector<1x4x256xf32> to vector<4x256xf32>
    %c2_27 = arith.constant 2 : index
    %c0_28 = arith.constant 0 : index
    %c0_29 = arith.constant 0 : index
    %34 = vector.load %arg3[%c2_27, %c0_28, %c0_29] : memref<4x4x256xf32, #tpu.memory_space<vmem>>, vector<1x4x256xf32>
    %35 = vector.shape_cast %34 : vector<1x4x256xf32> to vector<4x256xf32>
    %c2_30 = arith.constant 2 : index
    %c0_31 = arith.constant 0 : index
    %c0_32 = arith.constant 0 : index
    %36 = vector.load %arg4[%c2_30, %c0_31, %c0_32] : memref<4x4x256xf32, #tpu.memory_space<vmem>>, vector<1x4x256xf32>
    %37 = vector.shape_cast %36 : vector<1x4x256xf32> to vector<4x256xf32>
    %38 = arith.mulf %31, %35 : vector<4x256xf32>
    %39 = arith.mulf %33, %37 : vector<4x256xf32>
    %40 = arith.addf %38, %39 : vector<4x256xf32>
    %41 = arith.mulf %33, %35 : vector<4x256xf32>
    %42 = arith.mulf %31, %37 : vector<4x256xf32>
    %43 = arith.subf %41, %42 : vector<4x256xf32>
    %44 = arith.addf %28, %40 : vector<4x256xf32>
    %45 = arith.addf %29, %43 : vector<4x256xf32>
    %c3 = arith.constant 3 : index
    %c0_33 = arith.constant 0 : index
    %c0_34 = arith.constant 0 : index
    %46 = vector.load %arg1[%c3, %c0_33, %c0_34] : memref<4x4x256xf32, #tpu.memory_space<vmem>>, vector<1x4x256xf32>
    %47 = vector.shape_cast %46 : vector<1x4x256xf32> to vector<4x256xf32>
    %c3_35 = arith.constant 3 : index
    %c0_36 = arith.constant 0 : index
    %c0_37 = arith.constant 0 : index
    %48 = vector.load %arg2[%c3_35, %c0_36, %c0_37] : memref<4x4x256xf32, #tpu.memory_space<vmem>>, vector<1x4x256xf32>
    %49 = vector.shape_cast %48 : vector<1x4x256xf32> to vector<4x256xf32>
    %c3_38 = arith.constant 3 : index
    %c0_39 = arith.constant 0 : index
    %c0_40 = arith.constant 0 : index
    %50 = vector.load %arg3[%c3_38, %c0_39, %c0_40] : memref<4x4x256xf32, #tpu.memory_space<vmem>>, vector<1x4x256xf32>
    %51 = vector.shape_cast %50 : vector<1x4x256xf32> to vector<4x256xf32>
    %c3_41 = arith.constant 3 : index
    %c0_42 = arith.constant 0 : index
    %c0_43 = arith.constant 0 : index
    %52 = vector.load %arg4[%c3_41, %c0_42, %c0_43] : memref<4x4x256xf32, #tpu.memory_space<vmem>>, vector<1x4x256xf32>
    %53 = vector.shape_cast %52 : vector<1x4x256xf32> to vector<4x256xf32>
    %54 = arith.mulf %47, %51 : vector<4x256xf32>
    %55 = arith.mulf %49, %53 : vector<4x256xf32>
    %56 = arith.addf %54, %55 : vector<4x256xf32>
    %57 = arith.mulf %49, %51 : vector<4x256xf32>
    %58 = arith.mulf %47, %53 : vector<4x256xf32>
    %59 = arith.subf %57, %58 : vector<4x256xf32>
    %60 = arith.addf %44, %56 : vector<4x256xf32>
    %61 = arith.addf %45, %59 : vector<4x256xf32>
    %c0_44 = arith.constant 0 : index
    %c0_45 = arith.constant 0 : index
    %62 = vector.load %arg5[%c0_44, %c0_45] : memref<4x256xf32, #tpu.memory_space<vmem>>, vector<4x256xf32>
    tpu.vector_store %arg5[%c0_44, %c0_45], %60 {strides = array<i32>} : memref<4x256xf32, #tpu.memory_space<vmem>>, vector<4x256xf32>,
    %c0_46 = arith.constant 0 : index
    %c0_47 = arith.constant 0 : index
    %63 = vector.load %arg6[%c0_46, %c0_47] : memref<4x256xf32, #tpu.memory_space<vmem>>, vector<4x256xf32>
    tpu.vector_store %arg6[%c0_46, %c0_47], %61 {strides = array<i32>} : memref<4x256xf32, #tpu.memory_space<vmem>>, vector<4x256xf32>,
    %cst = arith.constant dense<0.000000e+00> : vector<4xf32>
    %64 = vector.multi_reduction <add>, %60, %cst [1] : vector<4x256xf32> to vector<4xf32>
    %65 = vector.shape_cast %64 : vector<4xf32> to vector<4x1xf32>
    %cst_48 = arith.constant dense<0.000000e+00> : vector<4xf32>
    %66 = vector.multi_reduction <add>, %61, %cst_48 [1] : vector<4x256xf32> to vector<4xf32>
    %67 = vector.shape_cast %66 : vector<4xf32> to vector<4x1xf32>
    %68 = arith.addf %65, %67 : vector<4x1xf32>
    %69 = arith.mulf %60, %60 : vector<4x256xf32>
    %cst_49 = arith.constant dense<0.000000e+00> : vector<4xf32>
    %70 = vector.multi_reduction <add>, %69, %cst_49 [1] : vector<4x256xf32> to vector<4xf32>
    %71 = vector.shape_cast %70 : vector<4xf32> to vector<4x1xf32>
    %72 = arith.mulf %61, %61 : vector<4x256xf32>
    %cst_50 = arith.constant dense<0.000000e+00> : vector<4xf32>
    %73 = vector.multi_reduction <add>, %72, %cst_50 [1] : vector<4x256xf32> to vector<4xf32>
    %74 = vector.shape_cast %73 : vector<4xf32> to vector<4x1xf32>
    %75 = arith.addf %71, %74 : vector<4x1xf32>
    %c0_51 = arith.constant 0 : index
    %c0_52 = arith.constant 0 : index
    %76 = vector.load %arg7[%c0_51, %c0_52] : memref<4x2xf32, #tpu.memory_space<vmem>>, vector<4x1xf32>
    tpu.vector_store %arg7[%c0_51, %c0_52], %68 {strides = array<i32>} : memref<4x2xf32, #tpu.memory_space<vmem>>, vector<4x1xf32>,
    %c0_53 = arith.constant 0 : index
    %c1_54 = arith.constant 1 : index
    %77 = vector.load %arg7[%c0_53, %c1_54] : memref<4x2xf32, #tpu.memory_space<vmem>>, vector<4x1xf32>
    tpu.vector_store %arg7[%c0_53, %c1_54], %75 {strides = array<i32>} : memref<4x2xf32, #tpu.memory_space<vmem>>, vector<4x1xf32>,
    return
  }
  func.func @transform_0(%arg0: i32) -> (i32, i32, i32) {
    %c0_i32 = arith.constant 0 : i32
    %c0_i32_0 = arith.constant 0 : i32
    %c0_i32_1 = arith.constant 0 : i32
    return %c0_i32, %arg0, %c0_i32_0 : i32, i32, i32
  }
  func.func @transform_1(%arg0: i32) -> (i32, i32, i32) {
    %c0_i32 = arith.constant 0 : i32
    %c0_i32_0 = arith.constant 0 : i32
    %c0_i32_1 = arith.constant 0 : i32
    return %c0_i32, %arg0, %c0_i32_0 : i32, i32, i32
  }
  func.func @transform_2(%arg0: i32) -> (i32, i32, i32) {
    %c0_i32 = arith.constant 0 : i32
    %c0_i32_0 = arith.constant 0 : i32
    %c0_i32_1 = arith.constant 0 : i32
    return %c0_i32, %arg0, %c0_i32_0 : i32, i32, i32
  }
  func.func @transform_3(%arg0: i32) -> (i32, i32, i32) {
    %c0_i32 = arith.constant 0 : i32
    %c0_i32_0 = arith.constant 0 : i32
    %c0_i32_1 = arith.constant 0 : i32
    return %c0_i32, %arg0, %c0_i32_0 : i32, i32, i32
  }
  func.func @transform_4(%arg0: i32) -> (i32, i32) {
    %c0_i32 = arith.constant 0 : i32
    %c0_i32_0 = arith.constant 0 : i32
    return %arg0, %c0_i32 : i32, i32
  }
  func.func @transform_5(%arg0: i32) -> (i32, i32) {
    %c0_i32 = arith.constant 0 : i32
    %c0_i32_0 = arith.constant 0 : i32
    return %arg0, %c0_i32 : i32, i32
  }
  func.func @transform_6(%arg0: i32) -> (i32, i32) {
    %c0_i32 = arith.constant 0 : i32
    %c0_i32_0 = arith.constant 0 : i32
    return %arg0, %c0_i32 : i32, i32
  }
}

module attributes {stable_mosaic.version = 11 : i64} {
  func.func @_cascade_fused_kernel(%arg0: i32, %arg1: memref<4x1xf32, #tpu.memory_space<vmem>>, %arg2: memref<4x1xf32, #tpu.memory_space<vmem>>, %arg3: memref<4x256xf32, #tpu.memory_space<vmem>>, %arg4: memref<4x256xf32, #tpu.memory_space<vmem>>, %arg5: memref<4x256xf32, #tpu.memory_space<vmem>>, %arg6: memref<4x256xf32, #tpu.memory_space<vmem>>, %arg7: memref<4x256xf32, #tpu.memory_space<vmem>>, %arg8: memref<4x256xf32, #tpu.memory_space<vmem>>, %arg9: memref<4x256xf32, #tpu.memory_space<vmem>>, %arg10: memref<4x256xf32, #tpu.memory_space<vmem>>, %arg11: memref<1xf32, #tpu.memory_space<smem>>, %arg12: memref<16x8xf32, #tpu.memory_space<smem>>, %arg13: memref<16xf32, #tpu.memory_space<smem>>, %arg14: memref<4x16xf32, #tpu.memory_space<smem>>, %arg15: memref<4xf32, #tpu.memory_space<smem>>, %arg16: memref<4x256xf32, #tpu.memory_space<vmem>>, %arg17: memref<4x256xf32, #tpu.memory_space<vmem>>, %arg18: memref<4x256xf32, #tpu.memory_space<vmem>>, %arg19: memref<4x256xf32, #tpu.memory_space<vmem>>, %arg20: memref<4x2xf32, #tpu.memory_space<vmem>>) attributes {dimension_semantics = [#tpu.dimension_semantics<parallel>], iteration_bounds = array<i64: 1>, scalar_prefetch = 0 : i64, scratch_operands = 0 : i64, tpu.core_type = #tpu.core_type<tc>, window_params = [{transform_indices = @transform_0, window_bounds = array<i64: 4, 1>}, {transform_indices = @transform_1, window_bounds = array<i64: 4, 1>}, {transform_indices = @transform_2, window_bounds = array<i64: 4, 256>}, {transform_indices = @transform_3, window_bounds = array<i64: 4, 256>}, {transform_indices = @transform_4, window_bounds = array<i64: 4, 256>}, {transform_indices = @transform_5, window_bounds = array<i64: 4, 256>}, {transform_indices = @transform_6, window_bounds = array<i64: 4, 256>}, {transform_indices = @transform_7, window_bounds = array<i64: 4, 256>}, {transform_indices = @transform_8, window_bounds = array<i64: 4, 256>}, {transform_indices = @transform_9, window_bounds = array<i64: 4, 256>}, {transform_indices = @transform_10, window_bounds = array<i64: 1>}, {transform_indices = @transform_11, window_bounds = array<i64: 16, 8>}, {transform_indices = @transform_12, window_bounds = array<i64: 16>}, {transform_indices = @transform_13, window_bounds = array<i64: 4, 16>}, {transform_indices = @transform_14, window_bounds = array<i64: 4>}, {transform_indices = @transform_15, window_bounds = array<i64: 4, 256>}, {transform_indices = @transform_16, window_bounds = array<i64: 4, 256>}, {transform_indices = @transform_17, window_bounds = array<i64: 4, 256>}, {transform_indices = @transform_18, window_bounds = array<i64: 4, 256>}, {transform_indices = @transform_19, window_bounds = array<i64: 4, 2>}]} {
    %c0 = arith.constant 0 : index
    %c0_0 = arith.constant 0 : index
    %0 = vector.load %arg3[%c0, %c0_0] : memref<4x256xf32, #tpu.memory_space<vmem>>, vector<4x256xf32>
    %c0_1 = arith.constant 0 : index
    %c0_2 = arith.constant 0 : index
    %1 = vector.load %arg4[%c0_1, %c0_2] : memref<4x256xf32, #tpu.memory_space<vmem>>, vector<4x256xf32>
    %c0_3 = arith.constant 0 : index
    %c0_4 = arith.constant 0 : index
    %2 = vector.load %arg5[%c0_3, %c0_4] : memref<4x256xf32, #tpu.memory_space<vmem>>, vector<4x256xf32>
    %c0_5 = arith.constant 0 : index
    %c0_6 = arith.constant 0 : index
    %3 = vector.load %arg6[%c0_5, %c0_6] : memref<4x256xf32, #tpu.memory_space<vmem>>, vector<4x256xf32>
    %c0_7 = arith.constant 0 : index
    %c0_8 = arith.constant 0 : index
    %4 = vector.load %arg7[%c0_7, %c0_8] : memref<4x256xf32, #tpu.memory_space<vmem>>, vector<4x256xf32>
    %c0_9 = arith.constant 0 : index
    %c0_10 = arith.constant 0 : index
    %5 = vector.load %arg8[%c0_9, %c0_10] : memref<4x256xf32, #tpu.memory_space<vmem>>, vector<4x256xf32>
    %c0_11 = arith.constant 0 : index
    %c0_12 = arith.constant 0 : index
    %6 = vector.load %arg9[%c0_11, %c0_12] : memref<4x256xf32, #tpu.memory_space<vmem>>, vector<4x256xf32>
    %c0_13 = arith.constant 0 : index
    %c0_14 = arith.constant 0 : index
    %7 = vector.load %arg10[%c0_13, %c0_14] : memref<4x256xf32, #tpu.memory_space<vmem>>, vector<4x256xf32>
    %c0_15 = arith.constant 0 : index
    %c0_16 = arith.constant 0 : index
    %8 = vector.load %arg1[%c0_15, %c0_16] : memref<4x1xf32, #tpu.memory_space<vmem>>, vector<4x1xf32>
    %9 = vector.shape_cast %8 : vector<4x1xf32> to vector<4x1xf32>
    %10 = vector.broadcast %9 : vector<4x1xf32> to vector<4x256xf32>
    %c0_17 = arith.constant 0 : index
    %c0_18 = arith.constant 0 : index
    %11 = vector.load %arg2[%c0_17, %c0_18] : memref<4x1xf32, #tpu.memory_space<vmem>>, vector<4x1xf32>
    %12 = vector.shape_cast %11 : vector<4x1xf32> to vector<4x1xf32>
    %13 = vector.broadcast %12 : vector<4x1xf32> to vector<4x256xf32>
    %cst = arith.constant 9.99999996E-13 : f32
    %14 = vector.broadcast %cst : f32 to vector<4x256xf32>
    %15 = arith.maximumf %13, %14 : vector<4x256xf32>
    %cst_19 = arith.constant 1.000000e+00 : f32
    %16 = vector.broadcast %cst_19 : f32 to vector<4x256xf32>
    %17 = arith.divf %16, %15 : vector<4x256xf32>
    %c0_20 = arith.constant 0 : index
    %18 = memref.load %arg11[%c0_20] : memref<1xf32, #tpu.memory_space<smem>>
    %19 = arith.subf %0, %10 : vector<4x256xf32>
    %20 = arith.mulf %19, %17 : vector<4x256xf32>
    %21 = arith.subf %2, %10 : vector<4x256xf32>
    %22 = arith.mulf %21, %17 : vector<4x256xf32>
    %23 = arith.subf %4, %10 : vector<4x256xf32>
    %24 = arith.mulf %23, %17 : vector<4x256xf32>
    %25 = arith.subf %6, %10 : vector<4x256xf32>
    %26 = arith.mulf %25, %17 : vector<4x256xf32>
    %27 = arith.subf %1, %10 : vector<4x256xf32>
    %28 = arith.mulf %27, %17 : vector<4x256xf32>
    %29 = arith.subf %3, %10 : vector<4x256xf32>
    %30 = arith.mulf %29, %17 : vector<4x256xf32>
    %31 = arith.subf %5, %10 : vector<4x256xf32>
    %32 = arith.mulf %31, %17 : vector<4x256xf32>
    %33 = arith.subf %7, %10 : vector<4x256xf32>
    %34 = arith.mulf %33, %17 : vector<4x256xf32>
    %c0_21 = arith.constant 0 : index
    %c0_22 = arith.constant 0 : index
    %35 = memref.load %arg12[%c0_21, %c0_22] : memref<16x8xf32, #tpu.memory_space<smem>>
    %36 = vector.broadcast %35 : f32 to vector<4x256xf32>
    %37 = arith.mulf %20, %36 : vector<4x256xf32>
    %c0_23 = arith.constant 0 : index
    %c1 = arith.constant 1 : index
    %38 = memref.load %arg12[%c0_23, %c1] : memref<16x8xf32, #tpu.memory_space<smem>>
    %39 = vector.broadcast %38 : f32 to vector<4x256xf32>
    %40 = arith.mulf %22, %39 : vector<4x256xf32>
    %41 = arith.addf %37, %40 : vector<4x256xf32>
    %c0_24 = arith.constant 0 : index
    %c2 = arith.constant 2 : index
    %42 = memref.load %arg12[%c0_24, %c2] : memref<16x8xf32, #tpu.memory_space<smem>>
    %43 = vector.broadcast %42 : f32 to vector<4x256xf32>
    %44 = arith.mulf %24, %43 : vector<4x256xf32>
    %45 = arith.addf %41, %44 : vector<4x256xf32>
    %c0_25 = arith.constant 0 : index
    %c3 = arith.constant 3 : index
    %46 = memref.load %arg12[%c0_25, %c3] : memref<16x8xf32, #tpu.memory_space<smem>>
    %47 = vector.broadcast %46 : f32 to vector<4x256xf32>
    %48 = arith.mulf %26, %47 : vector<4x256xf32>
    %49 = arith.addf %45, %48 : vector<4x256xf32>
    %c0_26 = arith.constant 0 : index
    %c4 = arith.constant 4 : index
    %50 = memref.load %arg12[%c0_26, %c4] : memref<16x8xf32, #tpu.memory_space<smem>>
    %51 = vector.broadcast %50 : f32 to vector<4x256xf32>
    %52 = arith.mulf %28, %51 : vector<4x256xf32>
    %53 = arith.addf %49, %52 : vector<4x256xf32>
    %c0_27 = arith.constant 0 : index
    %c5 = arith.constant 5 : index
    %54 = memref.load %arg12[%c0_27, %c5] : memref<16x8xf32, #tpu.memory_space<smem>>
    %55 = vector.broadcast %54 : f32 to vector<4x256xf32>
    %56 = arith.mulf %30, %55 : vector<4x256xf32>
    %57 = arith.addf %53, %56 : vector<4x256xf32>
    %c0_28 = arith.constant 0 : index
    %c6 = arith.constant 6 : index
    %58 = memref.load %arg12[%c0_28, %c6] : memref<16x8xf32, #tpu.memory_space<smem>>
    %59 = vector.broadcast %58 : f32 to vector<4x256xf32>
    %60 = arith.mulf %32, %59 : vector<4x256xf32>
    %61 = arith.addf %57, %60 : vector<4x256xf32>
    %c0_29 = arith.constant 0 : index
    %c7 = arith.constant 7 : index
    %62 = memref.load %arg12[%c0_29, %c7] : memref<16x8xf32, #tpu.memory_space<smem>>
    %63 = vector.broadcast %62 : f32 to vector<4x256xf32>
    %64 = arith.mulf %34, %63 : vector<4x256xf32>
    %65 = arith.addf %61, %64 : vector<4x256xf32>
    %c0_30 = arith.constant 0 : index
    %66 = memref.load %arg13[%c0_30] : memref<16xf32, #tpu.memory_space<smem>>
    %67 = vector.broadcast %66 : f32 to vector<4x256xf32>
    %68 = arith.addf %65, %67 : vector<4x256xf32>
    %cst_31 = arith.constant 0.000000e+00 : f32
    %69 = vector.broadcast %cst_31 : f32 to vector<4x256xf32>
    %70 = arith.maximumf %68, %69 : vector<4x256xf32>
    %c0_32 = arith.constant 0 : index
    %c0_33 = arith.constant 0 : index
    %71 = memref.load %arg14[%c0_32, %c0_33] : memref<4x16xf32, #tpu.memory_space<smem>>
    %72 = vector.broadcast %71 : f32 to vector<4x256xf32>
    %73 = arith.mulf %70, %72 : vector<4x256xf32>
    %c1_34 = arith.constant 1 : index
    %c0_35 = arith.constant 0 : index
    %74 = memref.load %arg14[%c1_34, %c0_35] : memref<4x16xf32, #tpu.memory_space<smem>>
    %75 = vector.broadcast %74 : f32 to vector<4x256xf32>
    %76 = arith.mulf %70, %75 : vector<4x256xf32>
    %c2_36 = arith.constant 2 : index
    %c0_37 = arith.constant 0 : index
    %77 = memref.load %arg14[%c2_36, %c0_37] : memref<4x16xf32, #tpu.memory_space<smem>>
    %78 = vector.broadcast %77 : f32 to vector<4x256xf32>
    %79 = arith.mulf %70, %78 : vector<4x256xf32>
    %c3_38 = arith.constant 3 : index
    %c0_39 = arith.constant 0 : index
    %80 = memref.load %arg14[%c3_38, %c0_39] : memref<4x16xf32, #tpu.memory_space<smem>>
    %81 = vector.broadcast %80 : f32 to vector<4x256xf32>
    %82 = arith.mulf %70, %81 : vector<4x256xf32>
    %c1_40 = arith.constant 1 : index
    %c0_41 = arith.constant 0 : index
    %83 = memref.load %arg12[%c1_40, %c0_41] : memref<16x8xf32, #tpu.memory_space<smem>>
    %84 = vector.broadcast %83 : f32 to vector<4x256xf32>
    %85 = arith.mulf %20, %84 : vector<4x256xf32>
    %c1_42 = arith.constant 1 : index
    %c1_43 = arith.constant 1 : index
    %86 = memref.load %arg12[%c1_42, %c1_43] : memref<16x8xf32, #tpu.memory_space<smem>>
    %87 = vector.broadcast %86 : f32 to vector<4x256xf32>
    %88 = arith.mulf %22, %87 : vector<4x256xf32>
    %89 = arith.addf %85, %88 : vector<4x256xf32>
    %c1_44 = arith.constant 1 : index
    %c2_45 = arith.constant 2 : index
    %90 = memref.load %arg12[%c1_44, %c2_45] : memref<16x8xf32, #tpu.memory_space<smem>>
    %91 = vector.broadcast %90 : f32 to vector<4x256xf32>
    %92 = arith.mulf %24, %91 : vector<4x256xf32>
    %93 = arith.addf %89, %92 : vector<4x256xf32>
    %c1_46 = arith.constant 1 : index
    %c3_47 = arith.constant 3 : index
    %94 = memref.load %arg12[%c1_46, %c3_47] : memref<16x8xf32, #tpu.memory_space<smem>>
    %95 = vector.broadcast %94 : f32 to vector<4x256xf32>
    %96 = arith.mulf %26, %95 : vector<4x256xf32>
    %97 = arith.addf %93, %96 : vector<4x256xf32>
    %c1_48 = arith.constant 1 : index
    %c4_49 = arith.constant 4 : index
    %98 = memref.load %arg12[%c1_48, %c4_49] : memref<16x8xf32, #tpu.memory_space<smem>>
    %99 = vector.broadcast %98 : f32 to vector<4x256xf32>
    %100 = arith.mulf %28, %99 : vector<4x256xf32>
    %101 = arith.addf %97, %100 : vector<4x256xf32>
    %c1_50 = arith.constant 1 : index
    %c5_51 = arith.constant 5 : index
    %102 = memref.load %arg12[%c1_50, %c5_51] : memref<16x8xf32, #tpu.memory_space<smem>>
    %103 = vector.broadcast %102 : f32 to vector<4x256xf32>
    %104 = arith.mulf %30, %103 : vector<4x256xf32>
    %105 = arith.addf %101, %104 : vector<4x256xf32>
    %c1_52 = arith.constant 1 : index
    %c6_53 = arith.constant 6 : index
    %106 = memref.load %arg12[%c1_52, %c6_53] : memref<16x8xf32, #tpu.memory_space<smem>>
    %107 = vector.broadcast %106 : f32 to vector<4x256xf32>
    %108 = arith.mulf %32, %107 : vector<4x256xf32>
    %109 = arith.addf %105, %108 : vector<4x256xf32>
    %c1_54 = arith.constant 1 : index
    %c7_55 = arith.constant 7 : index
    %110 = memref.load %arg12[%c1_54, %c7_55] : memref<16x8xf32, #tpu.memory_space<smem>>
    %111 = vector.broadcast %110 : f32 to vector<4x256xf32>
    %112 = arith.mulf %34, %111 : vector<4x256xf32>
    %113 = arith.addf %109, %112 : vector<4x256xf32>
    %c1_56 = arith.constant 1 : index
    %114 = memref.load %arg13[%c1_56] : memref<16xf32, #tpu.memory_space<smem>>
    %115 = vector.broadcast %114 : f32 to vector<4x256xf32>
    %116 = arith.addf %113, %115 : vector<4x256xf32>
    %cst_57 = arith.constant 0.000000e+00 : f32
    %117 = vector.broadcast %cst_57 : f32 to vector<4x256xf32>
    %118 = arith.maximumf %116, %117 : vector<4x256xf32>
    %c0_58 = arith.constant 0 : index
    %c1_59 = arith.constant 1 : index
    %119 = memref.load %arg14[%c0_58, %c1_59] : memref<4x16xf32, #tpu.memory_space<smem>>
    %120 = vector.broadcast %119 : f32 to vector<4x256xf32>
    %121 = arith.mulf %118, %120 : vector<4x256xf32>
    %122 = arith.addf %73, %121 : vector<4x256xf32>
    %c1_60 = arith.constant 1 : index
    %c1_61 = arith.constant 1 : index
    %123 = memref.load %arg14[%c1_60, %c1_61] : memref<4x16xf32, #tpu.memory_space<smem>>
    %124 = vector.broadcast %123 : f32 to vector<4x256xf32>
    %125 = arith.mulf %118, %124 : vector<4x256xf32>
    %126 = arith.addf %76, %125 : vector<4x256xf32>
    %c2_62 = arith.constant 2 : index
    %c1_63 = arith.constant 1 : index
    %127 = memref.load %arg14[%c2_62, %c1_63] : memref<4x16xf32, #tpu.memory_space<smem>>
    %128 = vector.broadcast %127 : f32 to vector<4x256xf32>
    %129 = arith.mulf %118, %128 : vector<4x256xf32>
    %130 = arith.addf %79, %129 : vector<4x256xf32>
    %c3_64 = arith.constant 3 : index
    %c1_65 = arith.constant 1 : index
    %131 = memref.load %arg14[%c3_64, %c1_65] : memref<4x16xf32, #tpu.memory_space<smem>>
    %132 = vector.broadcast %131 : f32 to vector<4x256xf32>
    %133 = arith.mulf %118, %132 : vector<4x256xf32>
    %134 = arith.addf %82, %133 : vector<4x256xf32>
    %c2_66 = arith.constant 2 : index
    %c0_67 = arith.constant 0 : index
    %135 = memref.load %arg12[%c2_66, %c0_67] : memref<16x8xf32, #tpu.memory_space<smem>>
    %136 = vector.broadcast %135 : f32 to vector<4x256xf32>
    %137 = arith.mulf %20, %136 : vector<4x256xf32>
    %c2_68 = arith.constant 2 : index
    %c1_69 = arith.constant 1 : index
    %138 = memref.load %arg12[%c2_68, %c1_69] : memref<16x8xf32, #tpu.memory_space<smem>>
    %139 = vector.broadcast %138 : f32 to vector<4x256xf32>
    %140 = arith.mulf %22, %139 : vector<4x256xf32>
    %141 = arith.addf %137, %140 : vector<4x256xf32>
    %c2_70 = arith.constant 2 : index
    %c2_71 = arith.constant 2 : index
    %142 = memref.load %arg12[%c2_70, %c2_71] : memref<16x8xf32, #tpu.memory_space<smem>>
    %143 = vector.broadcast %142 : f32 to vector<4x256xf32>
    %144 = arith.mulf %24, %143 : vector<4x256xf32>
    %145 = arith.addf %141, %144 : vector<4x256xf32>
    %c2_72 = arith.constant 2 : index
    %c3_73 = arith.constant 3 : index
    %146 = memref.load %arg12[%c2_72, %c3_73] : memref<16x8xf32, #tpu.memory_space<smem>>
    %147 = vector.broadcast %146 : f32 to vector<4x256xf32>
    %148 = arith.mulf %26, %147 : vector<4x256xf32>
    %149 = arith.addf %145, %148 : vector<4x256xf32>
    %c2_74 = arith.constant 2 : index
    %c4_75 = arith.constant 4 : index
    %150 = memref.load %arg12[%c2_74, %c4_75] : memref<16x8xf32, #tpu.memory_space<smem>>
    %151 = vector.broadcast %150 : f32 to vector<4x256xf32>
    %152 = arith.mulf %28, %151 : vector<4x256xf32>
    %153 = arith.addf %149, %152 : vector<4x256xf32>
    %c2_76 = arith.constant 2 : index
    %c5_77 = arith.constant 5 : index
    %154 = memref.load %arg12[%c2_76, %c5_77] : memref<16x8xf32, #tpu.memory_space<smem>>
    %155 = vector.broadcast %154 : f32 to vector<4x256xf32>
    %156 = arith.mulf %30, %155 : vector<4x256xf32>
    %157 = arith.addf %153, %156 : vector<4x256xf32>
    %c2_78 = arith.constant 2 : index
    %c6_79 = arith.constant 6 : index
    %158 = memref.load %arg12[%c2_78, %c6_79] : memref<16x8xf32, #tpu.memory_space<smem>>
    %159 = vector.broadcast %158 : f32 to vector<4x256xf32>
    %160 = arith.mulf %32, %159 : vector<4x256xf32>
    %161 = arith.addf %157, %160 : vector<4x256xf32>
    %c2_80 = arith.constant 2 : index
    %c7_81 = arith.constant 7 : index
    %162 = memref.load %arg12[%c2_80, %c7_81] : memref<16x8xf32, #tpu.memory_space<smem>>
    %163 = vector.broadcast %162 : f32 to vector<4x256xf32>
    %164 = arith.mulf %34, %163 : vector<4x256xf32>
    %165 = arith.addf %161, %164 : vector<4x256xf32>
    %c2_82 = arith.constant 2 : index
    %166 = memref.load %arg13[%c2_82] : memref<16xf32, #tpu.memory_space<smem>>
    %167 = vector.broadcast %166 : f32 to vector<4x256xf32>
    %168 = arith.addf %165, %167 : vector<4x256xf32>
    %cst_83 = arith.constant 0.000000e+00 : f32
    %169 = vector.broadcast %cst_83 : f32 to vector<4x256xf32>
    %170 = arith.maximumf %168, %169 : vector<4x256xf32>
    %c0_84 = arith.constant 0 : index
    %c2_85 = arith.constant 2 : index
    %171 = memref.load %arg14[%c0_84, %c2_85] : memref<4x16xf32, #tpu.memory_space<smem>>
    %172 = vector.broadcast %171 : f32 to vector<4x256xf32>
    %173 = arith.mulf %170, %172 : vector<4x256xf32>
    %174 = arith.addf %122, %173 : vector<4x256xf32>
    %c1_86 = arith.constant 1 : index
    %c2_87 = arith.constant 2 : index
    %175 = memref.load %arg14[%c1_86, %c2_87] : memref<4x16xf32, #tpu.memory_space<smem>>
    %176 = vector.broadcast %175 : f32 to vector<4x256xf32>
    %177 = arith.mulf %170, %176 : vector<4x256xf32>
    %178 = arith.addf %126, %177 : vector<4x256xf32>
    %c2_88 = arith.constant 2 : index
    %c2_89 = arith.constant 2 : index
    %179 = memref.load %arg14[%c2_88, %c2_89] : memref<4x16xf32, #tpu.memory_space<smem>>
    %180 = vector.broadcast %179 : f32 to vector<4x256xf32>
    %181 = arith.mulf %170, %180 : vector<4x256xf32>
    %182 = arith.addf %130, %181 : vector<4x256xf32>
    %c3_90 = arith.constant 3 : index
    %c2_91 = arith.constant 2 : index
    %183 = memref.load %arg14[%c3_90, %c2_91] : memref<4x16xf32, #tpu.memory_space<smem>>
    %184 = vector.broadcast %183 : f32 to vector<4x256xf32>
    %185 = arith.mulf %170, %184 : vector<4x256xf32>
    %186 = arith.addf %134, %185 : vector<4x256xf32>
    %c3_92 = arith.constant 3 : index
    %c0_93 = arith.constant 0 : index
    %187 = memref.load %arg12[%c3_92, %c0_93] : memref<16x8xf32, #tpu.memory_space<smem>>
    %188 = vector.broadcast %187 : f32 to vector<4x256xf32>
    %189 = arith.mulf %20, %188 : vector<4x256xf32>
    %c3_94 = arith.constant 3 : index
    %c1_95 = arith.constant 1 : index
    %190 = memref.load %arg12[%c3_94, %c1_95] : memref<16x8xf32, #tpu.memory_space<smem>>
    %191 = vector.broadcast %190 : f32 to vector<4x256xf32>
    %192 = arith.mulf %22, %191 : vector<4x256xf32>
    %193 = arith.addf %189, %192 : vector<4x256xf32>
    %c3_96 = arith.constant 3 : index
    %c2_97 = arith.constant 2 : index
    %194 = memref.load %arg12[%c3_96, %c2_97] : memref<16x8xf32, #tpu.memory_space<smem>>
    %195 = vector.broadcast %194 : f32 to vector<4x256xf32>
    %196 = arith.mulf %24, %195 : vector<4x256xf32>
    %197 = arith.addf %193, %196 : vector<4x256xf32>
    %c3_98 = arith.constant 3 : index
    %c3_99 = arith.constant 3 : index
    %198 = memref.load %arg12[%c3_98, %c3_99] : memref<16x8xf32, #tpu.memory_space<smem>>
    %199 = vector.broadcast %198 : f32 to vector<4x256xf32>
    %200 = arith.mulf %26, %199 : vector<4x256xf32>
    %201 = arith.addf %197, %200 : vector<4x256xf32>
    %c3_100 = arith.constant 3 : index
    %c4_101 = arith.constant 4 : index
    %202 = memref.load %arg12[%c3_100, %c4_101] : memref<16x8xf32, #tpu.memory_space<smem>>
    %203 = vector.broadcast %202 : f32 to vector<4x256xf32>
    %204 = arith.mulf %28, %203 : vector<4x256xf32>
    %205 = arith.addf %201, %204 : vector<4x256xf32>
    %c3_102 = arith.constant 3 : index
    %c5_103 = arith.constant 5 : index
    %206 = memref.load %arg12[%c3_102, %c5_103] : memref<16x8xf32, #tpu.memory_space<smem>>
    %207 = vector.broadcast %206 : f32 to vector<4x256xf32>
    %208 = arith.mulf %30, %207 : vector<4x256xf32>
    %209 = arith.addf %205, %208 : vector<4x256xf32>
    %c3_104 = arith.constant 3 : index
    %c6_105 = arith.constant 6 : index
    %210 = memref.load %arg12[%c3_104, %c6_105] : memref<16x8xf32, #tpu.memory_space<smem>>
    %211 = vector.broadcast %210 : f32 to vector<4x256xf32>
    %212 = arith.mulf %32, %211 : vector<4x256xf32>
    %213 = arith.addf %209, %212 : vector<4x256xf32>
    %c3_106 = arith.constant 3 : index
    %c7_107 = arith.constant 7 : index
    %214 = memref.load %arg12[%c3_106, %c7_107] : memref<16x8xf32, #tpu.memory_space<smem>>
    %215 = vector.broadcast %214 : f32 to vector<4x256xf32>
    %216 = arith.mulf %34, %215 : vector<4x256xf32>
    %217 = arith.addf %213, %216 : vector<4x256xf32>
    %c3_108 = arith.constant 3 : index
    %218 = memref.load %arg13[%c3_108] : memref<16xf32, #tpu.memory_space<smem>>
    %219 = vector.broadcast %218 : f32 to vector<4x256xf32>
    %220 = arith.addf %217, %219 : vector<4x256xf32>
    %cst_109 = arith.constant 0.000000e+00 : f32
    %221 = vector.broadcast %cst_109 : f32 to vector<4x256xf32>
    %222 = arith.maximumf %220, %221 : vector<4x256xf32>
    %c0_110 = arith.constant 0 : index
    %c3_111 = arith.constant 3 : index
    %223 = memref.load %arg14[%c0_110, %c3_111] : memref<4x16xf32, #tpu.memory_space<smem>>
    %224 = vector.broadcast %223 : f32 to vector<4x256xf32>
    %225 = arith.mulf %222, %224 : vector<4x256xf32>
    %226 = arith.addf %174, %225 : vector<4x256xf32>
    %c1_112 = arith.constant 1 : index
    %c3_113 = arith.constant 3 : index
    %227 = memref.load %arg14[%c1_112, %c3_113] : memref<4x16xf32, #tpu.memory_space<smem>>
    %228 = vector.broadcast %227 : f32 to vector<4x256xf32>
    %229 = arith.mulf %222, %228 : vector<4x256xf32>
    %230 = arith.addf %178, %229 : vector<4x256xf32>
    %c2_114 = arith.constant 2 : index
    %c3_115 = arith.constant 3 : index
    %231 = memref.load %arg14[%c2_114, %c3_115] : memref<4x16xf32, #tpu.memory_space<smem>>
    %232 = vector.broadcast %231 : f32 to vector<4x256xf32>
    %233 = arith.mulf %222, %232 : vector<4x256xf32>
    %234 = arith.addf %182, %233 : vector<4x256xf32>
    %c3_116 = arith.constant 3 : index
    %c3_117 = arith.constant 3 : index
    %235 = memref.load %arg14[%c3_116, %c3_117] : memref<4x16xf32, #tpu.memory_space<smem>>
    %236 = vector.broadcast %235 : f32 to vector<4x256xf32>
    %237 = arith.mulf %222, %236 : vector<4x256xf32>
    %238 = arith.addf %186, %237 : vector<4x256xf32>
    %c4_118 = arith.constant 4 : index
    %c0_119 = arith.constant 0 : index
    %239 = memref.load %arg12[%c4_118, %c0_119] : memref<16x8xf32, #tpu.memory_space<smem>>
    %240 = vector.broadcast %239 : f32 to vector<4x256xf32>
    %241 = arith.mulf %20, %240 : vector<4x256xf32>
    %c4_120 = arith.constant 4 : index
    %c1_121 = arith.constant 1 : index
    %242 = memref.load %arg12[%c4_120, %c1_121] : memref<16x8xf32, #tpu.memory_space<smem>>
    %243 = vector.broadcast %242 : f32 to vector<4x256xf32>
    %244 = arith.mulf %22, %243 : vector<4x256xf32>
    %245 = arith.addf %241, %244 : vector<4x256xf32>
    %c4_122 = arith.constant 4 : index
    %c2_123 = arith.constant 2 : index
    %246 = memref.load %arg12[%c4_122, %c2_123] : memref<16x8xf32, #tpu.memory_space<smem>>
    %247 = vector.broadcast %246 : f32 to vector<4x256xf32>
    %248 = arith.mulf %24, %247 : vector<4x256xf32>
    %249 = arith.addf %245, %248 : vector<4x256xf32>
    %c4_124 = arith.constant 4 : index
    %c3_125 = arith.constant 3 : index
    %250 = memref.load %arg12[%c4_124, %c3_125] : memref<16x8xf32, #tpu.memory_space<smem>>
    %251 = vector.broadcast %250 : f32 to vector<4x256xf32>
    %252 = arith.mulf %26, %251 : vector<4x256xf32>
    %253 = arith.addf %249, %252 : vector<4x256xf32>
    %c4_126 = arith.constant 4 : index
    %c4_127 = arith.constant 4 : index
    %254 = memref.load %arg12[%c4_126, %c4_127] : memref<16x8xf32, #tpu.memory_space<smem>>
    %255 = vector.broadcast %254 : f32 to vector<4x256xf32>
    %256 = arith.mulf %28, %255 : vector<4x256xf32>
    %257 = arith.addf %253, %256 : vector<4x256xf32>
    %c4_128 = arith.constant 4 : index
    %c5_129 = arith.constant 5 : index
    %258 = memref.load %arg12[%c4_128, %c5_129] : memref<16x8xf32, #tpu.memory_space<smem>>
    %259 = vector.broadcast %258 : f32 to vector<4x256xf32>
    %260 = arith.mulf %30, %259 : vector<4x256xf32>
    %261 = arith.addf %257, %260 : vector<4x256xf32>
    %c4_130 = arith.constant 4 : index
    %c6_131 = arith.constant 6 : index
    %262 = memref.load %arg12[%c4_130, %c6_131] : memref<16x8xf32, #tpu.memory_space<smem>>
    %263 = vector.broadcast %262 : f32 to vector<4x256xf32>
    %264 = arith.mulf %32, %263 : vector<4x256xf32>
    %265 = arith.addf %261, %264 : vector<4x256xf32>
    %c4_132 = arith.constant 4 : index
    %c7_133 = arith.constant 7 : index
    %266 = memref.load %arg12[%c4_132, %c7_133] : memref<16x8xf32, #tpu.memory_space<smem>>
    %267 = vector.broadcast %266 : f32 to vector<4x256xf32>
    %268 = arith.mulf %34, %267 : vector<4x256xf32>
    %269 = arith.addf %265, %268 : vector<4x256xf32>
    %c4_134 = arith.constant 4 : index
    %270 = memref.load %arg13[%c4_134] : memref<16xf32, #tpu.memory_space<smem>>
    %271 = vector.broadcast %270 : f32 to vector<4x256xf32>
    %272 = arith.addf %269, %271 : vector<4x256xf32>
    %cst_135 = arith.constant 0.000000e+00 : f32
    %273 = vector.broadcast %cst_135 : f32 to vector<4x256xf32>
    %274 = arith.maximumf %272, %273 : vector<4x256xf32>
    %c0_136 = arith.constant 0 : index
    %c4_137 = arith.constant 4 : index
    %275 = memref.load %arg14[%c0_136, %c4_137] : memref<4x16xf32, #tpu.memory_space<smem>>
    %276 = vector.broadcast %275 : f32 to vector<4x256xf32>
    %277 = arith.mulf %274, %276 : vector<4x256xf32>
    %278 = arith.addf %226, %277 : vector<4x256xf32>
    %c1_138 = arith.constant 1 : index
    %c4_139 = arith.constant 4 : index
    %279 = memref.load %arg14[%c1_138, %c4_139] : memref<4x16xf32, #tpu.memory_space<smem>>
    %280 = vector.broadcast %279 : f32 to vector<4x256xf32>
    %281 = arith.mulf %274, %280 : vector<4x256xf32>
    %282 = arith.addf %230, %281 : vector<4x256xf32>
    %c2_140 = arith.constant 2 : index
    %c4_141 = arith.constant 4 : index
    %283 = memref.load %arg14[%c2_140, %c4_141] : memref<4x16xf32, #tpu.memory_space<smem>>
    %284 = vector.broadcast %283 : f32 to vector<4x256xf32>
    %285 = arith.mulf %274, %284 : vector<4x256xf32>
    %286 = arith.addf %234, %285 : vector<4x256xf32>
    %c3_142 = arith.constant 3 : index
    %c4_143 = arith.constant 4 : index
    %287 = memref.load %arg14[%c3_142, %c4_143] : memref<4x16xf32, #tpu.memory_space<smem>>
    %288 = vector.broadcast %287 : f32 to vector<4x256xf32>
    %289 = arith.mulf %274, %288 : vector<4x256xf32>
    %290 = arith.addf %238, %289 : vector<4x256xf32>
    %c5_144 = arith.constant 5 : index
    %c0_145 = arith.constant 0 : index
    %291 = memref.load %arg12[%c5_144, %c0_145] : memref<16x8xf32, #tpu.memory_space<smem>>
    %292 = vector.broadcast %291 : f32 to vector<4x256xf32>
    %293 = arith.mulf %20, %292 : vector<4x256xf32>
    %c5_146 = arith.constant 5 : index
    %c1_147 = arith.constant 1 : index
    %294 = memref.load %arg12[%c5_146, %c1_147] : memref<16x8xf32, #tpu.memory_space<smem>>
    %295 = vector.broadcast %294 : f32 to vector<4x256xf32>
    %296 = arith.mulf %22, %295 : vector<4x256xf32>
    %297 = arith.addf %293, %296 : vector<4x256xf32>
    %c5_148 = arith.constant 5 : index
    %c2_149 = arith.constant 2 : index
    %298 = memref.load %arg12[%c5_148, %c2_149] : memref<16x8xf32, #tpu.memory_space<smem>>
    %299 = vector.broadcast %298 : f32 to vector<4x256xf32>
    %300 = arith.mulf %24, %299 : vector<4x256xf32>
    %301 = arith.addf %297, %300 : vector<4x256xf32>
    %c5_150 = arith.constant 5 : index
    %c3_151 = arith.constant 3 : index
    %302 = memref.load %arg12[%c5_150, %c3_151] : memref<16x8xf32, #tpu.memory_space<smem>>
    %303 = vector.broadcast %302 : f32 to vector<4x256xf32>
    %304 = arith.mulf %26, %303 : vector<4x256xf32>
    %305 = arith.addf %301, %304 : vector<4x256xf32>
    %c5_152 = arith.constant 5 : index
    %c4_153 = arith.constant 4 : index
    %306 = memref.load %arg12[%c5_152, %c4_153] : memref<16x8xf32, #tpu.memory_space<smem>>
    %307 = vector.broadcast %306 : f32 to vector<4x256xf32>
    %308 = arith.mulf %28, %307 : vector<4x256xf32>
    %309 = arith.addf %305, %308 : vector<4x256xf32>
    %c5_154 = arith.constant 5 : index
    %c5_155 = arith.constant 5 : index
    %310 = memref.load %arg12[%c5_154, %c5_155] : memref<16x8xf32, #tpu.memory_space<smem>>
    %311 = vector.broadcast %310 : f32 to vector<4x256xf32>
    %312 = arith.mulf %30, %311 : vector<4x256xf32>
    %313 = arith.addf %309, %312 : vector<4x256xf32>
    %c5_156 = arith.constant 5 : index
    %c6_157 = arith.constant 6 : index
    %314 = memref.load %arg12[%c5_156, %c6_157] : memref<16x8xf32, #tpu.memory_space<smem>>
    %315 = vector.broadcast %314 : f32 to vector<4x256xf32>
    %316 = arith.mulf %32, %315 : vector<4x256xf32>
    %317 = arith.addf %313, %316 : vector<4x256xf32>
    %c5_158 = arith.constant 5 : index
    %c7_159 = arith.constant 7 : index
    %318 = memref.load %arg12[%c5_158, %c7_159] : memref<16x8xf32, #tpu.memory_space<smem>>
    %319 = vector.broadcast %318 : f32 to vector<4x256xf32>
    %320 = arith.mulf %34, %319 : vector<4x256xf32>
    %321 = arith.addf %317, %320 : vector<4x256xf32>
    %c5_160 = arith.constant 5 : index
    %322 = memref.load %arg13[%c5_160] : memref<16xf32, #tpu.memory_space<smem>>
    %323 = vector.broadcast %322 : f32 to vector<4x256xf32>
    %324 = arith.addf %321, %323 : vector<4x256xf32>
    %cst_161 = arith.constant 0.000000e+00 : f32
    %325 = vector.broadcast %cst_161 : f32 to vector<4x256xf32>
    %326 = arith.maximumf %324, %325 : vector<4x256xf32>
    %c0_162 = arith.constant 0 : index
    %c5_163 = arith.constant 5 : index
    %327 = memref.load %arg14[%c0_162, %c5_163] : memref<4x16xf32, #tpu.memory_space<smem>>
    %328 = vector.broadcast %327 : f32 to vector<4x256xf32>
    %329 = arith.mulf %326, %328 : vector<4x256xf32>
    %330 = arith.addf %278, %329 : vector<4x256xf32>
    %c1_164 = arith.constant 1 : index
    %c5_165 = arith.constant 5 : index
    %331 = memref.load %arg14[%c1_164, %c5_165] : memref<4x16xf32, #tpu.memory_space<smem>>
    %332 = vector.broadcast %331 : f32 to vector<4x256xf32>
    %333 = arith.mulf %326, %332 : vector<4x256xf32>
    %334 = arith.addf %282, %333 : vector<4x256xf32>
    %c2_166 = arith.constant 2 : index
    %c5_167 = arith.constant 5 : index
    %335 = memref.load %arg14[%c2_166, %c5_167] : memref<4x16xf32, #tpu.memory_space<smem>>
    %336 = vector.broadcast %335 : f32 to vector<4x256xf32>
    %337 = arith.mulf %326, %336 : vector<4x256xf32>
    %338 = arith.addf %286, %337 : vector<4x256xf32>
    %c3_168 = arith.constant 3 : index
    %c5_169 = arith.constant 5 : index
    %339 = memref.load %arg14[%c3_168, %c5_169] : memref<4x16xf32, #tpu.memory_space<smem>>
    %340 = vector.broadcast %339 : f32 to vector<4x256xf32>
    %341 = arith.mulf %326, %340 : vector<4x256xf32>
    %342 = arith.addf %290, %341 : vector<4x256xf32>
    %c6_170 = arith.constant 6 : index
    %c0_171 = arith.constant 0 : index
    %343 = memref.load %arg12[%c6_170, %c0_171] : memref<16x8xf32, #tpu.memory_space<smem>>
    %344 = vector.broadcast %343 : f32 to vector<4x256xf32>
    %345 = arith.mulf %20, %344 : vector<4x256xf32>
    %c6_172 = arith.constant 6 : index
    %c1_173 = arith.constant 1 : index
    %346 = memref.load %arg12[%c6_172, %c1_173] : memref<16x8xf32, #tpu.memory_space<smem>>
    %347 = vector.broadcast %346 : f32 to vector<4x256xf32>
    %348 = arith.mulf %22, %347 : vector<4x256xf32>
    %349 = arith.addf %345, %348 : vector<4x256xf32>
    %c6_174 = arith.constant 6 : index
    %c2_175 = arith.constant 2 : index
    %350 = memref.load %arg12[%c6_174, %c2_175] : memref<16x8xf32, #tpu.memory_space<smem>>
    %351 = vector.broadcast %350 : f32 to vector<4x256xf32>
    %352 = arith.mulf %24, %351 : vector<4x256xf32>
    %353 = arith.addf %349, %352 : vector<4x256xf32>
    %c6_176 = arith.constant 6 : index
    %c3_177 = arith.constant 3 : index
    %354 = memref.load %arg12[%c6_176, %c3_177] : memref<16x8xf32, #tpu.memory_space<smem>>
    %355 = vector.broadcast %354 : f32 to vector<4x256xf32>
    %356 = arith.mulf %26, %355 : vector<4x256xf32>
    %357 = arith.addf %353, %356 : vector<4x256xf32>
    %c6_178 = arith.constant 6 : index
    %c4_179 = arith.constant 4 : index
    %358 = memref.load %arg12[%c6_178, %c4_179] : memref<16x8xf32, #tpu.memory_space<smem>>
    %359 = vector.broadcast %358 : f32 to vector<4x256xf32>
    %360 = arith.mulf %28, %359 : vector<4x256xf32>
    %361 = arith.addf %357, %360 : vector<4x256xf32>
    %c6_180 = arith.constant 6 : index
    %c5_181 = arith.constant 5 : index
    %362 = memref.load %arg12[%c6_180, %c5_181] : memref<16x8xf32, #tpu.memory_space<smem>>
    %363 = vector.broadcast %362 : f32 to vector<4x256xf32>
    %364 = arith.mulf %30, %363 : vector<4x256xf32>
    %365 = arith.addf %361, %364 : vector<4x256xf32>
    %c6_182 = arith.constant 6 : index
    %c6_183 = arith.constant 6 : index
    %366 = memref.load %arg12[%c6_182, %c6_183] : memref<16x8xf32, #tpu.memory_space<smem>>
    %367 = vector.broadcast %366 : f32 to vector<4x256xf32>
    %368 = arith.mulf %32, %367 : vector<4x256xf32>
    %369 = arith.addf %365, %368 : vector<4x256xf32>
    %c6_184 = arith.constant 6 : index
    %c7_185 = arith.constant 7 : index
    %370 = memref.load %arg12[%c6_184, %c7_185] : memref<16x8xf32, #tpu.memory_space<smem>>
    %371 = vector.broadcast %370 : f32 to vector<4x256xf32>
    %372 = arith.mulf %34, %371 : vector<4x256xf32>
    %373 = arith.addf %369, %372 : vector<4x256xf32>
    %c6_186 = arith.constant 6 : index
    %374 = memref.load %arg13[%c6_186] : memref<16xf32, #tpu.memory_space<smem>>
    %375 = vector.broadcast %374 : f32 to vector<4x256xf32>
    %376 = arith.addf %373, %375 : vector<4x256xf32>
    %cst_187 = arith.constant 0.000000e+00 : f32
    %377 = vector.broadcast %cst_187 : f32 to vector<4x256xf32>
    %378 = arith.maximumf %376, %377 : vector<4x256xf32>
    %c0_188 = arith.constant 0 : index
    %c6_189 = arith.constant 6 : index
    %379 = memref.load %arg14[%c0_188, %c6_189] : memref<4x16xf32, #tpu.memory_space<smem>>
    %380 = vector.broadcast %379 : f32 to vector<4x256xf32>
    %381 = arith.mulf %378, %380 : vector<4x256xf32>
    %382 = arith.addf %330, %381 : vector<4x256xf32>
    %c1_190 = arith.constant 1 : index
    %c6_191 = arith.constant 6 : index
    %383 = memref.load %arg14[%c1_190, %c6_191] : memref<4x16xf32, #tpu.memory_space<smem>>
    %384 = vector.broadcast %383 : f32 to vector<4x256xf32>
    %385 = arith.mulf %378, %384 : vector<4x256xf32>
    %386 = arith.addf %334, %385 : vector<4x256xf32>
    %c2_192 = arith.constant 2 : index
    %c6_193 = arith.constant 6 : index
    %387 = memref.load %arg14[%c2_192, %c6_193] : memref<4x16xf32, #tpu.memory_space<smem>>
    %388 = vector.broadcast %387 : f32 to vector<4x256xf32>
    %389 = arith.mulf %378, %388 : vector<4x256xf32>
    %390 = arith.addf %338, %389 : vector<4x256xf32>
    %c3_194 = arith.constant 3 : index
    %c6_195 = arith.constant 6 : index
    %391 = memref.load %arg14[%c3_194, %c6_195] : memref<4x16xf32, #tpu.memory_space<smem>>
    %392 = vector.broadcast %391 : f32 to vector<4x256xf32>
    %393 = arith.mulf %378, %392 : vector<4x256xf32>
    %394 = arith.addf %342, %393 : vector<4x256xf32>
    %c7_196 = arith.constant 7 : index
    %c0_197 = arith.constant 0 : index
    %395 = memref.load %arg12[%c7_196, %c0_197] : memref<16x8xf32, #tpu.memory_space<smem>>
    %396 = vector.broadcast %395 : f32 to vector<4x256xf32>
    %397 = arith.mulf %20, %396 : vector<4x256xf32>
    %c7_198 = arith.constant 7 : index
    %c1_199 = arith.constant 1 : index
    %398 = memref.load %arg12[%c7_198, %c1_199] : memref<16x8xf32, #tpu.memory_space<smem>>
    %399 = vector.broadcast %398 : f32 to vector<4x256xf32>
    %400 = arith.mulf %22, %399 : vector<4x256xf32>
    %401 = arith.addf %397, %400 : vector<4x256xf32>
    %c7_200 = arith.constant 7 : index
    %c2_201 = arith.constant 2 : index
    %402 = memref.load %arg12[%c7_200, %c2_201] : memref<16x8xf32, #tpu.memory_space<smem>>
    %403 = vector.broadcast %402 : f32 to vector<4x256xf32>
    %404 = arith.mulf %24, %403 : vector<4x256xf32>
    %405 = arith.addf %401, %404 : vector<4x256xf32>
    %c7_202 = arith.constant 7 : index
    %c3_203 = arith.constant 3 : index
    %406 = memref.load %arg12[%c7_202, %c3_203] : memref<16x8xf32, #tpu.memory_space<smem>>
    %407 = vector.broadcast %406 : f32 to vector<4x256xf32>
    %408 = arith.mulf %26, %407 : vector<4x256xf32>
    %409 = arith.addf %405, %408 : vector<4x256xf32>
    %c7_204 = arith.constant 7 : index
    %c4_205 = arith.constant 4 : index
    %410 = memref.load %arg12[%c7_204, %c4_205] : memref<16x8xf32, #tpu.memory_space<smem>>
    %411 = vector.broadcast %410 : f32 to vector<4x256xf32>
    %412 = arith.mulf %28, %411 : vector<4x256xf32>
    %413 = arith.addf %409, %412 : vector<4x256xf32>
    %c7_206 = arith.constant 7 : index
    %c5_207 = arith.constant 5 : index
    %414 = memref.load %arg12[%c7_206, %c5_207] : memref<16x8xf32, #tpu.memory_space<smem>>
    %415 = vector.broadcast %414 : f32 to vector<4x256xf32>
    %416 = arith.mulf %30, %415 : vector<4x256xf32>
    %417 = arith.addf %413, %416 : vector<4x256xf32>
    %c7_208 = arith.constant 7 : index
    %c6_209 = arith.constant 6 : index
    %418 = memref.load %arg12[%c7_208, %c6_209] : memref<16x8xf32, #tpu.memory_space<smem>>
    %419 = vector.broadcast %418 : f32 to vector<4x256xf32>
    %420 = arith.mulf %32, %419 : vector<4x256xf32>
    %421 = arith.addf %417, %420 : vector<4x256xf32>
    %c7_210 = arith.constant 7 : index
    %c7_211 = arith.constant 7 : index
    %422 = memref.load %arg12[%c7_210, %c7_211] : memref<16x8xf32, #tpu.memory_space<smem>>
    %423 = vector.broadcast %422 : f32 to vector<4x256xf32>
    %424 = arith.mulf %34, %423 : vector<4x256xf32>
    %425 = arith.addf %421, %424 : vector<4x256xf32>
    %c7_212 = arith.constant 7 : index
    %426 = memref.load %arg13[%c7_212] : memref<16xf32, #tpu.memory_space<smem>>
    %427 = vector.broadcast %426 : f32 to vector<4x256xf32>
    %428 = arith.addf %425, %427 : vector<4x256xf32>
    %cst_213 = arith.constant 0.000000e+00 : f32
    %429 = vector.broadcast %cst_213 : f32 to vector<4x256xf32>
    %430 = arith.maximumf %428, %429 : vector<4x256xf32>
    %c0_214 = arith.constant 0 : index
    %c7_215 = arith.constant 7 : index
    %431 = memref.load %arg14[%c0_214, %c7_215] : memref<4x16xf32, #tpu.memory_space<smem>>
    %432 = vector.broadcast %431 : f32 to vector<4x256xf32>
    %433 = arith.mulf %430, %432 : vector<4x256xf32>
    %434 = arith.addf %382, %433 : vector<4x256xf32>
    %c1_216 = arith.constant 1 : index
    %c7_217 = arith.constant 7 : index
    %435 = memref.load %arg14[%c1_216, %c7_217] : memref<4x16xf32, #tpu.memory_space<smem>>
    %436 = vector.broadcast %435 : f32 to vector<4x256xf32>
    %437 = arith.mulf %430, %436 : vector<4x256xf32>
    %438 = arith.addf %386, %437 : vector<4x256xf32>
    %c2_218 = arith.constant 2 : index
    %c7_219 = arith.constant 7 : index
    %439 = memref.load %arg14[%c2_218, %c7_219] : memref<4x16xf32, #tpu.memory_space<smem>>
    %440 = vector.broadcast %439 : f32 to vector<4x256xf32>
    %441 = arith.mulf %430, %440 : vector<4x256xf32>
    %442 = arith.addf %390, %441 : vector<4x256xf32>
    %c3_220 = arith.constant 3 : index
    %c7_221 = arith.constant 7 : index
    %443 = memref.load %arg14[%c3_220, %c7_221] : memref<4x16xf32, #tpu.memory_space<smem>>
    %444 = vector.broadcast %443 : f32 to vector<4x256xf32>
    %445 = arith.mulf %430, %444 : vector<4x256xf32>
    %446 = arith.addf %394, %445 : vector<4x256xf32>
    %c8 = arith.constant 8 : index
    %c0_222 = arith.constant 0 : index
    %447 = memref.load %arg12[%c8, %c0_222] : memref<16x8xf32, #tpu.memory_space<smem>>
    %448 = vector.broadcast %447 : f32 to vector<4x256xf32>
    %449 = arith.mulf %20, %448 : vector<4x256xf32>
    %c8_223 = arith.constant 8 : index
    %c1_224 = arith.constant 1 : index
    %450 = memref.load %arg12[%c8_223, %c1_224] : memref<16x8xf32, #tpu.memory_space<smem>>
    %451 = vector.broadcast %450 : f32 to vector<4x256xf32>
    %452 = arith.mulf %22, %451 : vector<4x256xf32>
    %453 = arith.addf %449, %452 : vector<4x256xf32>
    %c8_225 = arith.constant 8 : index
    %c2_226 = arith.constant 2 : index
    %454 = memref.load %arg12[%c8_225, %c2_226] : memref<16x8xf32, #tpu.memory_space<smem>>
    %455 = vector.broadcast %454 : f32 to vector<4x256xf32>
    %456 = arith.mulf %24, %455 : vector<4x256xf32>
    %457 = arith.addf %453, %456 : vector<4x256xf32>
    %c8_227 = arith.constant 8 : index
    %c3_228 = arith.constant 3 : index
    %458 = memref.load %arg12[%c8_227, %c3_228] : memref<16x8xf32, #tpu.memory_space<smem>>
    %459 = vector.broadcast %458 : f32 to vector<4x256xf32>
    %460 = arith.mulf %26, %459 : vector<4x256xf32>
    %461 = arith.addf %457, %460 : vector<4x256xf32>
    %c8_229 = arith.constant 8 : index
    %c4_230 = arith.constant 4 : index
    %462 = memref.load %arg12[%c8_229, %c4_230] : memref<16x8xf32, #tpu.memory_space<smem>>
    %463 = vector.broadcast %462 : f32 to vector<4x256xf32>
    %464 = arith.mulf %28, %463 : vector<4x256xf32>
    %465 = arith.addf %461, %464 : vector<4x256xf32>
    %c8_231 = arith.constant 8 : index
    %c5_232 = arith.constant 5 : index
    %466 = memref.load %arg12[%c8_231, %c5_232] : memref<16x8xf32, #tpu.memory_space<smem>>
    %467 = vector.broadcast %466 : f32 to vector<4x256xf32>
    %468 = arith.mulf %30, %467 : vector<4x256xf32>
    %469 = arith.addf %465, %468 : vector<4x256xf32>
    %c8_233 = arith.constant 8 : index
    %c6_234 = arith.constant 6 : index
    %470 = memref.load %arg12[%c8_233, %c6_234] : memref<16x8xf32, #tpu.memory_space<smem>>
    %471 = vector.broadcast %470 : f32 to vector<4x256xf32>
    %472 = arith.mulf %32, %471 : vector<4x256xf32>
    %473 = arith.addf %469, %472 : vector<4x256xf32>
    %c8_235 = arith.constant 8 : index
    %c7_236 = arith.constant 7 : index
    %474 = memref.load %arg12[%c8_235, %c7_236] : memref<16x8xf32, #tpu.memory_space<smem>>
    %475 = vector.broadcast %474 : f32 to vector<4x256xf32>
    %476 = arith.mulf %34, %475 : vector<4x256xf32>
    %477 = arith.addf %473, %476 : vector<4x256xf32>
    %c8_237 = arith.constant 8 : index
    %478 = memref.load %arg13[%c8_237] : memref<16xf32, #tpu.memory_space<smem>>
    %479 = vector.broadcast %478 : f32 to vector<4x256xf32>
    %480 = arith.addf %477, %479 : vector<4x256xf32>
    %cst_238 = arith.constant 0.000000e+00 : f32
    %481 = vector.broadcast %cst_238 : f32 to vector<4x256xf32>
    %482 = arith.maximumf %480, %481 : vector<4x256xf32>
    %c0_239 = arith.constant 0 : index
    %c8_240 = arith.constant 8 : index
    %483 = memref.load %arg14[%c0_239, %c8_240] : memref<4x16xf32, #tpu.memory_space<smem>>
    %484 = vector.broadcast %483 : f32 to vector<4x256xf32>
    %485 = arith.mulf %482, %484 : vector<4x256xf32>
    %486 = arith.addf %434, %485 : vector<4x256xf32>
    %c1_241 = arith.constant 1 : index
    %c8_242 = arith.constant 8 : index
    %487 = memref.load %arg14[%c1_241, %c8_242] : memref<4x16xf32, #tpu.memory_space<smem>>
    %488 = vector.broadcast %487 : f32 to vector<4x256xf32>
    %489 = arith.mulf %482, %488 : vector<4x256xf32>
    %490 = arith.addf %438, %489 : vector<4x256xf32>
    %c2_243 = arith.constant 2 : index
    %c8_244 = arith.constant 8 : index
    %491 = memref.load %arg14[%c2_243, %c8_244] : memref<4x16xf32, #tpu.memory_space<smem>>
    %492 = vector.broadcast %491 : f32 to vector<4x256xf32>
    %493 = arith.mulf %482, %492 : vector<4x256xf32>
    %494 = arith.addf %442, %493 : vector<4x256xf32>
    %c3_245 = arith.constant 3 : index
    %c8_246 = arith.constant 8 : index
    %495 = memref.load %arg14[%c3_245, %c8_246] : memref<4x16xf32, #tpu.memory_space<smem>>
    %496 = vector.broadcast %495 : f32 to vector<4x256xf32>
    %497 = arith.mulf %482, %496 : vector<4x256xf32>
    %498 = arith.addf %446, %497 : vector<4x256xf32>
    %c9 = arith.constant 9 : index
    %c0_247 = arith.constant 0 : index
    %499 = memref.load %arg12[%c9, %c0_247] : memref<16x8xf32, #tpu.memory_space<smem>>
    %500 = vector.broadcast %499 : f32 to vector<4x256xf32>
    %501 = arith.mulf %20, %500 : vector<4x256xf32>
    %c9_248 = arith.constant 9 : index
    %c1_249 = arith.constant 1 : index
    %502 = memref.load %arg12[%c9_248, %c1_249] : memref<16x8xf32, #tpu.memory_space<smem>>
    %503 = vector.broadcast %502 : f32 to vector<4x256xf32>
    %504 = arith.mulf %22, %503 : vector<4x256xf32>
    %505 = arith.addf %501, %504 : vector<4x256xf32>
    %c9_250 = arith.constant 9 : index
    %c2_251 = arith.constant 2 : index
    %506 = memref.load %arg12[%c9_250, %c2_251] : memref<16x8xf32, #tpu.memory_space<smem>>
    %507 = vector.broadcast %506 : f32 to vector<4x256xf32>
    %508 = arith.mulf %24, %507 : vector<4x256xf32>
    %509 = arith.addf %505, %508 : vector<4x256xf32>
    %c9_252 = arith.constant 9 : index
    %c3_253 = arith.constant 3 : index
    %510 = memref.load %arg12[%c9_252, %c3_253] : memref<16x8xf32, #tpu.memory_space<smem>>
    %511 = vector.broadcast %510 : f32 to vector<4x256xf32>
    %512 = arith.mulf %26, %511 : vector<4x256xf32>
    %513 = arith.addf %509, %512 : vector<4x256xf32>
    %c9_254 = arith.constant 9 : index
    %c4_255 = arith.constant 4 : index
    %514 = memref.load %arg12[%c9_254, %c4_255] : memref<16x8xf32, #tpu.memory_space<smem>>
    %515 = vector.broadcast %514 : f32 to vector<4x256xf32>
    %516 = arith.mulf %28, %515 : vector<4x256xf32>
    %517 = arith.addf %513, %516 : vector<4x256xf32>
    %c9_256 = arith.constant 9 : index
    %c5_257 = arith.constant 5 : index
    %518 = memref.load %arg12[%c9_256, %c5_257] : memref<16x8xf32, #tpu.memory_space<smem>>
    %519 = vector.broadcast %518 : f32 to vector<4x256xf32>
    %520 = arith.mulf %30, %519 : vector<4x256xf32>
    %521 = arith.addf %517, %520 : vector<4x256xf32>
    %c9_258 = arith.constant 9 : index
    %c6_259 = arith.constant 6 : index
    %522 = memref.load %arg12[%c9_258, %c6_259] : memref<16x8xf32, #tpu.memory_space<smem>>
    %523 = vector.broadcast %522 : f32 to vector<4x256xf32>
    %524 = arith.mulf %32, %523 : vector<4x256xf32>
    %525 = arith.addf %521, %524 : vector<4x256xf32>
    %c9_260 = arith.constant 9 : index
    %c7_261 = arith.constant 7 : index
    %526 = memref.load %arg12[%c9_260, %c7_261] : memref<16x8xf32, #tpu.memory_space<smem>>
    %527 = vector.broadcast %526 : f32 to vector<4x256xf32>
    %528 = arith.mulf %34, %527 : vector<4x256xf32>
    %529 = arith.addf %525, %528 : vector<4x256xf32>
    %c9_262 = arith.constant 9 : index
    %530 = memref.load %arg13[%c9_262] : memref<16xf32, #tpu.memory_space<smem>>
    %531 = vector.broadcast %530 : f32 to vector<4x256xf32>
    %532 = arith.addf %529, %531 : vector<4x256xf32>
    %cst_263 = arith.constant 0.000000e+00 : f32
    %533 = vector.broadcast %cst_263 : f32 to vector<4x256xf32>
    %534 = arith.maximumf %532, %533 : vector<4x256xf32>
    %c0_264 = arith.constant 0 : index
    %c9_265 = arith.constant 9 : index
    %535 = memref.load %arg14[%c0_264, %c9_265] : memref<4x16xf32, #tpu.memory_space<smem>>
    %536 = vector.broadcast %535 : f32 to vector<4x256xf32>
    %537 = arith.mulf %534, %536 : vector<4x256xf32>
    %538 = arith.addf %486, %537 : vector<4x256xf32>
    %c1_266 = arith.constant 1 : index
    %c9_267 = arith.constant 9 : index
    %539 = memref.load %arg14[%c1_266, %c9_267] : memref<4x16xf32, #tpu.memory_space<smem>>
    %540 = vector.broadcast %539 : f32 to vector<4x256xf32>
    %541 = arith.mulf %534, %540 : vector<4x256xf32>
    %542 = arith.addf %490, %541 : vector<4x256xf32>
    %c2_268 = arith.constant 2 : index
    %c9_269 = arith.constant 9 : index
    %543 = memref.load %arg14[%c2_268, %c9_269] : memref<4x16xf32, #tpu.memory_space<smem>>
    %544 = vector.broadcast %543 : f32 to vector<4x256xf32>
    %545 = arith.mulf %534, %544 : vector<4x256xf32>
    %546 = arith.addf %494, %545 : vector<4x256xf32>
    %c3_270 = arith.constant 3 : index
    %c9_271 = arith.constant 9 : index
    %547 = memref.load %arg14[%c3_270, %c9_271] : memref<4x16xf32, #tpu.memory_space<smem>>
    %548 = vector.broadcast %547 : f32 to vector<4x256xf32>
    %549 = arith.mulf %534, %548 : vector<4x256xf32>
    %550 = arith.addf %498, %549 : vector<4x256xf32>
    %c10 = arith.constant 10 : index
    %c0_272 = arith.constant 0 : index
    %551 = memref.load %arg12[%c10, %c0_272] : memref<16x8xf32, #tpu.memory_space<smem>>
    %552 = vector.broadcast %551 : f32 to vector<4x256xf32>
    %553 = arith.mulf %20, %552 : vector<4x256xf32>
    %c10_273 = arith.constant 10 : index
    %c1_274 = arith.constant 1 : index
    %554 = memref.load %arg12[%c10_273, %c1_274] : memref<16x8xf32, #tpu.memory_space<smem>>
    %555 = vector.broadcast %554 : f32 to vector<4x256xf32>
    %556 = arith.mulf %22, %555 : vector<4x256xf32>
    %557 = arith.addf %553, %556 : vector<4x256xf32>
    %c10_275 = arith.constant 10 : index
    %c2_276 = arith.constant 2 : index
    %558 = memref.load %arg12[%c10_275, %c2_276] : memref<16x8xf32, #tpu.memory_space<smem>>
    %559 = vector.broadcast %558 : f32 to vector<4x256xf32>
    %560 = arith.mulf %24, %559 : vector<4x256xf32>
    %561 = arith.addf %557, %560 : vector<4x256xf32>
    %c10_277 = arith.constant 10 : index
    %c3_278 = arith.constant 3 : index
    %562 = memref.load %arg12[%c10_277, %c3_278] : memref<16x8xf32, #tpu.memory_space<smem>>
    %563 = vector.broadcast %562 : f32 to vector<4x256xf32>
    %564 = arith.mulf %26, %563 : vector<4x256xf32>
    %565 = arith.addf %561, %564 : vector<4x256xf32>
    %c10_279 = arith.constant 10 : index
    %c4_280 = arith.constant 4 : index
    %566 = memref.load %arg12[%c10_279, %c4_280] : memref<16x8xf32, #tpu.memory_space<smem>>
    %567 = vector.broadcast %566 : f32 to vector<4x256xf32>
    %568 = arith.mulf %28, %567 : vector<4x256xf32>
    %569 = arith.addf %565, %568 : vector<4x256xf32>
    %c10_281 = arith.constant 10 : index
    %c5_282 = arith.constant 5 : index
    %570 = memref.load %arg12[%c10_281, %c5_282] : memref<16x8xf32, #tpu.memory_space<smem>>
    %571 = vector.broadcast %570 : f32 to vector<4x256xf32>
    %572 = arith.mulf %30, %571 : vector<4x256xf32>
    %573 = arith.addf %569, %572 : vector<4x256xf32>
    %c10_283 = arith.constant 10 : index
    %c6_284 = arith.constant 6 : index
    %574 = memref.load %arg12[%c10_283, %c6_284] : memref<16x8xf32, #tpu.memory_space<smem>>
    %575 = vector.broadcast %574 : f32 to vector<4x256xf32>
    %576 = arith.mulf %32, %575 : vector<4x256xf32>
    %577 = arith.addf %573, %576 : vector<4x256xf32>
    %c10_285 = arith.constant 10 : index
    %c7_286 = arith.constant 7 : index
    %578 = memref.load %arg12[%c10_285, %c7_286] : memref<16x8xf32, #tpu.memory_space<smem>>
    %579 = vector.broadcast %578 : f32 to vector<4x256xf32>
    %580 = arith.mulf %34, %579 : vector<4x256xf32>
    %581 = arith.addf %577, %580 : vector<4x256xf32>
    %c10_287 = arith.constant 10 : index
    %582 = memref.load %arg13[%c10_287] : memref<16xf32, #tpu.memory_space<smem>>
    %583 = vector.broadcast %582 : f32 to vector<4x256xf32>
    %584 = arith.addf %581, %583 : vector<4x256xf32>
    %cst_288 = arith.constant 0.000000e+00 : f32
    %585 = vector.broadcast %cst_288 : f32 to vector<4x256xf32>
    %586 = arith.maximumf %584, %585 : vector<4x256xf32>
    %c0_289 = arith.constant 0 : index
    %c10_290 = arith.constant 10 : index
    %587 = memref.load %arg14[%c0_289, %c10_290] : memref<4x16xf32, #tpu.memory_space<smem>>
    %588 = vector.broadcast %587 : f32 to vector<4x256xf32>
    %589 = arith.mulf %586, %588 : vector<4x256xf32>
    %590 = arith.addf %538, %589 : vector<4x256xf32>
    %c1_291 = arith.constant 1 : index
    %c10_292 = arith.constant 10 : index
    %591 = memref.load %arg14[%c1_291, %c10_292] : memref<4x16xf32, #tpu.memory_space<smem>>
    %592 = vector.broadcast %591 : f32 to vector<4x256xf32>
    %593 = arith.mulf %586, %592 : vector<4x256xf32>
    %594 = arith.addf %542, %593 : vector<4x256xf32>
    %c2_293 = arith.constant 2 : index
    %c10_294 = arith.constant 10 : index
    %595 = memref.load %arg14[%c2_293, %c10_294] : memref<4x16xf32, #tpu.memory_space<smem>>
    %596 = vector.broadcast %595 : f32 to vector<4x256xf32>
    %597 = arith.mulf %586, %596 : vector<4x256xf32>
    %598 = arith.addf %546, %597 : vector<4x256xf32>
    %c3_295 = arith.constant 3 : index
    %c10_296 = arith.constant 10 : index
    %599 = memref.load %arg14[%c3_295, %c10_296] : memref<4x16xf32, #tpu.memory_space<smem>>
    %600 = vector.broadcast %599 : f32 to vector<4x256xf32>
    %601 = arith.mulf %586, %600 : vector<4x256xf32>
    %602 = arith.addf %550, %601 : vector<4x256xf32>
    %c11 = arith.constant 11 : index
    %c0_297 = arith.constant 0 : index
    %603 = memref.load %arg12[%c11, %c0_297] : memref<16x8xf32, #tpu.memory_space<smem>>
    %604 = vector.broadcast %603 : f32 to vector<4x256xf32>
    %605 = arith.mulf %20, %604 : vector<4x256xf32>
    %c11_298 = arith.constant 11 : index
    %c1_299 = arith.constant 1 : index
    %606 = memref.load %arg12[%c11_298, %c1_299] : memref<16x8xf32, #tpu.memory_space<smem>>
    %607 = vector.broadcast %606 : f32 to vector<4x256xf32>
    %608 = arith.mulf %22, %607 : vector<4x256xf32>
    %609 = arith.addf %605, %608 : vector<4x256xf32>
    %c11_300 = arith.constant 11 : index
    %c2_301 = arith.constant 2 : index
    %610 = memref.load %arg12[%c11_300, %c2_301] : memref<16x8xf32, #tpu.memory_space<smem>>
    %611 = vector.broadcast %610 : f32 to vector<4x256xf32>
    %612 = arith.mulf %24, %611 : vector<4x256xf32>
    %613 = arith.addf %609, %612 : vector<4x256xf32>
    %c11_302 = arith.constant 11 : index
    %c3_303 = arith.constant 3 : index
    %614 = memref.load %arg12[%c11_302, %c3_303] : memref<16x8xf32, #tpu.memory_space<smem>>
    %615 = vector.broadcast %614 : f32 to vector<4x256xf32>
    %616 = arith.mulf %26, %615 : vector<4x256xf32>
    %617 = arith.addf %613, %616 : vector<4x256xf32>
    %c11_304 = arith.constant 11 : index
    %c4_305 = arith.constant 4 : index
    %618 = memref.load %arg12[%c11_304, %c4_305] : memref<16x8xf32, #tpu.memory_space<smem>>
    %619 = vector.broadcast %618 : f32 to vector<4x256xf32>
    %620 = arith.mulf %28, %619 : vector<4x256xf32>
    %621 = arith.addf %617, %620 : vector<4x256xf32>
    %c11_306 = arith.constant 11 : index
    %c5_307 = arith.constant 5 : index
    %622 = memref.load %arg12[%c11_306, %c5_307] : memref<16x8xf32, #tpu.memory_space<smem>>
    %623 = vector.broadcast %622 : f32 to vector<4x256xf32>
    %624 = arith.mulf %30, %623 : vector<4x256xf32>
    %625 = arith.addf %621, %624 : vector<4x256xf32>
    %c11_308 = arith.constant 11 : index
    %c6_309 = arith.constant 6 : index
    %626 = memref.load %arg12[%c11_308, %c6_309] : memref<16x8xf32, #tpu.memory_space<smem>>
    %627 = vector.broadcast %626 : f32 to vector<4x256xf32>
    %628 = arith.mulf %32, %627 : vector<4x256xf32>
    %629 = arith.addf %625, %628 : vector<4x256xf32>
    %c11_310 = arith.constant 11 : index
    %c7_311 = arith.constant 7 : index
    %630 = memref.load %arg12[%c11_310, %c7_311] : memref<16x8xf32, #tpu.memory_space<smem>>
    %631 = vector.broadcast %630 : f32 to vector<4x256xf32>
    %632 = arith.mulf %34, %631 : vector<4x256xf32>
    %633 = arith.addf %629, %632 : vector<4x256xf32>
    %c11_312 = arith.constant 11 : index
    %634 = memref.load %arg13[%c11_312] : memref<16xf32, #tpu.memory_space<smem>>
    %635 = vector.broadcast %634 : f32 to vector<4x256xf32>
    %636 = arith.addf %633, %635 : vector<4x256xf32>
    %cst_313 = arith.constant 0.000000e+00 : f32
    %637 = vector.broadcast %cst_313 : f32 to vector<4x256xf32>
    %638 = arith.maximumf %636, %637 : vector<4x256xf32>
    %c0_314 = arith.constant 0 : index
    %c11_315 = arith.constant 11 : index
    %639 = memref.load %arg14[%c0_314, %c11_315] : memref<4x16xf32, #tpu.memory_space<smem>>
    %640 = vector.broadcast %639 : f32 to vector<4x256xf32>
    %641 = arith.mulf %638, %640 : vector<4x256xf32>
    %642 = arith.addf %590, %641 : vector<4x256xf32>
    %c1_316 = arith.constant 1 : index
    %c11_317 = arith.constant 11 : index
    %643 = memref.load %arg14[%c1_316, %c11_317] : memref<4x16xf32, #tpu.memory_space<smem>>
    %644 = vector.broadcast %643 : f32 to vector<4x256xf32>
    %645 = arith.mulf %638, %644 : vector<4x256xf32>
    %646 = arith.addf %594, %645 : vector<4x256xf32>
    %c2_318 = arith.constant 2 : index
    %c11_319 = arith.constant 11 : index
    %647 = memref.load %arg14[%c2_318, %c11_319] : memref<4x16xf32, #tpu.memory_space<smem>>
    %648 = vector.broadcast %647 : f32 to vector<4x256xf32>
    %649 = arith.mulf %638, %648 : vector<4x256xf32>
    %650 = arith.addf %598, %649 : vector<4x256xf32>
    %c3_320 = arith.constant 3 : index
    %c11_321 = arith.constant 11 : index
    %651 = memref.load %arg14[%c3_320, %c11_321] : memref<4x16xf32, #tpu.memory_space<smem>>
    %652 = vector.broadcast %651 : f32 to vector<4x256xf32>
    %653 = arith.mulf %638, %652 : vector<4x256xf32>
    %654 = arith.addf %602, %653 : vector<4x256xf32>
    %c12 = arith.constant 12 : index
    %c0_322 = arith.constant 0 : index
    %655 = memref.load %arg12[%c12, %c0_322] : memref<16x8xf32, #tpu.memory_space<smem>>
    %656 = vector.broadcast %655 : f32 to vector<4x256xf32>
    %657 = arith.mulf %20, %656 : vector<4x256xf32>
    %c12_323 = arith.constant 12 : index
    %c1_324 = arith.constant 1 : index
    %658 = memref.load %arg12[%c12_323, %c1_324] : memref<16x8xf32, #tpu.memory_space<smem>>
    %659 = vector.broadcast %658 : f32 to vector<4x256xf32>
    %660 = arith.mulf %22, %659 : vector<4x256xf32>
    %661 = arith.addf %657, %660 : vector<4x256xf32>
    %c12_325 = arith.constant 12 : index
    %c2_326 = arith.constant 2 : index
    %662 = memref.load %arg12[%c12_325, %c2_326] : memref<16x8xf32, #tpu.memory_space<smem>>
    %663 = vector.broadcast %662 : f32 to vector<4x256xf32>
    %664 = arith.mulf %24, %663 : vector<4x256xf32>
    %665 = arith.addf %661, %664 : vector<4x256xf32>
    %c12_327 = arith.constant 12 : index
    %c3_328 = arith.constant 3 : index
    %666 = memref.load %arg12[%c12_327, %c3_328] : memref<16x8xf32, #tpu.memory_space<smem>>
    %667 = vector.broadcast %666 : f32 to vector<4x256xf32>
    %668 = arith.mulf %26, %667 : vector<4x256xf32>
    %669 = arith.addf %665, %668 : vector<4x256xf32>
    %c12_329 = arith.constant 12 : index
    %c4_330 = arith.constant 4 : index
    %670 = memref.load %arg12[%c12_329, %c4_330] : memref<16x8xf32, #tpu.memory_space<smem>>
    %671 = vector.broadcast %670 : f32 to vector<4x256xf32>
    %672 = arith.mulf %28, %671 : vector<4x256xf32>
    %673 = arith.addf %669, %672 : vector<4x256xf32>
    %c12_331 = arith.constant 12 : index
    %c5_332 = arith.constant 5 : index
    %674 = memref.load %arg12[%c12_331, %c5_332] : memref<16x8xf32, #tpu.memory_space<smem>>
    %675 = vector.broadcast %674 : f32 to vector<4x256xf32>
    %676 = arith.mulf %30, %675 : vector<4x256xf32>
    %677 = arith.addf %673, %676 : vector<4x256xf32>
    %c12_333 = arith.constant 12 : index
    %c6_334 = arith.constant 6 : index
    %678 = memref.load %arg12[%c12_333, %c6_334] : memref<16x8xf32, #tpu.memory_space<smem>>
    %679 = vector.broadcast %678 : f32 to vector<4x256xf32>
    %680 = arith.mulf %32, %679 : vector<4x256xf32>
    %681 = arith.addf %677, %680 : vector<4x256xf32>
    %c12_335 = arith.constant 12 : index
    %c7_336 = arith.constant 7 : index
    %682 = memref.load %arg12[%c12_335, %c7_336] : memref<16x8xf32, #tpu.memory_space<smem>>
    %683 = vector.broadcast %682 : f32 to vector<4x256xf32>
    %684 = arith.mulf %34, %683 : vector<4x256xf32>
    %685 = arith.addf %681, %684 : vector<4x256xf32>
    %c12_337 = arith.constant 12 : index
    %686 = memref.load %arg13[%c12_337] : memref<16xf32, #tpu.memory_space<smem>>
    %687 = vector.broadcast %686 : f32 to vector<4x256xf32>
    %688 = arith.addf %685, %687 : vector<4x256xf32>
    %cst_338 = arith.constant 0.000000e+00 : f32
    %689 = vector.broadcast %cst_338 : f32 to vector<4x256xf32>
    %690 = arith.maximumf %688, %689 : vector<4x256xf32>
    %c0_339 = arith.constant 0 : index
    %c12_340 = arith.constant 12 : index
    %691 = memref.load %arg14[%c0_339, %c12_340] : memref<4x16xf32, #tpu.memory_space<smem>>
    %692 = vector.broadcast %691 : f32 to vector<4x256xf32>
    %693 = arith.mulf %690, %692 : vector<4x256xf32>
    %694 = arith.addf %642, %693 : vector<4x256xf32>
    %c1_341 = arith.constant 1 : index
    %c12_342 = arith.constant 12 : index
    %695 = memref.load %arg14[%c1_341, %c12_342] : memref<4x16xf32, #tpu.memory_space<smem>>
    %696 = vector.broadcast %695 : f32 to vector<4x256xf32>
    %697 = arith.mulf %690, %696 : vector<4x256xf32>
    %698 = arith.addf %646, %697 : vector<4x256xf32>
    %c2_343 = arith.constant 2 : index
    %c12_344 = arith.constant 12 : index
    %699 = memref.load %arg14[%c2_343, %c12_344] : memref<4x16xf32, #tpu.memory_space<smem>>
    %700 = vector.broadcast %699 : f32 to vector<4x256xf32>
    %701 = arith.mulf %690, %700 : vector<4x256xf32>
    %702 = arith.addf %650, %701 : vector<4x256xf32>
    %c3_345 = arith.constant 3 : index
    %c12_346 = arith.constant 12 : index
    %703 = memref.load %arg14[%c3_345, %c12_346] : memref<4x16xf32, #tpu.memory_space<smem>>
    %704 = vector.broadcast %703 : f32 to vector<4x256xf32>
    %705 = arith.mulf %690, %704 : vector<4x256xf32>
    %706 = arith.addf %654, %705 : vector<4x256xf32>
    %c13 = arith.constant 13 : index
    %c0_347 = arith.constant 0 : index
    %707 = memref.load %arg12[%c13, %c0_347] : memref<16x8xf32, #tpu.memory_space<smem>>
    %708 = vector.broadcast %707 : f32 to vector<4x256xf32>
    %709 = arith.mulf %20, %708 : vector<4x256xf32>
    %c13_348 = arith.constant 13 : index
    %c1_349 = arith.constant 1 : index
    %710 = memref.load %arg12[%c13_348, %c1_349] : memref<16x8xf32, #tpu.memory_space<smem>>
    %711 = vector.broadcast %710 : f32 to vector<4x256xf32>
    %712 = arith.mulf %22, %711 : vector<4x256xf32>
    %713 = arith.addf %709, %712 : vector<4x256xf32>
    %c13_350 = arith.constant 13 : index
    %c2_351 = arith.constant 2 : index
    %714 = memref.load %arg12[%c13_350, %c2_351] : memref<16x8xf32, #tpu.memory_space<smem>>
    %715 = vector.broadcast %714 : f32 to vector<4x256xf32>
    %716 = arith.mulf %24, %715 : vector<4x256xf32>
    %717 = arith.addf %713, %716 : vector<4x256xf32>
    %c13_352 = arith.constant 13 : index
    %c3_353 = arith.constant 3 : index
    %718 = memref.load %arg12[%c13_352, %c3_353] : memref<16x8xf32, #tpu.memory_space<smem>>
    %719 = vector.broadcast %718 : f32 to vector<4x256xf32>
    %720 = arith.mulf %26, %719 : vector<4x256xf32>
    %721 = arith.addf %717, %720 : vector<4x256xf32>
    %c13_354 = arith.constant 13 : index
    %c4_355 = arith.constant 4 : index
    %722 = memref.load %arg12[%c13_354, %c4_355] : memref<16x8xf32, #tpu.memory_space<smem>>
    %723 = vector.broadcast %722 : f32 to vector<4x256xf32>
    %724 = arith.mulf %28, %723 : vector<4x256xf32>
    %725 = arith.addf %721, %724 : vector<4x256xf32>
    %c13_356 = arith.constant 13 : index
    %c5_357 = arith.constant 5 : index
    %726 = memref.load %arg12[%c13_356, %c5_357] : memref<16x8xf32, #tpu.memory_space<smem>>
    %727 = vector.broadcast %726 : f32 to vector<4x256xf32>
    %728 = arith.mulf %30, %727 : vector<4x256xf32>
    %729 = arith.addf %725, %728 : vector<4x256xf32>
    %c13_358 = arith.constant 13 : index
    %c6_359 = arith.constant 6 : index
    %730 = memref.load %arg12[%c13_358, %c6_359] : memref<16x8xf32, #tpu.memory_space<smem>>
    %731 = vector.broadcast %730 : f32 to vector<4x256xf32>
    %732 = arith.mulf %32, %731 : vector<4x256xf32>
    %733 = arith.addf %729, %732 : vector<4x256xf32>
    %c13_360 = arith.constant 13 : index
    %c7_361 = arith.constant 7 : index
    %734 = memref.load %arg12[%c13_360, %c7_361] : memref<16x8xf32, #tpu.memory_space<smem>>
    %735 = vector.broadcast %734 : f32 to vector<4x256xf32>
    %736 = arith.mulf %34, %735 : vector<4x256xf32>
    %737 = arith.addf %733, %736 : vector<4x256xf32>
    %c13_362 = arith.constant 13 : index
    %738 = memref.load %arg13[%c13_362] : memref<16xf32, #tpu.memory_space<smem>>
    %739 = vector.broadcast %738 : f32 to vector<4x256xf32>
    %740 = arith.addf %737, %739 : vector<4x256xf32>
    %cst_363 = arith.constant 0.000000e+00 : f32
    %741 = vector.broadcast %cst_363 : f32 to vector<4x256xf32>
    %742 = arith.maximumf %740, %741 : vector<4x256xf32>
    %c0_364 = arith.constant 0 : index
    %c13_365 = arith.constant 13 : index
    %743 = memref.load %arg14[%c0_364, %c13_365] : memref<4x16xf32, #tpu.memory_space<smem>>
    %744 = vector.broadcast %743 : f32 to vector<4x256xf32>
    %745 = arith.mulf %742, %744 : vector<4x256xf32>
    %746 = arith.addf %694, %745 : vector<4x256xf32>
    %c1_366 = arith.constant 1 : index
    %c13_367 = arith.constant 13 : index
    %747 = memref.load %arg14[%c1_366, %c13_367] : memref<4x16xf32, #tpu.memory_space<smem>>
    %748 = vector.broadcast %747 : f32 to vector<4x256xf32>
    %749 = arith.mulf %742, %748 : vector<4x256xf32>
    %750 = arith.addf %698, %749 : vector<4x256xf32>
    %c2_368 = arith.constant 2 : index
    %c13_369 = arith.constant 13 : index
    %751 = memref.load %arg14[%c2_368, %c13_369] : memref<4x16xf32, #tpu.memory_space<smem>>
    %752 = vector.broadcast %751 : f32 to vector<4x256xf32>
    %753 = arith.mulf %742, %752 : vector<4x256xf32>
    %754 = arith.addf %702, %753 : vector<4x256xf32>
    %c3_370 = arith.constant 3 : index
    %c13_371 = arith.constant 13 : index
    %755 = memref.load %arg14[%c3_370, %c13_371] : memref<4x16xf32, #tpu.memory_space<smem>>
    %756 = vector.broadcast %755 : f32 to vector<4x256xf32>
    %757 = arith.mulf %742, %756 : vector<4x256xf32>
    %758 = arith.addf %706, %757 : vector<4x256xf32>
    %c14 = arith.constant 14 : index
    %c0_372 = arith.constant 0 : index
    %759 = memref.load %arg12[%c14, %c0_372] : memref<16x8xf32, #tpu.memory_space<smem>>
    %760 = vector.broadcast %759 : f32 to vector<4x256xf32>
    %761 = arith.mulf %20, %760 : vector<4x256xf32>
    %c14_373 = arith.constant 14 : index
    %c1_374 = arith.constant 1 : index
    %762 = memref.load %arg12[%c14_373, %c1_374] : memref<16x8xf32, #tpu.memory_space<smem>>
    %763 = vector.broadcast %762 : f32 to vector<4x256xf32>
    %764 = arith.mulf %22, %763 : vector<4x256xf32>
    %765 = arith.addf %761, %764 : vector<4x256xf32>
    %c14_375 = arith.constant 14 : index
    %c2_376 = arith.constant 2 : index
    %766 = memref.load %arg12[%c14_375, %c2_376] : memref<16x8xf32, #tpu.memory_space<smem>>
    %767 = vector.broadcast %766 : f32 to vector<4x256xf32>
    %768 = arith.mulf %24, %767 : vector<4x256xf32>
    %769 = arith.addf %765, %768 : vector<4x256xf32>
    %c14_377 = arith.constant 14 : index
    %c3_378 = arith.constant 3 : index
    %770 = memref.load %arg12[%c14_377, %c3_378] : memref<16x8xf32, #tpu.memory_space<smem>>
    %771 = vector.broadcast %770 : f32 to vector<4x256xf32>
    %772 = arith.mulf %26, %771 : vector<4x256xf32>
    %773 = arith.addf %769, %772 : vector<4x256xf32>
    %c14_379 = arith.constant 14 : index
    %c4_380 = arith.constant 4 : index
    %774 = memref.load %arg12[%c14_379, %c4_380] : memref<16x8xf32, #tpu.memory_space<smem>>
    %775 = vector.broadcast %774 : f32 to vector<4x256xf32>
    %776 = arith.mulf %28, %775 : vector<4x256xf32>
    %777 = arith.addf %773, %776 : vector<4x256xf32>
    %c14_381 = arith.constant 14 : index
    %c5_382 = arith.constant 5 : index
    %778 = memref.load %arg12[%c14_381, %c5_382] : memref<16x8xf32, #tpu.memory_space<smem>>
    %779 = vector.broadcast %778 : f32 to vector<4x256xf32>
    %780 = arith.mulf %30, %779 : vector<4x256xf32>
    %781 = arith.addf %777, %780 : vector<4x256xf32>
    %c14_383 = arith.constant 14 : index
    %c6_384 = arith.constant 6 : index
    %782 = memref.load %arg12[%c14_383, %c6_384] : memref<16x8xf32, #tpu.memory_space<smem>>
    %783 = vector.broadcast %782 : f32 to vector<4x256xf32>
    %784 = arith.mulf %32, %783 : vector<4x256xf32>
    %785 = arith.addf %781, %784 : vector<4x256xf32>
    %c14_385 = arith.constant 14 : index
    %c7_386 = arith.constant 7 : index
    %786 = memref.load %arg12[%c14_385, %c7_386] : memref<16x8xf32, #tpu.memory_space<smem>>
    %787 = vector.broadcast %786 : f32 to vector<4x256xf32>
    %788 = arith.mulf %34, %787 : vector<4x256xf32>
    %789 = arith.addf %785, %788 : vector<4x256xf32>
    %c14_387 = arith.constant 14 : index
    %790 = memref.load %arg13[%c14_387] : memref<16xf32, #tpu.memory_space<smem>>
    %791 = vector.broadcast %790 : f32 to vector<4x256xf32>
    %792 = arith.addf %789, %791 : vector<4x256xf32>
    %cst_388 = arith.constant 0.000000e+00 : f32
    %793 = vector.broadcast %cst_388 : f32 to vector<4x256xf32>
    %794 = arith.maximumf %792, %793 : vector<4x256xf32>
    %c0_389 = arith.constant 0 : index
    %c14_390 = arith.constant 14 : index
    %795 = memref.load %arg14[%c0_389, %c14_390] : memref<4x16xf32, #tpu.memory_space<smem>>
    %796 = vector.broadcast %795 : f32 to vector<4x256xf32>
    %797 = arith.mulf %794, %796 : vector<4x256xf32>
    %798 = arith.addf %746, %797 : vector<4x256xf32>
    %c1_391 = arith.constant 1 : index
    %c14_392 = arith.constant 14 : index
    %799 = memref.load %arg14[%c1_391, %c14_392] : memref<4x16xf32, #tpu.memory_space<smem>>
    %800 = vector.broadcast %799 : f32 to vector<4x256xf32>
    %801 = arith.mulf %794, %800 : vector<4x256xf32>
    %802 = arith.addf %750, %801 : vector<4x256xf32>
    %c2_393 = arith.constant 2 : index
    %c14_394 = arith.constant 14 : index
    %803 = memref.load %arg14[%c2_393, %c14_394] : memref<4x16xf32, #tpu.memory_space<smem>>
    %804 = vector.broadcast %803 : f32 to vector<4x256xf32>
    %805 = arith.mulf %794, %804 : vector<4x256xf32>
    %806 = arith.addf %754, %805 : vector<4x256xf32>
    %c3_395 = arith.constant 3 : index
    %c14_396 = arith.constant 14 : index
    %807 = memref.load %arg14[%c3_395, %c14_396] : memref<4x16xf32, #tpu.memory_space<smem>>
    %808 = vector.broadcast %807 : f32 to vector<4x256xf32>
    %809 = arith.mulf %794, %808 : vector<4x256xf32>
    %810 = arith.addf %758, %809 : vector<4x256xf32>
    %c15 = arith.constant 15 : index
    %c0_397 = arith.constant 0 : index
    %811 = memref.load %arg12[%c15, %c0_397] : memref<16x8xf32, #tpu.memory_space<smem>>
    %812 = vector.broadcast %811 : f32 to vector<4x256xf32>
    %813 = arith.mulf %20, %812 : vector<4x256xf32>
    %c15_398 = arith.constant 15 : index
    %c1_399 = arith.constant 1 : index
    %814 = memref.load %arg12[%c15_398, %c1_399] : memref<16x8xf32, #tpu.memory_space<smem>>
    %815 = vector.broadcast %814 : f32 to vector<4x256xf32>
    %816 = arith.mulf %22, %815 : vector<4x256xf32>
    %817 = arith.addf %813, %816 : vector<4x256xf32>
    %c15_400 = arith.constant 15 : index
    %c2_401 = arith.constant 2 : index
    %818 = memref.load %arg12[%c15_400, %c2_401] : memref<16x8xf32, #tpu.memory_space<smem>>
    %819 = vector.broadcast %818 : f32 to vector<4x256xf32>
    %820 = arith.mulf %24, %819 : vector<4x256xf32>
    %821 = arith.addf %817, %820 : vector<4x256xf32>
    %c15_402 = arith.constant 15 : index
    %c3_403 = arith.constant 3 : index
    %822 = memref.load %arg12[%c15_402, %c3_403] : memref<16x8xf32, #tpu.memory_space<smem>>
    %823 = vector.broadcast %822 : f32 to vector<4x256xf32>
    %824 = arith.mulf %26, %823 : vector<4x256xf32>
    %825 = arith.addf %821, %824 : vector<4x256xf32>
    %c15_404 = arith.constant 15 : index
    %c4_405 = arith.constant 4 : index
    %826 = memref.load %arg12[%c15_404, %c4_405] : memref<16x8xf32, #tpu.memory_space<smem>>
    %827 = vector.broadcast %826 : f32 to vector<4x256xf32>
    %828 = arith.mulf %28, %827 : vector<4x256xf32>
    %829 = arith.addf %825, %828 : vector<4x256xf32>
    %c15_406 = arith.constant 15 : index
    %c5_407 = arith.constant 5 : index
    %830 = memref.load %arg12[%c15_406, %c5_407] : memref<16x8xf32, #tpu.memory_space<smem>>
    %831 = vector.broadcast %830 : f32 to vector<4x256xf32>
    %832 = arith.mulf %30, %831 : vector<4x256xf32>
    %833 = arith.addf %829, %832 : vector<4x256xf32>
    %c15_408 = arith.constant 15 : index
    %c6_409 = arith.constant 6 : index
    %834 = memref.load %arg12[%c15_408, %c6_409] : memref<16x8xf32, #tpu.memory_space<smem>>
    %835 = vector.broadcast %834 : f32 to vector<4x256xf32>
    %836 = arith.mulf %32, %835 : vector<4x256xf32>
    %837 = arith.addf %833, %836 : vector<4x256xf32>
    %c15_410 = arith.constant 15 : index
    %c7_411 = arith.constant 7 : index
    %838 = memref.load %arg12[%c15_410, %c7_411] : memref<16x8xf32, #tpu.memory_space<smem>>
    %839 = vector.broadcast %838 : f32 to vector<4x256xf32>
    %840 = arith.mulf %34, %839 : vector<4x256xf32>
    %841 = arith.addf %837, %840 : vector<4x256xf32>
    %c15_412 = arith.constant 15 : index
    %842 = memref.load %arg13[%c15_412] : memref<16xf32, #tpu.memory_space<smem>>
    %843 = vector.broadcast %842 : f32 to vector<4x256xf32>
    %844 = arith.addf %841, %843 : vector<4x256xf32>
    %cst_413 = arith.constant 0.000000e+00 : f32
    %845 = vector.broadcast %cst_413 : f32 to vector<4x256xf32>
    %846 = arith.maximumf %844, %845 : vector<4x256xf32>
    %c0_414 = arith.constant 0 : index
    %c15_415 = arith.constant 15 : index
    %847 = memref.load %arg14[%c0_414, %c15_415] : memref<4x16xf32, #tpu.memory_space<smem>>
    %848 = vector.broadcast %847 : f32 to vector<4x256xf32>
    %849 = arith.mulf %846, %848 : vector<4x256xf32>
    %850 = arith.addf %798, %849 : vector<4x256xf32>
    %c1_416 = arith.constant 1 : index
    %c15_417 = arith.constant 15 : index
    %851 = memref.load %arg14[%c1_416, %c15_417] : memref<4x16xf32, #tpu.memory_space<smem>>
    %852 = vector.broadcast %851 : f32 to vector<4x256xf32>
    %853 = arith.mulf %846, %852 : vector<4x256xf32>
    %854 = arith.addf %802, %853 : vector<4x256xf32>
    %c2_418 = arith.constant 2 : index
    %c15_419 = arith.constant 15 : index
    %855 = memref.load %arg14[%c2_418, %c15_419] : memref<4x16xf32, #tpu.memory_space<smem>>
    %856 = vector.broadcast %855 : f32 to vector<4x256xf32>
    %857 = arith.mulf %846, %856 : vector<4x256xf32>
    %858 = arith.addf %806, %857 : vector<4x256xf32>
    %c3_420 = arith.constant 3 : index
    %c15_421 = arith.constant 15 : index
    %859 = memref.load %arg14[%c3_420, %c15_421] : memref<4x16xf32, #tpu.memory_space<smem>>
    %860 = vector.broadcast %859 : f32 to vector<4x256xf32>
    %861 = arith.mulf %846, %860 : vector<4x256xf32>
    %862 = arith.addf %810, %861 : vector<4x256xf32>
    %c0_422 = arith.constant 0 : index
    %863 = memref.load %arg15[%c0_422] : memref<4xf32, #tpu.memory_space<smem>>
    %864 = vector.broadcast %863 : f32 to vector<4x256xf32>
    %865 = arith.addf %850, %864 : vector<4x256xf32>
    %866 = arith.mulf %865, %13 : vector<4x256xf32>
    %867 = arith.addf %866, %10 : vector<4x256xf32>
    %c1_423 = arith.constant 1 : index
    %868 = memref.load %arg15[%c1_423] : memref<4xf32, #tpu.memory_space<smem>>
    %869 = vector.broadcast %868 : f32 to vector<4x256xf32>
    %870 = arith.addf %854, %869 : vector<4x256xf32>
    %871 = arith.mulf %870, %13 : vector<4x256xf32>
    %872 = arith.addf %871, %10 : vector<4x256xf32>
    %c2_424 = arith.constant 2 : index
    %873 = memref.load %arg15[%c2_424] : memref<4xf32, #tpu.memory_space<smem>>
    %874 = vector.broadcast %873 : f32 to vector<4x256xf32>
    %875 = arith.addf %858, %874 : vector<4x256xf32>
    %876 = arith.mulf %875, %13 : vector<4x256xf32>
    %877 = arith.addf %876, %10 : vector<4x256xf32>
    %c3_425 = arith.constant 3 : index
    %878 = memref.load %arg15[%c3_425] : memref<4xf32, #tpu.memory_space<smem>>
    %879 = vector.broadcast %878 : f32 to vector<4x256xf32>
    %880 = arith.addf %862, %879 : vector<4x256xf32>
    %881 = arith.mulf %880, %13 : vector<4x256xf32>
    %882 = arith.addf %881, %10 : vector<4x256xf32>
    %883 = arith.subf %2, %6 : vector<4x256xf32>
    %884 = vector.broadcast %18 : f32 to vector<4x256xf32>
    %885 = arith.mulf %883, %884 : vector<4x256xf32>
    %886 = arith.subf %0, %885 : vector<4x256xf32>
    %887 = arith.subf %886, %867 : vector<4x256xf32>
    %888 = arith.subf %3, %7 : vector<4x256xf32>
    %889 = vector.broadcast %18 : f32 to vector<4x256xf32>
    %890 = arith.mulf %888, %889 : vector<4x256xf32>
    %891 = arith.subf %1, %890 : vector<4x256xf32>
    %892 = arith.subf %891, %877 : vector<4x256xf32>
    %c0_426 = arith.constant 0 : index
    %c0_427 = arith.constant 0 : index
    %893 = vector.load %arg16[%c0_426, %c0_427] : memref<4x256xf32, #tpu.memory_space<vmem>>, vector<4x256xf32>
    tpu.vector_store %arg16[%c0_426, %c0_427], %887 {strides = array<i32>} : memref<4x256xf32, #tpu.memory_space<vmem>>, vector<4x256xf32>,
    %c0_428 = arith.constant 0 : index
    %c0_429 = arith.constant 0 : index
    %894 = vector.load %arg17[%c0_428, %c0_429] : memref<4x256xf32, #tpu.memory_space<vmem>>, vector<4x256xf32>
    tpu.vector_store %arg17[%c0_428, %c0_429], %892 {strides = array<i32>} : memref<4x256xf32, #tpu.memory_space<vmem>>, vector<4x256xf32>,
    %c0_430 = arith.constant 0 : index
    %c0_431 = arith.constant 0 : index
    %895 = vector.load %arg18[%c0_430, %c0_431] : memref<4x256xf32, #tpu.memory_space<vmem>>, vector<4x256xf32>
    tpu.vector_store %arg18[%c0_430, %c0_431], %872 {strides = array<i32>} : memref<4x256xf32, #tpu.memory_space<vmem>>, vector<4x256xf32>,
    %c0_432 = arith.constant 0 : index
    %c0_433 = arith.constant 0 : index
    %896 = vector.load %arg19[%c0_432, %c0_433] : memref<4x256xf32, #tpu.memory_space<vmem>>, vector<4x256xf32>
    tpu.vector_store %arg19[%c0_432, %c0_433], %882 {strides = array<i32>} : memref<4x256xf32, #tpu.memory_space<vmem>>, vector<4x256xf32>,
    %cst_434 = arith.constant dense<0.000000e+00> : vector<4xf32>
    %897 = vector.multi_reduction <add>, %887, %cst_434 [1] : vector<4x256xf32> to vector<4xf32>
    %898 = vector.shape_cast %897 : vector<4xf32> to vector<4x1xf32>
    %cst_435 = arith.constant dense<0.000000e+00> : vector<4xf32>
    %899 = vector.multi_reduction <add>, %892, %cst_435 [1] : vector<4x256xf32> to vector<4xf32>
    %900 = vector.shape_cast %899 : vector<4xf32> to vector<4x1xf32>
    %901 = arith.addf %898, %900 : vector<4x1xf32>
    %cst_436 = arith.constant dense<0.000000e+00> : vector<4xf32>
    %902 = vector.multi_reduction <add>, %872, %cst_436 [1] : vector<4x256xf32> to vector<4xf32>
    %903 = vector.shape_cast %902 : vector<4xf32> to vector<4x1xf32>
    %904 = arith.addf %901, %903 : vector<4x1xf32>
    %cst_437 = arith.constant dense<0.000000e+00> : vector<4xf32>
    %905 = vector.multi_reduction <add>, %882, %cst_437 [1] : vector<4x256xf32> to vector<4xf32>
    %906 = vector.shape_cast %905 : vector<4xf32> to vector<4x1xf32>
    %907 = arith.addf %904, %906 : vector<4x1xf32>
    %908 = arith.mulf %887, %887 : vector<4x256xf32>
    %cst_438 = arith.constant dense<0.000000e+00> : vector<4xf32>
    %909 = vector.multi_reduction <add>, %908, %cst_438 [1] : vector<4x256xf32> to vector<4xf32>
    %910 = vector.shape_cast %909 : vector<4xf32> to vector<4x1xf32>
    %911 = arith.mulf %892, %892 : vector<4x256xf32>
    %cst_439 = arith.constant dense<0.000000e+00> : vector<4xf32>
    %912 = vector.multi_reduction <add>, %911, %cst_439 [1] : vector<4x256xf32> to vector<4xf32>
    %913 = vector.shape_cast %912 : vector<4xf32> to vector<4x1xf32>
    %914 = arith.addf %910, %913 : vector<4x1xf32>
    %915 = arith.mulf %872, %872 : vector<4x256xf32>
    %cst_440 = arith.constant dense<0.000000e+00> : vector<4xf32>
    %916 = vector.multi_reduction <add>, %915, %cst_440 [1] : vector<4x256xf32> to vector<4xf32>
    %917 = vector.shape_cast %916 : vector<4xf32> to vector<4x1xf32>
    %918 = arith.addf %914, %917 : vector<4x1xf32>
    %919 = arith.mulf %882, %882 : vector<4x256xf32>
    %cst_441 = arith.constant dense<0.000000e+00> : vector<4xf32>
    %920 = vector.multi_reduction <add>, %919, %cst_441 [1] : vector<4x256xf32> to vector<4xf32>
    %921 = vector.shape_cast %920 : vector<4xf32> to vector<4x1xf32>
    %922 = arith.addf %918, %921 : vector<4x1xf32>
    %c0_442 = arith.constant 0 : index
    %c0_443 = arith.constant 0 : index
    %923 = vector.load %arg20[%c0_442, %c0_443] : memref<4x2xf32, #tpu.memory_space<vmem>>, vector<4x1xf32>
    tpu.vector_store %arg20[%c0_442, %c0_443], %907 {strides = array<i32>} : memref<4x2xf32, #tpu.memory_space<vmem>>, vector<4x1xf32>,
    %c0_444 = arith.constant 0 : index
    %c1_445 = arith.constant 1 : index
    %924 = vector.load %arg20[%c0_444, %c1_445] : memref<4x2xf32, #tpu.memory_space<vmem>>, vector<4x1xf32>
    tpu.vector_store %arg20[%c0_444, %c1_445], %922 {strides = array<i32>} : memref<4x2xf32, #tpu.memory_space<vmem>>, vector<4x1xf32>,
    return
  }
  func.func @transform_0(%arg0: i32) -> (i32, i32) {
    %c0_i32 = arith.constant 0 : i32
    %c0_i32_0 = arith.constant 0 : i32
    return %arg0, %c0_i32 : i32, i32
  }
  func.func @transform_1(%arg0: i32) -> (i32, i32) {
    %c0_i32 = arith.constant 0 : i32
    %c0_i32_0 = arith.constant 0 : i32
    return %arg0, %c0_i32 : i32, i32
  }
  func.func @transform_2(%arg0: i32) -> (i32, i32) {
    %c0_i32 = arith.constant 0 : i32
    %c0_i32_0 = arith.constant 0 : i32
    return %arg0, %c0_i32 : i32, i32
  }
  func.func @transform_3(%arg0: i32) -> (i32, i32) {
    %c0_i32 = arith.constant 0 : i32
    %c0_i32_0 = arith.constant 0 : i32
    return %arg0, %c0_i32 : i32, i32
  }
  func.func @transform_4(%arg0: i32) -> (i32, i32) {
    %c0_i32 = arith.constant 0 : i32
    %c0_i32_0 = arith.constant 0 : i32
    return %arg0, %c0_i32 : i32, i32
  }
  func.func @transform_5(%arg0: i32) -> (i32, i32) {
    %c0_i32 = arith.constant 0 : i32
    %c0_i32_0 = arith.constant 0 : i32
    return %arg0, %c0_i32 : i32, i32
  }
  func.func @transform_6(%arg0: i32) -> (i32, i32) {
    %c0_i32 = arith.constant 0 : i32
    %c0_i32_0 = arith.constant 0 : i32
    return %arg0, %c0_i32 : i32, i32
  }
  func.func @transform_7(%arg0: i32) -> (i32, i32) {
    %c0_i32 = arith.constant 0 : i32
    %c0_i32_0 = arith.constant 0 : i32
    return %arg0, %c0_i32 : i32, i32
  }
  func.func @transform_8(%arg0: i32) -> (i32, i32) {
    %c0_i32 = arith.constant 0 : i32
    %c0_i32_0 = arith.constant 0 : i32
    return %arg0, %c0_i32 : i32, i32
  }
  func.func @transform_9(%arg0: i32) -> (i32, i32) {
    %c0_i32 = arith.constant 0 : i32
    %c0_i32_0 = arith.constant 0 : i32
    return %arg0, %c0_i32 : i32, i32
  }
  func.func @transform_10(%arg0: i32) -> i32 {
    %c0_i32 = arith.constant 0 : i32
    %c0_i32_0 = arith.constant 0 : i32
    return %c0_i32 : i32
  }
  func.func @transform_11(%arg0: i32) -> (i32, i32) {
    %c0_i32 = arith.constant 0 : i32
    %c0_i32_0 = arith.constant 0 : i32
    %c0_i32_1 = arith.constant 0 : i32
    return %c0_i32, %c0_i32_0 : i32, i32
  }
  func.func @transform_12(%arg0: i32) -> i32 {
    %c0_i32 = arith.constant 0 : i32
    %c0_i32_0 = arith.constant 0 : i32
    return %c0_i32 : i32
  }
  func.func @transform_13(%arg0: i32) -> (i32, i32) {
    %c0_i32 = arith.constant 0 : i32
    %c0_i32_0 = arith.constant 0 : i32
    %c0_i32_1 = arith.constant 0 : i32
    return %c0_i32, %c0_i32_0 : i32, i32
  }
  func.func @transform_14(%arg0: i32) -> i32 {
    %c0_i32 = arith.constant 0 : i32
    %c0_i32_0 = arith.constant 0 : i32
    return %c0_i32 : i32
  }
  func.func @transform_15(%arg0: i32) -> (i32, i32) {
    %c0_i32 = arith.constant 0 : i32
    %c0_i32_0 = arith.constant 0 : i32
    return %arg0, %c0_i32 : i32, i32
  }
  func.func @transform_16(%arg0: i32) -> (i32, i32) {
    %c0_i32 = arith.constant 0 : i32
    %c0_i32_0 = arith.constant 0 : i32
    return %arg0, %c0_i32 : i32, i32
  }
  func.func @transform_17(%arg0: i32) -> (i32, i32) {
    %c0_i32 = arith.constant 0 : i32
    %c0_i32_0 = arith.constant 0 : i32
    return %arg0, %c0_i32 : i32, i32
  }
  func.func @transform_18(%arg0: i32) -> (i32, i32) {
    %c0_i32 = arith.constant 0 : i32
    %c0_i32_0 = arith.constant 0 : i32
    return %arg0, %c0_i32 : i32, i32
  }
  func.func @transform_19(%arg0: i32) -> (i32, i32) {
    %c0_i32 = arith.constant 0 : i32
    %c0_i32_0 = arith.constant 0 : i32
    return %arg0, %c0_i32 : i32, i32
  }
}

module attributes {stable_mosaic.version = 11 : i64} {
  func.func @_cascade_fused_kernel(%arg0: i32, %arg1: memref<4x1xf32, #tpu.memory_space<vmem>>, %arg2: memref<4x1xf32, #tpu.memory_space<vmem>>, %arg3: memref<4x256xf32, #tpu.memory_space<vmem>>, %arg4: memref<4x256xf32, #tpu.memory_space<vmem>>, %arg5: memref<4x256xf32, #tpu.memory_space<vmem>>, %arg6: memref<4x256xf32, #tpu.memory_space<vmem>>, %arg7: memref<4x256xf32, #tpu.memory_space<vmem>>, %arg8: memref<4x256xf32, #tpu.memory_space<vmem>>, %arg9: memref<4x256xf32, #tpu.memory_space<vmem>>, %arg10: memref<4x256xf32, #tpu.memory_space<vmem>>, %arg11: memref<1xf32, #tpu.memory_space<smem>>, %arg12: memref<16x8xf32, #tpu.memory_space<smem>>, %arg13: memref<16xf32, #tpu.memory_space<smem>>, %arg14: memref<4x16xf32, #tpu.memory_space<smem>>, %arg15: memref<4xf32, #tpu.memory_space<smem>>, %arg16: memref<4x256xf32, #tpu.memory_space<vmem>>, %arg17: memref<4x256xf32, #tpu.memory_space<vmem>>, %arg18: memref<4x256xf32, #tpu.memory_space<vmem>>, %arg19: memref<4x256xf32, #tpu.memory_space<vmem>>, %arg20: memref<4x2xf32, #tpu.memory_space<vmem>>) attributes {dimension_semantics = [#tpu.dimension_semantics<parallel>], iteration_bounds = array<i64: 1>, scalar_prefetch = 0 : i64, scratch_operands = 0 : i64, tpu.core_type = #tpu.core_type<tc>, window_params = [{transform_indices = @transform_0, window_bounds = array<i64: 4, 1>}, {transform_indices = @transform_1, window_bounds = array<i64: 4, 1>}, {transform_indices = @transform_2, window_bounds = array<i64: 4, 256>}, {transform_indices = @transform_3, window_bounds = array<i64: 4, 256>}, {transform_indices = @transform_4, window_bounds = array<i64: 4, 256>}, {transform_indices = @transform_5, window_bounds = array<i64: 4, 256>}, {transform_indices = @transform_6, window_bounds = array<i64: 4, 256>}, {transform_indices = @transform_7, window_bounds = array<i64: 4, 256>}, {transform_indices = @transform_8, window_bounds = array<i64: 4, 256>}, {transform_indices = @transform_9, window_bounds = array<i64: 4, 256>}, {transform_indices = @transform_10, window_bounds = array<i64: 1>}, {transform_indices = @transform_11, window_bounds = array<i64: 16, 8>}, {transform_indices = @transform_12, window_bounds = array<i64: 16>}, {transform_indices = @transform_13, window_bounds = array<i64: 4, 16>}, {transform_indices = @transform_14, window_bounds = array<i64: 4>}, {transform_indices = @transform_15, window_bounds = array<i64: 4, 256>}, {transform_indices = @transform_16, window_bounds = array<i64: 4, 256>}, {transform_indices = @transform_17, window_bounds = array<i64: 4, 256>}, {transform_indices = @transform_18, window_bounds = array<i64: 4, 256>}, {transform_indices = @transform_19, window_bounds = array<i64: 4, 2>}]} {
    %c0 = arith.constant 0 : index
    %c0_0 = arith.constant 0 : index
    %0 = vector.load %arg3[%c0, %c0_0] : memref<4x256xf32, #tpu.memory_space<vmem>>, vector<4x256xf32>
    %c0_1 = arith.constant 0 : index
    %c0_2 = arith.constant 0 : index
    %1 = vector.load %arg4[%c0_1, %c0_2] : memref<4x256xf32, #tpu.memory_space<vmem>>, vector<4x256xf32>
    %c0_3 = arith.constant 0 : index
    %c0_4 = arith.constant 0 : index
    %2 = vector.load %arg5[%c0_3, %c0_4] : memref<4x256xf32, #tpu.memory_space<vmem>>, vector<4x256xf32>
    %c0_5 = arith.constant 0 : index
    %c0_6 = arith.constant 0 : index
    %3 = vector.load %arg6[%c0_5, %c0_6] : memref<4x256xf32, #tpu.memory_space<vmem>>, vector<4x256xf32>
    %c0_7 = arith.constant 0 : index
    %c0_8 = arith.constant 0 : index
    %4 = vector.load %arg7[%c0_7, %c0_8] : memref<4x256xf32, #tpu.memory_space<vmem>>, vector<4x256xf32>
    %c0_9 = arith.constant 0 : index
    %c0_10 = arith.constant 0 : index
    %5 = vector.load %arg8[%c0_9, %c0_10] : memref<4x256xf32, #tpu.memory_space<vmem>>, vector<4x256xf32>
    %c0_11 = arith.constant 0 : index
    %c0_12 = arith.constant 0 : index
    %6 = vector.load %arg9[%c0_11, %c0_12] : memref<4x256xf32, #tpu.memory_space<vmem>>, vector<4x256xf32>
    %c0_13 = arith.constant 0 : index
    %c0_14 = arith.constant 0 : index
    %7 = vector.load %arg10[%c0_13, %c0_14] : memref<4x256xf32, #tpu.memory_space<vmem>>, vector<4x256xf32>
    %c0_15 = arith.constant 0 : index
    %c0_16 = arith.constant 0 : index
    %8 = vector.load %arg1[%c0_15, %c0_16] : memref<4x1xf32, #tpu.memory_space<vmem>>, vector<4x1xf32>
    %9 = vector.shape_cast %8 : vector<4x1xf32> to vector<4x1xf32>
    %10 = vector.broadcast %9 : vector<4x1xf32> to vector<4x256xf32>
    %c0_17 = arith.constant 0 : index
    %c0_18 = arith.constant 0 : index
    %11 = vector.load %arg2[%c0_17, %c0_18] : memref<4x1xf32, #tpu.memory_space<vmem>>, vector<4x1xf32>
    %12 = vector.shape_cast %11 : vector<4x1xf32> to vector<4x1xf32>
    %13 = vector.broadcast %12 : vector<4x1xf32> to vector<4x256xf32>
    %cst = arith.constant 9.99999996E-13 : f32
    %14 = vector.broadcast %cst : f32 to vector<4x256xf32>
    %15 = arith.maximumf %13, %14 : vector<4x256xf32>
    %cst_19 = arith.constant 1.000000e+00 : f32
    %16 = vector.broadcast %cst_19 : f32 to vector<4x256xf32>
    %17 = arith.divf %16, %15 : vector<4x256xf32>
    %c0_20 = arith.constant 0 : index
    %18 = memref.load %arg11[%c0_20] : memref<1xf32, #tpu.memory_space<smem>>
    %19 = arith.subf %0, %10 : vector<4x256xf32>
    %20 = arith.mulf %19, %17 : vector<4x256xf32>
    %21 = arith.subf %2, %10 : vector<4x256xf32>
    %22 = arith.mulf %21, %17 : vector<4x256xf32>
    %23 = arith.subf %4, %10 : vector<4x256xf32>
    %24 = arith.mulf %23, %17 : vector<4x256xf32>
    %25 = arith.subf %6, %10 : vector<4x256xf32>
    %26 = arith.mulf %25, %17 : vector<4x256xf32>
    %27 = arith.subf %1, %10 : vector<4x256xf32>
    %28 = arith.mulf %27, %17 : vector<4x256xf32>
    %29 = arith.subf %3, %10 : vector<4x256xf32>
    %30 = arith.mulf %29, %17 : vector<4x256xf32>
    %31 = arith.subf %5, %10 : vector<4x256xf32>
    %32 = arith.mulf %31, %17 : vector<4x256xf32>
    %33 = arith.subf %7, %10 : vector<4x256xf32>
    %34 = arith.mulf %33, %17 : vector<4x256xf32>
    %c0_21 = arith.constant 0 : index
    %c0_22 = arith.constant 0 : index
    %35 = memref.load %arg12[%c0_21, %c0_22] : memref<16x8xf32, #tpu.memory_space<smem>>
    %36 = vector.broadcast %35 : f32 to vector<4x256xf32>
    %37 = arith.mulf %20, %36 : vector<4x256xf32>
    %c0_23 = arith.constant 0 : index
    %c1 = arith.constant 1 : index
    %38 = memref.load %arg12[%c0_23, %c1] : memref<16x8xf32, #tpu.memory_space<smem>>
    %39 = vector.broadcast %38 : f32 to vector<4x256xf32>
    %40 = arith.mulf %22, %39 : vector<4x256xf32>
    %41 = arith.addf %37, %40 : vector<4x256xf32>
    %c0_24 = arith.constant 0 : index
    %c2 = arith.constant 2 : index
    %42 = memref.load %arg12[%c0_24, %c2] : memref<16x8xf32, #tpu.memory_space<smem>>
    %43 = vector.broadcast %42 : f32 to vector<4x256xf32>
    %44 = arith.mulf %24, %43 : vector<4x256xf32>
    %45 = arith.addf %41, %44 : vector<4x256xf32>
    %c0_25 = arith.constant 0 : index
    %c3 = arith.constant 3 : index
    %46 = memref.load %arg12[%c0_25, %c3] : memref<16x8xf32, #tpu.memory_space<smem>>
    %47 = vector.broadcast %46 : f32 to vector<4x256xf32>
    %48 = arith.mulf %26, %47 : vector<4x256xf32>
    %49 = arith.addf %45, %48 : vector<4x256xf32>
    %c0_26 = arith.constant 0 : index
    %c4 = arith.constant 4 : index
    %50 = memref.load %arg12[%c0_26, %c4] : memref<16x8xf32, #tpu.memory_space<smem>>
    %51 = vector.broadcast %50 : f32 to vector<4x256xf32>
    %52 = arith.mulf %28, %51 : vector<4x256xf32>
    %53 = arith.addf %49, %52 : vector<4x256xf32>
    %c0_27 = arith.constant 0 : index
    %c5 = arith.constant 5 : index
    %54 = memref.load %arg12[%c0_27, %c5] : memref<16x8xf32, #tpu.memory_space<smem>>
    %55 = vector.broadcast %54 : f32 to vector<4x256xf32>
    %56 = arith.mulf %30, %55 : vector<4x256xf32>
    %57 = arith.addf %53, %56 : vector<4x256xf32>
    %c0_28 = arith.constant 0 : index
    %c6 = arith.constant 6 : index
    %58 = memref.load %arg12[%c0_28, %c6] : memref<16x8xf32, #tpu.memory_space<smem>>
    %59 = vector.broadcast %58 : f32 to vector<4x256xf32>
    %60 = arith.mulf %32, %59 : vector<4x256xf32>
    %61 = arith.addf %57, %60 : vector<4x256xf32>
    %c0_29 = arith.constant 0 : index
    %c7 = arith.constant 7 : index
    %62 = memref.load %arg12[%c0_29, %c7] : memref<16x8xf32, #tpu.memory_space<smem>>
    %63 = vector.broadcast %62 : f32 to vector<4x256xf32>
    %64 = arith.mulf %34, %63 : vector<4x256xf32>
    %65 = arith.addf %61, %64 : vector<4x256xf32>
    %c0_30 = arith.constant 0 : index
    %66 = memref.load %arg13[%c0_30] : memref<16xf32, #tpu.memory_space<smem>>
    %67 = vector.broadcast %66 : f32 to vector<4x256xf32>
    %68 = arith.addf %65, %67 : vector<4x256xf32>
    %cst_31 = arith.constant 0.000000e+00 : f32
    %69 = vector.broadcast %cst_31 : f32 to vector<4x256xf32>
    %70 = arith.maximumf %68, %69 : vector<4x256xf32>
    %c0_32 = arith.constant 0 : index
    %c0_33 = arith.constant 0 : index
    %71 = memref.load %arg14[%c0_32, %c0_33] : memref<4x16xf32, #tpu.memory_space<smem>>
    %72 = vector.broadcast %71 : f32 to vector<4x256xf32>
    %73 = arith.mulf %70, %72 : vector<4x256xf32>
    %c1_34 = arith.constant 1 : index
    %c0_35 = arith.constant 0 : index
    %74 = memref.load %arg14[%c1_34, %c0_35] : memref<4x16xf32, #tpu.memory_space<smem>>
    %75 = vector.broadcast %74 : f32 to vector<4x256xf32>
    %76 = arith.mulf %70, %75 : vector<4x256xf32>
    %c2_36 = arith.constant 2 : index
    %c0_37 = arith.constant 0 : index
    %77 = memref.load %arg14[%c2_36, %c0_37] : memref<4x16xf32, #tpu.memory_space<smem>>
    %78 = vector.broadcast %77 : f32 to vector<4x256xf32>
    %79 = arith.mulf %70, %78 : vector<4x256xf32>
    %c3_38 = arith.constant 3 : index
    %c0_39 = arith.constant 0 : index
    %80 = memref.load %arg14[%c3_38, %c0_39] : memref<4x16xf32, #tpu.memory_space<smem>>
    %81 = vector.broadcast %80 : f32 to vector<4x256xf32>
    %82 = arith.mulf %70, %81 : vector<4x256xf32>
    %c1_40 = arith.constant 1 : index
    %c0_41 = arith.constant 0 : index
    %83 = memref.load %arg12[%c1_40, %c0_41] : memref<16x8xf32, #tpu.memory_space<smem>>
    %84 = vector.broadcast %83 : f32 to vector<4x256xf32>
    %85 = arith.mulf %20, %84 : vector<4x256xf32>
    %c1_42 = arith.constant 1 : index
    %c1_43 = arith.constant 1 : index
    %86 = memref.load %arg12[%c1_42, %c1_43] : memref<16x8xf32, #tpu.memory_space<smem>>
    %87 = vector.broadcast %86 : f32 to vector<4x256xf32>
    %88 = arith.mulf %22, %87 : vector<4x256xf32>
    %89 = arith.addf %85, %88 : vector<4x256xf32>
    %c1_44 = arith.constant 1 : index
    %c2_45 = arith.constant 2 : index
    %90 = memref.load %arg12[%c1_44, %c2_45] : memref<16x8xf32, #tpu.memory_space<smem>>
    %91 = vector.broadcast %90 : f32 to vector<4x256xf32>
    %92 = arith.mulf %24, %91 : vector<4x256xf32>
    %93 = arith.addf %89, %92 : vector<4x256xf32>
    %c1_46 = arith.constant 1 : index
    %c3_47 = arith.constant 3 : index
    %94 = memref.load %arg12[%c1_46, %c3_47] : memref<16x8xf32, #tpu.memory_space<smem>>
    %95 = vector.broadcast %94 : f32 to vector<4x256xf32>
    %96 = arith.mulf %26, %95 : vector<4x256xf32>
    %97 = arith.addf %93, %96 : vector<4x256xf32>
    %c1_48 = arith.constant 1 : index
    %c4_49 = arith.constant 4 : index
    %98 = memref.load %arg12[%c1_48, %c4_49] : memref<16x8xf32, #tpu.memory_space<smem>>
    %99 = vector.broadcast %98 : f32 to vector<4x256xf32>
    %100 = arith.mulf %28, %99 : vector<4x256xf32>
    %101 = arith.addf %97, %100 : vector<4x256xf32>
    %c1_50 = arith.constant 1 : index
    %c5_51 = arith.constant 5 : index
    %102 = memref.load %arg12[%c1_50, %c5_51] : memref<16x8xf32, #tpu.memory_space<smem>>
    %103 = vector.broadcast %102 : f32 to vector<4x256xf32>
    %104 = arith.mulf %30, %103 : vector<4x256xf32>
    %105 = arith.addf %101, %104 : vector<4x256xf32>
    %c1_52 = arith.constant 1 : index
    %c6_53 = arith.constant 6 : index
    %106 = memref.load %arg12[%c1_52, %c6_53] : memref<16x8xf32, #tpu.memory_space<smem>>
    %107 = vector.broadcast %106 : f32 to vector<4x256xf32>
    %108 = arith.mulf %32, %107 : vector<4x256xf32>
    %109 = arith.addf %105, %108 : vector<4x256xf32>
    %c1_54 = arith.constant 1 : index
    %c7_55 = arith.constant 7 : index
    %110 = memref.load %arg12[%c1_54, %c7_55] : memref<16x8xf32, #tpu.memory_space<smem>>
    %111 = vector.broadcast %110 : f32 to vector<4x256xf32>
    %112 = arith.mulf %34, %111 : vector<4x256xf32>
    %113 = arith.addf %109, %112 : vector<4x256xf32>
    %c1_56 = arith.constant 1 : index
    %114 = memref.load %arg13[%c1_56] : memref<16xf32, #tpu.memory_space<smem>>
    %115 = vector.broadcast %114 : f32 to vector<4x256xf32>
    %116 = arith.addf %113, %115 : vector<4x256xf32>
    %cst_57 = arith.constant 0.000000e+00 : f32
    %117 = vector.broadcast %cst_57 : f32 to vector<4x256xf32>
    %118 = arith.maximumf %116, %117 : vector<4x256xf32>
    %c0_58 = arith.constant 0 : index
    %c1_59 = arith.constant 1 : index
    %119 = memref.load %arg14[%c0_58, %c1_59] : memref<4x16xf32, #tpu.memory_space<smem>>
    %120 = vector.broadcast %119 : f32 to vector<4x256xf32>
    %121 = arith.mulf %118, %120 : vector<4x256xf32>
    %122 = arith.addf %73, %121 : vector<4x256xf32>
    %c1_60 = arith.constant 1 : index
    %c1_61 = arith.constant 1 : index
    %123 = memref.load %arg14[%c1_60, %c1_61] : memref<4x16xf32, #tpu.memory_space<smem>>
    %124 = vector.broadcast %123 : f32 to vector<4x256xf32>
    %125 = arith.mulf %118, %124 : vector<4x256xf32>
    %126 = arith.addf %76, %125 : vector<4x256xf32>
    %c2_62 = arith.constant 2 : index
    %c1_63 = arith.constant 1 : index
    %127 = memref.load %arg14[%c2_62, %c1_63] : memref<4x16xf32, #tpu.memory_space<smem>>
    %128 = vector.broadcast %127 : f32 to vector<4x256xf32>
    %129 = arith.mulf %118, %128 : vector<4x256xf32>
    %130 = arith.addf %79, %129 : vector<4x256xf32>
    %c3_64 = arith.constant 3 : index
    %c1_65 = arith.constant 1 : index
    %131 = memref.load %arg14[%c3_64, %c1_65] : memref<4x16xf32, #tpu.memory_space<smem>>
    %132 = vector.broadcast %131 : f32 to vector<4x256xf32>
    %133 = arith.mulf %118, %132 : vector<4x256xf32>
    %134 = arith.addf %82, %133 : vector<4x256xf32>
    %c2_66 = arith.constant 2 : index
    %c0_67 = arith.constant 0 : index
    %135 = memref.load %arg12[%c2_66, %c0_67] : memref<16x8xf32, #tpu.memory_space<smem>>
    %136 = vector.broadcast %135 : f32 to vector<4x256xf32>
    %137 = arith.mulf %20, %136 : vector<4x256xf32>
    %c2_68 = arith.constant 2 : index
    %c1_69 = arith.constant 1 : index
    %138 = memref.load %arg12[%c2_68, %c1_69] : memref<16x8xf32, #tpu.memory_space<smem>>
    %139 = vector.broadcast %138 : f32 to vector<4x256xf32>
    %140 = arith.mulf %22, %139 : vector<4x256xf32>
    %141 = arith.addf %137, %140 : vector<4x256xf32>
    %c2_70 = arith.constant 2 : index
    %c2_71 = arith.constant 2 : index
    %142 = memref.load %arg12[%c2_70, %c2_71] : memref<16x8xf32, #tpu.memory_space<smem>>
    %143 = vector.broadcast %142 : f32 to vector<4x256xf32>
    %144 = arith.mulf %24, %143 : vector<4x256xf32>
    %145 = arith.addf %141, %144 : vector<4x256xf32>
    %c2_72 = arith.constant 2 : index
    %c3_73 = arith.constant 3 : index
    %146 = memref.load %arg12[%c2_72, %c3_73] : memref<16x8xf32, #tpu.memory_space<smem>>
    %147 = vector.broadcast %146 : f32 to vector<4x256xf32>
    %148 = arith.mulf %26, %147 : vector<4x256xf32>
    %149 = arith.addf %145, %148 : vector<4x256xf32>
    %c2_74 = arith.constant 2 : index
    %c4_75 = arith.constant 4 : index
    %150 = memref.load %arg12[%c2_74, %c4_75] : memref<16x8xf32, #tpu.memory_space<smem>>
    %151 = vector.broadcast %150 : f32 to vector<4x256xf32>
    %152 = arith.mulf %28, %151 : vector<4x256xf32>
    %153 = arith.addf %149, %152 : vector<4x256xf32>
    %c2_76 = arith.constant 2 : index
    %c5_77 = arith.constant 5 : index
    %154 = memref.load %arg12[%c2_76, %c5_77] : memref<16x8xf32, #tpu.memory_space<smem>>
    %155 = vector.broadcast %154 : f32 to vector<4x256xf32>
    %156 = arith.mulf %30, %155 : vector<4x256xf32>
    %157 = arith.addf %153, %156 : vector<4x256xf32>
    %c2_78 = arith.constant 2 : index
    %c6_79 = arith.constant 6 : index
    %158 = memref.load %arg12[%c2_78, %c6_79] : memref<16x8xf32, #tpu.memory_space<smem>>
    %159 = vector.broadcast %158 : f32 to vector<4x256xf32>
    %160 = arith.mulf %32, %159 : vector<4x256xf32>
    %161 = arith.addf %157, %160 : vector<4x256xf32>
    %c2_80 = arith.constant 2 : index
    %c7_81 = arith.constant 7 : index
    %162 = memref.load %arg12[%c2_80, %c7_81] : memref<16x8xf32, #tpu.memory_space<smem>>
    %163 = vector.broadcast %162 : f32 to vector<4x256xf32>
    %164 = arith.mulf %34, %163 : vector<4x256xf32>
    %165 = arith.addf %161, %164 : vector<4x256xf32>
    %c2_82 = arith.constant 2 : index
    %166 = memref.load %arg13[%c2_82] : memref<16xf32, #tpu.memory_space<smem>>
    %167 = vector.broadcast %166 : f32 to vector<4x256xf32>
    %168 = arith.addf %165, %167 : vector<4x256xf32>
    %cst_83 = arith.constant 0.000000e+00 : f32
    %169 = vector.broadcast %cst_83 : f32 to vector<4x256xf32>
    %170 = arith.maximumf %168, %169 : vector<4x256xf32>
    %c0_84 = arith.constant 0 : index
    %c2_85 = arith.constant 2 : index
    %171 = memref.load %arg14[%c0_84, %c2_85] : memref<4x16xf32, #tpu.memory_space<smem>>
    %172 = vector.broadcast %171 : f32 to vector<4x256xf32>
    %173 = arith.mulf %170, %172 : vector<4x256xf32>
    %174 = arith.addf %122, %173 : vector<4x256xf32>
    %c1_86 = arith.constant 1 : index
    %c2_87 = arith.constant 2 : index
    %175 = memref.load %arg14[%c1_86, %c2_87] : memref<4x16xf32, #tpu.memory_space<smem>>
    %176 = vector.broadcast %175 : f32 to vector<4x256xf32>
    %177 = arith.mulf %170, %176 : vector<4x256xf32>
    %178 = arith.addf %126, %177 : vector<4x256xf32>
    %c2_88 = arith.constant 2 : index
    %c2_89 = arith.constant 2 : index
    %179 = memref.load %arg14[%c2_88, %c2_89] : memref<4x16xf32, #tpu.memory_space<smem>>
    %180 = vector.broadcast %179 : f32 to vector<4x256xf32>
    %181 = arith.mulf %170, %180 : vector<4x256xf32>
    %182 = arith.addf %130, %181 : vector<4x256xf32>
    %c3_90 = arith.constant 3 : index
    %c2_91 = arith.constant 2 : index
    %183 = memref.load %arg14[%c3_90, %c2_91] : memref<4x16xf32, #tpu.memory_space<smem>>
    %184 = vector.broadcast %183 : f32 to vector<4x256xf32>
    %185 = arith.mulf %170, %184 : vector<4x256xf32>
    %186 = arith.addf %134, %185 : vector<4x256xf32>
    %c3_92 = arith.constant 3 : index
    %c0_93 = arith.constant 0 : index
    %187 = memref.load %arg12[%c3_92, %c0_93] : memref<16x8xf32, #tpu.memory_space<smem>>
    %188 = vector.broadcast %187 : f32 to vector<4x256xf32>
    %189 = arith.mulf %20, %188 : vector<4x256xf32>
    %c3_94 = arith.constant 3 : index
    %c1_95 = arith.constant 1 : index
    %190 = memref.load %arg12[%c3_94, %c1_95] : memref<16x8xf32, #tpu.memory_space<smem>>
    %191 = vector.broadcast %190 : f32 to vector<4x256xf32>
    %192 = arith.mulf %22, %191 : vector<4x256xf32>
    %193 = arith.addf %189, %192 : vector<4x256xf32>
    %c3_96 = arith.constant 3 : index
    %c2_97 = arith.constant 2 : index
    %194 = memref.load %arg12[%c3_96, %c2_97] : memref<16x8xf32, #tpu.memory_space<smem>>
    %195 = vector.broadcast %194 : f32 to vector<4x256xf32>
    %196 = arith.mulf %24, %195 : vector<4x256xf32>
    %197 = arith.addf %193, %196 : vector<4x256xf32>
    %c3_98 = arith.constant 3 : index
    %c3_99 = arith.constant 3 : index
    %198 = memref.load %arg12[%c3_98, %c3_99] : memref<16x8xf32, #tpu.memory_space<smem>>
    %199 = vector.broadcast %198 : f32 to vector<4x256xf32>
    %200 = arith.mulf %26, %199 : vector<4x256xf32>
    %201 = arith.addf %197, %200 : vector<4x256xf32>
    %c3_100 = arith.constant 3 : index
    %c4_101 = arith.constant 4 : index
    %202 = memref.load %arg12[%c3_100, %c4_101] : memref<16x8xf32, #tpu.memory_space<smem>>
    %203 = vector.broadcast %202 : f32 to vector<4x256xf32>
    %204 = arith.mulf %28, %203 : vector<4x256xf32>
    %205 = arith.addf %201, %204 : vector<4x256xf32>
    %c3_102 = arith.constant 3 : index
    %c5_103 = arith.constant 5 : index
    %206 = memref.load %arg12[%c3_102, %c5_103] : memref<16x8xf32, #tpu.memory_space<smem>>
    %207 = vector.broadcast %206 : f32 to vector<4x256xf32>
    %208 = arith.mulf %30, %207 : vector<4x256xf32>
    %209 = arith.addf %205, %208 : vector<4x256xf32>
    %c3_104 = arith.constant 3 : index
    %c6_105 = arith.constant 6 : index
    %210 = memref.load %arg12[%c3_104, %c6_105] : memref<16x8xf32, #tpu.memory_space<smem>>
    %211 = vector.broadcast %210 : f32 to vector<4x256xf32>
    %212 = arith.mulf %32, %211 : vector<4x256xf32>
    %213 = arith.addf %209, %212 : vector<4x256xf32>
    %c3_106 = arith.constant 3 : index
    %c7_107 = arith.constant 7 : index
    %214 = memref.load %arg12[%c3_106, %c7_107] : memref<16x8xf32, #tpu.memory_space<smem>>
    %215 = vector.broadcast %214 : f32 to vector<4x256xf32>
    %216 = arith.mulf %34, %215 : vector<4x256xf32>
    %217 = arith.addf %213, %216 : vector<4x256xf32>
    %c3_108 = arith.constant 3 : index
    %218 = memref.load %arg13[%c3_108] : memref<16xf32, #tpu.memory_space<smem>>
    %219 = vector.broadcast %218 : f32 to vector<4x256xf32>
    %220 = arith.addf %217, %219 : vector<4x256xf32>
    %cst_109 = arith.constant 0.000000e+00 : f32
    %221 = vector.broadcast %cst_109 : f32 to vector<4x256xf32>
    %222 = arith.maximumf %220, %221 : vector<4x256xf32>
    %c0_110 = arith.constant 0 : index
    %c3_111 = arith.constant 3 : index
    %223 = memref.load %arg14[%c0_110, %c3_111] : memref<4x16xf32, #tpu.memory_space<smem>>
    %224 = vector.broadcast %223 : f32 to vector<4x256xf32>
    %225 = arith.mulf %222, %224 : vector<4x256xf32>
    %226 = arith.addf %174, %225 : vector<4x256xf32>
    %c1_112 = arith.constant 1 : index
    %c3_113 = arith.constant 3 : index
    %227 = memref.load %arg14[%c1_112, %c3_113] : memref<4x16xf32, #tpu.memory_space<smem>>
    %228 = vector.broadcast %227 : f32 to vector<4x256xf32>
    %229 = arith.mulf %222, %228 : vector<4x256xf32>
    %230 = arith.addf %178, %229 : vector<4x256xf32>
    %c2_114 = arith.constant 2 : index
    %c3_115 = arith.constant 3 : index
    %231 = memref.load %arg14[%c2_114, %c3_115] : memref<4x16xf32, #tpu.memory_space<smem>>
    %232 = vector.broadcast %231 : f32 to vector<4x256xf32>
    %233 = arith.mulf %222, %232 : vector<4x256xf32>
    %234 = arith.addf %182, %233 : vector<4x256xf32>
    %c3_116 = arith.constant 3 : index
    %c3_117 = arith.constant 3 : index
    %235 = memref.load %arg14[%c3_116, %c3_117] : memref<4x16xf32, #tpu.memory_space<smem>>
    %236 = vector.broadcast %235 : f32 to vector<4x256xf32>
    %237 = arith.mulf %222, %236 : vector<4x256xf32>
    %238 = arith.addf %186, %237 : vector<4x256xf32>
    %c4_118 = arith.constant 4 : index
    %c0_119 = arith.constant 0 : index
    %239 = memref.load %arg12[%c4_118, %c0_119] : memref<16x8xf32, #tpu.memory_space<smem>>
    %240 = vector.broadcast %239 : f32 to vector<4x256xf32>
    %241 = arith.mulf %20, %240 : vector<4x256xf32>
    %c4_120 = arith.constant 4 : index
    %c1_121 = arith.constant 1 : index
    %242 = memref.load %arg12[%c4_120, %c1_121] : memref<16x8xf32, #tpu.memory_space<smem>>
    %243 = vector.broadcast %242 : f32 to vector<4x256xf32>
    %244 = arith.mulf %22, %243 : vector<4x256xf32>
    %245 = arith.addf %241, %244 : vector<4x256xf32>
    %c4_122 = arith.constant 4 : index
    %c2_123 = arith.constant 2 : index
    %246 = memref.load %arg12[%c4_122, %c2_123] : memref<16x8xf32, #tpu.memory_space<smem>>
    %247 = vector.broadcast %246 : f32 to vector<4x256xf32>
    %248 = arith.mulf %24, %247 : vector<4x256xf32>
    %249 = arith.addf %245, %248 : vector<4x256xf32>
    %c4_124 = arith.constant 4 : index
    %c3_125 = arith.constant 3 : index
    %250 = memref.load %arg12[%c4_124, %c3_125] : memref<16x8xf32, #tpu.memory_space<smem>>
    %251 = vector.broadcast %250 : f32 to vector<4x256xf32>
    %252 = arith.mulf %26, %251 : vector<4x256xf32>
    %253 = arith.addf %249, %252 : vector<4x256xf32>
    %c4_126 = arith.constant 4 : index
    %c4_127 = arith.constant 4 : index
    %254 = memref.load %arg12[%c4_126, %c4_127] : memref<16x8xf32, #tpu.memory_space<smem>>
    %255 = vector.broadcast %254 : f32 to vector<4x256xf32>
    %256 = arith.mulf %28, %255 : vector<4x256xf32>
    %257 = arith.addf %253, %256 : vector<4x256xf32>
    %c4_128 = arith.constant 4 : index
    %c5_129 = arith.constant 5 : index
    %258 = memref.load %arg12[%c4_128, %c5_129] : memref<16x8xf32, #tpu.memory_space<smem>>
    %259 = vector.broadcast %258 : f32 to vector<4x256xf32>
    %260 = arith.mulf %30, %259 : vector<4x256xf32>
    %261 = arith.addf %257, %260 : vector<4x256xf32>
    %c4_130 = arith.constant 4 : index
    %c6_131 = arith.constant 6 : index
    %262 = memref.load %arg12[%c4_130, %c6_131] : memref<16x8xf32, #tpu.memory_space<smem>>
    %263 = vector.broadcast %262 : f32 to vector<4x256xf32>
    %264 = arith.mulf %32, %263 : vector<4x256xf32>
    %265 = arith.addf %261, %264 : vector<4x256xf32>
    %c4_132 = arith.constant 4 : index
    %c7_133 = arith.constant 7 : index
    %266 = memref.load %arg12[%c4_132, %c7_133] : memref<16x8xf32, #tpu.memory_space<smem>>
    %267 = vector.broadcast %266 : f32 to vector<4x256xf32>
    %268 = arith.mulf %34, %267 : vector<4x256xf32>
    %269 = arith.addf %265, %268 : vector<4x256xf32>
    %c4_134 = arith.constant 4 : index
    %270 = memref.load %arg13[%c4_134] : memref<16xf32, #tpu.memory_space<smem>>
    %271 = vector.broadcast %270 : f32 to vector<4x256xf32>
    %272 = arith.addf %269, %271 : vector<4x256xf32>
    %cst_135 = arith.constant 0.000000e+00 : f32
    %273 = vector.broadcast %cst_135 : f32 to vector<4x256xf32>
    %274 = arith.maximumf %272, %273 : vector<4x256xf32>
    %c0_136 = arith.constant 0 : index
    %c4_137 = arith.constant 4 : index
    %275 = memref.load %arg14[%c0_136, %c4_137] : memref<4x16xf32, #tpu.memory_space<smem>>
    %276 = vector.broadcast %275 : f32 to vector<4x256xf32>
    %277 = arith.mulf %274, %276 : vector<4x256xf32>
    %278 = arith.addf %226, %277 : vector<4x256xf32>
    %c1_138 = arith.constant 1 : index
    %c4_139 = arith.constant 4 : index
    %279 = memref.load %arg14[%c1_138, %c4_139] : memref<4x16xf32, #tpu.memory_space<smem>>
    %280 = vector.broadcast %279 : f32 to vector<4x256xf32>
    %281 = arith.mulf %274, %280 : vector<4x256xf32>
    %282 = arith.addf %230, %281 : vector<4x256xf32>
    %c2_140 = arith.constant 2 : index
    %c4_141 = arith.constant 4 : index
    %283 = memref.load %arg14[%c2_140, %c4_141] : memref<4x16xf32, #tpu.memory_space<smem>>
    %284 = vector.broadcast %283 : f32 to vector<4x256xf32>
    %285 = arith.mulf %274, %284 : vector<4x256xf32>
    %286 = arith.addf %234, %285 : vector<4x256xf32>
    %c3_142 = arith.constant 3 : index
    %c4_143 = arith.constant 4 : index
    %287 = memref.load %arg14[%c3_142, %c4_143] : memref<4x16xf32, #tpu.memory_space<smem>>
    %288 = vector.broadcast %287 : f32 to vector<4x256xf32>
    %289 = arith.mulf %274, %288 : vector<4x256xf32>
    %290 = arith.addf %238, %289 : vector<4x256xf32>
    %c5_144 = arith.constant 5 : index
    %c0_145 = arith.constant 0 : index
    %291 = memref.load %arg12[%c5_144, %c0_145] : memref<16x8xf32, #tpu.memory_space<smem>>
    %292 = vector.broadcast %291 : f32 to vector<4x256xf32>
    %293 = arith.mulf %20, %292 : vector<4x256xf32>
    %c5_146 = arith.constant 5 : index
    %c1_147 = arith.constant 1 : index
    %294 = memref.load %arg12[%c5_146, %c1_147] : memref<16x8xf32, #tpu.memory_space<smem>>
    %295 = vector.broadcast %294 : f32 to vector<4x256xf32>
    %296 = arith.mulf %22, %295 : vector<4x256xf32>
    %297 = arith.addf %293, %296 : vector<4x256xf32>
    %c5_148 = arith.constant 5 : index
    %c2_149 = arith.constant 2 : index
    %298 = memref.load %arg12[%c5_148, %c2_149] : memref<16x8xf32, #tpu.memory_space<smem>>
    %299 = vector.broadcast %298 : f32 to vector<4x256xf32>
    %300 = arith.mulf %24, %299 : vector<4x256xf32>
    %301 = arith.addf %297, %300 : vector<4x256xf32>
    %c5_150 = arith.constant 5 : index
    %c3_151 = arith.constant 3 : index
    %302 = memref.load %arg12[%c5_150, %c3_151] : memref<16x8xf32, #tpu.memory_space<smem>>
    %303 = vector.broadcast %302 : f32 to vector<4x256xf32>
    %304 = arith.mulf %26, %303 : vector<4x256xf32>
    %305 = arith.addf %301, %304 : vector<4x256xf32>
    %c5_152 = arith.constant 5 : index
    %c4_153 = arith.constant 4 : index
    %306 = memref.load %arg12[%c5_152, %c4_153] : memref<16x8xf32, #tpu.memory_space<smem>>
    %307 = vector.broadcast %306 : f32 to vector<4x256xf32>
    %308 = arith.mulf %28, %307 : vector<4x256xf32>
    %309 = arith.addf %305, %308 : vector<4x256xf32>
    %c5_154 = arith.constant 5 : index
    %c5_155 = arith.constant 5 : index
    %310 = memref.load %arg12[%c5_154, %c5_155] : memref<16x8xf32, #tpu.memory_space<smem>>
    %311 = vector.broadcast %310 : f32 to vector<4x256xf32>
    %312 = arith.mulf %30, %311 : vector<4x256xf32>
    %313 = arith.addf %309, %312 : vector<4x256xf32>
    %c5_156 = arith.constant 5 : index
    %c6_157 = arith.constant 6 : index
    %314 = memref.load %arg12[%c5_156, %c6_157] : memref<16x8xf32, #tpu.memory_space<smem>>
    %315 = vector.broadcast %314 : f32 to vector<4x256xf32>
    %316 = arith.mulf %32, %315 : vector<4x256xf32>
    %317 = arith.addf %313, %316 : vector<4x256xf32>
    %c5_158 = arith.constant 5 : index
    %c7_159 = arith.constant 7 : index
    %318 = memref.load %arg12[%c5_158, %c7_159] : memref<16x8xf32, #tpu.memory_space<smem>>
    %319 = vector.broadcast %318 : f32 to vector<4x256xf32>
    %320 = arith.mulf %34, %319 : vector<4x256xf32>
    %321 = arith.addf %317, %320 : vector<4x256xf32>
    %c5_160 = arith.constant 5 : index
    %322 = memref.load %arg13[%c5_160] : memref<16xf32, #tpu.memory_space<smem>>
    %323 = vector.broadcast %322 : f32 to vector<4x256xf32>
    %324 = arith.addf %321, %323 : vector<4x256xf32>
    %cst_161 = arith.constant 0.000000e+00 : f32
    %325 = vector.broadcast %cst_161 : f32 to vector<4x256xf32>
    %326 = arith.maximumf %324, %325 : vector<4x256xf32>
    %c0_162 = arith.constant 0 : index
    %c5_163 = arith.constant 5 : index
    %327 = memref.load %arg14[%c0_162, %c5_163] : memref<4x16xf32, #tpu.memory_space<smem>>
    %328 = vector.broadcast %327 : f32 to vector<4x256xf32>
    %329 = arith.mulf %326, %328 : vector<4x256xf32>
    %330 = arith.addf %278, %329 : vector<4x256xf32>
    %c1_164 = arith.constant 1 : index
    %c5_165 = arith.constant 5 : index
    %331 = memref.load %arg14[%c1_164, %c5_165] : memref<4x16xf32, #tpu.memory_space<smem>>
    %332 = vector.broadcast %331 : f32 to vector<4x256xf32>
    %333 = arith.mulf %326, %332 : vector<4x256xf32>
    %334 = arith.addf %282, %333 : vector<4x256xf32>
    %c2_166 = arith.constant 2 : index
    %c5_167 = arith.constant 5 : index
    %335 = memref.load %arg14[%c2_166, %c5_167] : memref<4x16xf32, #tpu.memory_space<smem>>
    %336 = vector.broadcast %335 : f32 to vector<4x256xf32>
    %337 = arith.mulf %326, %336 : vector<4x256xf32>
    %338 = arith.addf %286, %337 : vector<4x256xf32>
    %c3_168 = arith.constant 3 : index
    %c5_169 = arith.constant 5 : index
    %339 = memref.load %arg14[%c3_168, %c5_169] : memref<4x16xf32, #tpu.memory_space<smem>>
    %340 = vector.broadcast %339 : f32 to vector<4x256xf32>
    %341 = arith.mulf %326, %340 : vector<4x256xf32>
    %342 = arith.addf %290, %341 : vector<4x256xf32>
    %c6_170 = arith.constant 6 : index
    %c0_171 = arith.constant 0 : index
    %343 = memref.load %arg12[%c6_170, %c0_171] : memref<16x8xf32, #tpu.memory_space<smem>>
    %344 = vector.broadcast %343 : f32 to vector<4x256xf32>
    %345 = arith.mulf %20, %344 : vector<4x256xf32>
    %c6_172 = arith.constant 6 : index
    %c1_173 = arith.constant 1 : index
    %346 = memref.load %arg12[%c6_172, %c1_173] : memref<16x8xf32, #tpu.memory_space<smem>>
    %347 = vector.broadcast %346 : f32 to vector<4x256xf32>
    %348 = arith.mulf %22, %347 : vector<4x256xf32>
    %349 = arith.addf %345, %348 : vector<4x256xf32>
    %c6_174 = arith.constant 6 : index
    %c2_175 = arith.constant 2 : index
    %350 = memref.load %arg12[%c6_174, %c2_175] : memref<16x8xf32, #tpu.memory_space<smem>>
    %351 = vector.broadcast %350 : f32 to vector<4x256xf32>
    %352 = arith.mulf %24, %351 : vector<4x256xf32>
    %353 = arith.addf %349, %352 : vector<4x256xf32>
    %c6_176 = arith.constant 6 : index
    %c3_177 = arith.constant 3 : index
    %354 = memref.load %arg12[%c6_176, %c3_177] : memref<16x8xf32, #tpu.memory_space<smem>>
    %355 = vector.broadcast %354 : f32 to vector<4x256xf32>
    %356 = arith.mulf %26, %355 : vector<4x256xf32>
    %357 = arith.addf %353, %356 : vector<4x256xf32>
    %c6_178 = arith.constant 6 : index
    %c4_179 = arith.constant 4 : index
    %358 = memref.load %arg12[%c6_178, %c4_179] : memref<16x8xf32, #tpu.memory_space<smem>>
    %359 = vector.broadcast %358 : f32 to vector<4x256xf32>
    %360 = arith.mulf %28, %359 : vector<4x256xf32>
    %361 = arith.addf %357, %360 : vector<4x256xf32>
    %c6_180 = arith.constant 6 : index
    %c5_181 = arith.constant 5 : index
    %362 = memref.load %arg12[%c6_180, %c5_181] : memref<16x8xf32, #tpu.memory_space<smem>>
    %363 = vector.broadcast %362 : f32 to vector<4x256xf32>
    %364 = arith.mulf %30, %363 : vector<4x256xf32>
    %365 = arith.addf %361, %364 : vector<4x256xf32>
    %c6_182 = arith.constant 6 : index
    %c6_183 = arith.constant 6 : index
    %366 = memref.load %arg12[%c6_182, %c6_183] : memref<16x8xf32, #tpu.memory_space<smem>>
    %367 = vector.broadcast %366 : f32 to vector<4x256xf32>
    %368 = arith.mulf %32, %367 : vector<4x256xf32>
    %369 = arith.addf %365, %368 : vector<4x256xf32>
    %c6_184 = arith.constant 6 : index
    %c7_185 = arith.constant 7 : index
    %370 = memref.load %arg12[%c6_184, %c7_185] : memref<16x8xf32, #tpu.memory_space<smem>>
    %371 = vector.broadcast %370 : f32 to vector<4x256xf32>
    %372 = arith.mulf %34, %371 : vector<4x256xf32>
    %373 = arith.addf %369, %372 : vector<4x256xf32>
    %c6_186 = arith.constant 6 : index
    %374 = memref.load %arg13[%c6_186] : memref<16xf32, #tpu.memory_space<smem>>
    %375 = vector.broadcast %374 : f32 to vector<4x256xf32>
    %376 = arith.addf %373, %375 : vector<4x256xf32>
    %cst_187 = arith.constant 0.000000e+00 : f32
    %377 = vector.broadcast %cst_187 : f32 to vector<4x256xf32>
    %378 = arith.maximumf %376, %377 : vector<4x256xf32>
    %c0_188 = arith.constant 0 : index
    %c6_189 = arith.constant 6 : index
    %379 = memref.load %arg14[%c0_188, %c6_189] : memref<4x16xf32, #tpu.memory_space<smem>>
    %380 = vector.broadcast %379 : f32 to vector<4x256xf32>
    %381 = arith.mulf %378, %380 : vector<4x256xf32>
    %382 = arith.addf %330, %381 : vector<4x256xf32>
    %c1_190 = arith.constant 1 : index
    %c6_191 = arith.constant 6 : index
    %383 = memref.load %arg14[%c1_190, %c6_191] : memref<4x16xf32, #tpu.memory_space<smem>>
    %384 = vector.broadcast %383 : f32 to vector<4x256xf32>
    %385 = arith.mulf %378, %384 : vector<4x256xf32>
    %386 = arith.addf %334, %385 : vector<4x256xf32>
    %c2_192 = arith.constant 2 : index
    %c6_193 = arith.constant 6 : index
    %387 = memref.load %arg14[%c2_192, %c6_193] : memref<4x16xf32, #tpu.memory_space<smem>>
    %388 = vector.broadcast %387 : f32 to vector<4x256xf32>
    %389 = arith.mulf %378, %388 : vector<4x256xf32>
    %390 = arith.addf %338, %389 : vector<4x256xf32>
    %c3_194 = arith.constant 3 : index
    %c6_195 = arith.constant 6 : index
    %391 = memref.load %arg14[%c3_194, %c6_195] : memref<4x16xf32, #tpu.memory_space<smem>>
    %392 = vector.broadcast %391 : f32 to vector<4x256xf32>
    %393 = arith.mulf %378, %392 : vector<4x256xf32>
    %394 = arith.addf %342, %393 : vector<4x256xf32>
    %c7_196 = arith.constant 7 : index
    %c0_197 = arith.constant 0 : index
    %395 = memref.load %arg12[%c7_196, %c0_197] : memref<16x8xf32, #tpu.memory_space<smem>>
    %396 = vector.broadcast %395 : f32 to vector<4x256xf32>
    %397 = arith.mulf %20, %396 : vector<4x256xf32>
    %c7_198 = arith.constant 7 : index
    %c1_199 = arith.constant 1 : index
    %398 = memref.load %arg12[%c7_198, %c1_199] : memref<16x8xf32, #tpu.memory_space<smem>>
    %399 = vector.broadcast %398 : f32 to vector<4x256xf32>
    %400 = arith.mulf %22, %399 : vector<4x256xf32>
    %401 = arith.addf %397, %400 : vector<4x256xf32>
    %c7_200 = arith.constant 7 : index
    %c2_201 = arith.constant 2 : index
    %402 = memref.load %arg12[%c7_200, %c2_201] : memref<16x8xf32, #tpu.memory_space<smem>>
    %403 = vector.broadcast %402 : f32 to vector<4x256xf32>
    %404 = arith.mulf %24, %403 : vector<4x256xf32>
    %405 = arith.addf %401, %404 : vector<4x256xf32>
    %c7_202 = arith.constant 7 : index
    %c3_203 = arith.constant 3 : index
    %406 = memref.load %arg12[%c7_202, %c3_203] : memref<16x8xf32, #tpu.memory_space<smem>>
    %407 = vector.broadcast %406 : f32 to vector<4x256xf32>
    %408 = arith.mulf %26, %407 : vector<4x256xf32>
    %409 = arith.addf %405, %408 : vector<4x256xf32>
    %c7_204 = arith.constant 7 : index
    %c4_205 = arith.constant 4 : index
    %410 = memref.load %arg12[%c7_204, %c4_205] : memref<16x8xf32, #tpu.memory_space<smem>>
    %411 = vector.broadcast %410 : f32 to vector<4x256xf32>
    %412 = arith.mulf %28, %411 : vector<4x256xf32>
    %413 = arith.addf %409, %412 : vector<4x256xf32>
    %c7_206 = arith.constant 7 : index
    %c5_207 = arith.constant 5 : index
    %414 = memref.load %arg12[%c7_206, %c5_207] : memref<16x8xf32, #tpu.memory_space<smem>>
    %415 = vector.broadcast %414 : f32 to vector<4x256xf32>
    %416 = arith.mulf %30, %415 : vector<4x256xf32>
    %417 = arith.addf %413, %416 : vector<4x256xf32>
    %c7_208 = arith.constant 7 : index
    %c6_209 = arith.constant 6 : index
    %418 = memref.load %arg12[%c7_208, %c6_209] : memref<16x8xf32, #tpu.memory_space<smem>>
    %419 = vector.broadcast %418 : f32 to vector<4x256xf32>
    %420 = arith.mulf %32, %419 : vector<4x256xf32>
    %421 = arith.addf %417, %420 : vector<4x256xf32>
    %c7_210 = arith.constant 7 : index
    %c7_211 = arith.constant 7 : index
    %422 = memref.load %arg12[%c7_210, %c7_211] : memref<16x8xf32, #tpu.memory_space<smem>>
    %423 = vector.broadcast %422 : f32 to vector<4x256xf32>
    %424 = arith.mulf %34, %423 : vector<4x256xf32>
    %425 = arith.addf %421, %424 : vector<4x256xf32>
    %c7_212 = arith.constant 7 : index
    %426 = memref.load %arg13[%c7_212] : memref<16xf32, #tpu.memory_space<smem>>
    %427 = vector.broadcast %426 : f32 to vector<4x256xf32>
    %428 = arith.addf %425, %427 : vector<4x256xf32>
    %cst_213 = arith.constant 0.000000e+00 : f32
    %429 = vector.broadcast %cst_213 : f32 to vector<4x256xf32>
    %430 = arith.maximumf %428, %429 : vector<4x256xf32>
    %c0_214 = arith.constant 0 : index
    %c7_215 = arith.constant 7 : index
    %431 = memref.load %arg14[%c0_214, %c7_215] : memref<4x16xf32, #tpu.memory_space<smem>>
    %432 = vector.broadcast %431 : f32 to vector<4x256xf32>
    %433 = arith.mulf %430, %432 : vector<4x256xf32>
    %434 = arith.addf %382, %433 : vector<4x256xf32>
    %c1_216 = arith.constant 1 : index
    %c7_217 = arith.constant 7 : index
    %435 = memref.load %arg14[%c1_216, %c7_217] : memref<4x16xf32, #tpu.memory_space<smem>>
    %436 = vector.broadcast %435 : f32 to vector<4x256xf32>
    %437 = arith.mulf %430, %436 : vector<4x256xf32>
    %438 = arith.addf %386, %437 : vector<4x256xf32>
    %c2_218 = arith.constant 2 : index
    %c7_219 = arith.constant 7 : index
    %439 = memref.load %arg14[%c2_218, %c7_219] : memref<4x16xf32, #tpu.memory_space<smem>>
    %440 = vector.broadcast %439 : f32 to vector<4x256xf32>
    %441 = arith.mulf %430, %440 : vector<4x256xf32>
    %442 = arith.addf %390, %441 : vector<4x256xf32>
    %c3_220 = arith.constant 3 : index
    %c7_221 = arith.constant 7 : index
    %443 = memref.load %arg14[%c3_220, %c7_221] : memref<4x16xf32, #tpu.memory_space<smem>>
    %444 = vector.broadcast %443 : f32 to vector<4x256xf32>
    %445 = arith.mulf %430, %444 : vector<4x256xf32>
    %446 = arith.addf %394, %445 : vector<4x256xf32>
    %c8 = arith.constant 8 : index
    %c0_222 = arith.constant 0 : index
    %447 = memref.load %arg12[%c8, %c0_222] : memref<16x8xf32, #tpu.memory_space<smem>>
    %448 = vector.broadcast %447 : f32 to vector<4x256xf32>
    %449 = arith.mulf %20, %448 : vector<4x256xf32>
    %c8_223 = arith.constant 8 : index
    %c1_224 = arith.constant 1 : index
    %450 = memref.load %arg12[%c8_223, %c1_224] : memref<16x8xf32, #tpu.memory_space<smem>>
    %451 = vector.broadcast %450 : f32 to vector<4x256xf32>
    %452 = arith.mulf %22, %451 : vector<4x256xf32>
    %453 = arith.addf %449, %452 : vector<4x256xf32>
    %c8_225 = arith.constant 8 : index
    %c2_226 = arith.constant 2 : index
    %454 = memref.load %arg12[%c8_225, %c2_226] : memref<16x8xf32, #tpu.memory_space<smem>>
    %455 = vector.broadcast %454 : f32 to vector<4x256xf32>
    %456 = arith.mulf %24, %455 : vector<4x256xf32>
    %457 = arith.addf %453, %456 : vector<4x256xf32>
    %c8_227 = arith.constant 8 : index
    %c3_228 = arith.constant 3 : index
    %458 = memref.load %arg12[%c8_227, %c3_228] : memref<16x8xf32, #tpu.memory_space<smem>>
    %459 = vector.broadcast %458 : f32 to vector<4x256xf32>
    %460 = arith.mulf %26, %459 : vector<4x256xf32>
    %461 = arith.addf %457, %460 : vector<4x256xf32>
    %c8_229 = arith.constant 8 : index
    %c4_230 = arith.constant 4 : index
    %462 = memref.load %arg12[%c8_229, %c4_230] : memref<16x8xf32, #tpu.memory_space<smem>>
    %463 = vector.broadcast %462 : f32 to vector<4x256xf32>
    %464 = arith.mulf %28, %463 : vector<4x256xf32>
    %465 = arith.addf %461, %464 : vector<4x256xf32>
    %c8_231 = arith.constant 8 : index
    %c5_232 = arith.constant 5 : index
    %466 = memref.load %arg12[%c8_231, %c5_232] : memref<16x8xf32, #tpu.memory_space<smem>>
    %467 = vector.broadcast %466 : f32 to vector<4x256xf32>
    %468 = arith.mulf %30, %467 : vector<4x256xf32>
    %469 = arith.addf %465, %468 : vector<4x256xf32>
    %c8_233 = arith.constant 8 : index
    %c6_234 = arith.constant 6 : index
    %470 = memref.load %arg12[%c8_233, %c6_234] : memref<16x8xf32, #tpu.memory_space<smem>>
    %471 = vector.broadcast %470 : f32 to vector<4x256xf32>
    %472 = arith.mulf %32, %471 : vector<4x256xf32>
    %473 = arith.addf %469, %472 : vector<4x256xf32>
    %c8_235 = arith.constant 8 : index
    %c7_236 = arith.constant 7 : index
    %474 = memref.load %arg12[%c8_235, %c7_236] : memref<16x8xf32, #tpu.memory_space<smem>>
    %475 = vector.broadcast %474 : f32 to vector<4x256xf32>
    %476 = arith.mulf %34, %475 : vector<4x256xf32>
    %477 = arith.addf %473, %476 : vector<4x256xf32>
    %c8_237 = arith.constant 8 : index
    %478 = memref.load %arg13[%c8_237] : memref<16xf32, #tpu.memory_space<smem>>
    %479 = vector.broadcast %478 : f32 to vector<4x256xf32>
    %480 = arith.addf %477, %479 : vector<4x256xf32>
    %cst_238 = arith.constant 0.000000e+00 : f32
    %481 = vector.broadcast %cst_238 : f32 to vector<4x256xf32>
    %482 = arith.maximumf %480, %481 : vector<4x256xf32>
    %c0_239 = arith.constant 0 : index
    %c8_240 = arith.constant 8 : index
    %483 = memref.load %arg14[%c0_239, %c8_240] : memref<4x16xf32, #tpu.memory_space<smem>>
    %484 = vector.broadcast %483 : f32 to vector<4x256xf32>
    %485 = arith.mulf %482, %484 : vector<4x256xf32>
    %486 = arith.addf %434, %485 : vector<4x256xf32>
    %c1_241 = arith.constant 1 : index
    %c8_242 = arith.constant 8 : index
    %487 = memref.load %arg14[%c1_241, %c8_242] : memref<4x16xf32, #tpu.memory_space<smem>>
    %488 = vector.broadcast %487 : f32 to vector<4x256xf32>
    %489 = arith.mulf %482, %488 : vector<4x256xf32>
    %490 = arith.addf %438, %489 : vector<4x256xf32>
    %c2_243 = arith.constant 2 : index
    %c8_244 = arith.constant 8 : index
    %491 = memref.load %arg14[%c2_243, %c8_244] : memref<4x16xf32, #tpu.memory_space<smem>>
    %492 = vector.broadcast %491 : f32 to vector<4x256xf32>
    %493 = arith.mulf %482, %492 : vector<4x256xf32>
    %494 = arith.addf %442, %493 : vector<4x256xf32>
    %c3_245 = arith.constant 3 : index
    %c8_246 = arith.constant 8 : index
    %495 = memref.load %arg14[%c3_245, %c8_246] : memref<4x16xf32, #tpu.memory_space<smem>>
    %496 = vector.broadcast %495 : f32 to vector<4x256xf32>
    %497 = arith.mulf %482, %496 : vector<4x256xf32>
    %498 = arith.addf %446, %497 : vector<4x256xf32>
    %c9 = arith.constant 9 : index
    %c0_247 = arith.constant 0 : index
    %499 = memref.load %arg12[%c9, %c0_247] : memref<16x8xf32, #tpu.memory_space<smem>>
    %500 = vector.broadcast %499 : f32 to vector<4x256xf32>
    %501 = arith.mulf %20, %500 : vector<4x256xf32>
    %c9_248 = arith.constant 9 : index
    %c1_249 = arith.constant 1 : index
    %502 = memref.load %arg12[%c9_248, %c1_249] : memref<16x8xf32, #tpu.memory_space<smem>>
    %503 = vector.broadcast %502 : f32 to vector<4x256xf32>
    %504 = arith.mulf %22, %503 : vector<4x256xf32>
    %505 = arith.addf %501, %504 : vector<4x256xf32>
    %c9_250 = arith.constant 9 : index
    %c2_251 = arith.constant 2 : index
    %506 = memref.load %arg12[%c9_250, %c2_251] : memref<16x8xf32, #tpu.memory_space<smem>>
    %507 = vector.broadcast %506 : f32 to vector<4x256xf32>
    %508 = arith.mulf %24, %507 : vector<4x256xf32>
    %509 = arith.addf %505, %508 : vector<4x256xf32>
    %c9_252 = arith.constant 9 : index
    %c3_253 = arith.constant 3 : index
    %510 = memref.load %arg12[%c9_252, %c3_253] : memref<16x8xf32, #tpu.memory_space<smem>>
    %511 = vector.broadcast %510 : f32 to vector<4x256xf32>
    %512 = arith.mulf %26, %511 : vector<4x256xf32>
    %513 = arith.addf %509, %512 : vector<4x256xf32>
    %c9_254 = arith.constant 9 : index
    %c4_255 = arith.constant 4 : index
    %514 = memref.load %arg12[%c9_254, %c4_255] : memref<16x8xf32, #tpu.memory_space<smem>>
    %515 = vector.broadcast %514 : f32 to vector<4x256xf32>
    %516 = arith.mulf %28, %515 : vector<4x256xf32>
    %517 = arith.addf %513, %516 : vector<4x256xf32>
    %c9_256 = arith.constant 9 : index
    %c5_257 = arith.constant 5 : index
    %518 = memref.load %arg12[%c9_256, %c5_257] : memref<16x8xf32, #tpu.memory_space<smem>>
    %519 = vector.broadcast %518 : f32 to vector<4x256xf32>
    %520 = arith.mulf %30, %519 : vector<4x256xf32>
    %521 = arith.addf %517, %520 : vector<4x256xf32>
    %c9_258 = arith.constant 9 : index
    %c6_259 = arith.constant 6 : index
    %522 = memref.load %arg12[%c9_258, %c6_259] : memref<16x8xf32, #tpu.memory_space<smem>>
    %523 = vector.broadcast %522 : f32 to vector<4x256xf32>
    %524 = arith.mulf %32, %523 : vector<4x256xf32>
    %525 = arith.addf %521, %524 : vector<4x256xf32>
    %c9_260 = arith.constant 9 : index
    %c7_261 = arith.constant 7 : index
    %526 = memref.load %arg12[%c9_260, %c7_261] : memref<16x8xf32, #tpu.memory_space<smem>>
    %527 = vector.broadcast %526 : f32 to vector<4x256xf32>
    %528 = arith.mulf %34, %527 : vector<4x256xf32>
    %529 = arith.addf %525, %528 : vector<4x256xf32>
    %c9_262 = arith.constant 9 : index
    %530 = memref.load %arg13[%c9_262] : memref<16xf32, #tpu.memory_space<smem>>
    %531 = vector.broadcast %530 : f32 to vector<4x256xf32>
    %532 = arith.addf %529, %531 : vector<4x256xf32>
    %cst_263 = arith.constant 0.000000e+00 : f32
    %533 = vector.broadcast %cst_263 : f32 to vector<4x256xf32>
    %534 = arith.maximumf %532, %533 : vector<4x256xf32>
    %c0_264 = arith.constant 0 : index
    %c9_265 = arith.constant 9 : index
    %535 = memref.load %arg14[%c0_264, %c9_265] : memref<4x16xf32, #tpu.memory_space<smem>>
    %536 = vector.broadcast %535 : f32 to vector<4x256xf32>
    %537 = arith.mulf %534, %536 : vector<4x256xf32>
    %538 = arith.addf %486, %537 : vector<4x256xf32>
    %c1_266 = arith.constant 1 : index
    %c9_267 = arith.constant 9 : index
    %539 = memref.load %arg14[%c1_266, %c9_267] : memref<4x16xf32, #tpu.memory_space<smem>>
    %540 = vector.broadcast %539 : f32 to vector<4x256xf32>
    %541 = arith.mulf %534, %540 : vector<4x256xf32>
    %542 = arith.addf %490, %541 : vector<4x256xf32>
    %c2_268 = arith.constant 2 : index
    %c9_269 = arith.constant 9 : index
    %543 = memref.load %arg14[%c2_268, %c9_269] : memref<4x16xf32, #tpu.memory_space<smem>>
    %544 = vector.broadcast %543 : f32 to vector<4x256xf32>
    %545 = arith.mulf %534, %544 : vector<4x256xf32>
    %546 = arith.addf %494, %545 : vector<4x256xf32>
    %c3_270 = arith.constant 3 : index
    %c9_271 = arith.constant 9 : index
    %547 = memref.load %arg14[%c3_270, %c9_271] : memref<4x16xf32, #tpu.memory_space<smem>>
    %548 = vector.broadcast %547 : f32 to vector<4x256xf32>
    %549 = arith.mulf %534, %548 : vector<4x256xf32>
    %550 = arith.addf %498, %549 : vector<4x256xf32>
    %c10 = arith.constant 10 : index
    %c0_272 = arith.constant 0 : index
    %551 = memref.load %arg12[%c10, %c0_272] : memref<16x8xf32, #tpu.memory_space<smem>>
    %552 = vector.broadcast %551 : f32 to vector<4x256xf32>
    %553 = arith.mulf %20, %552 : vector<4x256xf32>
    %c10_273 = arith.constant 10 : index
    %c1_274 = arith.constant 1 : index
    %554 = memref.load %arg12[%c10_273, %c1_274] : memref<16x8xf32, #tpu.memory_space<smem>>
    %555 = vector.broadcast %554 : f32 to vector<4x256xf32>
    %556 = arith.mulf %22, %555 : vector<4x256xf32>
    %557 = arith.addf %553, %556 : vector<4x256xf32>
    %c10_275 = arith.constant 10 : index
    %c2_276 = arith.constant 2 : index
    %558 = memref.load %arg12[%c10_275, %c2_276] : memref<16x8xf32, #tpu.memory_space<smem>>
    %559 = vector.broadcast %558 : f32 to vector<4x256xf32>
    %560 = arith.mulf %24, %559 : vector<4x256xf32>
    %561 = arith.addf %557, %560 : vector<4x256xf32>
    %c10_277 = arith.constant 10 : index
    %c3_278 = arith.constant 3 : index
    %562 = memref.load %arg12[%c10_277, %c3_278] : memref<16x8xf32, #tpu.memory_space<smem>>
    %563 = vector.broadcast %562 : f32 to vector<4x256xf32>
    %564 = arith.mulf %26, %563 : vector<4x256xf32>
    %565 = arith.addf %561, %564 : vector<4x256xf32>
    %c10_279 = arith.constant 10 : index
    %c4_280 = arith.constant 4 : index
    %566 = memref.load %arg12[%c10_279, %c4_280] : memref<16x8xf32, #tpu.memory_space<smem>>
    %567 = vector.broadcast %566 : f32 to vector<4x256xf32>
    %568 = arith.mulf %28, %567 : vector<4x256xf32>
    %569 = arith.addf %565, %568 : vector<4x256xf32>
    %c10_281 = arith.constant 10 : index
    %c5_282 = arith.constant 5 : index
    %570 = memref.load %arg12[%c10_281, %c5_282] : memref<16x8xf32, #tpu.memory_space<smem>>
    %571 = vector.broadcast %570 : f32 to vector<4x256xf32>
    %572 = arith.mulf %30, %571 : vector<4x256xf32>
    %573 = arith.addf %569, %572 : vector<4x256xf32>
    %c10_283 = arith.constant 10 : index
    %c6_284 = arith.constant 6 : index
    %574 = memref.load %arg12[%c10_283, %c6_284] : memref<16x8xf32, #tpu.memory_space<smem>>
    %575 = vector.broadcast %574 : f32 to vector<4x256xf32>
    %576 = arith.mulf %32, %575 : vector<4x256xf32>
    %577 = arith.addf %573, %576 : vector<4x256xf32>
    %c10_285 = arith.constant 10 : index
    %c7_286 = arith.constant 7 : index
    %578 = memref.load %arg12[%c10_285, %c7_286] : memref<16x8xf32, #tpu.memory_space<smem>>
    %579 = vector.broadcast %578 : f32 to vector<4x256xf32>
    %580 = arith.mulf %34, %579 : vector<4x256xf32>
    %581 = arith.addf %577, %580 : vector<4x256xf32>
    %c10_287 = arith.constant 10 : index
    %582 = memref.load %arg13[%c10_287] : memref<16xf32, #tpu.memory_space<smem>>
    %583 = vector.broadcast %582 : f32 to vector<4x256xf32>
    %584 = arith.addf %581, %583 : vector<4x256xf32>
    %cst_288 = arith.constant 0.000000e+00 : f32
    %585 = vector.broadcast %cst_288 : f32 to vector<4x256xf32>
    %586 = arith.maximumf %584, %585 : vector<4x256xf32>
    %c0_289 = arith.constant 0 : index
    %c10_290 = arith.constant 10 : index
    %587 = memref.load %arg14[%c0_289, %c10_290] : memref<4x16xf32, #tpu.memory_space<smem>>
    %588 = vector.broadcast %587 : f32 to vector<4x256xf32>
    %589 = arith.mulf %586, %588 : vector<4x256xf32>
    %590 = arith.addf %538, %589 : vector<4x256xf32>
    %c1_291 = arith.constant 1 : index
    %c10_292 = arith.constant 10 : index
    %591 = memref.load %arg14[%c1_291, %c10_292] : memref<4x16xf32, #tpu.memory_space<smem>>
    %592 = vector.broadcast %591 : f32 to vector<4x256xf32>
    %593 = arith.mulf %586, %592 : vector<4x256xf32>
    %594 = arith.addf %542, %593 : vector<4x256xf32>
    %c2_293 = arith.constant 2 : index
    %c10_294 = arith.constant 10 : index
    %595 = memref.load %arg14[%c2_293, %c10_294] : memref<4x16xf32, #tpu.memory_space<smem>>
    %596 = vector.broadcast %595 : f32 to vector<4x256xf32>
    %597 = arith.mulf %586, %596 : vector<4x256xf32>
    %598 = arith.addf %546, %597 : vector<4x256xf32>
    %c3_295 = arith.constant 3 : index
    %c10_296 = arith.constant 10 : index
    %599 = memref.load %arg14[%c3_295, %c10_296] : memref<4x16xf32, #tpu.memory_space<smem>>
    %600 = vector.broadcast %599 : f32 to vector<4x256xf32>
    %601 = arith.mulf %586, %600 : vector<4x256xf32>
    %602 = arith.addf %550, %601 : vector<4x256xf32>
    %c11 = arith.constant 11 : index
    %c0_297 = arith.constant 0 : index
    %603 = memref.load %arg12[%c11, %c0_297] : memref<16x8xf32, #tpu.memory_space<smem>>
    %604 = vector.broadcast %603 : f32 to vector<4x256xf32>
    %605 = arith.mulf %20, %604 : vector<4x256xf32>
    %c11_298 = arith.constant 11 : index
    %c1_299 = arith.constant 1 : index
    %606 = memref.load %arg12[%c11_298, %c1_299] : memref<16x8xf32, #tpu.memory_space<smem>>
    %607 = vector.broadcast %606 : f32 to vector<4x256xf32>
    %608 = arith.mulf %22, %607 : vector<4x256xf32>
    %609 = arith.addf %605, %608 : vector<4x256xf32>
    %c11_300 = arith.constant 11 : index
    %c2_301 = arith.constant 2 : index
    %610 = memref.load %arg12[%c11_300, %c2_301] : memref<16x8xf32, #tpu.memory_space<smem>>
    %611 = vector.broadcast %610 : f32 to vector<4x256xf32>
    %612 = arith.mulf %24, %611 : vector<4x256xf32>
    %613 = arith.addf %609, %612 : vector<4x256xf32>
    %c11_302 = arith.constant 11 : index
    %c3_303 = arith.constant 3 : index
    %614 = memref.load %arg12[%c11_302, %c3_303] : memref<16x8xf32, #tpu.memory_space<smem>>
    %615 = vector.broadcast %614 : f32 to vector<4x256xf32>
    %616 = arith.mulf %26, %615 : vector<4x256xf32>
    %617 = arith.addf %613, %616 : vector<4x256xf32>
    %c11_304 = arith.constant 11 : index
    %c4_305 = arith.constant 4 : index
    %618 = memref.load %arg12[%c11_304, %c4_305] : memref<16x8xf32, #tpu.memory_space<smem>>
    %619 = vector.broadcast %618 : f32 to vector<4x256xf32>
    %620 = arith.mulf %28, %619 : vector<4x256xf32>
    %621 = arith.addf %617, %620 : vector<4x256xf32>
    %c11_306 = arith.constant 11 : index
    %c5_307 = arith.constant 5 : index
    %622 = memref.load %arg12[%c11_306, %c5_307] : memref<16x8xf32, #tpu.memory_space<smem>>
    %623 = vector.broadcast %622 : f32 to vector<4x256xf32>
    %624 = arith.mulf %30, %623 : vector<4x256xf32>
    %625 = arith.addf %621, %624 : vector<4x256xf32>
    %c11_308 = arith.constant 11 : index
    %c6_309 = arith.constant 6 : index
    %626 = memref.load %arg12[%c11_308, %c6_309] : memref<16x8xf32, #tpu.memory_space<smem>>
    %627 = vector.broadcast %626 : f32 to vector<4x256xf32>
    %628 = arith.mulf %32, %627 : vector<4x256xf32>
    %629 = arith.addf %625, %628 : vector<4x256xf32>
    %c11_310 = arith.constant 11 : index
    %c7_311 = arith.constant 7 : index
    %630 = memref.load %arg12[%c11_310, %c7_311] : memref<16x8xf32, #tpu.memory_space<smem>>
    %631 = vector.broadcast %630 : f32 to vector<4x256xf32>
    %632 = arith.mulf %34, %631 : vector<4x256xf32>
    %633 = arith.addf %629, %632 : vector<4x256xf32>
    %c11_312 = arith.constant 11 : index
    %634 = memref.load %arg13[%c11_312] : memref<16xf32, #tpu.memory_space<smem>>
    %635 = vector.broadcast %634 : f32 to vector<4x256xf32>
    %636 = arith.addf %633, %635 : vector<4x256xf32>
    %cst_313 = arith.constant 0.000000e+00 : f32
    %637 = vector.broadcast %cst_313 : f32 to vector<4x256xf32>
    %638 = arith.maximumf %636, %637 : vector<4x256xf32>
    %c0_314 = arith.constant 0 : index
    %c11_315 = arith.constant 11 : index
    %639 = memref.load %arg14[%c0_314, %c11_315] : memref<4x16xf32, #tpu.memory_space<smem>>
    %640 = vector.broadcast %639 : f32 to vector<4x256xf32>
    %641 = arith.mulf %638, %640 : vector<4x256xf32>
    %642 = arith.addf %590, %641 : vector<4x256xf32>
    %c1_316 = arith.constant 1 : index
    %c11_317 = arith.constant 11 : index
    %643 = memref.load %arg14[%c1_316, %c11_317] : memref<4x16xf32, #tpu.memory_space<smem>>
    %644 = vector.broadcast %643 : f32 to vector<4x256xf32>
    %645 = arith.mulf %638, %644 : vector<4x256xf32>
    %646 = arith.addf %594, %645 : vector<4x256xf32>
    %c2_318 = arith.constant 2 : index
    %c11_319 = arith.constant 11 : index
    %647 = memref.load %arg14[%c2_318, %c11_319] : memref<4x16xf32, #tpu.memory_space<smem>>
    %648 = vector.broadcast %647 : f32 to vector<4x256xf32>
    %649 = arith.mulf %638, %648 : vector<4x256xf32>
    %650 = arith.addf %598, %649 : vector<4x256xf32>
    %c3_320 = arith.constant 3 : index
    %c11_321 = arith.constant 11 : index
    %651 = memref.load %arg14[%c3_320, %c11_321] : memref<4x16xf32, #tpu.memory_space<smem>>
    %652 = vector.broadcast %651 : f32 to vector<4x256xf32>
    %653 = arith.mulf %638, %652 : vector<4x256xf32>
    %654 = arith.addf %602, %653 : vector<4x256xf32>
    %c12 = arith.constant 12 : index
    %c0_322 = arith.constant 0 : index
    %655 = memref.load %arg12[%c12, %c0_322] : memref<16x8xf32, #tpu.memory_space<smem>>
    %656 = vector.broadcast %655 : f32 to vector<4x256xf32>
    %657 = arith.mulf %20, %656 : vector<4x256xf32>
    %c12_323 = arith.constant 12 : index
    %c1_324 = arith.constant 1 : index
    %658 = memref.load %arg12[%c12_323, %c1_324] : memref<16x8xf32, #tpu.memory_space<smem>>
    %659 = vector.broadcast %658 : f32 to vector<4x256xf32>
    %660 = arith.mulf %22, %659 : vector<4x256xf32>
    %661 = arith.addf %657, %660 : vector<4x256xf32>
    %c12_325 = arith.constant 12 : index
    %c2_326 = arith.constant 2 : index
    %662 = memref.load %arg12[%c12_325, %c2_326] : memref<16x8xf32, #tpu.memory_space<smem>>
    %663 = vector.broadcast %662 : f32 to vector<4x256xf32>
    %664 = arith.mulf %24, %663 : vector<4x256xf32>
    %665 = arith.addf %661, %664 : vector<4x256xf32>
    %c12_327 = arith.constant 12 : index
    %c3_328 = arith.constant 3 : index
    %666 = memref.load %arg12[%c12_327, %c3_328] : memref<16x8xf32, #tpu.memory_space<smem>>
    %667 = vector.broadcast %666 : f32 to vector<4x256xf32>
    %668 = arith.mulf %26, %667 : vector<4x256xf32>
    %669 = arith.addf %665, %668 : vector<4x256xf32>
    %c12_329 = arith.constant 12 : index
    %c4_330 = arith.constant 4 : index
    %670 = memref.load %arg12[%c12_329, %c4_330] : memref<16x8xf32, #tpu.memory_space<smem>>
    %671 = vector.broadcast %670 : f32 to vector<4x256xf32>
    %672 = arith.mulf %28, %671 : vector<4x256xf32>
    %673 = arith.addf %669, %672 : vector<4x256xf32>
    %c12_331 = arith.constant 12 : index
    %c5_332 = arith.constant 5 : index
    %674 = memref.load %arg12[%c12_331, %c5_332] : memref<16x8xf32, #tpu.memory_space<smem>>
    %675 = vector.broadcast %674 : f32 to vector<4x256xf32>
    %676 = arith.mulf %30, %675 : vector<4x256xf32>
    %677 = arith.addf %673, %676 : vector<4x256xf32>
    %c12_333 = arith.constant 12 : index
    %c6_334 = arith.constant 6 : index
    %678 = memref.load %arg12[%c12_333, %c6_334] : memref<16x8xf32, #tpu.memory_space<smem>>
    %679 = vector.broadcast %678 : f32 to vector<4x256xf32>
    %680 = arith.mulf %32, %679 : vector<4x256xf32>
    %681 = arith.addf %677, %680 : vector<4x256xf32>
    %c12_335 = arith.constant 12 : index
    %c7_336 = arith.constant 7 : index
    %682 = memref.load %arg12[%c12_335, %c7_336] : memref<16x8xf32, #tpu.memory_space<smem>>
    %683 = vector.broadcast %682 : f32 to vector<4x256xf32>
    %684 = arith.mulf %34, %683 : vector<4x256xf32>
    %685 = arith.addf %681, %684 : vector<4x256xf32>
    %c12_337 = arith.constant 12 : index
    %686 = memref.load %arg13[%c12_337] : memref<16xf32, #tpu.memory_space<smem>>
    %687 = vector.broadcast %686 : f32 to vector<4x256xf32>
    %688 = arith.addf %685, %687 : vector<4x256xf32>
    %cst_338 = arith.constant 0.000000e+00 : f32
    %689 = vector.broadcast %cst_338 : f32 to vector<4x256xf32>
    %690 = arith.maximumf %688, %689 : vector<4x256xf32>
    %c0_339 = arith.constant 0 : index
    %c12_340 = arith.constant 12 : index
    %691 = memref.load %arg14[%c0_339, %c12_340] : memref<4x16xf32, #tpu.memory_space<smem>>
    %692 = vector.broadcast %691 : f32 to vector<4x256xf32>
    %693 = arith.mulf %690, %692 : vector<4x256xf32>
    %694 = arith.addf %642, %693 : vector<4x256xf32>
    %c1_341 = arith.constant 1 : index
    %c12_342 = arith.constant 12 : index
    %695 = memref.load %arg14[%c1_341, %c12_342] : memref<4x16xf32, #tpu.memory_space<smem>>
    %696 = vector.broadcast %695 : f32 to vector<4x256xf32>
    %697 = arith.mulf %690, %696 : vector<4x256xf32>
    %698 = arith.addf %646, %697 : vector<4x256xf32>
    %c2_343 = arith.constant 2 : index
    %c12_344 = arith.constant 12 : index
    %699 = memref.load %arg14[%c2_343, %c12_344] : memref<4x16xf32, #tpu.memory_space<smem>>
    %700 = vector.broadcast %699 : f32 to vector<4x256xf32>
    %701 = arith.mulf %690, %700 : vector<4x256xf32>
    %702 = arith.addf %650, %701 : vector<4x256xf32>
    %c3_345 = arith.constant 3 : index
    %c12_346 = arith.constant 12 : index
    %703 = memref.load %arg14[%c3_345, %c12_346] : memref<4x16xf32, #tpu.memory_space<smem>>
    %704 = vector.broadcast %703 : f32 to vector<4x256xf32>
    %705 = arith.mulf %690, %704 : vector<4x256xf32>
    %706 = arith.addf %654, %705 : vector<4x256xf32>
    %c13 = arith.constant 13 : index
    %c0_347 = arith.constant 0 : index
    %707 = memref.load %arg12[%c13, %c0_347] : memref<16x8xf32, #tpu.memory_space<smem>>
    %708 = vector.broadcast %707 : f32 to vector<4x256xf32>
    %709 = arith.mulf %20, %708 : vector<4x256xf32>
    %c13_348 = arith.constant 13 : index
    %c1_349 = arith.constant 1 : index
    %710 = memref.load %arg12[%c13_348, %c1_349] : memref<16x8xf32, #tpu.memory_space<smem>>
    %711 = vector.broadcast %710 : f32 to vector<4x256xf32>
    %712 = arith.mulf %22, %711 : vector<4x256xf32>
    %713 = arith.addf %709, %712 : vector<4x256xf32>
    %c13_350 = arith.constant 13 : index
    %c2_351 = arith.constant 2 : index
    %714 = memref.load %arg12[%c13_350, %c2_351] : memref<16x8xf32, #tpu.memory_space<smem>>
    %715 = vector.broadcast %714 : f32 to vector<4x256xf32>
    %716 = arith.mulf %24, %715 : vector<4x256xf32>
    %717 = arith.addf %713, %716 : vector<4x256xf32>
    %c13_352 = arith.constant 13 : index
    %c3_353 = arith.constant 3 : index
    %718 = memref.load %arg12[%c13_352, %c3_353] : memref<16x8xf32, #tpu.memory_space<smem>>
    %719 = vector.broadcast %718 : f32 to vector<4x256xf32>
    %720 = arith.mulf %26, %719 : vector<4x256xf32>
    %721 = arith.addf %717, %720 : vector<4x256xf32>
    %c13_354 = arith.constant 13 : index
    %c4_355 = arith.constant 4 : index
    %722 = memref.load %arg12[%c13_354, %c4_355] : memref<16x8xf32, #tpu.memory_space<smem>>
    %723 = vector.broadcast %722 : f32 to vector<4x256xf32>
    %724 = arith.mulf %28, %723 : vector<4x256xf32>
    %725 = arith.addf %721, %724 : vector<4x256xf32>
    %c13_356 = arith.constant 13 : index
    %c5_357 = arith.constant 5 : index
    %726 = memref.load %arg12[%c13_356, %c5_357] : memref<16x8xf32, #tpu.memory_space<smem>>
    %727 = vector.broadcast %726 : f32 to vector<4x256xf32>
    %728 = arith.mulf %30, %727 : vector<4x256xf32>
    %729 = arith.addf %725, %728 : vector<4x256xf32>
    %c13_358 = arith.constant 13 : index
    %c6_359 = arith.constant 6 : index
    %730 = memref.load %arg12[%c13_358, %c6_359] : memref<16x8xf32, #tpu.memory_space<smem>>
    %731 = vector.broadcast %730 : f32 to vector<4x256xf32>
    %732 = arith.mulf %32, %731 : vector<4x256xf32>
    %733 = arith.addf %729, %732 : vector<4x256xf32>
    %c13_360 = arith.constant 13 : index
    %c7_361 = arith.constant 7 : index
    %734 = memref.load %arg12[%c13_360, %c7_361] : memref<16x8xf32, #tpu.memory_space<smem>>
    %735 = vector.broadcast %734 : f32 to vector<4x256xf32>
    %736 = arith.mulf %34, %735 : vector<4x256xf32>
    %737 = arith.addf %733, %736 : vector<4x256xf32>
    %c13_362 = arith.constant 13 : index
    %738 = memref.load %arg13[%c13_362] : memref<16xf32, #tpu.memory_space<smem>>
    %739 = vector.broadcast %738 : f32 to vector<4x256xf32>
    %740 = arith.addf %737, %739 : vector<4x256xf32>
    %cst_363 = arith.constant 0.000000e+00 : f32
    %741 = vector.broadcast %cst_363 : f32 to vector<4x256xf32>
    %742 = arith.maximumf %740, %741 : vector<4x256xf32>
    %c0_364 = arith.constant 0 : index
    %c13_365 = arith.constant 13 : index
    %743 = memref.load %arg14[%c0_364, %c13_365] : memref<4x16xf32, #tpu.memory_space<smem>>
    %744 = vector.broadcast %743 : f32 to vector<4x256xf32>
    %745 = arith.mulf %742, %744 : vector<4x256xf32>
    %746 = arith.addf %694, %745 : vector<4x256xf32>
    %c1_366 = arith.constant 1 : index
    %c13_367 = arith.constant 13 : index
    %747 = memref.load %arg14[%c1_366, %c13_367] : memref<4x16xf32, #tpu.memory_space<smem>>
    %748 = vector.broadcast %747 : f32 to vector<4x256xf32>
    %749 = arith.mulf %742, %748 : vector<4x256xf32>
    %750 = arith.addf %698, %749 : vector<4x256xf32>
    %c2_368 = arith.constant 2 : index
    %c13_369 = arith.constant 13 : index
    %751 = memref.load %arg14[%c2_368, %c13_369] : memref<4x16xf32, #tpu.memory_space<smem>>
    %752 = vector.broadcast %751 : f32 to vector<4x256xf32>
    %753 = arith.mulf %742, %752 : vector<4x256xf32>
    %754 = arith.addf %702, %753 : vector<4x256xf32>
    %c3_370 = arith.constant 3 : index
    %c13_371 = arith.constant 13 : index
    %755 = memref.load %arg14[%c3_370, %c13_371] : memref<4x16xf32, #tpu.memory_space<smem>>
    %756 = vector.broadcast %755 : f32 to vector<4x256xf32>
    %757 = arith.mulf %742, %756 : vector<4x256xf32>
    %758 = arith.addf %706, %757 : vector<4x256xf32>
    %c14 = arith.constant 14 : index
    %c0_372 = arith.constant 0 : index
    %759 = memref.load %arg12[%c14, %c0_372] : memref<16x8xf32, #tpu.memory_space<smem>>
    %760 = vector.broadcast %759 : f32 to vector<4x256xf32>
    %761 = arith.mulf %20, %760 : vector<4x256xf32>
    %c14_373 = arith.constant 14 : index
    %c1_374 = arith.constant 1 : index
    %762 = memref.load %arg12[%c14_373, %c1_374] : memref<16x8xf32, #tpu.memory_space<smem>>
    %763 = vector.broadcast %762 : f32 to vector<4x256xf32>
    %764 = arith.mulf %22, %763 : vector<4x256xf32>
    %765 = arith.addf %761, %764 : vector<4x256xf32>
    %c14_375 = arith.constant 14 : index
    %c2_376 = arith.constant 2 : index
    %766 = memref.load %arg12[%c14_375, %c2_376] : memref<16x8xf32, #tpu.memory_space<smem>>
    %767 = vector.broadcast %766 : f32 to vector<4x256xf32>
    %768 = arith.mulf %24, %767 : vector<4x256xf32>
    %769 = arith.addf %765, %768 : vector<4x256xf32>
    %c14_377 = arith.constant 14 : index
    %c3_378 = arith.constant 3 : index
    %770 = memref.load %arg12[%c14_377, %c3_378] : memref<16x8xf32, #tpu.memory_space<smem>>
    %771 = vector.broadcast %770 : f32 to vector<4x256xf32>
    %772 = arith.mulf %26, %771 : vector<4x256xf32>
    %773 = arith.addf %769, %772 : vector<4x256xf32>
    %c14_379 = arith.constant 14 : index
    %c4_380 = arith.constant 4 : index
    %774 = memref.load %arg12[%c14_379, %c4_380] : memref<16x8xf32, #tpu.memory_space<smem>>
    %775 = vector.broadcast %774 : f32 to vector<4x256xf32>
    %776 = arith.mulf %28, %775 : vector<4x256xf32>
    %777 = arith.addf %773, %776 : vector<4x256xf32>
    %c14_381 = arith.constant 14 : index
    %c5_382 = arith.constant 5 : index
    %778 = memref.load %arg12[%c14_381, %c5_382] : memref<16x8xf32, #tpu.memory_space<smem>>
    %779 = vector.broadcast %778 : f32 to vector<4x256xf32>
    %780 = arith.mulf %30, %779 : vector<4x256xf32>
    %781 = arith.addf %777, %780 : vector<4x256xf32>
    %c14_383 = arith.constant 14 : index
    %c6_384 = arith.constant 6 : index
    %782 = memref.load %arg12[%c14_383, %c6_384] : memref<16x8xf32, #tpu.memory_space<smem>>
    %783 = vector.broadcast %782 : f32 to vector<4x256xf32>
    %784 = arith.mulf %32, %783 : vector<4x256xf32>
    %785 = arith.addf %781, %784 : vector<4x256xf32>
    %c14_385 = arith.constant 14 : index
    %c7_386 = arith.constant 7 : index
    %786 = memref.load %arg12[%c14_385, %c7_386] : memref<16x8xf32, #tpu.memory_space<smem>>
    %787 = vector.broadcast %786 : f32 to vector<4x256xf32>
    %788 = arith.mulf %34, %787 : vector<4x256xf32>
    %789 = arith.addf %785, %788 : vector<4x256xf32>
    %c14_387 = arith.constant 14 : index
    %790 = memref.load %arg13[%c14_387] : memref<16xf32, #tpu.memory_space<smem>>
    %791 = vector.broadcast %790 : f32 to vector<4x256xf32>
    %792 = arith.addf %789, %791 : vector<4x256xf32>
    %cst_388 = arith.constant 0.000000e+00 : f32
    %793 = vector.broadcast %cst_388 : f32 to vector<4x256xf32>
    %794 = arith.maximumf %792, %793 : vector<4x256xf32>
    %c0_389 = arith.constant 0 : index
    %c14_390 = arith.constant 14 : index
    %795 = memref.load %arg14[%c0_389, %c14_390] : memref<4x16xf32, #tpu.memory_space<smem>>
    %796 = vector.broadcast %795 : f32 to vector<4x256xf32>
    %797 = arith.mulf %794, %796 : vector<4x256xf32>
    %798 = arith.addf %746, %797 : vector<4x256xf32>
    %c1_391 = arith.constant 1 : index
    %c14_392 = arith.constant 14 : index
    %799 = memref.load %arg14[%c1_391, %c14_392] : memref<4x16xf32, #tpu.memory_space<smem>>
    %800 = vector.broadcast %799 : f32 to vector<4x256xf32>
    %801 = arith.mulf %794, %800 : vector<4x256xf32>
    %802 = arith.addf %750, %801 : vector<4x256xf32>
    %c2_393 = arith.constant 2 : index
    %c14_394 = arith.constant 14 : index
    %803 = memref.load %arg14[%c2_393, %c14_394] : memref<4x16xf32, #tpu.memory_space<smem>>
    %804 = vector.broadcast %803 : f32 to vector<4x256xf32>
    %805 = arith.mulf %794, %804 : vector<4x256xf32>
    %806 = arith.addf %754, %805 : vector<4x256xf32>
    %c3_395 = arith.constant 3 : index
    %c14_396 = arith.constant 14 : index
    %807 = memref.load %arg14[%c3_395, %c14_396] : memref<4x16xf32, #tpu.memory_space<smem>>
    %808 = vector.broadcast %807 : f32 to vector<4x256xf32>
    %809 = arith.mulf %794, %808 : vector<4x256xf32>
    %810 = arith.addf %758, %809 : vector<4x256xf32>
    %c15 = arith.constant 15 : index
    %c0_397 = arith.constant 0 : index
    %811 = memref.load %arg12[%c15, %c0_397] : memref<16x8xf32, #tpu.memory_space<smem>>
    %812 = vector.broadcast %811 : f32 to vector<4x256xf32>
    %813 = arith.mulf %20, %812 : vector<4x256xf32>
    %c15_398 = arith.constant 15 : index
    %c1_399 = arith.constant 1 : index
    %814 = memref.load %arg12[%c15_398, %c1_399] : memref<16x8xf32, #tpu.memory_space<smem>>
    %815 = vector.broadcast %814 : f32 to vector<4x256xf32>
    %816 = arith.mulf %22, %815 : vector<4x256xf32>
    %817 = arith.addf %813, %816 : vector<4x256xf32>
    %c15_400 = arith.constant 15 : index
    %c2_401 = arith.constant 2 : index
    %818 = memref.load %arg12[%c15_400, %c2_401] : memref<16x8xf32, #tpu.memory_space<smem>>
    %819 = vector.broadcast %818 : f32 to vector<4x256xf32>
    %820 = arith.mulf %24, %819 : vector<4x256xf32>
    %821 = arith.addf %817, %820 : vector<4x256xf32>
    %c15_402 = arith.constant 15 : index
    %c3_403 = arith.constant 3 : index
    %822 = memref.load %arg12[%c15_402, %c3_403] : memref<16x8xf32, #tpu.memory_space<smem>>
    %823 = vector.broadcast %822 : f32 to vector<4x256xf32>
    %824 = arith.mulf %26, %823 : vector<4x256xf32>
    %825 = arith.addf %821, %824 : vector<4x256xf32>
    %c15_404 = arith.constant 15 : index
    %c4_405 = arith.constant 4 : index
    %826 = memref.load %arg12[%c15_404, %c4_405] : memref<16x8xf32, #tpu.memory_space<smem>>
    %827 = vector.broadcast %826 : f32 to vector<4x256xf32>
    %828 = arith.mulf %28, %827 : vector<4x256xf32>
    %829 = arith.addf %825, %828 : vector<4x256xf32>
    %c15_406 = arith.constant 15 : index
    %c5_407 = arith.constant 5 : index
    %830 = memref.load %arg12[%c15_406, %c5_407] : memref<16x8xf32, #tpu.memory_space<smem>>
    %831 = vector.broadcast %830 : f32 to vector<4x256xf32>
    %832 = arith.mulf %30, %831 : vector<4x256xf32>
    %833 = arith.addf %829, %832 : vector<4x256xf32>
    %c15_408 = arith.constant 15 : index
    %c6_409 = arith.constant 6 : index
    %834 = memref.load %arg12[%c15_408, %c6_409] : memref<16x8xf32, #tpu.memory_space<smem>>
    %835 = vector.broadcast %834 : f32 to vector<4x256xf32>
    %836 = arith.mulf %32, %835 : vector<4x256xf32>
    %837 = arith.addf %833, %836 : vector<4x256xf32>
    %c15_410 = arith.constant 15 : index
    %c7_411 = arith.constant 7 : index
    %838 = memref.load %arg12[%c15_410, %c7_411] : memref<16x8xf32, #tpu.memory_space<smem>>
    %839 = vector.broadcast %838 : f32 to vector<4x256xf32>
    %840 = arith.mulf %34, %839 : vector<4x256xf32>
    %841 = arith.addf %837, %840 : vector<4x256xf32>
    %c15_412 = arith.constant 15 : index
    %842 = memref.load %arg13[%c15_412] : memref<16xf32, #tpu.memory_space<smem>>
    %843 = vector.broadcast %842 : f32 to vector<4x256xf32>
    %844 = arith.addf %841, %843 : vector<4x256xf32>
    %cst_413 = arith.constant 0.000000e+00 : f32
    %845 = vector.broadcast %cst_413 : f32 to vector<4x256xf32>
    %846 = arith.maximumf %844, %845 : vector<4x256xf32>
    %c0_414 = arith.constant 0 : index
    %c15_415 = arith.constant 15 : index
    %847 = memref.load %arg14[%c0_414, %c15_415] : memref<4x16xf32, #tpu.memory_space<smem>>
    %848 = vector.broadcast %847 : f32 to vector<4x256xf32>
    %849 = arith.mulf %846, %848 : vector<4x256xf32>
    %850 = arith.addf %798, %849 : vector<4x256xf32>
    %c1_416 = arith.constant 1 : index
    %c15_417 = arith.constant 15 : index
    %851 = memref.load %arg14[%c1_416, %c15_417] : memref<4x16xf32, #tpu.memory_space<smem>>
    %852 = vector.broadcast %851 : f32 to vector<4x256xf32>
    %853 = arith.mulf %846, %852 : vector<4x256xf32>
    %854 = arith.addf %802, %853 : vector<4x256xf32>
    %c2_418 = arith.constant 2 : index
    %c15_419 = arith.constant 15 : index
    %855 = memref.load %arg14[%c2_418, %c15_419] : memref<4x16xf32, #tpu.memory_space<smem>>
    %856 = vector.broadcast %855 : f32 to vector<4x256xf32>
    %857 = arith.mulf %846, %856 : vector<4x256xf32>
    %858 = arith.addf %806, %857 : vector<4x256xf32>
    %c3_420 = arith.constant 3 : index
    %c15_421 = arith.constant 15 : index
    %859 = memref.load %arg14[%c3_420, %c15_421] : memref<4x16xf32, #tpu.memory_space<smem>>
    %860 = vector.broadcast %859 : f32 to vector<4x256xf32>
    %861 = arith.mulf %846, %860 : vector<4x256xf32>
    %862 = arith.addf %810, %861 : vector<4x256xf32>
    %c0_422 = arith.constant 0 : index
    %863 = memref.load %arg15[%c0_422] : memref<4xf32, #tpu.memory_space<smem>>
    %864 = vector.broadcast %863 : f32 to vector<4x256xf32>
    %865 = arith.addf %850, %864 : vector<4x256xf32>
    %866 = arith.mulf %865, %13 : vector<4x256xf32>
    %867 = arith.addf %866, %10 : vector<4x256xf32>
    %c1_423 = arith.constant 1 : index
    %868 = memref.load %arg15[%c1_423] : memref<4xf32, #tpu.memory_space<smem>>
    %869 = vector.broadcast %868 : f32 to vector<4x256xf32>
    %870 = arith.addf %854, %869 : vector<4x256xf32>
    %871 = arith.mulf %870, %13 : vector<4x256xf32>
    %872 = arith.addf %871, %10 : vector<4x256xf32>
    %c2_424 = arith.constant 2 : index
    %873 = memref.load %arg15[%c2_424] : memref<4xf32, #tpu.memory_space<smem>>
    %874 = vector.broadcast %873 : f32 to vector<4x256xf32>
    %875 = arith.addf %858, %874 : vector<4x256xf32>
    %876 = arith.mulf %875, %13 : vector<4x256xf32>
    %877 = arith.addf %876, %10 : vector<4x256xf32>
    %c3_425 = arith.constant 3 : index
    %878 = memref.load %arg15[%c3_425] : memref<4xf32, #tpu.memory_space<smem>>
    %879 = vector.broadcast %878 : f32 to vector<4x256xf32>
    %880 = arith.addf %862, %879 : vector<4x256xf32>
    %881 = arith.mulf %880, %13 : vector<4x256xf32>
    %882 = arith.addf %881, %10 : vector<4x256xf32>
    %883 = arith.subf %2, %6 : vector<4x256xf32>
    %884 = vector.broadcast %18 : f32 to vector<4x256xf32>
    %885 = arith.mulf %883, %884 : vector<4x256xf32>
    %886 = arith.subf %0, %885 : vector<4x256xf32>
    %887 = arith.subf %886, %867 : vector<4x256xf32>
    %888 = arith.subf %3, %7 : vector<4x256xf32>
    %889 = vector.broadcast %18 : f32 to vector<4x256xf32>
    %890 = arith.mulf %888, %889 : vector<4x256xf32>
    %891 = arith.subf %1, %890 : vector<4x256xf32>
    %892 = arith.subf %891, %877 : vector<4x256xf32>
    %c0_426 = arith.constant 0 : index
    %c0_427 = arith.constant 0 : index
    %893 = vector.load %arg16[%c0_426, %c0_427] : memref<4x256xf32, #tpu.memory_space<vmem>>, vector<4x256xf32>
    tpu.vector_store %arg16[%c0_426, %c0_427], %887 {strides = array<i32>} : memref<4x256xf32, #tpu.memory_space<vmem>>, vector<4x256xf32>,
    %c0_428 = arith.constant 0 : index
    %c0_429 = arith.constant 0 : index
    %894 = vector.load %arg17[%c0_428, %c0_429] : memref<4x256xf32, #tpu.memory_space<vmem>>, vector<4x256xf32>
    tpu.vector_store %arg17[%c0_428, %c0_429], %892 {strides = array<i32>} : memref<4x256xf32, #tpu.memory_space<vmem>>, vector<4x256xf32>,
    %c0_430 = arith.constant 0 : index
    %c0_431 = arith.constant 0 : index
    %895 = vector.load %arg18[%c0_430, %c0_431] : memref<4x256xf32, #tpu.memory_space<vmem>>, vector<4x256xf32>
    tpu.vector_store %arg18[%c0_430, %c0_431], %872 {strides = array<i32>} : memref<4x256xf32, #tpu.memory_space<vmem>>, vector<4x256xf32>,
    %c0_432 = arith.constant 0 : index
    %c0_433 = arith.constant 0 : index
    %896 = vector.load %arg19[%c0_432, %c0_433] : memref<4x256xf32, #tpu.memory_space<vmem>>, vector<4x256xf32>
    tpu.vector_store %arg19[%c0_432, %c0_433], %882 {strides = array<i32>} : memref<4x256xf32, #tpu.memory_space<vmem>>, vector<4x256xf32>,
    %cst_434 = arith.constant dense<0.000000e+00> : vector<4xf32>
    %897 = vector.multi_reduction <add>, %887, %cst_434 [1] : vector<4x256xf32> to vector<4xf32>
    %898 = vector.shape_cast %897 : vector<4xf32> to vector<4x1xf32>
    %cst_435 = arith.constant dense<0.000000e+00> : vector<4xf32>
    %899 = vector.multi_reduction <add>, %892, %cst_435 [1] : vector<4x256xf32> to vector<4xf32>
    %900 = vector.shape_cast %899 : vector<4xf32> to vector<4x1xf32>
    %901 = arith.addf %898, %900 : vector<4x1xf32>
    %cst_436 = arith.constant dense<0.000000e+00> : vector<4xf32>
    %902 = vector.multi_reduction <add>, %872, %cst_436 [1] : vector<4x256xf32> to vector<4xf32>
    %903 = vector.shape_cast %902 : vector<4xf32> to vector<4x1xf32>
    %904 = arith.addf %901, %903 : vector<4x1xf32>
    %cst_437 = arith.constant dense<0.000000e+00> : vector<4xf32>
    %905 = vector.multi_reduction <add>, %882, %cst_437 [1] : vector<4x256xf32> to vector<4xf32>
    %906 = vector.shape_cast %905 : vector<4xf32> to vector<4x1xf32>
    %907 = arith.addf %904, %906 : vector<4x1xf32>
    %908 = arith.mulf %887, %887 : vector<4x256xf32>
    %cst_438 = arith.constant dense<0.000000e+00> : vector<4xf32>
    %909 = vector.multi_reduction <add>, %908, %cst_438 [1] : vector<4x256xf32> to vector<4xf32>
    %910 = vector.shape_cast %909 : vector<4xf32> to vector<4x1xf32>
    %911 = arith.mulf %892, %892 : vector<4x256xf32>
    %cst_439 = arith.constant dense<0.000000e+00> : vector<4xf32>
    %912 = vector.multi_reduction <add>, %911, %cst_439 [1] : vector<4x256xf32> to vector<4xf32>
    %913 = vector.shape_cast %912 : vector<4xf32> to vector<4x1xf32>
    %914 = arith.addf %910, %913 : vector<4x1xf32>
    %915 = arith.mulf %872, %872 : vector<4x256xf32>
    %cst_440 = arith.constant dense<0.000000e+00> : vector<4xf32>
    %916 = vector.multi_reduction <add>, %915, %cst_440 [1] : vector<4x256xf32> to vector<4xf32>
    %917 = vector.shape_cast %916 : vector<4xf32> to vector<4x1xf32>
    %918 = arith.addf %914, %917 : vector<4x1xf32>
    %919 = arith.mulf %882, %882 : vector<4x256xf32>
    %cst_441 = arith.constant dense<0.000000e+00> : vector<4xf32>
    %920 = vector.multi_reduction <add>, %919, %cst_441 [1] : vector<4x256xf32> to vector<4xf32>
    %921 = vector.shape_cast %920 : vector<4xf32> to vector<4x1xf32>
    %922 = arith.addf %918, %921 : vector<4x1xf32>
    %c0_442 = arith.constant 0 : index
    %c0_443 = arith.constant 0 : index
    %923 = vector.load %arg20[%c0_442, %c0_443] : memref<4x2xf32, #tpu.memory_space<vmem>>, vector<4x1xf32>
    tpu.vector_store %arg20[%c0_442, %c0_443], %907 {strides = array<i32>} : memref<4x2xf32, #tpu.memory_space<vmem>>, vector<4x1xf32>,
    %c0_444 = arith.constant 0 : index
    %c1_445 = arith.constant 1 : index
    %924 = vector.load %arg20[%c0_444, %c1_445] : memref<4x2xf32, #tpu.memory_space<vmem>>, vector<4x1xf32>
    tpu.vector_store %arg20[%c0_444, %c1_445], %922 {strides = array<i32>} : memref<4x2xf32, #tpu.memory_space<vmem>>, vector<4x1xf32>,
    return
  }
  func.func @transform_0(%arg0: i32) -> (i32, i32) {
    %c0_i32 = arith.constant 0 : i32
    %c0_i32_0 = arith.constant 0 : i32
    return %arg0, %c0_i32 : i32, i32
  }
  func.func @transform_1(%arg0: i32) -> (i32, i32) {
    %c0_i32 = arith.constant 0 : i32
    %c0_i32_0 = arith.constant 0 : i32
    return %arg0, %c0_i32 : i32, i32
  }
  func.func @transform_2(%arg0: i32) -> (i32, i32) {
    %c0_i32 = arith.constant 0 : i32
    %c0_i32_0 = arith.constant 0 : i32
    return %arg0, %c0_i32 : i32, i32
  }
  func.func @transform_3(%arg0: i32) -> (i32, i32) {
    %c0_i32 = arith.constant 0 : i32
    %c0_i32_0 = arith.constant 0 : i32
    return %arg0, %c0_i32 : i32, i32
  }
  func.func @transform_4(%arg0: i32) -> (i32, i32) {
    %c0_i32 = arith.constant 0 : i32
    %c0_i32_0 = arith.constant 0 : i32
    return %arg0, %c0_i32 : i32, i32
  }
  func.func @transform_5(%arg0: i32) -> (i32, i32) {
    %c0_i32 = arith.constant 0 : i32
    %c0_i32_0 = arith.constant 0 : i32
    return %arg0, %c0_i32 : i32, i32
  }
  func.func @transform_6(%arg0: i32) -> (i32, i32) {
    %c0_i32 = arith.constant 0 : i32
    %c0_i32_0 = arith.constant 0 : i32
    return %arg0, %c0_i32 : i32, i32
  }
  func.func @transform_7(%arg0: i32) -> (i32, i32) {
    %c0_i32 = arith.constant 0 : i32
    %c0_i32_0 = arith.constant 0 : i32
    return %arg0, %c0_i32 : i32, i32
  }
  func.func @transform_8(%arg0: i32) -> (i32, i32) {
    %c0_i32 = arith.constant 0 : i32
    %c0_i32_0 = arith.constant 0 : i32
    return %arg0, %c0_i32 : i32, i32
  }
  func.func @transform_9(%arg0: i32) -> (i32, i32) {
    %c0_i32 = arith.constant 0 : i32
    %c0_i32_0 = arith.constant 0 : i32
    return %arg0, %c0_i32 : i32, i32
  }
  func.func @transform_10(%arg0: i32) -> i32 {
    %c0_i32 = arith.constant 0 : i32
    %c0_i32_0 = arith.constant 0 : i32
    return %c0_i32 : i32
  }
  func.func @transform_11(%arg0: i32) -> (i32, i32) {
    %c0_i32 = arith.constant 0 : i32
    %c0_i32_0 = arith.constant 0 : i32
    %c0_i32_1 = arith.constant 0 : i32
    return %c0_i32, %c0_i32_0 : i32, i32
  }
  func.func @transform_12(%arg0: i32) -> i32 {
    %c0_i32 = arith.constant 0 : i32
    %c0_i32_0 = arith.constant 0 : i32
    return %c0_i32 : i32
  }
  func.func @transform_13(%arg0: i32) -> (i32, i32) {
    %c0_i32 = arith.constant 0 : i32
    %c0_i32_0 = arith.constant 0 : i32
    %c0_i32_1 = arith.constant 0 : i32
    return %c0_i32, %c0_i32_0 : i32, i32
  }
  func.func @transform_14(%arg0: i32) -> i32 {
    %c0_i32 = arith.constant 0 : i32
    %c0_i32_0 = arith.constant 0 : i32
    return %c0_i32 : i32
  }
  func.func @transform_15(%arg0: i32) -> (i32, i32) {
    %c0_i32 = arith.constant 0 : i32
    %c0_i32_0 = arith.constant 0 : i32
    return %arg0, %c0_i32 : i32, i32
  }
  func.func @transform_16(%arg0: i32) -> (i32, i32) {
    %c0_i32 = arith.constant 0 : i32
    %c0_i32_0 = arith.constant 0 : i32
    return %arg0, %c0_i32 : i32, i32
  }
  func.func @transform_17(%arg0: i32) -> (i32, i32) {
    %c0_i32 = arith.constant 0 : i32
    %c0_i32_0 = arith.constant 0 : i32
    return %arg0, %c0_i32 : i32, i32
  }
  func.func @transform_18(%arg0: i32) -> (i32, i32) {
    %c0_i32 = arith.constant 0 : i32
    %c0_i32_0 = arith.constant 0 : i32
    return %arg0, %c0_i32 : i32, i32
  }
  func.func @transform_19(%arg0: i32) -> (i32, i32) {
    %c0_i32 = arith.constant 0 : i32
    %c0_i32_0 = arith.constant 0 : i32
    return %arg0, %c0_i32 : i32, i32
  }
}

module attributes {stable_mosaic.version = 11 : i64} {
  func.func @_rss_kernel(%arg0: i32, %arg1: memref<1x1x256xf32, #tpu.memory_space<vmem>>, %arg2: memref<1x1x256xf32, #tpu.memory_space<vmem>>, %arg3: memref<4x1x256xf32, #tpu.memory_space<vmem>>, %arg4: memref<4x1x256xf32, #tpu.memory_space<vmem>>, %arg5: memref<1x256xf32, #tpu.memory_space<vmem>>) attributes {dimension_semantics = [#tpu.dimension_semantics<parallel>], iteration_bounds = array<i64: 1>, scalar_prefetch = 0 : i64, scratch_operands = 0 : i64, tpu.core_type = #tpu.core_type<tc>, window_params = [{transform_indices = @transform_0, window_bounds = array<i64: 1, 1, 256>}, {transform_indices = @transform_1, window_bounds = array<i64: 1, 1, 256>}, {transform_indices = @transform_2, window_bounds = array<i64: 4, 1, 256>}, {transform_indices = @transform_3, window_bounds = array<i64: 4, 1, 256>}, {transform_indices = @transform_4, window_bounds = array<i64: 1, 256>}]} {
    %c0 = arith.constant 0 : index
    %c0_0 = arith.constant 0 : index
    %c0_1 = arith.constant 0 : index
    %0 = vector.load %arg1[%c0, %c0_0, %c0_1] : memref<1x1x256xf32, #tpu.memory_space<vmem>>, vector<1x1x256xf32>
    %1 = vector.shape_cast %0 : vector<1x1x256xf32> to vector<1x256xf32>
    %c0_2 = arith.constant 0 : index
    %c0_3 = arith.constant 0 : index
    %c0_4 = arith.constant 0 : index
    %2 = vector.load %arg2[%c0_2, %c0_3, %c0_4] : memref<1x1x256xf32, #tpu.memory_space<vmem>>, vector<1x1x256xf32>
    %3 = vector.shape_cast %2 : vector<1x1x256xf32> to vector<1x256xf32>
    %c0_5 = arith.constant 0 : index
    %c0_6 = arith.constant 0 : index
    %c0_7 = arith.constant 0 : index
    %4 = vector.load %arg3[%c0_5, %c0_6, %c0_7] : memref<4x1x256xf32, #tpu.memory_space<vmem>>, vector<1x1x256xf32>
    %5 = vector.shape_cast %4 : vector<1x1x256xf32> to vector<1x256xf32>
    %c0_8 = arith.constant 0 : index
    %c0_9 = arith.constant 0 : index
    %c0_10 = arith.constant 0 : index
    %6 = vector.load %arg4[%c0_8, %c0_9, %c0_10] : memref<4x1x256xf32, #tpu.memory_space<vmem>>, vector<1x1x256xf32>
    %7 = vector.shape_cast %6 : vector<1x1x256xf32> to vector<1x256xf32>
    %8 = arith.mulf %1, %5 : vector<1x256xf32>
    %9 = arith.mulf %3, %7 : vector<1x256xf32>
    %10 = arith.subf %8, %9 : vector<1x256xf32>
    %11 = arith.mulf %1, %7 : vector<1x256xf32>
    %12 = arith.mulf %3, %5 : vector<1x256xf32>
    %13 = arith.addf %11, %12 : vector<1x256xf32>
    %14 = arith.mulf %10, %10 : vector<1x256xf32>
    %15 = arith.mulf %13, %13 : vector<1x256xf32>
    %16 = arith.addf %14, %15 : vector<1x256xf32>
    %c1 = arith.constant 1 : index
    %c0_11 = arith.constant 0 : index
    %c0_12 = arith.constant 0 : index
    %17 = vector.load %arg3[%c1, %c0_11, %c0_12] : memref<4x1x256xf32, #tpu.memory_space<vmem>>, vector<1x1x256xf32>
    %18 = vector.shape_cast %17 : vector<1x1x256xf32> to vector<1x256xf32>
    %c1_13 = arith.constant 1 : index
    %c0_14 = arith.constant 0 : index
    %c0_15 = arith.constant 0 : index
    %19 = vector.load %arg4[%c1_13, %c0_14, %c0_15] : memref<4x1x256xf32, #tpu.memory_space<vmem>>, vector<1x1x256xf32>
    %20 = vector.shape_cast %19 : vector<1x1x256xf32> to vector<1x256xf32>
    %21 = arith.mulf %1, %18 : vector<1x256xf32>
    %22 = arith.mulf %3, %20 : vector<1x256xf32>
    %23 = arith.subf %21, %22 : vector<1x256xf32>
    %24 = arith.mulf %1, %20 : vector<1x256xf32>
    %25 = arith.mulf %3, %18 : vector<1x256xf32>
    %26 = arith.addf %24, %25 : vector<1x256xf32>
    %27 = arith.mulf %23, %23 : vector<1x256xf32>
    %28 = arith.mulf %26, %26 : vector<1x256xf32>
    %29 = arith.addf %27, %28 : vector<1x256xf32>
    %30 = arith.addf %16, %29 : vector<1x256xf32>
    %c2 = arith.constant 2 : index
    %c0_16 = arith.constant 0 : index
    %c0_17 = arith.constant 0 : index
    %31 = vector.load %arg3[%c2, %c0_16, %c0_17] : memref<4x1x256xf32, #tpu.memory_space<vmem>>, vector<1x1x256xf32>
    %32 = vector.shape_cast %31 : vector<1x1x256xf32> to vector<1x256xf32>
    %c2_18 = arith.constant 2 : index
    %c0_19 = arith.constant 0 : index
    %c0_20 = arith.constant 0 : index
    %33 = vector.load %arg4[%c2_18, %c0_19, %c0_20] : memref<4x1x256xf32, #tpu.memory_space<vmem>>, vector<1x1x256xf32>
    %34 = vector.shape_cast %33 : vector<1x1x256xf32> to vector<1x256xf32>
    %35 = arith.mulf %1, %32 : vector<1x256xf32>
    %36 = arith.mulf %3, %34 : vector<1x256xf32>
    %37 = arith.subf %35, %36 : vector<1x256xf32>
    %38 = arith.mulf %1, %34 : vector<1x256xf32>
    %39 = arith.mulf %3, %32 : vector<1x256xf32>
    %40 = arith.addf %38, %39 : vector<1x256xf32>
    %41 = arith.mulf %37, %37 : vector<1x256xf32>
    %42 = arith.mulf %40, %40 : vector<1x256xf32>
    %43 = arith.addf %41, %42 : vector<1x256xf32>
    %44 = arith.addf %30, %43 : vector<1x256xf32>
    %c3 = arith.constant 3 : index
    %c0_21 = arith.constant 0 : index
    %c0_22 = arith.constant 0 : index
    %45 = vector.load %arg3[%c3, %c0_21, %c0_22] : memref<4x1x256xf32, #tpu.memory_space<vmem>>, vector<1x1x256xf32>
    %46 = vector.shape_cast %45 : vector<1x1x256xf32> to vector<1x256xf32>
    %c3_23 = arith.constant 3 : index
    %c0_24 = arith.constant 0 : index
    %c0_25 = arith.constant 0 : index
    %47 = vector.load %arg4[%c3_23, %c0_24, %c0_25] : memref<4x1x256xf32, #tpu.memory_space<vmem>>, vector<1x1x256xf32>
    %48 = vector.shape_cast %47 : vector<1x1x256xf32> to vector<1x256xf32>
    %49 = arith.mulf %1, %46 : vector<1x256xf32>
    %50 = arith.mulf %3, %48 : vector<1x256xf32>
    %51 = arith.subf %49, %50 : vector<1x256xf32>
    %52 = arith.mulf %1, %48 : vector<1x256xf32>
    %53 = arith.mulf %3, %46 : vector<1x256xf32>
    %54 = arith.addf %52, %53 : vector<1x256xf32>
    %55 = arith.mulf %51, %51 : vector<1x256xf32>
    %56 = arith.mulf %54, %54 : vector<1x256xf32>
    %57 = arith.addf %55, %56 : vector<1x256xf32>
    %58 = arith.addf %44, %57 : vector<1x256xf32>
    %59 = math.sqrt %58 : vector<1x256xf32>
    %c0_26 = arith.constant 0 : index
    %c0_27 = arith.constant 0 : index
    %60 = vector.load %arg5[%c0_26, %c0_27] : memref<1x256xf32, #tpu.memory_space<vmem>>, vector<1x256xf32>
    tpu.vector_store %arg5[%c0_26, %c0_27], %59 {strides = array<i32>} : memref<1x256xf32, #tpu.memory_space<vmem>>, vector<1x256xf32>,
    return
  }
  func.func @transform_0(%arg0: i32) -> (i32, i32, i32) {
    %c0_i32 = arith.constant 0 : i32
    %c0_i32_0 = arith.constant 0 : i32
    %c0_i32_1 = arith.constant 0 : i32
    return %c0_i32, %arg0, %c0_i32_0 : i32, i32, i32
  }
  func.func @transform_1(%arg0: i32) -> (i32, i32, i32) {
    %c0_i32 = arith.constant 0 : i32
    %c0_i32_0 = arith.constant 0 : i32
    %c0_i32_1 = arith.constant 0 : i32
    return %c0_i32, %arg0, %c0_i32_0 : i32, i32, i32
  }
  func.func @transform_2(%arg0: i32) -> (i32, i32, i32) {
    %c0_i32 = arith.constant 0 : i32
    %c0_i32_0 = arith.constant 0 : i32
    %c0_i32_1 = arith.constant 0 : i32
    return %c0_i32, %arg0, %c0_i32_0 : i32, i32, i32
  }
  func.func @transform_3(%arg0: i32) -> (i32, i32, i32) {
    %c0_i32 = arith.constant 0 : i32
    %c0_i32_0 = arith.constant 0 : i32
    %c0_i32_1 = arith.constant 0 : i32
    return %c0_i32, %arg0, %c0_i32_0 : i32, i32, i32
  }
  func.func @transform_4(%arg0: i32) -> (i32, i32) {
    %c0_i32 = arith.constant 0 : i32
    %c0_i32_0 = arith.constant 0 : i32
    return %arg0, %c0_i32 : i32, i32
  }
}

</mosaic_0001>

<bundles_post_ra>
// kernel: squeeze.26
= control target key start
LH: loop header
LB: loop body
LE: loop exit
PB: predicated region body
PF: predicated region fallthrough
CT: control target
= control target key end

     0   :  { %vm4_vm0 = vcmask 1047556   ;;  %s167_s16 = smov 112   ;;  %s168_s19 = smov 80   ;;  %vm6_vm1 = vcmask 130048   ;;  %vm17_vm2 = vcmask 1048448   ;;  %vm28_vm3 = vcmask 917248   ;;  %s264_s0 = inlined_call_operand.vmem [shape: f32[1,1,1,4,16,16], index: 0, kind: input, shape index: {}]   ;;  %s265_s1 = inlined_call_operand.vmem [shape: f32[4,1,256], index: 1, kind: output, shape index: {}]  }
   0x1   :  { %v139_v0 = vld [vmem:[%s264_s0 + $0x7] ss:$8 sm:$0xf]   ;;  %v143_v2 = vld [vmem:[%s264_s0 + $0x5] ss:$8 sm:$0xf]  }
   0x2   :  { %v140_v1 = vld [vmem:[%s264_s0 + $0x7] ss:$8 sm:$0xf0]   ;;  %v144_v4 = vld [vmem:[%s264_s0 + $0x5] ss:$8 sm:$0xf0]  }
   0x3   :  { %v14_v3 = vsel %vm4_vm0, %v140_v1, %v139_v0  ;;  %v141_v5 = vld [vmem:[%s264_s0 + $0x6] ss:$8 sm:$0xf]   ;;  %v36_v6 = vsel %vm4_vm0, %v144_v4, %v143_v2  ;;  %v145_v9 = vld [vmem:[%s264_s0 + $0x4] ss:$8 sm:$0xf]  }
   0x4   :  { %15 = vrot.lane.b32.xlu0 %v14_v3, %s167_s16  ;;  %v142_v7 = vld [vmem:[%s264_s0 + $0x6] ss:$8 sm:$0xf0]   ;;  %37 = vrot.lane.b32.xlu1 %v36_v6, %s168_s19  ;;  %v146_v10 = vld [vmem:[%s264_s0 + $0x4] ss:$8 sm:$0xf0]  }
   0x5   :  { %v25_v8 = vsel %vm4_vm0, %v142_v7, %v141_v5  ;;  %v47_v11 = vsel %vm4_vm0, %v146_v10, %v145_v9  ;;  %v147_v12 = vld [vmem:[%s264_s0 + $0x3] ss:$8 sm:$0xf]   ;;  %v149_v14 = vld [vmem:[%s264_s0 + $0x2] ss:$8 sm:$0xf]  }
   0x6   :  { %v148_v13 = vld [vmem:[%s264_s0 + $0x3] ss:$8 sm:$0xf0]   ;;  %s169_s30 = smov 96   ;;  %s170_s4 = smov 64   ;;  %vm39_vm4 = vcmask 786048  }
   0x7   :  { %v150_v15 = vld [vmem:[%s264_s0 + $0x2] ss:$8 sm:$0xf0]   ;;  %v58_v16 = vsel %vm4_vm0, %v148_v13, %v147_v12  ;;  %v151_v17 = vld [vmem:[%s264_s0 + $0x1] ss:$8 sm:$0xf]  }
   0x8   :  { %26 = vrot.lane.b32.xlu0 %v25_v8, %s169_s30  ;;  %48 = vrot.lane.b32.xlu1 %v47_v11, %s170_s4  ;;  %v152_v18 = vld [vmem:[%s264_s0 + $0x1] ss:$8 sm:$0xf0]   ;;  %v69_v19 = vsel %vm4_vm0, %v150_v15, %v149_v14  ;;  %v2_v20 = vld [vmem:[%s264_s0] ss:$8 sm:$0xf]  }
   0x9   :  { %v3_v21 = vld [vmem:[%s264_s0] ss:$8 sm:$0xf0]   ;;  %s171_s0 = smov 48   ;;  %s172_s13 = smov 32   ;;  %v80_v23 = vsel %vm4_vm0, %v152_v18, %v151_v17  ;;  %vm50_vm5 = vcmask 654848  }
   0xa   :  { %v5_v22 = vsel %vm4_vm0, %v3_v21, %v2_v20  ;;  %s173_s14 = smov 16   ;;  %vm61_vm6 = vcmask 523648   ;;  %vm72_vm7 = vcmask 392448   ;;  %vm83_vm8 = vcmask 261248  }
   0xb   :  { %7 = vst.msk [vmem:[#allocation0] ss:$8 sm:$0xf] %vm6_vm1, %v5_v22   ;;  %8 = vst.msk [vmem:[#allocation0] ss:$8 sm:$0xf0] %vm6_vm1, %v5_v22  }
   0xc   :  { %59 = vrot.lane.b32.xlu0 %v58_v16, %s171_s0  ;;  %70 = vrot.lane.b32.xlu1 %v69_v19, %s172_s13 }
  0x10   :  { %81 = vrot.lane.b32.xlu0 %v80_v23, %s173_s14 }
  0x76   :  { %v16_v24 = vpop.permute.xlu0 %15   ;;  %v38_v25 = vpop.permute.xlu1 %37  }
  0x77   :  { %18 = vst.msk [vmem:[#allocation0] ss:$8 sm:$0xf] %vm17_vm2, %v16_v24   ;;  %19 = vst.msk [vmem:[#allocation0] ss:$8 sm:$0xf0] %vm17_vm2, %v16_v24  }
  0x7a   :  { %v27_v26 = vpop.permute.xlu0 %26   ;;  %v49_v27 = vpop.permute.xlu1 %48  }
  0x7b   :  { %29 = vst.msk [vmem:[#allocation0] ss:$8 sm:$0xf] %vm28_vm3, %v27_v26   ;;  %30 = vst.msk [vmem:[#allocation0] ss:$8 sm:$0xf0] %vm28_vm3, %v27_v26  }
  0x7c   :  { %40 = vst.msk [vmem:[#allocation0] ss:$8 sm:$0xf] %vm39_vm4, %v38_v25   ;;  %41 = vst.msk [vmem:[#allocation0] ss:$8 sm:$0xf0] %vm39_vm4, %v38_v25  }
  0x7d   :  { %51 = vst.msk [vmem:[#allocation0] ss:$8 sm:$0xf] %vm50_vm5, %v49_v27   ;;  %52 = vst.msk [vmem:[#allocation0] ss:$8 sm:$0xf0] %vm50_vm5, %v49_v27  }
  0x7e   :  { %v60_v28 = vpop.permute.xlu0 %59   ;;  %v71_v29 = vpop.permute.xlu1 %70  }
  0x7f   :  { %62 = vst.msk [vmem:[#allocation0] ss:$8 sm:$0xf] %vm61_vm6, %v60_v28   ;;  %63 = vst.msk [vmem:[#allocation0] ss:$8 sm:$0xf0] %vm61_vm6, %v60_v28  }
  0x80   :  { %73 = vst.msk [vmem:[#allocation0] ss:$8 sm:$0xf] %vm72_vm7, %v71_v29   ;;  %74 = vst.msk [vmem:[#allocation0] ss:$8 sm:$0xf0] %vm72_vm7, %v71_v29  }
  0x82   :  { %v82_v30 = vpop.permute.xlu0 %81  }
  0x83   :  { %84 = vst.msk [vmem:[#allocation0] ss:$8 sm:$0xf] %vm83_vm8, %v82_v30   ;;  %85 = vst.msk [vmem:[#allocation0] ss:$8 sm:$0xf0] %vm83_vm8, %v82_v30  }
  0x8a   :  { %v89_v31 = vld [vmem:[#allocation0] sm:$0x1]  ;;  %v93_v32 = vld [vmem:[#allocation0 + $0x8] sm:$0x1]  ;;  %v98_v33 = vld [vmem:[#allocation0 + $0x10] sm:$0x1] }
  0x8b   :  { %91 = vst [vmem:[%s265_s1] sm:$0x1] %v89_v31  ;;  %153 = vst [vmem:[%s265_s1 + $0x1] sm:$0x1] %v93_v32  ;;  %v104_v34 = vld [vmem:[#allocation0 + $0x18] sm:$0x1] }
  0x8c   :  { %154 = vst [vmem:[%s265_s1 + $0x2] sm:$0x1] %v98_v33  ;;  %v110_v35 = vld [vmem:[#allocation0 + $0x20] sm:$0x1]  ;;  %v116_v36 = vld [vmem:[#allocation0 + $0x28] sm:$0x1] }
  0x8d   :  { %155 = vst [vmem:[%s265_s1 + $0x3] sm:$0x1] %v104_v34  ;;  %156 = vst [vmem:[%s265_s1 + $0x4] sm:$0x1] %v110_v35  ;;  %v122_v37 = vld [vmem:[#allocation0 + $0x30] sm:$0x1] }
  0x8e   :  { %157 = vst [vmem:[%s265_s1 + $0x5] sm:$0x1] %v116_v36  ;;  %v128_v38 = vld [vmem:[#allocation0 + $0x38] sm:$0x1]  ;;  %158 = vst [vmem:[%s265_s1 + $0x6] sm:$0x1] %v122_v37 }
  0x8f   :  { %159 = vst [vmem:[%s265_s1 + $0x7] sm:$0x1] %v128_v38 }

// kernel: custom-call
= control target key start
LH: loop header
LB: loop body
LE: loop exit
PB: predicated region body
PF: predicated region fallthrough
CT: control target
= control target key end

     0   :  { %s126_s0 = inlined_call_operand.vmem [shape: f32[1,4,16,16], index: 0, kind: input, shape index: {}]   ;;  %s127_s1 = inlined_call_operand.vmem [shape: f32[1,4,16,16], index: 1, kind: input, shape index: {}]   ;;  %s128_s2 = inlined_call_operand.hbm [shape: c64[1,4,16,16], index: 2, kind: output, shape index: {}]  }
   0x1   :  { %s87_s11 = scalar_lea.hbm %s128_s2, 1024 }
   0x2   :  { %4 = vsyncpa [#allocation0], 0  ;;  %s5_s14 = sshll.u32 %s126_s0, 4  ;;  %s6_s14 = int_to_ptr.vmem [resolvable:$true] %s5_s14 }
   0x3   :  { %s18_s15 = scalar_lea.vmem %s6_s14, 1024  ;;  %p23_p1 = scmp.lt.s32.totalorder %s6_s14, %s6_s14 }
   0x4   :  { %p19_p0 = scmp.ne.s32.totalorder %s6_s14, %s18_s15  ;;  %p24_p2 = scmp.lt.s32.totalorder %s18_s15, %s18_s15 }
   0x6   :  { %p25_p3 = por %p24_p2, %p23_p1 }
   0x8   :  { %p26_p4 = pnand %p25_p3, %p19_p0 }
   0xa   :  { %29 = shalt.err (!%p26_p4)  }
   0xb   :  { %p31_p5 = scmp.ne.s32.totalorder %s128_s2, %s87_s11  ;;  %s32_s0 = scalar_lea.hbm %s128_s2, 2048 }
   0xc   :  { %p33_p6 = scmp.lt.u32.totalorder %s32_s0, %s87_s11  ;;  %p34_p7 = scmp.lt.u32.totalorder %s87_s11, %s128_s2 }
   0xe   :  { %p35_p8 = por %p34_p7, %p33_p6 }
  0x10   :  { %p36_p9 = pnand %p35_p8, %p31_p5 }
  0x12   :  { %39 = shalt.err (!%p36_p9)  }
  0x13   :  { %8 = dma.vmem_to_hbm [thread:$0]  %s6_s14, 1024, %s128_s2, [#allocation0] }
  0x14   :  { %65 = dma.done.wait [#allocation0], 1024  }
  0x15   :  { %66 = vsyncadd [#allocation0], 4294966272 }
  0x16   :  { %10 = vsyncpa [#allocation0], 1 }
  0x17   :  { %11 = vsyncpa [#allocation1], 0  ;;  %s12_s28 = sshll.u32 %s127_s1, 4  ;;  %s13_s28 = int_to_ptr.vmem [resolvable:$true] %s12_s28 }
  0x18   :  { %s40_s29 = scalar_lea.vmem %s13_s28, 1024  ;;  %p45_p11 = scmp.lt.s32.totalorder %s13_s28, %s13_s28 }
  0x19   :  { %p41_p10 = scmp.ne.s32.totalorder %s13_s28, %s40_s29  ;;  %p46_p12 = scmp.lt.s32.totalorder %s40_s29, %s40_s29 }
  0x1b   :  { %p47_p13 = por %p46_p12, %p45_p11 }
  0x1d   :  { %p48_p0 = pnand %p47_p13, %p41_p10 }
  0x1f   :  { %51 = shalt.err (!%p48_p0)  }
  0x20   :  { %p53_p1 = scmp.ne.s32.totalorder %s87_s11, %s32_s0  ;;  %p56_p2 = scmp.lt.u32.totalorder %s32_s0, %s32_s0 }
  0x22   :  { %p57_p3 = por %p56_p2, %p34_p7 }
  0x24   :  { %p59_p4 = por %p57_p3, %p33_p6 }
  0x26   :  { %p60_p5 = pnand %p59_p4, %p53_p1 }
  0x28   :  { %63 = shalt.err (!%p60_p5)  }
  0x29   :  { %15 = dma.vmem_to_hbm [thread:$0]  %s13_s28, 1024, %s87_s11, [#allocation1] }
  0x2a   :  { %67 = dma.done.wait [#allocation1], 1024  }
  0x2b   :  { %68 = vsyncadd [#allocation1], 4294966272 }
  0x2c   :  { %17 = vsyncpa [#allocation1], 1 }

// kernel: vve_forward.10
= control target key start
LH: loop header
LB: loop body
LE: loop exit
PB: predicated region body
PF: predicated region fallthrough
CT: control target
= control target key end

     0   :  { %s169_s0 = inlined_call_operand.vmem [shape: f32[4,4,256], index: 0, kind: input, shape index: {}]   ;;  %s170_s1 = inlined_call_operand.vmem [shape: f32[4,4,256], index: 1, kind: input, shape index: {}]   ;;  %s171_s2 = inlined_call_operand.vmem [shape: f32[4,4,256], index: 2, kind: output, shape index: {0}]   ;;  %s172_s3 = inlined_call_operand.vmem [shape: f32[4,4,256], index: 3, kind: output, shape index: {1}]  }
   0x1   :  { %v13_v0 = vld [vmem:[%s169_s0] sm:$0xff]  ;;  %v81_v2 = vld [vmem:[%s169_s0 + $0x8] sm:$0xff]  ;;  %v83_v7 = vld [vmem:[%s169_s0 + $0x10] sm:$0xff] }
   0x2   :  { %v14_v1 = vld [vmem:[%s170_s1] sm:$0xff]  ;;  %v15_v3 = vmul.f32 %v13_v0, %v13_v0  ;;  %v82_v5 = vld [vmem:[%s170_s1 + $0x8] sm:$0xff]  ;;  %v22_v6 = vmul.f32 %v81_v2, %v81_v2  ;;  %v84_v8 = vld [vmem:[%s170_s1 + $0x10] sm:$0xff]  ;;  %v30_v10 = vmul.f32 %v83_v7, %v83_v7 }
   0x3   :  { %v16_v4 = vmul.f32 %v14_v1, %v14_v1  ;;  %v23_v9 = vmul.f32 %v82_v5, %v82_v5  ;;  %v31_v11 = vmul.f32 %v84_v8, %v84_v8  ;;  %v85_v12 = vld [vmem:[%s169_s0 + $0x18] sm:$0xff] }
   0x4   :  { %v86_v13 = vld [vmem:[%s170_s1 + $0x18] sm:$0xff]  ;;  %v38_v15 = vmul.f32 %v85_v12, %v85_v12 }
   0x5   :  { %v17_v14 = vadd.f32 %v16_v4, %v15_v3  ;;  %v39_v16 = vmul.f32 %v86_v13, %v86_v13  ;;  %v24_v17 = vadd.f32 %v23_v9, %v22_v6  ;;  %v32_v18 = vadd.f32 %v31_v11, %v30_v10 }
   0x7   :  { %v25_v19 = vadd.f32 %v24_v17, %v17_v14  ;;  %v40_v20 = vadd.f32 %v39_v16, %v38_v15 }
   0x9   :  { %v33_v21 = vadd.f32 %v32_v18, %v25_v19 }
   0xb   :  { %v41_v22 = vadd.f32 %v40_v20, %v33_v21 }
   0xd   :  { %v42_v23 = vadd.f32 1e-12, %v41_v22 }
   0xf   :  { %99 = vrsqrt.f32 %v42_v23 }
  0x19   :  { %v100_v24 = vpop.eup %99 }
  0x1a   :  { %v44_v25 = vmul.f32 %v100_v24, %v13_v0  ;;  %v47_v26 = vmul.f32 %v100_v24, %v14_v1  ;;  %v50_v27 = vmul.f32 %v100_v24, %v81_v2  ;;  %v54_v28 = vmul.f32 %v100_v24, %v82_v5 }
  0x1b   :  { %v58_v29 = vmul.f32 %v100_v24, %v83_v7  ;;  %v62_v30 = vmul.f32 %v100_v24, %v84_v8  ;;  %v66_v31 = vmul.f32 %v100_v24, %v85_v12  ;;  %v70_v32 = vmul.f32 %v100_v24, %v86_v13 }
  0x1c   :  { %45 = vst [vmem:[%s171_s2] sm:$0xff] %v44_v25  ;;  %48 = vst [vmem:[%s172_s3] sm:$0xff] %v47_v26 }
  0x1d   :  { %88 = vst [vmem:[%s171_s2 + $0x8] sm:$0xff] %v50_v27  ;;  %90 = vst [vmem:[%s172_s3 + $0x8] sm:$0xff] %v54_v28 }
  0x1e   :  { %92 = vst [vmem:[%s171_s2 + $0x10] sm:$0xff] %v58_v29  ;;  %94 = vst [vmem:[%s172_s3 + $0x10] sm:$0xff] %v62_v30 }
  0x1f   :  { %96 = vst [vmem:[%s171_s2 + $0x18] sm:$0xff] %v66_v31  ;;  %98 = vst [vmem:[%s172_s3 + $0x18] sm:$0xff] %v70_v32 }

// kernel: vve_forward.19
= control target key start
LH: loop header
LB: loop body
LE: loop exit
PB: predicated region body
PF: predicated region fallthrough
CT: control target
= control target key end

     0   :  { %v91_v55 = vlaneseq  ;;  %s190_s0 = inlined_call_operand.vmem [shape: f32[4,1,256], index: 0, kind: input, shape index: {}]   ;;  %s191_s1 = inlined_call_operand.vmem [shape: f32[4,1,256], index: 1, kind: input, shape index: {}]   ;;  %s192_s2 = inlined_call_operand.vmem [shape: f32[4,1,256], index: 2, kind: input, shape index: {}]   ;;  %s193_s3 = inlined_call_operand.vmem [shape: f32[4,1,256], index: 3, kind: input, shape index: {}]   ;;  %s194_s4 = inlined_call_operand.vmem [shape: f32[1,256], index: 4, kind: output, shape index: {}]  }
   0x1   :  { %v17_v0 = vld [vmem:[%s190_s0] sm:$0x3]  ;;  %v100_v6 = vld [vmem:[%s190_s0 + $0x2] sm:$0x3]  ;;  %v104_v12 = vld [vmem:[%s190_s0 + $0x4] sm:$0x3] }
   0x2   :  { %v18_v1 = vld [vmem:[%s191_s1] sm:$0x3]  ;;  %v101_v7 = vld [vmem:[%s191_s1 + $0x2] sm:$0x3]  ;;  %v105_v17 = vld [vmem:[%s191_s1 + $0x4] sm:$0x3] }
   0x3   :  { %v19_v2 = vld [vmem:[%s192_s2] sm:$0x3]  ;;  %v102_v10 = vld [vmem:[%s192_s2 + $0x2] sm:$0x3]  ;;  %v106_v18 = vld [vmem:[%s192_s2 + $0x4] sm:$0x3] }
   0x4   :  { %v20_v3 = vld [vmem:[%s193_s3] sm:$0x3]  ;;  %v21_v4 = vmul.f32 %v19_v2, %v17_v0  ;;  %v25_v5 = vmul.f32 %v19_v2, %v18_v1  ;;  %v103_v11 = vld [vmem:[%s193_s3 + $0x2] sm:$0x3]  ;;  %v38_v13 = vmul.f32 %v102_v10, %v100_v6  ;;  %v42_v16 = vmul.f32 %v102_v10, %v101_v7  ;;  %v107_v19 = vld [vmem:[%s193_s3 + $0x4] sm:$0x3] }
   0x5   :  { %v22_v8 = vmul.f32 %v20_v3, %v18_v1  ;;  %v24_v9 = vmul.f32 %v20_v3, %v17_v0  ;;  %v39_v14 = vmul.f32 %v103_v11, %v101_v7  ;;  %v41_v15 = vmul.f32 %v103_v11, %v100_v6  ;;  %v108_v24 = vld [vmem:[%s190_s0 + $0x6] sm:$0x3] }
   0x6   :  { %v56_v22 = vmul.f32 %v106_v18, %v104_v12  ;;  %v57_v23 = vmul.f32 %v107_v19, %v105_v17  ;;  %v109_v25 = vld [vmem:[%s191_s1 + $0x6] sm:$0x3]  ;;  %v59_v29 = vmul.f32 %v107_v19, %v104_v12  ;;  %v60_v30 = vmul.f32 %v106_v18, %v105_v17 }
   0x7   :  { %v23_v20 = vsub.f32 %v21_v4, %v22_v8  ;;  %v26_v21 = vadd.f32 %v25_v5, %v24_v9  ;;  %v110_v26 = vld [vmem:[%s192_s2 + $0x6] sm:$0x3]  ;;  %v40_v27 = vsub.f32 %v38_v13, %v39_v14  ;;  %v43_v28 = vadd.f32 %v42_v16, %v41_v15 }
   0x8   :  { %v111_v31 = vld [vmem:[%s193_s3 + $0x6] sm:$0x3]  ;;  %v58_v34 = vsub.f32 %v56_v22, %v57_v23  ;;  %v74_v35 = vmul.f32 %v110_v26, %v108_v24  ;;  %v61_v38 = vadd.f32 %v60_v30, %v59_v29  ;;  %v78_v43 = vmul.f32 %v110_v26, %v109_v25 }
   0x9   :  { %v27_v32 = vmul.f32 %v23_v20, %v23_v20  ;;  %v28_v33 = vmul.f32 %v26_v21, %v26_v21  ;;  %v44_v36 = vmul.f32 %v40_v27, %v40_v27  ;;  %v45_v37 = vmul.f32 %v43_v28, %v43_v28 }
   0xa   :  { %v75_v39 = vmul.f32 %v111_v31, %v109_v25  ;;  %v62_v41 = vmul.f32 %v58_v34, %v58_v34  ;;  %v77_v42 = vmul.f32 %v111_v31, %v108_v24  ;;  %v63_v45 = vmul.f32 %v61_v38, %v61_v38 }
   0xb   :  { %v29_v40 = vadd.f32 %v28_v33, %v27_v32  ;;  %v46_v44 = vadd.f32 %v45_v37, %v44_v36  ;;  %vm93_vm2 = vcmp.lt.s32.totalorder %v91_v55, 256 }
   0xc   :  { %v76_v46 = vsub.f32 %v74_v35, %v75_v39  ;;  %v79_v47 = vadd.f32 %v78_v43, %v77_v42  ;;  %v64_v49 = vadd.f32 %v63_v45, %v62_v41 }
   0xd   :  { %v47_v48 = vadd.f32 %v46_v44, %v29_v40 }
   0xe   :  { %v80_v50 = vmul.f32 %v76_v46, %v76_v46  ;;  %v81_v51 = vmul.f32 %v79_v47, %v79_v47 }
   0xf   :  { %v65_v52 = vadd.f32 %v64_v49, %v47_v48 }
  0x10   :  { %v82_v53 = vadd.f32 %v81_v51, %v80_v50 }
  0x12   :  { %v83_v54 = vadd.f32 %v82_v53, %v65_v52 }
  0x14   :  { %112 = vrsqrt.f32 %v83_v54  ;;  %vm86_vm0 = vcmp.eq.f32.partialorder %v83_v54, inf  ;;  %v89_v57 = vand.u32 2147483648, %v83_v54  ;;  %vm88_vm1 = vcmp.eq.f32.partialorder %v83_v54, 0.0 }
  0x1e   :  { %v113_v56 = vpop.eup %112 }
  0x1f   :  { %v85_v58 = vmul.f32 %v113_v56, %v83_v54 }
  0x21   :  { %v87_v59 = vsel %vm86_vm0, %v83_v54, %v85_v58 }
  0x22   :  { %v90_v60 = vsel %vm88_vm1, %v89_v57, %v87_v59 }
  0x23   :  { %95 = vst.msk [vmem:[%s194_s4] sm:$0x3] %vm93_vm2, %v90_v60 }

// kernel: vve_forward.12
= control target key start
LH: loop header
LB: loop body
LE: loop exit
PB: predicated region body
PF: predicated region fallthrough
CT: control target
= control target key end

     0   :  { %s177_s0 = inlined_call_operand.vmem [shape: f32[4,256], index: 0, kind: input, shape index: {}]   ;;  %s178_s1 = inlined_call_operand.vmem [shape: f32[4,256], index: 1, kind: input, shape index: {}]   ;;  %s179_s2 = inlined_call_operand.vmem [shape: f32[4,4,256], index: 2, kind: input, shape index: {}]   ;;  %s180_s3 = inlined_call_operand.vmem [shape: f32[4,4,256], index: 3, kind: input, shape index: {}]   ;;  %s181_s4 = inlined_call_operand.vmem [shape: f32[4,4,256], index: 4, kind: output, shape index: {0}]   ;;  %s182_s5 = inlined_call_operand.vmem [shape: f32[4,4,256], index: 5, kind: output, shape index: {1}]  }
   0x1   :  { %v19_v0 = vld [vmem:[%s177_s0] sm:$0xff]  ;;  %v81_v6 = vld [vmem:[%s179_s2 + $0x8] sm:$0xff]  ;;  %v85_v12 = vld [vmem:[%s179_s2 + $0x10] sm:$0xff] }
   0x2   :  { %v20_v1 = vld [vmem:[%s178_s1] sm:$0xff]  ;;  %v82_v7 = vld [vmem:[%s180_s3 + $0x8] sm:$0xff]  ;;  %v35_v10 = vmul.f32 %v81_v6, %v19_v0  ;;  %v86_v13 = vld [vmem:[%s180_s3 + $0x10] sm:$0xff]  ;;  %v49_v17 = vmul.f32 %v85_v12, %v19_v0 }
   0x3   :  { %v21_v2 = vld [vmem:[%s179_s2] sm:$0xff]  ;;  %v36_v11 = vmul.f32 %v82_v7, %v20_v1  ;;  %v89_v14 = vld [vmem:[%s179_s2 + $0x18] sm:$0xff]  ;;  %v40_v15 = vmul.f32 %v82_v7, %v19_v0  ;;  %v41_v16 = vmul.f32 %v81_v6, %v20_v1  ;;  %v50_v18 = vmul.f32 %v86_v13, %v20_v1 }
   0x4   :  { %v22_v3 = vld [vmem:[%s180_s3] sm:$0xff]  ;;  %v23_v4 = vmul.f32 %v21_v2, %v19_v0  ;;  %v28_v5 = vmul.f32 %v21_v2, %v20_v1  ;;  %v90_v19 = vld [vmem:[%s180_s3 + $0x18] sm:$0xff]  ;;  %v54_v23 = vmul.f32 %v86_v13, %v19_v0  ;;  %v55_v26 = vmul.f32 %v85_v12, %v20_v1 }
   0x5   :  { %v24_v8 = vmul.f32 %v22_v3, %v20_v1  ;;  %v27_v9 = vmul.f32 %v22_v3, %v19_v0  ;;  %v37_v22 = vsub.f32 %v35_v10, %v36_v11  ;;  %v42_v24 = vadd.f32 %v41_v16, %v40_v15 }
   0x6   :  { %v51_v25 = vsub.f32 %v49_v17, %v50_v18  ;;  %v63_v27 = vmul.f32 %v89_v14, %v19_v0  ;;  %v64_v28 = vmul.f32 %v90_v19, %v20_v1  ;;  %v68_v29 = vmul.f32 %v90_v19, %v19_v0 }
   0x7   :  { %v25_v20 = vsub.f32 %v23_v4, %v24_v8  ;;  %v29_v21 = vadd.f32 %v28_v5, %v27_v9  ;;  %83 = vst [vmem:[%s181_s4 + $0x8] sm:$0xff] %v37_v22  ;;  %v69_v30 = vmul.f32 %v89_v14, %v20_v1  ;;  %84 = vst [vmem:[%s182_s5 + $0x8] sm:$0xff] %v42_v24 }
   0x8   :  { %87 = vst [vmem:[%s181_s4 + $0x10] sm:$0xff] %v51_v25  ;;  %v56_v31 = vadd.f32 %v55_v26, %v54_v23  ;;  %v65_v32 = vsub.f32 %v63_v27, %v64_v28 }
   0x9   :  { %26 = vst [vmem:[%s181_s4] sm:$0xff] %v25_v20  ;;  %30 = vst [vmem:[%s182_s5] sm:$0xff] %v29_v21  ;;  %v70_v33 = vadd.f32 %v69_v30, %v68_v29 }
   0xa   :  { %88 = vst [vmem:[%s182_s5 + $0x10] sm:$0xff] %v56_v31  ;;  %91 = vst [vmem:[%s181_s4 + $0x18] sm:$0xff] %v65_v32 }
   0xb   :  { %92 = vst [vmem:[%s182_s5 + $0x18] sm:$0xff] %v70_v33 }

// kernel: vve_forward.11
= control target key start
LH: loop header
LB: loop body
LE: loop exit
PB: predicated region body
PF: predicated region fallthrough
CT: control target
= control target key end

     0   :  { %vm83_vm0 = vcmask 1043456   ;;  %vm117_vm1 = vcmask 3072   ;;  %vm119_vm2 = vcmask 11272   ;;  %s248_s0 = inlined_call_operand.vmem [shape: f32[4,4,256], index: 0, kind: input, shape index: {}]   ;;  %s249_s1 = inlined_call_operand.vmem [shape: f32[4,4,256], index: 1, kind: input, shape index: {}]   ;;  %s250_s2 = inlined_call_operand.vmem [shape: f32[4,4,256], index: 2, kind: input, shape index: {}]   ;;  %s251_s3 = inlined_call_operand.vmem [shape: f32[4,4,256], index: 3, kind: input, shape index: {}]   ;;  %s252_s4 = inlined_call_operand.vmem [shape: f32[4,256], index: 4, kind: output, shape index: {0}]   ;;  %s253_s5 = inlined_call_operand.vmem [shape: f32[4,256], index: 5, kind: output, shape index: {1}]   ;;  %s254_s6 = inlined_call_operand.vmem [shape: f32[4,2], index: 6, kind: output, shape index: {2}]  }
   0x1   :  { %v20_v0 = vld [vmem:[%s248_s0] sm:$0xff]  ;;  %v133_v5 = vld [vmem:[%s248_s0 + $0x8] sm:$0xff]  ;;  %v137_v11 = vld [vmem:[%s248_s0 + $0x10] sm:$0xff] }
   0x2   :  { %v21_v1 = vld [vmem:[%s249_s1] sm:$0xff]  ;;  %v134_v6 = vld [vmem:[%s249_s1 + $0x8] sm:$0xff]  ;;  %v138_v15 = vld [vmem:[%s249_s1 + $0x10] sm:$0xff] }
   0x3   :  { %v22_v2 = vld [vmem:[%s250_s2] sm:$0xff]  ;;  %v135_v9 = vld [vmem:[%s250_s2 + $0x8] sm:$0xff]  ;;  %v139_v16 = vld [vmem:[%s250_s2 + $0x10] sm:$0xff] }
   0x4   :  { %v23_v3 = vld [vmem:[%s251_s3] sm:$0xff]  ;;  %v24_v4 = vmul.f32 %v22_v2, %v20_v0  ;;  %v27_v7 = vmul.f32 %v22_v2, %v21_v1  ;;  %v136_v10 = vld [vmem:[%s251_s3 + $0x8] sm:$0xff]  ;;  %v38_v13 = vmul.f32 %v135_v9, %v133_v5  ;;  %v140_v17 = vld [vmem:[%s251_s3 + $0x10] sm:$0xff]  ;;  %v41_v18 = vmul.f32 %v135_v9, %v134_v6 }
   0x5   :  { %v25_v8 = vmul.f32 %v23_v3, %v21_v1  ;;  %v28_v12 = vmul.f32 %v23_v3, %v20_v0  ;;  %v39_v14 = vmul.f32 %v136_v10, %v134_v6  ;;  %v42_v19 = vmul.f32 %v136_v10, %v133_v5  ;;  %v141_v23 = vld [vmem:[%s248_s0 + $0x18] sm:$0xff] }
   0x6   :  { %v54_v21 = vmul.f32 %v139_v16, %v137_v11  ;;  %v55_v22 = vmul.f32 %v140_v17, %v138_v15  ;;  %v142_v24 = vld [vmem:[%s249_s1 + $0x18] sm:$0xff]  ;;  %v57_v31 = vmul.f32 %v139_v16, %v138_v15  ;;  %v58_v34 = vmul.f32 %v140_v17, %v137_v11 }
   0x7   :  { %v26_v20 = vadd.f32 %v25_v8, %v24_v4  ;;  %v143_v25 = vld [vmem:[%s250_s2 + $0x18] sm:$0xff]  ;;  %v29_v26 = vsub.f32 %v27_v7, %v28_v12  ;;  %v40_v27 = vadd.f32 %v39_v14, %v38_v13  ;;  %v43_v30 = vsub.f32 %v41_v18, %v42_v19 }
   0x8   :  { %v144_v28 = vld [vmem:[%s251_s3 + $0x18] sm:$0xff]  ;;  %v70_v29 = vmul.f32 %v143_v25, %v141_v23  ;;  %v56_v32 = vadd.f32 %v55_v22, %v54_v21  ;;  %v73_v35 = vmul.f32 %v143_v25, %v142_v24  ;;  %v59_v40 = vsub.f32 %v57_v31, %v58_v34 }
   0x9   :  { %v71_v33 = vmul.f32 %v144_v28, %v142_v24  ;;  %v44_v36 = vadd.f32 %v40_v27, %v26_v20  ;;  %v45_v37 = vadd.f32 %v43_v30, %v29_v26  ;;  %v74_v38 = vmul.f32 %v144_v28, %v141_v23 }
   0xb   :  { %v72_v39 = vadd.f32 %v71_v33, %v70_v29  ;;  %v60_v41 = vadd.f32 %v56_v32, %v44_v36  ;;  %v75_v42 = vsub.f32 %v73_v35, %v74_v38  ;;  %v61_v43 = vadd.f32 %v59_v40, %v45_v37 }
   0xd   :  { %v76_v44 = vadd.f32 %v72_v39, %v60_v41  ;;  %v77_v45 = vadd.f32 %v75_v42, %v61_v43 }
   0xf   :  { %v81_v46 = vcombine.high %v76_v44, %v76_v44  ;;  %v84_v47 = vsel %vm83_vm0, %v76_v44, 0.0  ;;  %78 = vst [vmem:[%s252_s4] sm:$0xff] %v76_v44  ;;  %v98_v48 = vmul.f32 %v76_v44, %v76_v44  ;;  %79 = vst [vmem:[%s253_s5] sm:$0xff] %v77_v45  ;;  %v90_v49 = vcombine.high %v77_v45, %v77_v45 }
  0x10   :  { %v107_v50 = vmul.f32 %v77_v45, %v77_v45  ;;  %v92_v54 = vsel %vm83_vm0, %v77_v45, 0.0 }
  0x11   :  { %v85_v51 = vsel %vm83_vm0, %v81_v46, 0.0  ;;  %v100_v52 = vcombine.high %v98_v48, %v98_v48  ;;  %v102_v53 = vsel %vm83_vm0, %v98_v48, 0.0  ;;  %v93_v56 = vsel %vm83_vm0, %v90_v49, 0.0 }
  0x12   :  { %v86_v55 = vadd.f32 %v85_v51, %v84_v47  ;;  %v109_v57 = vcombine.high %v107_v50, %v107_v50  ;;  %v111_v59 = vsel %vm83_vm0, %v107_v50, 0.0  ;;  %v94_v61 = vadd.f32 %v93_v56, %v92_v54 }
  0x13   :  { %v103_v58 = vsel %vm83_vm0, %v100_v52, 0.0 }
  0x14   :  { %87 = vadd.xlane.f32.xlu0 %v86_v55  ;;  %v104_v60 = vadd.f32 %v103_v58, %v102_v53  ;;  %v112_v62 = vsel %vm83_vm0, %v109_v57, 0.0 }
  0x15   :  { %v113_v63 = vadd.f32 %v112_v62, %v111_v59 }
  0x16   :  { %105 = vadd.xlane.f32.xlu1 %v104_v60 }
  0x18   :  { %95 = vadd.xlane.f32.xlu0 %v94_v61 }
  0x1a   :  { %114 = vadd.xlane.f32.xlu1 %v113_v63 }
  0xa1   :  { %v88_v0 = vpop.xlane.xlu0 %87 }
  0xa3   :  { %v106_v1 = vpop.xlane.xlu1 %105 }
  0xa5   :  { %v96_v2 = vpop.xlane.xlu0 %95 }
  0xa6   :  { %v97_v3 = vadd.f32 %v96_v2, %v88_v0 }
  0xa7   :  { %v115_v4 = vpop.xlane.xlu1 %114 }
  0xa8   :  { %118 = vst.msk [vmem:[%s254_s6] sm:$0xf] %vm117_vm1, %v97_v3  ;;  %v116_v5 = vadd.f32 %v115_v4, %v106_v1 }
  0xaa   :  { %120 = vst.msk [vmem:[%s254_s6] sm:$0xf] %vm119_vm2, %v116_v5 }

// kernel: vve_forward.18
= control target key start
LH: loop header
LB: loop body
LE: loop exit
PB: predicated region body
PF: predicated region fallthrough
CT: control target
= control target key end

     0   :  { %v79_v49 = vlaneseq  ;;  %s154_s0 = inlined_call_operand.vmem [shape: f32[1,1,256], index: 0, kind: input, shape index: {}]   ;;  %s155_s1 = inlined_call_operand.vmem [shape: f32[1,1,256], index: 1, kind: input, shape index: {}]   ;;  %s156_s2 = inlined_call_operand.vmem [shape: f32[4,1,256], index: 2, kind: input, shape index: {}]   ;;  %s157_s3 = inlined_call_operand.vmem [shape: f32[4,1,256], index: 3, kind: input, shape index: {}]   ;;  %s158_s4 = inlined_call_operand.vmem [shape: f32[1,256], index: 4, kind: output, shape index: {}]  }
   0x1   :  { %v17_v0 = vld [vmem:[%s154_s0] sm:$0x3]  ;;  %v88_v6 = vld [vmem:[%s156_s2 + $0x2] sm:$0x3]  ;;  %v90_v12 = vld [vmem:[%s156_s2 + $0x4] sm:$0x3] }
   0x2   :  { %v18_v1 = vld [vmem:[%s155_s1] sm:$0x3]  ;;  %v89_v7 = vld [vmem:[%s157_s3 + $0x2] sm:$0x3]  ;;  %v34_v10 = vmul.f32 %v88_v6, %v17_v0  ;;  %v91_v13 = vld [vmem:[%s157_s3 + $0x4] sm:$0x3]  ;;  %v48_v17 = vmul.f32 %v90_v12, %v17_v0 }
   0x3   :  { %v19_v2 = vld [vmem:[%s156_s2] sm:$0x3]  ;;  %v35_v11 = vmul.f32 %v89_v7, %v18_v1  ;;  %v92_v14 = vld [vmem:[%s156_s2 + $0x6] sm:$0x3]  ;;  %v37_v15 = vmul.f32 %v89_v7, %v17_v0  ;;  %v38_v16 = vmul.f32 %v88_v6, %v18_v1  ;;  %v49_v18 = vmul.f32 %v91_v13, %v18_v1 }
   0x4   :  { %v20_v3 = vld [vmem:[%s157_s3] sm:$0x3]  ;;  %v21_v4 = vmul.f32 %v19_v2, %v17_v0  ;;  %v25_v5 = vmul.f32 %v19_v2, %v18_v1  ;;  %v93_v19 = vld [vmem:[%s157_s3 + $0x6] sm:$0x3]  ;;  %v51_v23 = vmul.f32 %v91_v13, %v17_v0  ;;  %v52_v26 = vmul.f32 %v90_v12, %v18_v1 }
   0x5   :  { %v22_v8 = vmul.f32 %v20_v3, %v18_v1  ;;  %v24_v9 = vmul.f32 %v20_v3, %v17_v0  ;;  %v36_v22 = vsub.f32 %v34_v10, %v35_v11  ;;  %v39_v24 = vadd.f32 %v38_v16, %v37_v15 }
   0x6   :  { %v50_v25 = vsub.f32 %v48_v17, %v49_v18  ;;  %v62_v27 = vmul.f32 %v92_v14, %v17_v0  ;;  %v63_v31 = vmul.f32 %v93_v19, %v18_v1  ;;  %v53_v33 = vadd.f32 %v52_v26, %v51_v23 }
   0x7   :  { %v23_v20 = vsub.f32 %v21_v4, %v22_v8  ;;  %v26_v21 = vadd.f32 %v25_v5, %v24_v9  ;;  %v40_v30 = vmul.f32 %v36_v22, %v36_v22  ;;  %v41_v32 = vmul.f32 %v39_v24, %v39_v24 }
   0x8   :  { %v54_v34 = vmul.f32 %v50_v25, %v50_v25  ;;  %v65_v35 = vmul.f32 %v93_v19, %v17_v0  ;;  %v64_v37 = vsub.f32 %v62_v27, %v63_v31  ;;  %v66_v38 = vmul.f32 %v92_v14, %v18_v1 }
   0x9   :  { %v27_v28 = vmul.f32 %v23_v20, %v23_v20  ;;  %v28_v29 = vmul.f32 %v26_v21, %v26_v21  ;;  %v42_v39 = vadd.f32 %v41_v32, %v40_v30  ;;  %v55_v40 = vmul.f32 %v53_v33, %v53_v33 }
   0xa   :  { %v67_v41 = vadd.f32 %v66_v38, %v65_v35  ;;  %v68_v42 = vmul.f32 %v64_v37, %v64_v37  ;;  %vm81_vm2 = vcmp.lt.s32.totalorder %v79_v49, 256 }
   0xb   :  { %v29_v36 = vadd.f32 %v28_v29, %v27_v28  ;;  %v56_v44 = vadd.f32 %v55_v40, %v54_v34 }
   0xc   :  { %v69_v45 = vmul.f32 %v67_v41, %v67_v41 }
   0xd   :  { %v43_v43 = vadd.f32 %v42_v39, %v29_v36 }
   0xe   :  { %v70_v47 = vadd.f32 %v69_v45, %v68_v42 }
   0xf   :  { %v57_v46 = vadd.f32 %v56_v44, %v43_v43 }
  0x11   :  { %v71_v48 = vadd.f32 %v70_v47, %v57_v46 }
  0x13   :  { %94 = vrsqrt.f32 %v71_v48  ;;  %vm74_vm0 = vcmp.eq.f32.partialorder %v71_v48, inf  ;;  %v77_v51 = vand.u32 2147483648, %v71_v48  ;;  %vm76_vm1 = vcmp.eq.f32.partialorder %v71_v48, 0.0 }
  0x1d   :  { %v95_v50 = vpop.eup %94 }
  0x1e   :  { %v73_v52 = vmul.f32 %v95_v50, %v71_v48 }
  0x20   :  { %v75_v53 = vsel %vm74_vm0, %v71_v48, %v73_v52 }
  0x21   :  { %v78_v54 = vsel %vm76_vm1, %v77_v51, %v75_v53 }
  0x22   :  { %83 = vst.msk [vmem:[%s158_s4] sm:$0x3] %vm81_vm2, %v78_v54 }

// kernel: vve_forward.17
= control target key start
LH: loop header
LB: loop body
LE: loop exit
PB: predicated region body
PF: predicated region fallthrough
CT: control target
= control target key end

     0   :  { %s2959_s0 = inlined_call_operand.vmem [shape: f32[4,1], index: 0, kind: input, shape index: {}]   ;;  %s2960_s1 = inlined_call_operand.vmem [shape: f32[4,1], index: 1, kind: input, shape index: {}]   ;;  %s2961_s2 = inlined_call_operand.vmem [shape: f32[4,256], index: 2, kind: input, shape index: {}, may-alias: {2,15}]   ;;  %s2962_s3 = inlined_call_operand.vmem [shape: f32[4,256], index: 3, kind: input, shape index: {}, may-alias: {3,16}]   ;;  %s2963_s4 = inlined_call_operand.vmem [shape: f32[4,256], index: 4, kind: input, shape index: {}]   ;;  %s2964_s5 = inlined_call_operand.vmem [shape: f32[4,256], index: 5, kind: input, shape index: {}]   ;;  %s2965_s6 = inlined_call_operand.vmem [shape: f32[4,256], index: 6, kind: input, shape index: {}, may-alias: {6,17}]   ;;  %s2966_s7 = inlined_call_operand.vmem [shape: f32[4,256], index: 7, kind: input, shape index: {}, may-alias: {7,18}]   ;;  %s2967_s8 = inlined_call_operand.vmem [shape: f32[4,256], index: 8, kind: input, shape index: {}]   ;;  %s2968_s9 = inlined_call_operand.vmem [shape: f32[4,256], index: 9, kind: input, shape index: {}]   ;;  %s2969_s10 = inlined_call_operand.<no memory space> [shape: f32[1], index: 10, kind: input, shape index: {}]   ;;  %s2970_s11 = inlined_call_operand.vmem [shape: f32[16,8], index: 11, kind: input, shape index: {}]   ;;  %s2971_s12 = inlined_call_operand.vmem [shape: f32[16], index: 12, kind: input, shape index: {}]   ;;  %s2972_s13 = inlined_call_operand.vmem [shape: f32[4,16], index: 13, kind: input, shape index: {}]   ;;  %s2973_s14 = inlined_call_operand.vmem [shape: f32[4], index: 14, kind: input, shape index: {}]   ;;  %s2974_s15 = inlined_call_operand.vmem [shape: f32[4,256], index: 15, kind: output, shape index: {0}, may-alias: {2,15}]   ;;  %s2975_s16 = inlined_call_operand.vmem [shape: f32[4,256], index: 16, kind: output, shape index: {1}, may-alias: {3,16}]   ;;  %s2976_s17 = inlined_call_operand.vmem [shape: f32[4,256], index: 17, kind: output, shape index: {2}, may-alias: {6,17}]   ;;  %s2977_s18 = inlined_call_operand.vmem [shape: f32[4,256], index: 18, kind: output, shape index: {3}, may-alias: {7,18}]   ;;  %s2978_s19 = inlined_call_operand.hbm [shape: f32[4,2], index: 19, kind: output, shape index: {4}]  }
   0x1   :  { %3168 = sst [smem:[#allocation195_spill]] %s2959_s0 }
   0x2   :  { %3169 = sst [smem:[#allocation196_spill]] %s2960_s1 }
   0x3   :  { %3170 = sst [smem:[#allocation197_spill]] %s2961_s2 }
   0x4   :  { %3171 = sst [smem:[#allocation198_spill]] %s2962_s3 }
   0x5   :  { %3172 = sst [smem:[#allocation199_spill]] %s2963_s4 }
   0x6   :  { %3173 = sst [smem:[#allocation200_spill]] %s2964_s5 }
   0x7   :  { %3174 = sst [smem:[#allocation201_spill]] %s2965_s6 }
   0x8   :  { %3175 = sst [smem:[#allocation202_spill]] %s2966_s7 }
   0x9   :  { %3176 = sst [smem:[#allocation203_spill]] %s2967_s8 }
   0xa   :  { %3177 = sst [smem:[#allocation204_spill]] %s2968_s9 }
   0xb   :  { %3178 = sst [smem:[#allocation205_spill]] %s2969_s10 }
   0xc   :  { %3179 = sst [smem:[#allocation206_spill]] %s2974_s15 }
   0xd   :  { %3180 = sst [smem:[#allocation207_spill]] %s2975_s16 }
   0xe   :  { %3181 = sst [smem:[#allocation208_spill]] %s2976_s17 }
   0xf   :  { %3182 = sst [smem:[#allocation209_spill]] %s2977_s18 }
  0x10   :  { %3183 = sst [smem:[#allocation210_spill]] %s2978_s19 }
  0x11   :  { %26 = vsyncpa [#allocation5], 0 }
  0x12   :  { %27 = vsyncpa [#allocation7], 0 }
  0x13   :  { %28 = vsyncpa [#allocation10], 0  ;;  %s70_s20 = sshll.u32 %s2971_s12, 4  ;;  %s71_s20 = int_to_ptr.vmem [resolvable:$true] %s70_s20 }
  0x14   :  { %29 = vsyncpa [#allocation4], 0  ;;  %s57_s22 = sshll.u32 %s2970_s11, 4  ;;  %s1348_s2 = scalar_lea.vmem %s71_s20, 16  ;;  %s58_s22 = int_to_ptr.vmem [resolvable:$true] %s57_s22 }
  0x15   :  { %p1349_p0 = scmp.ne.s32.totalorder %s71_s20, %s1348_s2  ;;  %p1353_p1 = scmp.lt.s32.totalorder %s71_s20, %s71_s20 }
  0x16   :  { %p1354_p2 = scmp.lt.s32.totalorder %s1348_s2, %s1348_s2 }
  0x18   :  { %p1355_p3 = por %p1354_p2, %p1353_p1 }
  0x1a   :  { %p1356_p4 = pnand %p1355_p3, %p1349_p0 }
  0x1c   :  { %1359 = shalt.err (!%p1356_p4)
}
  0x1d   :  { %s1426_s23 = smov [#allocation6]   ;;  %s1360_s24 = scalar_lea.vmem %s58_s22, 256 }
  0x1e   :  { %73 = dma.vmem_to_smem %s71_s20, 16, %s1426_s23, [#allocation7]  }
  0x1f   :  { %p1361_p5 = scmp.ne.s32.totalorder %s58_s22, %s1360_s24  ;;  %p1365_p6 = scmp.lt.s32.totalorder %s58_s22, %s58_s22 }
  0x20   :  { %p1366_p7 = scmp.lt.s32.totalorder %s1360_s24, %s1360_s24 }
  0x22   :  { %p1367_p8 = por %p1366_p7, %p1365_p6 }
  0x24   :  { %p1368_p9 = pnand %p1367_p8, %p1361_p5 }
  0x26   :  { %1371 = shalt.err (!%p1368_p9)
}
  0x27   :  { %s1427_s12 = smov [#allocation3]   ;;  %s1428_s25 = smov 128  }
  0x28   :  { %s1429_s11 = smov 8   ;;  %s80_s27 = sshll.u32 %s2972_s13, 4  ;;  %s81_s27 = int_to_ptr.vmem [resolvable:$true] %s80_s27 }
  0x29   :  { %63 = dma.vmem_to_smem %s58_s22, 256, %s1427_s12, [#allocation5], %s1428_s25, %s1428_s25, %s1429_s11  }
  0x2a   :  { %s90_s0 = sshll.u32 %s2973_s14, 4  ;;  %s1372_s30 = scalar_lea.vmem %s81_s27, 64  ;;  %s91_s0 = int_to_ptr.vmem [resolvable:$true] %s90_s0 }
  0x2b   :  { %p1373_p10 = scmp.ne.s32.totalorder %s81_s27, %s1372_s30  ;;  %p1377_p11 = scmp.lt.s32.totalorder %s81_s27, %s81_s27 }
  0x2c   :  { %p1378_p12 = scmp.lt.s32.totalorder %s1372_s30, %s1372_s30 }
  0x2e   :  { %p1379_p13 = por %p1378_p12, %p1377_p11 }
  0x30   :  { %p1380_p0 = pnand %p1379_p13, %p1373_p10 }
  0x32   :  { %1383 = shalt.err (!%p1380_p0)
}
  0x33   :  { %s1430_s20 = smov [#allocation8]   ;;  %s1384_s21 = scalar_lea.vmem %s91_s0, 16 }
  0x34   :  { %83 = dma.vmem_to_smem %s81_s27, 64, %s1430_s20, [#allocation7]  }
  0x35   :  { %p1385_p1 = scmp.ne.s32.totalorder %s91_s0, %s1384_s21  ;;  %p1389_p2 = scmp.lt.s32.totalorder %s91_s0, %s91_s0 }
  0x36   :  { %p1390_p3 = scmp.lt.s32.totalorder %s1384_s21, %s1384_s21 }
  0x38   :  { %p1391_p4 = por %p1390_p3, %p1389_p2 }
  0x3a   :  { %p1392_p5 = pnand %p1391_p4, %p1385_p1 }
  0x3c   :  { %1395 = shalt.err (!%p1392_p5)
}
  0x3d   :  { %s1431_s13 = smov [#allocation9]  }
  0x3e   :  { %93 = dma.vmem_to_smem %s91_s0, 16, %s1431_s13, [#allocation10]  }
  0x3f   :  { %1418 = dma.done.wait [#allocation5], 256  }
  0x40   :  { %1419 = vsyncadd [#allocation5], 4294967040 }
  0x41   :  { %1420 = dma.done.wait [#allocation7], 80  }
  0x42   :  { %1421 = vsyncadd [#allocation7], 4294967216 }
  0x43   :  { %1422 = dma.done.wait [#allocation10], 16  }
  0x44   :  { %1423 = vsyncadd [#allocation10], 4294967280 }
  0x45   :  { %106 = sfence }
  0x46   :  { %s3184_s22 = sld [smem:[#allocation196_spill]]  ;;  %v1432_v1 = vmov 0   ;;  %s3185_s24 = sld [smem:[#allocation195_spill]]  ;;  %v1433_v3 = vmov 839922192   ;;  %v133_v5 = vlaneseq  ;;  %vm1019_vm0 = vcmask 1043456  }
  0x47   :  { %1345 = vset.pattern.permute.xlu0 %v1432_v1  ;;  %s1553_s12 = sld [smem:[#allocation3]]  ;;  %s1555_s25 = sld [smem:[#allocation3 + $0x1]]  ;;  %v131_v4 = vunpack.c.l.s4 %v1433_v3  ;;  %vm1091_vm1 = vcmask 3072   ;;  %vm1093_vm2 = vcmask 11272  }
  0x48   :  { %s1557_s11 = sld [smem:[#allocation3 + $0x2]]  ;;  %s1559_s3 = sld [smem:[#allocation3 + $0x3]]  ;;  %v134_v7 = vshrl.u32 %v133_v5, 7 }
  0x49   :  { %s1561_s26 = sld [smem:[#allocation3 + $0x4]]  ;;  %s1563_s27 = sld [smem:[#allocation3 + $0x5]]  ;;  %v132_v6 = vunpack.c.0.s8 %v131_v4 }
  0x4a   :  { %s1565_s28 = sld [smem:[#allocation3 + $0x6]]  ;;  %s1567_s29 = sld [smem:[#allocation3 + $0x7]] }
  0x4b   :  { %s1569_s0 = sld [smem:[#allocation3 + $0x80]]  ;;  %s1571_s30 = sld [smem:[#allocation3 + $0x81]]  ;;  %v1761_v8 = vsub.s32 %v132_v6, %v134_v7 }
  0x4c   :  { %v120_v0 = vld [vmem:[%s3184_s22] sm:$0xf]  ;;  %s1573_s20 = sld [smem:[#allocation3 + $0x82]]  ;;  %s1575_s21 = sld [smem:[#allocation3 + $0x83]] }
  0x4d   :  { %123 = vperm.xlu0 %1345, %v120_v0   ;;  %v115_v2 = vld [vmem:[%s3185_s24] sm:$0xf]  ;;  %3186 = sst [smem:[#allocation16_spill]] %s1553_s12  ;;  %s1577_s13 = sld [smem:[#allocation3 + $0x84]]  ;;  %v164_v9 = vstv %s1553_s12  ;;  %v167_v10 = vstv %s1555_s25 }
  0x4e   :  { %3187 = sst [smem:[#allocation17_spill]] %s1555_s25  ;;  %s1579_s14 = sld [smem:[#allocation3 + $0x85]]  ;;  %v171_v11 = vstv %s1557_s11  ;;  %v175_v12 = vstv %s1559_s3 }
  0x4f   :  { %3188 = sst [smem:[#allocation18_spill]] %s1557_s11  ;;  %s1581_s1 = sld [smem:[#allocation3 + $0x86]]  ;;  %v179_v13 = vstv %s1561_s26  ;;  %v183_v14 = vstv %s1563_s27 }
  0x50   :  { %3189 = sst [smem:[#allocation19_spill]] %s1559_s3  ;;  %s1583_s22 = sld [smem:[#allocation3 + $0x87]]  ;;  %v187_v15 = vstv %s1565_s28  ;;  %v191_v16 = vstv %s1567_s29 }
  0x51   :  { %118 = vperm.xlu0 %1345, %v115_v2   ;;  %3190 = sst [smem:[#allocation20_spill]] %s1561_s26  ;;  %s1585_s2 = sld [smem:[#allocation3 + $0x100]]  ;;  %v211_v17 = vstv %s1569_s0  ;;  %v214_v18 = vstv %s1571_s30 }
  0x52   :  { %3191 = sst [smem:[#allocation21_spill]] %s1563_s27  ;;  %s1587_s23 = sld [smem:[#allocation3 + $0x101]]  ;;  %v218_v19 = vstv %s1573_s20  ;;  %v222_v20 = vstv %s1575_s21 }
  0x53   :  { %3192 = sst [smem:[#allocation22_spill]] %s1565_s28  ;;  %s1589_s24 = sld [smem:[#allocation3 + $0x102]]  ;;  %v226_v21 = vstv %s1577_s13 }
  0x54   :  { %3193 = sst [smem:[#allocation23_spill]] %s1567_s29  ;;  %s1591_s19 = sld [smem:[#allocation3 + $0x103]]  ;;  %v230_v22 = vstv %s1579_s14 }
  0x55   :  { %3194 = sst [smem:[#allocation24_spill]] %s1569_s0  ;;  %s1593_s18 = sld [smem:[#allocation3 + $0x104]]  ;;  %v234_v23 = vstv %s1581_s1 }
  0x56   :  { %3195 = sst [smem:[#allocation25_spill]] %s1571_s30  ;;  %s1595_s17 = sld [smem:[#allocation3 + $0x105]]  ;;  %v238_v24 = vstv %s1583_s22 }
  0x57   :  { %3196 = sst [smem:[#allocation26_spill]] %s1573_s20  ;;  %s1597_s16 = sld [smem:[#allocation3 + $0x106]]  ;;  %v262_v25 = vstv %s1585_s2 }
  0x58   :  { %3197 = sst [smem:[#allocation27_spill]] %s1575_s21  ;;  %s1599_s15 = sld [smem:[#allocation3 + $0x107]]  ;;  %v265_v26 = vstv %s1587_s23 }
  0x59   :  { %3198 = sst [smem:[#allocation28_spill]] %s1577_s13  ;;  %s1601_s9 = sld [smem:[#allocation3 + $0x180]]  ;;  %v269_v27 = vstv %s1589_s24 }
  0x5a   :  { %3199 = sst [smem:[#allocation29_spill]] %s1579_s14  ;;  %s1603_s7 = sld [smem:[#allocation3 + $0x181]]  ;;  %v273_v28 = vstv %s1591_s19 }
  0x5b   :  { %3200 = sst [smem:[#allocation30_spill]] %s1581_s1  ;;  %s1605_s5 = sld [smem:[#allocation3 + $0x182]] }
  0x5c   :  { %3201 = sst [smem:[#allocation31_spill]] %s1583_s22  ;;  %s1607_s6 = sld [smem:[#allocation3 + $0x183]] }
  0x5d   :  { %3202 = sst [smem:[#allocation32_spill]] %s1585_s2  ;;  %s1609_s10 = sld [smem:[#allocation3 + $0x184]] }
  0x5e   :  { %3203 = sst [smem:[#allocation33_spill]] %s1587_s23  ;;  %s1611_s8 = sld [smem:[#allocation3 + $0x185]] }
  0x5f   :  { %3204 = sst [smem:[#allocation34_spill]] %s1589_s24  ;;  %s1613_s4 = sld [smem:[#allocation3 + $0x186]] }
  0x60   :  { %3205 = sst [smem:[#allocation35_spill]] %s1591_s19  ;;  %s1781_s25 = sld [smem:[#allocation3 + $0x584]] }
  0x61   :  { %3206 = sst [smem:[#allocation36_spill]] %s1593_s18  ;;  %s1615_s18 = sld [smem:[#allocation3 + $0x187]] }
  0x62   :  { %3207 = sst [smem:[#allocation37_spill]] %s1595_s17  ;;  %s1617_s17 = sld [smem:[#allocation6]] }
  0x63   :  { %3208 = sst [smem:[#allocation38_spill]] %s1597_s16  ;;  %s1619_s16 = sld [smem:[#allocation3 + $0x200]] }
  0x64   :  { %3209 = sst [smem:[#allocation39_spill]] %s1599_s15  ;;  %s1621_s15 = sld [smem:[#allocation3 + $0x201]] }
  0x65   :  { %3210 = sst [smem:[#allocation40_spill]] %s1601_s9  ;;  %s1623_s9 = sld [smem:[#allocation3 + $0x202]] }
  0x66   :  { %3211 = sst [smem:[#allocation41_spill]] %s1603_s7  ;;  %s1625_s7 = sld [smem:[#allocation3 + $0x203]] }
  0x67   :  { %3212 = sst [smem:[#allocation42_spill]] %s1605_s5  ;;  %s1627_s5 = sld [smem:[#allocation3 + $0x204]] }
  0x68   :  { %3213 = sst [smem:[#allocation43_spill]] %s1607_s6  ;;  %s1629_s6 = sld [smem:[#allocation6 + $0x1]] }
  0x69   :  { %3214 = sst [smem:[#allocation44_spill]] %s1609_s10  ;;  %s1631_s10 = sld [smem:[#allocation3 + $0x205]] }
  0x6a   :  { %3215 = sst [smem:[#allocation45_spill]] %s1611_s8  ;;  %s1633_s8 = sld [smem:[#allocation8]] }
  0x6b   :  { %3216 = sst [smem:[#allocation46_spill]] %s1613_s4  ;;  %s3296_s3 = sld [smem:[#allocation36_spill]] }
  0x6c   :  { %3217 = sst [smem:[#allocation47_spill]] %s1615_s18  ;;  %s1635_s4 = sld [smem:[#allocation3 + $0x206]] }
  0x6d   :  { %3218 = sst [smem:[#allocation48_spill]] %s1617_s17  ;;  %s1637_s18 = sld [smem:[#allocation3 + $0x207]] }
  0x6e   :  { %3219 = sst [smem:[#allocation49_spill]] %s1619_s16  ;;  %s1639_s17 = sld [smem:[#allocation3 + $0x280]] }
  0x6f   :  { %3220 = sst [smem:[#allocation50_spill]] %s1621_s15  ;;  %s1643_s15 = sld [smem:[#allocation3 + $0x281]] }
  0x70   :  { %3221 = sst [smem:[#allocation51_spill]] %s1623_s9  ;;  %s1641_s16 = sld [smem:[#allocation6 + $0x2]] }
  0x71   :  { %3222 = sst [smem:[#allocation52_spill]] %s1625_s7  ;;  %s1645_s9 = sld [smem:[#allocation8 + $0x1]]  ;;  %v277_v29 = vstv %s3296_s3 }
  0x72   :  { %3223 = sst [smem:[#allocation53_spill]] %s1627_s5  ;;  %s1647_s7 = sld [smem:[#allocation3 + $0x282]] }
  0x73   :  { %3224 = sst [smem:[#allocation54_spill]] %s1629_s6  ;;  %s1649_s5 = sld [smem:[#allocation3 + $0x283]] }
  0x74   :  { %3225 = sst [smem:[#allocation55_spill]] %s1631_s10  ;;  %s1651_s6 = sld [smem:[#allocation3 + $0x284]] }
  0x75   :  { %3226 = sst [smem:[#allocation56_spill]] %s1633_s8  ;;  %s1653_s10 = sld [smem:[#allocation6 + $0x3]] }
  0x76   :  { %3227 = sst [smem:[#allocation57_spill]] %s1635_s4  ;;  %s1655_s8 = sld [smem:[#allocation3 + $0x285]] }
  0x77   :  { %3228 = sst [smem:[#allocation58_spill]] %s1637_s18  ;;  %s1659_s18 = sld [smem:[#allocation3 + $0x286]] }
  0x78   :  { %3229 = sst [smem:[#allocation59_spill]] %s1639_s17  ;;  %s1657_s4 = sld [smem:[#allocation8 + $0x2]] }
  0x79   :  { %3230 = sst [smem:[#allocation60_spill]] %s1641_s16  ;;  %s1661_s17 = sld [smem:[#allocation3 + $0x287]] }
  0x7a   :  { %3231 = sst [smem:[#allocation61_spill]] %s1643_s15  ;;  %s1663_s16 = sld [smem:[#allocation3 + $0x300]] }
  0x7b   :  { %3232 = sst [smem:[#allocation62_spill]] %s1645_s9  ;;  %s1665_s15 = sld [smem:[#allocation3 + $0x301]] }
  0x7c   :  { %3233 = sst [smem:[#allocation63_spill]] %s1647_s7  ;;  %s1667_s9 = sld [smem:[#allocation3 + $0x302]] }
  0x7d   :  { %3234 = sst [smem:[#allocation64_spill]] %s1649_s5  ;;  %s1669_s7 = sld [smem:[#allocation8 + $0x3]] }
  0x7e   :  { %3235 = sst [smem:[#allocation65_spill]] %s1651_s6  ;;  %s1671_s5 = sld [smem:[#allocation3 + $0x303]] }
  0x7f   :  { %3236 = sst [smem:[#allocation66_spill]] %s1653_s10  ;;  %s1673_s6 = sld [smem:[#allocation6 + $0x4]] }
  0x80   :  { %3237 = sst [smem:[#allocation67_spill]] %s1655_s8  ;;  %s1675_s10 = sld [smem:[#allocation3 + $0x304]] }
  0x81   :  { %3238 = sst [smem:[#allocation68_spill]] %s1657_s4  ;;  %s1677_s8 = sld [smem:[#allocation3 + $0x305]] }
  0x82   :  { %3239 = sst [smem:[#allocation69_spill]] %s1659_s18  ;;  %s1679_s4 = sld [smem:[#allocation3 + $0x306]] }
  0x83   :  { %3240 = sst [smem:[#allocation70_spill]] %s1661_s17  ;;  %s1681_s18 = sld [smem:[#allocation3 + $0x307]] }
  0x84   :  { %3241 = sst [smem:[#allocation71_spill]] %s1663_s16  ;;  %s1683_s17 = sld [smem:[#allocation3 + $0x380]] }
  0x85   :  { %3242 = sst [smem:[#allocation72_spill]] %s1665_s15  ;;  %s1685_s16 = sld [smem:[#allocation3 + $0x381]] }
  0x86   :  { %3243 = sst [smem:[#allocation73_spill]] %s1667_s9  ;;  %s1687_s15 = sld [smem:[#allocation3 + $0x382]] }
  0x87   :  { %3244 = sst [smem:[#allocation74_spill]] %s1669_s7  ;;  %s1689_s9 = sld [smem:[#allocation8 + $0x4]] }
  0x88   :  { %3245 = sst [smem:[#allocation75_spill]] %s1671_s5  ;;  %s1693_s5 = sld [smem:[#allocation3 + $0x384]] }
  0x89   :  { %3246 = sst [smem:[#allocation76_spill]] %s1673_s6  ;;  %s1691_s7 = sld [smem:[#allocation3 + $0x383]] }
  0x8a   :  { %3247 = sst [smem:[#allocation77_spill]] %s1675_s10  ;;  %s1697_s10 = sld [smem:[#allocation3 + $0x386]] }
  0x8b   :  { %3248 = sst [smem:[#allocation78_spill]] %s1677_s8  ;;  %s1695_s6 = sld [smem:[#allocation3 + $0x385]] }
  0x8c   :  { %3249 = sst [smem:[#allocation79_spill]] %s1679_s4  ;;  %s1701_s4 = sld [smem:[#allocation6 + $0x5]] }
  0x8d   :  { %3250 = sst [smem:[#allocation80_spill]] %s1681_s18  ;;  %s1699_s8 = sld [smem:[#allocation3 + $0x387]] }
  0x8e   :  { %3251 = sst [smem:[#allocation81_spill]] %s1683_s17  ;;  %s1703_s18 = sld [smem:[#allocation3 + $0x400]] }
  0x8f   :  { %3252 = sst [smem:[#allocation82_spill]] %s1685_s16  ;;  %s1705_s17 = sld [smem:[#allocation3 + $0x401]] }
  0x90   :  { %3253 = sst [smem:[#allocation83_spill]] %s1687_s15  ;;  %s1707_s16 = sld [smem:[#allocation3 + $0x402]] }
  0x91   :  { %3254 = sst [smem:[#allocation84_spill]] %s1689_s9  ;;  %s1709_s15 = sld [smem:[#allocation3 + $0x403]] }
  0x92   :  { %3255 = sst [smem:[#allocation85_spill]] %s1691_s7  ;;  %s1711_s9 = sld [smem:[#allocation3 + $0x404]] }
  0x93   :  { %3256 = sst [smem:[#allocation86_spill]] %s1693_s5  ;;  %s1713_s7 = sld [smem:[#allocation8 + $0x5]] }
  0x94   :  { %3257 = sst [smem:[#allocation87_spill]] %s1695_s6  ;;  %s1715_s5 = sld [smem:[#allocation3 + $0x405]] }
  0x95   :  { %3258 = sst [smem:[#allocation88_spill]] %s1697_s10  ;;  %s1717_s6 = sld [smem:[#allocation3 + $0x406]] }
  0x96   :  { %3259 = sst [smem:[#allocation89_spill]] %s1699_s8  ;;  %s1719_s10 = sld [smem:[#allocation3 + $0x407]] }
  0x97   :  { %3260 = sst [smem:[#allocation90_spill]] %s1701_s4  ;;  %s1721_s8 = sld [smem:[#allocation3 + $0x480]] }
  0x98   :  { %3261 = sst [smem:[#allocation91_spill]] %s1703_s18  ;;  %s1723_s4 = sld [smem:[#allocation3 + $0x481]] }
  0x99   :  { %3262 = sst [smem:[#allocation92_spill]] %s1705_s17  ;;  %s1725_s18 = sld [smem:[#allocation6 + $0x6]] }
  0x9a   :  { %3263 = sst [smem:[#allocation93_spill]] %s1707_s16  ;;  %s1727_s17 = sld [smem:[#allocation3 + $0x482]] }
  0x9b   :  { %3264 = sst [smem:[#allocation94_spill]] %s1709_s15  ;;  %s3297_s12 = sld [smem:[#allocation37_spill]] }
  0x9c   :  { %3265 = sst [smem:[#allocation95_spill]] %s1711_s9  ;;  %s1729_s9 = sld [smem:[#allocation3 + $0x483]] }
  0x9d   :  { %3266 = sst [smem:[#allocation96_spill]] %s1713_s7  ;;  %s1731_s7 = sld [smem:[#allocation3 + $0x484]] }
  0x9e   :  { %3267 = sst [smem:[#allocation97_spill]] %s1715_s5  ;;  %s1733_s5 = sld [smem:[#allocation3 + $0x485]] }
  0x9f   :  { %3268 = sst [smem:[#allocation98_spill]] %s1717_s6  ;;  %s1735_s6 = sld [smem:[#allocation3 + $0x486]] }
  0xa0   :  { %3269 = sst [smem:[#allocation99_spill]] %s1719_s10  ;;  %s1737_s10 = sld [smem:[#allocation3 + $0x487]] }
  0xa1   :  { %3270 = sst [smem:[#allocation100_spill]] %s1721_s8  ;;  %s1739_s8 = sld [smem:[#allocation3 + $0x500]]  ;;  %v281_v30 = vstv %s3297_s12 }
  0xa2   :  { %3271 = sst [smem:[#allocation101_spill]] %s1723_s4  ;;  %s1741_s4 = sld [smem:[#allocation8 + $0x6]] }
  0xa3   :  { %3272 = sst [smem:[#allocation102_spill]] %s1725_s18  ;;  %s1787_s11 = sld [smem:[#allocation8 + $0x8]] }
  0xa4   :  { %3273 = sst [smem:[#allocation103_spill]] %s1727_s17  ;;  %s3299_s26 = sld [smem:[#allocation38_spill]] }
  0xa5   :  { %3274 = sst [smem:[#allocation104_spill]] %s1729_s9  ;;  %s1743_s17 = sld [smem:[#allocation6 + $0x7]] }
  0xa6   :  { %3275 = sst [smem:[#allocation105_spill]] %s1731_s7  ;;  %s1747_s7 = sld [smem:[#allocation3 + $0x502]] }
  0xa7   :  { %3276 = sst [smem:[#allocation106_spill]] %s1733_s5  ;;  %s1745_s9 = sld [smem:[#allocation3 + $0x501]] }
  0xa8   :  { %3277 = sst [smem:[#allocation107_spill]] %s1735_s6  ;;  %s1759_s5 = sld [smem:[#allocation6 + $0x8]] }
  0xa9   :  { %3278 = sst [smem:[#allocation108_spill]] %s1737_s10  ;;  %s1749_s6 = sld [smem:[#allocation3 + $0x503]] }
  0xaa   :  { %3279 = sst [smem:[#allocation109_spill]] %s1739_s8  ;;  %s1751_s10 = sld [smem:[#allocation3 + $0x504]]  ;;  %v285_v31 = vstv %s3299_s26 }
  0xab   :  { %3280 = sst [smem:[#allocation110_spill]] %s1741_s4  ;;  %s1753_s8 = sld [smem:[#allocation3 + $0x505]] }
  0xac   :  { %3281 = sst [smem:[#allocation111_spill]] %s1743_s17  ;;  %s1755_s4 = sld [smem:[#allocation3 + $0x506]] }
  0xad   :  { %3282 = sst [smem:[#allocation112_spill]] %s1745_s9  ;;  %s1757_s17 = sld [smem:[#allocation8 + $0x7]] }
  0xae   :  { %3283 = sst [smem:[#allocation113_spill]] %s1747_s7  ;;  %s1763_s7 = sld [smem:[#allocation3 + $0x507]] }
  0xaf   :  { %3284 = sst [smem:[#allocation114_spill]] %s1749_s6  ;;  %s1765_s6 = sld [smem:[#allocation3 + $0x580]] }
  0xb0   :  { %3285 = sst [smem:[#allocation115_spill]] %s1751_s10  ;;  %s1789_s27 = sld [smem:[#allocation6 + $0x9]] }
  0xb1   :  { %3286 = sst [smem:[#allocation116_spill]] %s1753_s8  ;;  %s1773_s8 = sld [smem:[#allocation3 + $0x582]] }
  0xb2   :  { %3287 = sst [smem:[#allocation117_spill]] %s1755_s4  ;;  %s1771_s4 = sld [smem:[#allocation3 + $0x581]] }
  0xb3   :  { %3288 = sst [smem:[#allocation118_spill]] %s1757_s17  ;;  %s3301_s28 = sld [smem:[#allocation39_spill]] }
  0xb4   :  { %3289 = sst [smem:[#allocation119_spill]] %s1759_s5  ;;  %s3302_s29 = sld [smem:[#allocation40_spill]] }
  0xb5   :  { %3290 = sst [smem:[#allocation120_spill]] %s1763_s7  ;;  %s3305_s0 = sld [smem:[#allocation42_spill]] }
  0xb6   :  { %3291 = sst [smem:[#allocation121_spill]] %s1765_s6  ;;  %s1779_s6 = sld [smem:[#allocation3 + $0x583]] }
  0xb7   :  { %3293 = sst [smem:[#allocation123_spill]] %s1773_s8  ;;  %s1797_s30 = sld [smem:[#allocation3 + $0x586]] }
  0xb8   :  { %3292 = sst [smem:[#allocation122_spill]] %s1771_s4  ;;  %s3307_s20 = sld [smem:[#allocation43_spill]] }
  0xb9   :  { %3295 = sst [smem:[#allocation125_spill]] %s1781_s25  ;;  %s3308_s21 = sld [smem:[#allocation44_spill]]  ;;  %v289_v32 = vstv %s3301_s28 }
  0xba   :  { %3298 = sst [smem:[#allocation126_spill]] %s1787_s11  ;;  %s1795_s25 = sld [smem:[#allocation3 + $0x585]]  ;;  %v313_v33 = vstv %s3302_s29 }
  0xbb   :  { %3300 = sst [smem:[#allocation127_spill]] %s1789_s27  ;;  %s3309_s11 = sld [smem:[#allocation45_spill]]  ;;  %v320_v35 = vstv %s3305_s0 }
  0xbc   :  { %3294 = sst [smem:[#allocation124_spill]] %s1779_s6  ;;  %s3303_s6 = sld [smem:[#allocation41_spill]] }
  0xbd   :  { %3306 = sst [smem:[#allocation129_spill]] %s1797_s30  ;;  %s1803_s27 = sld [smem:[#allocation3 + $0x587]] }
  0xbe   :  { %s3311_s13 = sld [smem:[#allocation46_spill]]  ;;  %s1805_s14 = sld [smem:[#allocation3 + $0x600]]  ;;  %v324_v36 = vstv %s3307_s20 }
  0xbf   :  { %s3313_s1 = sld [smem:[#allocation47_spill]]  ;;  %s1811_s30 = sld [smem:[#allocation3 + $0x601]]  ;;  %v328_v37 = vstv %s3308_s21 }
  0xc0   :  { %3304 = sst [smem:[#allocation128_spill]] %s1795_s25  ;;  %s3315_s25 = sld [smem:[#allocation49_spill]] }
  0xc1   :  { %s3317_s2 = sld [smem:[#allocation50_spill]]  ;;  %s3319_s24 = sld [smem:[#allocation51_spill]]  ;;  %v332_v38 = vstv %s3309_s11 }
  0xc2   :  { %s1813_s23 = sld [smem:[#allocation3 + $0x602]]  ;;  %v316_v34 = vstv %s3303_s6  ;;  %s3323_s3 = sld [smem:[#allocation53_spill]] }
  0xc3   :  { %3310 = sst [smem:[#allocation130_spill]] %s1803_s27  ;;  %s3321_s27 = sld [smem:[#allocation52_spill]] }
  0xc4   :  { %3312 = sst [smem:[#allocation131_spill]] %s1805_s14  ;;  %s1819_s14 = sld [smem:[#allocation8 + $0x9]]  ;;  %v336_v39 = vstv %s3311_s13 }
  0xc5   :  { %3316 = sst [smem:[#allocation132_spill]] %s1811_s30  ;;  %s1821_s12 = sld [smem:[#allocation6 + $0xa]]  ;;  %v340_v40 = vstv %s3313_s1 }
  0xc6   :  { %s1829_s6 = sld [smem:[#allocation3 + $0x604]]  ;;  %v364_v42 = vstv %s3315_s25  ;;  %s1837_s11 = sld [smem:[#allocation3 + $0x606]] }
  0xc7   :  { %v367_v43 = vstv %s3317_s2  ;;  %v371_v44 = vstv %s3319_s24  ;;  %s1845_s25 = sld [smem:[#allocation3 + $0x680]]  ;;  %s1861_s30 = sld [smem:[#allocation3 + $0x683]] }
  0xc8   :  { %3318 = sst [smem:[#allocation133_spill]] %s1813_s23  ;;  %s1827_s23 = sld [smem:[#allocation3 + $0x603]]  ;;  %v379_v47 = vstv %s3323_s3 }
  0xc9   :  { %v375_v46 = vstv %s3321_s27  ;;  %s1853_s27 = sld [smem:[#allocation3 + $0x681]]  ;;  %s1941_s0 = sld [smem:[#allocation3 + $0x783]] }
  0xca   :  { %3322 = sst [smem:[#allocation134_spill]] %s1819_s14  ;;  %s1869_s14 = sld [smem:[#allocation3 + $0x684]] }
  0xcb   :  { %3324 = sst [smem:[#allocation135_spill]] %s1821_s12  ;;  %s1835_s12 = sld [smem:[#allocation3 + $0x605]] }
  0xcc   :  { %3330 = sst [smem:[#allocation137_spill]] %s1829_s6  ;;  %s1843_s6 = sld [smem:[#allocation3 + $0x607]]  ;;  %v2057_v61 = vpop.permute.xlu0 %123 }
  0xcd   :  { %3336 = sst [smem:[#allocation139_spill]] %s1837_s11  ;;  %s1851_s11 = sld [smem:[#allocation8 + $0xa]]  ;;  %v126_v63 = vmax.f32 %v2057_v61, 1e-12 }
  0xce   :  { %3328 = sst [smem:[#allocation136_spill]] %s1827_s23  ;;  %s1877_s23 = sld [smem:[#allocation3 + $0x686]] }
  0xcf   :  { %3342 = sst [smem:[#allocation141_spill]] %s1845_s25  ;;  %s1859_s25 = sld [smem:[#allocation3 + $0x682]]  ;;  %1346 = vrcp.f32 %v126_v63 }
  0xd0   :  { %3348 = sst [smem:[#allocation143_spill]] %s1853_s27  ;;  %s1867_s27 = sld [smem:[#allocation6 + $0xb]]  ;;  %v119_v3 = vpop.permute.xlu0 %118 }
  0xd1   :  { %3334 = sst [smem:[#allocation138_spill]] %s1835_s12  ;;  %s1885_s12 = sld [smem:[#allocation3 + $0x700]] }
  0xd2   :  { %3340 = sst [smem:[#allocation140_spill]] %s1843_s6  ;;  %s1893_s6 = sld [smem:[#allocation3 + $0x702]] }
  0xd3   :  { %3346 = sst [smem:[#allocation142_spill]] %s1851_s11  ;;  %s1901_s11 = sld [smem:[#allocation6 + $0xc]] }
  0xd4   :  { %3354 = sst [smem:[#allocation145_spill]] %s1861_s30  ;;  %s1875_s30 = sld [smem:[#allocation3 + $0x685]] }
  0xd5   :  { %3352 = sst [smem:[#allocation144_spill]] %s1859_s25  ;;  %s1909_s25 = sld [smem:[#allocation3 + $0x704]] }
  0xd6   :  { %3358 = sst [smem:[#allocation146_spill]] %s1867_s27  ;;  %s1917_s27 = sld [smem:[#allocation3 + $0x706]] }
  0xd7   :  { %3360 = sst [smem:[#allocation147_spill]] %s1869_s14  ;;  %s1883_s14 = sld [smem:[#allocation3 + $0x687]] }
  0xd8   :  { %3366 = sst [smem:[#allocation149_spill]] %s1877_s23  ;;  %s1891_s23 = sld [smem:[#allocation3 + $0x701]] }
  0xd9   :  { %3372 = sst [smem:[#allocation151_spill]] %s1885_s12  ;;  %s1899_s12 = sld [smem:[#allocation8 + $0xb]]  ;;  %v1347_v41 = vpop.eup %1346 }
  0xda   :  { %3364 = sst [smem:[#allocation148_spill]] %s1875_s30  ;;  %s1925_s30 = sld [smem:[#allocation3 + $0x780]]  ;;  %v146_v49 = vrot.slane %v1347_v41, %v1761_v8 }
  0xdb   :  { %3378 = sst [smem:[#allocation153_spill]] %s1893_s6  ;;  %s1907_s6 = sld [smem:[#allocation3 + $0x703]] }
  0xdc   :  { %3382 = sst [smem:[#allocation155_spill]] %s1901_s11  ;;  %s1933_s16 = sld [smem:[#allocation3 + $0x781]] }
  0xdd   :  { %3370 = sst [smem:[#allocation150_spill]] %s1883_s14  ;;  %s1947_s1 = sld [smem:[#allocation6 + $0xd]] }
  0xde   :  { %3376 = sst [smem:[#allocation152_spill]] %s1891_s23  ;;  %s1915_s23 = sld [smem:[#allocation3 + $0x705]] }
  0xdf   :  { %3381 = sst [smem:[#allocation154_spill]] %s1899_s12  ;;  %s1949_s18 = sld [smem:[#allocation3 + $0x784]] }
  0xe0   :  { %3388 = sst [smem:[#allocation157_spill]] %s1909_s25  ;;  %s1923_s25 = sld [smem:[#allocation3 + $0x707]] }
  0xe1   :  { %3386 = sst [smem:[#allocation156_spill]] %s1907_s6  ;;  %s1955_s22 = sld [smem:[#allocation3 + $0x785]] }
  0xe2   :  { %3393 = sst [smem:[#allocation159_spill]] %s1917_s27  ;;  %s1931_s27 = sld [smem:[#allocation8 + $0xc]] }
  0xe3   :  { %3399 = sst [smem:[#allocation161_spill]] %s1925_s30  ;;  %s1939_s30 = sld [smem:[#allocation3 + $0x782]] }
  0xe4   :  { %3391 = sst [smem:[#allocation158_spill]] %s1915_s23  ;;  %s1963_s19 = sld [smem:[#allocation8 + $0xd]] }
  0xe5   :  { %3405 = sst [smem:[#allocation163_spill]] %s1933_s16  ;;  %s1957_s6 = sld [smem:[#allocation3 + $0x786]] }
  0xe6   :  { %3397 = sst [smem:[#allocation160_spill]] %s1923_s25  ;;  %s1965_s23 = sld [smem:[#allocation3 + $0x787]] }
  0xe7   :  { %3410 = sst [smem:[#allocation165_spill]] %s1941_s0  ;;  %s1973_s20 = sld [smem:[#allocation8 + $0xe]] }
  0xe8   :  { %3403 = sst [smem:[#allocation162_spill]] %s1931_s27  ;;  %s1981_s5 = sld [smem:[#allocation8 + $0xf]] }
  0xe9   :  { %3408 = sst [smem:[#allocation164_spill]] %s1939_s30  ;;  %s1989_s24 = sld [smem:[#allocation8 + $0x101]] }
  0xea   :  { %3411 = sst [smem:[#allocation166_spill]] %s1947_s1  ;;  %s1997_s3 = sld [smem:[#allocation8 + $0x103]] }
  0xeb   :  { %3413 = sst [smem:[#allocation167_spill]] %s1949_s18  ;;  %s2019_s13 = sld [smem:[#allocation9]] }
  0xec   :  { %3416 = sst [smem:[#allocation168_spill]] %s1955_s22  ;;  %s2005_s22 = sld [smem:[#allocation8 + $0x105]] }
  0xed   :  { %3417 = sst [smem:[#allocation169_spill]] %s1957_s6  ;;  %s1971_s6 = sld [smem:[#allocation6 + $0xe]] }
  0xee   :  { %3420 = sst [smem:[#allocation170_spill]] %s1963_s19  ;;  %s2013_s10 = sld [smem:[#allocation8 + $0x107]] }
  0xef   :  { %3422 = sst [smem:[#allocation171_spill]] %s1965_s23  ;;  %s1979_s23 = sld [smem:[#allocation6 + $0xf]] }
  0xf0   :  { %3428 = sst [smem:[#allocation173_spill]] %s1973_s20  ;;  %s1987_s20 = sld [smem:[#allocation8 + $0x100]] }
  0xf1   :  { %3434 = sst [smem:[#allocation175_spill]] %s1981_s5  ;;  %s1995_s5 = sld [smem:[#allocation8 + $0x102]] }
  0xf2   :  { %3440 = sst [smem:[#allocation177_spill]] %s1989_s24  ;;  %s2003_s24 = sld [smem:[#allocation8 + $0x104]] }
  0xf3   :  { %3426 = sst [smem:[#allocation172_spill]] %s1971_s6  ;;  %s2021_s17 = sld [smem:[#allocation8 + $0x108]] }
  0xf4   :  { %3446 = sst [smem:[#allocation179_spill]] %s1997_s3  ;;  %s2011_s3 = sld [smem:[#allocation8 + $0x106]] }
  0xf5   :  { %3432 = sst [smem:[#allocation174_spill]] %s1979_s23  ;;  %s2027_s6 = sld [smem:[#allocation8 + $0x109]] }
  0xf6   :  { %3438 = sst [smem:[#allocation176_spill]] %s1987_s20  ;;  %s2029_s2 = sld [smem:[#allocation8 + $0x10a]] }
  0xf7   :  { %3444 = sst [smem:[#allocation178_spill]] %s1995_s5  ;;  %s2037_s29 = sld [smem:[#allocation8 + $0x10c]] }
  0xf8   :  { %3450 = sst [smem:[#allocation180_spill]] %s2003_s24  ;;  %s2053_s5 = sld [smem:[#allocation8 + $0x10d]] }
  0xf9   :  { %3452 = sst [smem:[#allocation181_spill]] %s2005_s22  ;;  %s3470_s15 = sld [smem:[#allocation199_spill]] }
  0xfa   :  { %3456 = sst [smem:[#allocation182_spill]] %s2013_s10  ;;  %s2065_s9 = sld [smem:[#allocation8 + $0x80]] }
  0xfb   :  { %3458 = sst [smem:[#allocation183_spill]] %s2019_s13  ;;  %s2055_s21 = sld [smem:[#allocation8 + $0x10e]] }
  0xfc   :  { %3459 = sst [smem:[#allocation184_spill]] %s2021_s17  ;;  %s2035_s17 = sld [smem:[#allocation8 + $0x10b]] }
  0xfd   :  { %3462 = sst [smem:[#allocation185_spill]] %s2027_s6  ;;  %s2063_s6 = sld [smem:[#allocation8 + $0x10f]] }
  0xfe   :  { %3463 = sst [smem:[#allocation186_spill]] %s2029_s2  ;;  %s3471_s2 = sld [smem:[#allocation203_spill]] }
  0xff   :  { %3469 = sst [smem:[#allocation188_spill]] %s2037_s29  ;;  %v2042_v62 = vld [vmem:[%s3470_s15] sm:$0xff]  ;;  %s2071_s20 = sld [smem:[#allocation8 + $0x81]] }
 0x100   :  { %3473 = sst [smem:[#allocation189_spill]] %s2053_s5  ;;  %s2073_s12 = sld [smem:[#allocation8 + $0x82]]  ;;  %v202_v57 = vstv %s2065_s9 }
 0x101   :  { %3474 = sst [smem:[#allocation190_spill]] %s2055_s21  ;;  %s2080_s23 = sld [smem:[#allocation8 + $0x83]] }
 0x102   :  { %3468 = sst [smem:[#allocation187_spill]] %s2035_s17  ;;  %s2082_s25 = sld [smem:[#allocation8 + $0x84]] }
 0x103   :  { %3475 = sst [smem:[#allocation191_spill]] %s2063_s6  ;;  %s3486_s7 = sld [smem:[#allocation205_spill]] }
 0x104   :  { %v2047_v5 = vld [vmem:[%s3471_s2] sm:$0xff]  ;;  %s2089_s30 = sld [smem:[#allocation8 + $0x85]]  ;;  %s3487_s0 = sld [smem:[#allocation176_spill]] }
 0x105   :  { %v1003_v4 = vsub.f32 %v2042_v62, %v2047_v5  ;;  %s2091_s16 = sld [smem:[#allocation8 + $0x86]]  ;;  %s3489_s19 = sld [smem:[#allocation177_spill]]  ;;  %v250_v60 = vstv %s2071_s20 }
 0x106   :  { %3479 = sst [smem:[#allocation192_spill]] %s2073_s12  ;;  %s3490_s12 = sld [smem:[#allocation178_spill]] }
 0x107   :  { %3483 = sst [smem:[#allocation193_spill]] %s2080_s23  ;;  %s2097_s1 = sld [smem:[#allocation8 + $0x87]] }
 0x108   :  { %s2099_s18 = sld [smem:[#allocation8 + $0x88]]  ;;  %s3494_s4 = sld [smem:[#allocation182_spill]] }
 0x109   :  { %v3152_v2 = vstv %s3486_s7  ;;  %s2107_s15 = sld [smem:[#allocation8 + $0x8a]]  ;;  %s3500_s11 = sld [smem:[#allocation201_spill]] }
 0x10a   :  { %v2113_v0 = vmul.f32 %v3152_v2, %v1003_v4  ;;  %s3499_s26 = sld [smem:[#allocation186_spill]]  ;;  %s3501_s7 = sld [smem:[#allocation198_spill]]  ;;  %v2143_v4 = vrot.slane %v119_v3, %v1761_v8 }
 0x10b   :  { %3488 = sst [smem:[#allocation176_spill]] %s2091_s16  ;;  %s2105_s16 = sld [smem:[#allocation8 + $0x89]] }
 0x10c   :  { %s3502_s22 = sld [smem:[#allocation200_spill]]  ;;  %s3503_s14 = sld [smem:[#allocation202_spill]]  ;;  %v149_v41 = vsub.f32 %v2042_v62, %v2143_v4  ;;  %v153_v55 = vsub.f32 %v2047_v5, %v2143_v4 }
 0x10d   :  { %3492 = sst [smem:[#allocation177_spill]] %s2097_s1  ;;  %s3504_s13 = sld [smem:[#allocation192_spill]] }
 0x10e   :  { %3493 = sst [smem:[#allocation178_spill]] %s2099_s18  ;;  %s2153_s23 = sld [smem:[#allocation8 + $0x8b]]  ;;  %v2207_v58 = vmul.f32 %v149_v41, %v146_v49  ;;  %v2209_v5 = vmul.f32 %v153_v55, %v146_v49 }
 0x10f   :  { %3498 = sst [smem:[#allocation194_spill]] %s2107_s15  ;;  %v111_v53 = vld [vmem:[%s3500_s11] sm:$0xff]  ;;  %s3508_s27 = sld [smem:[#allocation204_spill]] }
 0x110   :  { %v2132_v7 = vld [vmem:[%s3501_s7] sm:$0xff]  ;;  %s3505_s28 = sld [smem:[#allocation197_spill]]  ;;  %s3506_s7 = sld [smem:[#allocation193_spill]]  ;;  %v151_v6 = vsub.f32 %v111_v53, %v2143_v4  ;;  %v176_v55 = vmul.f32 %v175_v12, %v2209_v5  ;;  %v223_v12 = vmul.f32 %v222_v20, %v2209_v5 }
 0x111   :  { %3497 = sst [smem:[#allocation182_spill]] %s2105_s16  ;;  %s2165_s10 = sld [smem:[#allocation8 + $0x8c]]  ;;  %v155_v52 = vsub.f32 %v2132_v7, %v2143_v4 }
 0x112   :  { %v2137_v59 = vld [vmem:[%s3502_s22] sm:$0xff]  ;;  %s2167_s8 = sld [smem:[#allocation8 + $0x8d]]  ;;  %v2195_v63 = vmul.f32 %v151_v6, %v146_v49  ;;  %s3547_s24 = sld [smem:[#allocation59_spill]] }
 0x113   :  { %v112_v51 = vld [vmem:[%s3503_s14] sm:$0xff]  ;;  %v157_v54 = vsub.f32 %v2137_v59, %v2143_v4  ;;  %s3548_s6 = sld [smem:[#allocation61_spill]]  ;;  %s3549_s2 = sld [smem:[#allocation48_spill]] }
 0x114   :  { %v159_v45 = vsub.f32 %v112_v51, %v2143_v4  ;;  %v2197_v51 = vmul.f32 %v155_v52, %v146_v49  ;;  %v172_v52 = vmul.f32 %v171_v11, %v2195_v63  ;;  %s3550_s16 = sld [smem:[#allocation55_spill]]  ;;  %s3551_s21 = sld [smem:[#allocation54_spill]] }
 0x115   :  { %v2158_v3 = vld [vmem:[%s3508_s27] sm:$0xff]  ;;  %v2199_v48 = vmul.f32 %v157_v54, %v146_v49  ;;  %v760_v54 = vstv %s2153_s23  ;;  %s3552_s5 = sld [smem:[#allocation63_spill]]  ;;  %s3555_s18 = sld [smem:[#allocation57_spill]] }
 0x116   :  { %v2148_v2 = vld [vmem:[%s3505_s28] sm:$0xff]  ;;  %v161_v53 = vsub.f32 %v2158_v3, %v2143_v4  ;;  %v2201_v56 = vmul.f32 %v159_v45, %v146_v49  ;;  %s2331_s17 = sld [smem:[#allocation8 + $0x8e]]  ;;  %s3556_s29 = sld [smem:[#allocation60_spill]] }
 0x117   :  { %3509 = sst [smem:[#allocation186_spill]] %s2165_s10  ;;  %v138_v1 = vsub.f32 %v2148_v2, %v2143_v4  ;;  %v811_v6 = vstv %s2165_s10  ;;  %v184_v11 = vmul.f32 %v183_v14, %v2199_v48  ;;  %v219_v14 = vmul.f32 %v218_v19, %v2195_v63  ;;  %s2333_s1 = sld [smem:[#allocation8 + $0x8f]] }
 0x118   :  { %v2203_v50 = vmul.f32 %v161_v53, %v146_v49  ;;  %v168_v53 = vmul.f32 %v167_v10, %v2207_v58  ;;  %v188_v41 = vmul.f32 %v187_v15, %v2201_v56  ;;  %v215_v10 = vmul.f32 %v214_v18, %v2207_v58  ;;  %s3559_s15 = sld [smem:[#allocation64_spill]]  ;;  %s3563_s10 = sld [smem:[#allocation58_spill]] }
 0x119   :  { %v2205_v62 = vmul.f32 %v146_v49, %v138_v1  ;;  %v180_v49 = vmul.f32 %v179_v13, %v2197_v51  ;;  %v231_v19 = vmul.f32 %v230_v22, %v2199_v48  ;;  %v235_v20 = vmul.f32 %v234_v23, %v2201_v56  ;;  %s3560_s22 = sld [smem:[#allocation56_spill]]  ;;  %s3565_s27 = sld [smem:[#allocation62_spill]] }
 0x11a   :  { %v192_v45 = vmul.f32 %v191_v16, %v2203_v50  ;;  %v266_v16 = vmul.f32 %v265_v26, %v2207_v58  ;;  %v274_v26 = vmul.f32 %v273_v28, %v2209_v5  ;;  %v278_v22 = vmul.f32 %v277_v29, %v2197_v51  ;;  %s2345_s11 = sld [smem:[#allocation8 + $0x180]]  ;;  %s3566_s14 = sld [smem:[#allocation65_spill]] }
 0x11b   :  { %v165_v1 = vmul.f32 %v164_v9, %v2205_v62  ;;  %v212_v9 = vmul.f32 %v211_v17, %v2205_v62  ;;  %v227_v17 = vmul.f32 %v226_v21, %v2197_v51  ;;  %v263_v18 = vmul.f32 %v262_v25, %v2205_v62  ;;  %s3567_s28 = sld [smem:[#allocation66_spill]]  ;;  %s2755_s9 = sld [smem:[#allocation8 + $0x189]] }
 0x11c   :  { %v270_v25 = vmul.f32 %v269_v27, %v2195_v63  ;;  %v314_v23 = vmul.f32 %v313_v33, %v2205_v62  ;;  %v282_v27 = vmul.f32 %v281_v30, %v2199_v48  ;;  %v286_v28 = vmul.f32 %v285_v31, %v2201_v56  ;;  %s3801_s20 = sld [smem:[#allocation184_spill]]  ;;  %s2874_s23 = sld [smem:[#allocation8 + $0x18c]] }
 0x11d   :  { %v169_v13 = vadd.f32 %v168_v53, %v165_v1  ;;  %v216_v15 = vadd.f32 %v215_v10, %v212_v9  ;;  %v239_v53 = vmul.f32 %v238_v24, %v2203_v50  ;;  %v267_v9 = vadd.f32 %v266_v16, %v263_v18  ;;  %3557 = sst [smem:[#allocation192_spill]] %s2333_s1 }
 0x11e   :  { %v317_v24 = vmul.f32 %v316_v34, %v2207_v58  ;;  %v290_v29 = vmul.f32 %v289_v32, %v2203_v50  ;;  %v329_v30 = vmul.f32 %v328_v37, %v2197_v51  ;;  %v365_v32 = vmul.f32 %v364_v42, %v2205_v62 }
 0x11f   :  { %v173_v1 = vadd.f32 %v172_v52, %v169_v13  ;;  %v220_v21 = vadd.f32 %v219_v14, %v216_v15  ;;  %v271_v13 = vadd.f32 %v270_v25, %v267_v9  ;;  %v321_v14 = vmul.f32 %v320_v35, %v2195_v63 }
 0x120   :  { %v318_v33 = vadd.f32 %v317_v24, %v314_v23  ;;  %v325_v15 = vmul.f32 %v324_v36, %v2209_v5  ;;  %v368_v18 = vmul.f32 %v367_v43, %v2207_v58  ;;  %v333_v16 = vmul.f32 %v332_v38, %v2199_v48 }
 0x121   :  { %v177_v52 = vadd.f32 %v176_v55, %v173_v1  ;;  %v224_v10 = vadd.f32 %v223_v12, %v220_v21  ;;  %v275_v12 = vadd.f32 %v274_v26, %v271_v13  ;;  %v337_v36 = vmul.f32 %v336_v39, %v2201_v56 }
 0x122   :  { %v369_v1 = vadd.f32 %v368_v18, %v365_v32  ;;  %v372_v42 = vmul.f32 %v371_v44, %v2195_v63  ;;  %v376_v38 = vmul.f32 %v375_v46, %v2209_v5  ;;  %v380_v25 = vmul.f32 %v379_v47, %v2197_v51 }
 0x123   :  { %v181_v55 = vadd.f32 %v180_v49, %v177_v52  ;;  %v228_v34 = vadd.f32 %v227_v17, %v224_v10  ;;  %v322_v49 = vadd.f32 %v321_v14, %v318_v33  ;;  %v279_v17 = vadd.f32 %v278_v22, %v275_v12 }
 0x124   :  { %v3553_v44 = vstv %s3547_s24  ;;  %v3554_v22 = vstv %s3548_s6  ;;  %v3558_v46 = vstv %s3549_s2  ;;  %v3562_v10 = vstv %s3551_s21  ;;  %s3569_s24 = sld [smem:[#allocation71_spill]]  ;;  %s3571_s6 = sld [smem:[#allocation72_spill]] }
 0x125   :  { %v185_v31 = vadd.f32 %v184_v11, %v181_v55  ;;  %v232_v35 = vadd.f32 %v231_v19, %v228_v34  ;;  %v326_v11 = vadd.f32 %v325_v15, %v322_v49  ;;  %v283_v43 = vadd.f32 %v282_v27, %v279_v17  ;;  %s3573_s2 = sld [smem:[#allocation67_spill]]  ;;  %s3577_s21 = sld [smem:[#allocation73_spill]] }
 0x126   :  { %v341_v19 = vmul.f32 %v340_v40, %v2203_v50  ;;  %v419_v40 = vmul.f32 %v3554_v22, %v2207_v58  ;;  %v3564_v55 = vstv %s3552_s5  ;;  %v3568_v15 = vstv %s3555_s18  ;;  %s3578_s5 = sld [smem:[#allocation68_spill]]  ;;  %s3580_s18 = sld [smem:[#allocation69_spill]] }
 0x127   :  { %v189_v37 = vadd.f32 %v188_v41, %v185_v31  ;;  %v236_v21 = vadd.f32 %v235_v20, %v232_v35  ;;  %v330_v39 = vadd.f32 %v329_v30, %v326_v11  ;;  %v373_v41 = vadd.f32 %v372_v42, %v369_v1 }
 0x128   :  { %v287_v52 = vadd.f32 %v286_v28, %v283_v43  ;;  %v416_v20 = vmul.f32 %v3553_v44, %v2205_v62  ;;  %v423_v33 = vmul.f32 %v3564_v55, %v2195_v63  ;;  %v388_v30 = vmul.f32 %v3568_v15, %v2201_v56 }
 0x129   :  { %v193_v9 = vadd.f32 %v192_v45, %v189_v37  ;;  %v240_v26 = vadd.f32 %v239_v53, %v236_v21  ;;  %v334_v23 = vadd.f32 %v333_v16, %v330_v39  ;;  %v377_v47 = vadd.f32 %v376_v38, %v373_v41 }
 0x12a   :  { %v3561_v53 = vstv %s3550_s16  ;;  %v291_v27 = vadd.f32 %v290_v29, %v287_v52  ;;  %v420_v28 = vadd.f32 %v419_v40, %v416_v20  ;;  %v3570_v29 = vstv %s3556_s29  ;;  %s2365_s16 = sld [smem:[#allocation8 + $0x181]]  ;;  %s3583_s29 = sld [smem:[#allocation76_spill]] }
 0x12b   :  { %v196_v45 = vadd.f32 %v3558_v46, %v193_v9  ;;  %v384_v24 = vmul.f32 %v3561_v53, %v2199_v48  ;;  %v243_v13 = vadd.f32 %v3562_v10, %v240_v26  ;;  %v338_v34 = vadd.f32 %v337_v36, %v334_v23 }
 0x12c   :  { %v381_v12 = vadd.f32 %v380_v25, %v377_v47  ;;  %v294_v49 = vadd.f32 %v3570_v29, %v291_v27  ;;  %v424_v32 = vadd.f32 %v423_v33, %v420_v28  ;;  %v3572_v18 = vstv %s3559_s15  ;;  %s3585_s15 = sld [smem:[#allocation75_spill]] }
 0x12d   :  { %v2347_v14 = vmax.f32 %v196_v45, 0.0  ;;  %v2352_v31 = vmax.f32 %v243_v13, 0.0  ;;  %v427_v35 = vmul.f32 %v3572_v18, %v2209_v5  ;;  %v3574_v17 = vstv %s3560_s22  ;;  %s3587_s22 = sld [smem:[#allocation70_spill]] }
 0x12e   :  { %v342_v36 = vadd.f32 %v341_v19, %v338_v34  ;;  %v385_v37 = vadd.f32 %v384_v24, %v381_v12  ;;  %v3575_v11 = vstv %s3563_s10  ;;  %v3576_v42 = vstv %s3565_s27  ;;  %s3588_s10 = sld [smem:[#allocation81_spill]]  ;;  %s3589_s27 = sld [smem:[#allocation82_spill]] }
 0x12f   :  { %v200_v16 = vmul.f32 %v3574_v17, %v2347_v14  ;;  %v392_v1 = vmul.f32 %v3575_v11, %v2203_v50  ;;  %v247_v21 = vmul.f32 %v3576_v42, %v2352_v31  ;;  %v2370_v43 = vmax.f32 %v294_v49, 0.0 }
 0x130   :  { %v428_v38 = vadd.f32 %v427_v35, %v424_v32  ;;  %v3579_v9 = vstv %s3566_s14  ;;  %v3581_v41 = vstv %s3567_s28  ;;  %v389_v25 = vadd.f32 %v388_v30, %v385_v37  ;;  %s3591_s14 = sld [smem:[#allocation77_spill]]  ;;  %s3594_s28 = sld [smem:[#allocation83_spill]] }
 0x131   :  { %v431_v39 = vmul.f32 %v3579_v9, %v2197_v51  ;;  %v345_v19 = vadd.f32 %v3581_v41, %v342_v36  ;;  %v3582_v26 = vstv %s3569_s24  ;;  %v3584_v44 = vstv %s3571_s6  ;;  %s3596_s24 = sld [smem:[#allocation74_spill]]  ;;  %s3598_s6 = sld [smem:[#allocation78_spill]] }
 0x132   :  { %v467_v52 = vmul.f32 %v3582_v26, %v2205_v62  ;;  %v470_v20 = vmul.f32 %v3584_v44, %v2207_v58  ;;  %v3586_v40 = vstv %s3573_s2  ;;  %v913_v45 = vstv %s2331_s17  ;;  %s3599_s2 = sld [smem:[#allocation79_spill]]  ;;  %s1335_s17 = sld [smem:[#allocation9 + $0x3]] }
 0x133   :  { %v432_v22 = vadd.f32 %v431_v39, %v428_v38  ;;  %v435_v46 = vmul.f32 %v3586_v40, %v2199_v48  ;;  %v964_v23 = vstv %s2333_s1  ;;  %v248_v47 = vadd.f32 %v247_v21, %v200_v16  ;;  %s3618_s1 = sld [smem:[#allocation93_spill]] }
 0x134   :  { %v393_v53 = vadd.f32 %v392_v1, %v389_v25  ;;  %v471_v24 = vadd.f32 %v470_v20, %v467_v52  ;;  %v3590_v10 = vstv %s3577_s21  ;;  %v3592_v27 = vstv %s3578_s5  ;;  %s3601_s21 = sld [smem:[#allocation90_spill]]  ;;  %s3604_s5 = sld [smem:[#allocation85_spill]] }
 0x135   :  { %v474_v13 = vmul.f32 %v3590_v10, %v2195_v63  ;;  %v298_v28 = vmul.f32 %v3592_v27, %v2370_v43  ;;  %v436_v55 = vadd.f32 %v435_v46, %v432_v22  ;;  %v3593_v33 = vstv %s3580_s18  ;;  %s3605_s18 = sld [smem:[#allocation91_spill]] }
 0x136   :  { %v439_v34 = vmul.f32 %v3593_v33, %v2201_v56  ;;  %v208_v12 = vstv %s2345_s11  ;;  %v2398_v15 = vmax.f32 %v345_v19, 0.0  ;;  %v3595_v30 = vstv %s3583_s29  ;;  %s3607_s29 = sld [smem:[#allocation80_spill]]  ;;  %s3827_s11 = sld [smem:[#allocation182_spill]] }
 0x137   :  { %v396_v29 = vadd.f32 %v3595_v30, %v393_v53  ;;  %v475_v49 = vadd.f32 %v474_v13, %v471_v24  ;;  %v3597_v32 = vstv %s3585_s15  ;;  %v3600_v17 = vstv %s3587_s22  ;;  %s3608_s15 = sld [smem:[#allocation92_spill]] }
 0x138   :  { %v478_v18 = vmul.f32 %v3597_v32, %v2209_v5  ;;  %v440_v35 = vadd.f32 %v439_v34, %v436_v55  ;;  %v443_v16 = vmul.f32 %v3600_v17, %v2203_v50  ;;  %v3602_v36 = vstv %s3588_s10  ;;  %s3609_s22 = sld [smem:[#allocation84_spill]]  ;;  %s3611_s10 = sld [smem:[#allocation86_spill]] }
 0x139   :  { %v518_v37 = vmul.f32 %v3602_v36, %v2205_v62  ;;  %v3603_v11 = vstv %s3589_s27  ;;  %v299_v42 = vadd.f32 %v298_v28, %v248_v47  ;;  %v3606_v38 = vstv %s3591_s14  ;;  %s3613_s27 = sld [smem:[#allocation87_spill]]  ;;  %s3615_s14 = sld [smem:[#allocation88_spill]] }
 0x13a   :  { %v521_v1 = vmul.f32 %v3603_v11, %v2207_v58  ;;  %v479_v21 = vadd.f32 %v478_v18, %v475_v49  ;;  %v482_v9 = vmul.f32 %v3606_v38, %v2197_v51  ;;  %v258_v39 = vstv %s2365_s16  ;;  %s3829_s16 = sld [smem:[#allocation190_spill]] }
 0x13b   :  { %v2418_v41 = vmax.f32 %v396_v29, 0.0  ;;  %v444_v19 = vadd.f32 %v443_v16, %v440_v35  ;;  %v3610_v26 = vstv %s3594_s28  ;;  %v3612_v44 = vstv %s3596_s24  ;;  %s3621_s28 = sld [smem:[#allocation89_spill]]  ;;  %s3622_s24 = sld [smem:[#allocation100_spill]] }
 0x13c   :  { %v522_v25 = vadd.f32 %v521_v1, %v518_v37  ;;  %v525_v52 = vmul.f32 %v3610_v26, %v2195_v63  ;;  %v349_v20 = vmul.f32 %v3612_v44, %v2398_v15  ;;  %v483_v22 = vadd.f32 %v482_v9, %v479_v21 }
 0x13d   :  { %v3614_v40 = vstv %s3598_s6  ;;  %v3616_v47 = vstv %s3599_s2  ;;  %v3617_v24 = vstv %s3601_s21  ;;  %v3619_v27 = vstv %s3604_s5  ;;  %s3625_s6 = sld [smem:[#allocation94_spill]]  ;;  %s3627_s2 = sld [smem:[#allocation101_spill]] }
 0x13e   :  { %v486_v46 = vmul.f32 %v3614_v40, %v2199_v48  ;;  %v490_v53 = vmul.f32 %v3616_v47, %v2201_v56  ;;  %v447_v10 = vadd.f32 %v3617_v24, %v444_v19  ;;  %v526_v13 = vadd.f32 %v525_v52, %v522_v25  ;;  %s3630_s21 = sld [smem:[#allocation95_spill]]  ;;  %s3631_s5 = sld [smem:[#allocation97_spill]] }
 0x13f   :  { %v529_v28 = vmul.f32 %v3619_v27, %v2209_v5  ;;  %v3620_v55 = vstv %s3605_s18  ;;  %v350_v34 = vadd.f32 %v349_v20, %v299_v42  ;;  %v3623_v29 = vstv %s3607_s29  ;;  %s3633_s18 = sld [smem:[#allocation102_spill]]  ;;  %s3635_s29 = sld [smem:[#allocation103_spill]] }
 0x140   :  { %v569_v33 = vmul.f32 %v3620_v55, %v2205_v62  ;;  %v487_v30 = vadd.f32 %v486_v46, %v483_v22  ;;  %v494_v49 = vmul.f32 %v3623_v29, %v2203_v50  ;;  %v3624_v32 = vstv %s3608_s15  ;;  %s3636_s15 = sld [smem:[#allocation96_spill]] }
 0x141   :  { %v572_v18 = vmul.f32 %v3624_v32, %v2207_v58  ;;  %v3626_v35 = vstv %s3609_s22  ;;  %v530_v16 = vadd.f32 %v529_v28, %v526_v13  ;;  %v3628_v36 = vstv %s3611_s10  ;;  %s3639_s22 = sld [smem:[#allocation98_spill]]  ;;  %s3640_s10 = sld [smem:[#allocation109_spill]] }
 0x142   :  { %v400_v17 = vmul.f32 %v3626_v35, %v2418_v41  ;;  %v533_v37 = vmul.f32 %v3628_v36, %v2197_v51  ;;  %v3629_v11 = vstv %s3613_s27  ;;  %v491_v42 = vadd.f32 %v490_v53, %v487_v30  ;;  %s3644_s27 = sld [smem:[#allocation112_spill]] }
 0x143   :  { %v537_v1 = vmul.f32 %v3629_v11, %v2199_v48  ;;  %v3632_v21 = vstv %s3615_s14  ;;  %v573_v9 = vadd.f32 %v572_v18, %v569_v33  ;;  %v3634_v19 = vstv %s3618_s1  ;;  %s3643_s1 = sld [smem:[#allocation104_spill]]  ;;  %s3647_s14 = sld [smem:[#allocation99_spill]] }
 0x144   :  { %v541_v38 = vmul.f32 %v3632_v21, %v2201_v56  ;;  %v576_v25 = vmul.f32 %v3634_v19, %v2195_v63  ;;  %v2461_v26 = vmax.f32 %v447_v10, 0.0  ;;  %v534_v52 = vadd.f32 %v533_v37, %v530_v16 }
 0x145   :  { %v3637_v44 = vstv %s3621_s28  ;;  %v3638_v22 = vstv %s3622_s24  ;;  %v495_v46 = vadd.f32 %v494_v49, %v491_v42  ;;  %v3641_v53 = vstv %s3625_s6  ;;  %s3649_s28 = sld [smem:[#allocation105_spill]]  ;;  %s3654_s6 = sld [smem:[#allocation111_spill]] }
 0x146   :  { %v545_v20 = vmul.f32 %v3637_v44, %v2203_v50  ;;  %v620_v40 = vmul.f32 %v3638_v22, %v2205_v62  ;;  %v577_v47 = vadd.f32 %v576_v25, %v573_v9  ;;  %v580_v24 = vmul.f32 %v3641_v53, %v2209_v5  ;;  %s3652_s24 = sld [smem:[#allocation113_spill]] }
 0x147   :  { %v3642_v13 = vstv %s3627_s2  ;;  %v401_v27 = vadd.f32 %v400_v17, %v350_v34  ;;  %v538_v28 = vadd.f32 %v537_v1, %v534_v52  ;;  %v3645_v55 = vstv %s3630_s21  ;;  %s3656_s2 = sld [smem:[#allocation106_spill]]  ;;  %s3657_s21 = sld [smem:[#allocation107_spill]] }
 0x148   :  { %v623_v10 = vmul.f32 %v3642_v13, %v2207_v58  ;;  %v584_v33 = vmul.f32 %v3645_v55, %v2197_v51  ;;  %v3646_v30 = vstv %s3631_s5  ;;  %v3648_v32 = vstv %s3633_s18  ;;  %s3660_s5 = sld [smem:[#allocation114_spill]]  ;;  %s3661_s18 = sld [smem:[#allocation108_spill]] }
 0x149   :  { %v588_v29 = vmul.f32 %v3646_v30, %v2199_v48  ;;  %v498_v49 = vadd.f32 %v3648_v32, %v495_v46  ;;  %v581_v18 = vadd.f32 %v580_v24, %v577_v47  ;;  %v3650_v16 = vstv %s3635_s29  ;;  %s3663_s29 = sld [smem:[#allocation115_spill]] }
 0x14a   :  { %v624_v35 = vadd.f32 %v623_v10, %v620_v40  ;;  %v627_v36 = vmul.f32 %v3650_v16, %v2195_v63  ;;  %v3651_v37 = vstv %s3636_s15  ;;  %v542_v17 = vadd.f32 %v541_v38, %v538_v28  ;;  %s3665_s15 = sld [smem:[#allocation121_spill]] }
 0x14b   :  { %v451_v34 = vmul.f32 %v3651_v37, %v2461_v26  ;;  %v3653_v11 = vstv %s3639_s22  ;;  %v3655_v42 = vstv %s3640_s10  ;;  %v585_v9 = vadd.f32 %v584_v33, %v581_v18  ;;  %s3666_s22 = sld [smem:[#allocation122_spill]]  ;;  %s3667_s10 = sld [smem:[#allocation110_spill]] }
 0x14c   :  { %v592_v1 = vmul.f32 %v3653_v11, %v2201_v56  ;;  %v671_v21 = vmul.f32 %v3655_v42, %v2205_v62  ;;  %v628_v19 = vadd.f32 %v627_v36, %v624_v35  ;;  %v3658_v25 = vstv %s3643_s1  ;;  %s3671_s1 = sld [smem:[#allocation116_spill]] }
 0x14d   :  { %v631_v52 = vmul.f32 %v3658_v25, %v2209_v5  ;;  %v3659_v44 = vstv %s3644_s27  ;;  %v2501_v40 = vmax.f32 %v498_v49, 0.0  ;;  %v546_v38 = vadd.f32 %v545_v20, %v542_v17  ;;  %s3673_s27 = sld [smem:[#allocation123_spill]] }
 0x14e   :  { %v674_v22 = vmul.f32 %v3659_v44, %v2207_v58  ;;  %v3662_v46 = vstv %s3647_s14  ;;  %v3664_v53 = vstv %s3649_s28  ;;  %v589_v13 = vadd.f32 %v588_v29, %v585_v9  ;;  %s3674_s14 = sld [smem:[#allocation119_spill]]  ;;  %s3677_s28 = sld [smem:[#allocation117_spill]] }
 0x14f   :  { %v596_v47 = vmul.f32 %v3662_v46, %v2203_v50  ;;  %v635_v24 = vmul.f32 %v3664_v53, %v2197_v51  ;;  %v632_v10 = vadd.f32 %v631_v52, %v628_v19  ;;  %v3668_v55 = vstv %s3652_s24  ;;  %s3681_s24 = sld [smem:[#allocation124_spill]] }
 0x150   :  { %v675_v28 = vadd.f32 %v674_v22, %v671_v21  ;;  %v678_v33 = vmul.f32 %v3668_v55, %v2195_v63  ;;  %v452_v30 = vadd.f32 %v451_v34, %v401_v27  ;;  %v3669_v32 = vstv %s3654_s6  ;;  %s3683_s6 = sld [smem:[#allocation131_spill]] }
 0x151   :  { %v549_v49 = vadd.f32 %v3669_v32, %v546_v38  ;;  %v3670_v20 = vstv %s3656_s2  ;;  %v3672_v35 = vstv %s3657_s21  ;;  %v593_v36 = vadd.f32 %v592_v1, %v589_v13  ;;  %s3684_s2 = sld [smem:[#allocation120_spill]]  ;;  %s3685_s21 = sld [smem:[#allocation132_spill]] }
 0x152   :  { %v639_v18 = vmul.f32 %v3670_v20, %v2199_v48  ;;  %v643_v16 = vmul.f32 %v3672_v35, %v2201_v56  ;;  %v636_v29 = vadd.f32 %v635_v24, %v632_v10  ;;  %v679_v37 = vadd.f32 %v678_v33, %v675_v28 }
 0x153   :  { %v3675_v17 = vstv %s3660_s5  ;;  %v3676_v42 = vstv %s3661_s18  ;;  %v3678_v34 = vstv %s3663_s29  ;;  %v3679_v9 = vstv %s3665_s15  ;;  %s3687_s5 = sld [smem:[#allocation118_spill]]  ;;  %s3690_s18 = sld [smem:[#allocation125_spill]] }
 0x154   :  { %v682_v11 = vmul.f32 %v3675_v17, %v2209_v5  ;;  %v647_v27 = vmul.f32 %v3676_v42, %v2203_v50  ;;  %v686_v21 = vmul.f32 %v3678_v34, %v2197_v51  ;;  %v722_v19 = vmul.f32 %v3679_v9, %v2205_v62  ;;  %s3691_s29 = sld [smem:[#allocation127_spill]]  ;;  %s3693_s15 = sld [smem:[#allocation133_spill]] }
 0x155   :  { %v3680_v25 = vstv %s3666_s22  ;;  %v3682_v52 = vstv %s3667_s10  ;;  %v597_v22 = vadd.f32 %v596_v47, %v593_v36  ;;  %v640_v38 = vadd.f32 %v639_v18, %v636_v29  ;;  %s3696_s22 = sld [smem:[#allocation128_spill]]  ;;  %s3697_s10 = sld [smem:[#allocation129_spill]] }
 0x156   :  { %v725_v1 = vmul.f32 %v3680_v25, %v2207_v58  ;;  %v502_v44 = vmul.f32 %v3682_v52, %v2501_v40  ;;  %v683_v46 = vadd.f32 %v682_v11, %v679_v37  ;;  %v2538_v53 = vmax.f32 %v549_v49, 0.0 }
 0x157   :  { %v3686_v24 = vstv %s3671_s1  ;;  %v3688_v28 = vstv %s3673_s27  ;;  %v3689_v33 = vstv %s3674_s14  ;;  %v644_v20 = vadd.f32 %v643_v16, %v640_v38  ;;  %s3701_s1 = sld [smem:[#allocation136_spill]]  ;;  %s3702_s27 = sld [smem:[#allocation126_spill]] }
 0x158   :  { %v690_v13 = vmul.f32 %v3686_v24, %v2199_v48  ;;  %v726_v10 = vadd.f32 %v725_v1, %v722_v19  ;;  %v729_v55 = vmul.f32 %v3688_v28, %v2195_v63  ;;  %v600_v32 = vadd.f32 %v3689_v33, %v597_v22  ;;  %s3704_s14 = sld [smem:[#allocation141_spill]] }
 0x159   :  { %v687_v47 = vadd.f32 %v686_v21, %v683_v46  ;;  %v3692_v18 = vstv %s3677_s28  ;;  %v503_v49 = vadd.f32 %v502_v44, %v452_v30  ;;  %v3694_v29 = vstv %s3681_s24  ;;  %s3706_s28 = sld [smem:[#allocation143_spill]] }
 0x15a   :  { %v694_v35 = vmul.f32 %v3692_v18, %v2201_v56  ;;  %v730_v36 = vadd.f32 %v729_v55, %v726_v10  ;;  %v733_v37 = vmul.f32 %v3694_v29, %v2209_v5  ;;  %v3695_v17 = vstv %s3683_s6  ;;  %s3707_s24 = sld [smem:[#allocation135_spill]]  ;;  %s3708_s6 = sld [smem:[#allocation130_spill]] }
 0x15b   :  { %v773_v11 = vmul.f32 %v3695_v17, %v2205_v62  ;;  %v648_v42 = vadd.f32 %v647_v27, %v644_v20  ;;  %v691_v34 = vadd.f32 %v690_v13, %v687_v47  ;;  %v3698_v9 = vstv %s3684_s2  ;;  %s3710_s2 = sld [smem:[#allocation137_spill]] }
 0x15c   :  { %v698_v16 = vmul.f32 %v3698_v9, %v2203_v50  ;;  %v3699_v21 = vstv %s3685_s21  ;;  %v3700_v25 = vstv %s3687_s5  ;;  %v2566_v1 = vmax.f32 %v600_v32, 0.0  ;;  %s3713_s21 = sld [smem:[#allocation144_spill]]  ;;  %s3714_s5 = sld [smem:[#allocation134_spill]] }
 0x15d   :  { %v776_v19 = vmul.f32 %v3699_v21, %v2207_v58  ;;  %v553_v30 = vmul.f32 %v3700_v25, %v2538_v53  ;;  %v734_v52 = vadd.f32 %v733_v37, %v730_v36  ;;  %v3703_v44 = vstv %s3690_s18  ;;  %s3716_s18 = sld [smem:[#allocation138_spill]] }
 0x15e   :  { %v737_v22 = vmul.f32 %v3703_v44, %v2197_v51  ;;  %v3705_v27 = vstv %s3691_s29  ;;  %v695_v46 = vadd.f32 %v694_v35, %v691_v34  ;;  %v3709_v13 = vstv %s3693_s15  ;;  %s3718_s29 = sld [smem:[#allocation145_spill]]  ;;  %s3722_s15 = sld [smem:[#allocation151_spill]] }
 0x15f   :  { %v651_v38 = vadd.f32 %v3705_v27, %v648_v42  ;;  %v777_v24 = vadd.f32 %v776_v19, %v773_v11  ;;  %v780_v10 = vmul.f32 %v3709_v13, %v2195_v63  ;;  %v554_v28 = vadd.f32 %v553_v30, %v503_v49 }
 0x160   :  { %v738_v55 = vadd.f32 %v737_v22, %v734_v52  ;;  %v3711_v33 = vstv %s3696_s22  ;;  %v3712_v20 = vstv %s3697_s10  ;;  %v699_v36 = vadd.f32 %v698_v16, %v695_v46  ;;  %s3724_s22 = sld [smem:[#allocation139_spill]]  ;;  %s3726_s10 = sld [smem:[#allocation140_spill]] }
 0x161   :  { %v741_v32 = vmul.f32 %v3711_v33, %v2199_v48  ;;  %v745_v47 = vmul.f32 %v3712_v20, %v2201_v56  ;;  %v2582_v18 = vmax.f32 %v651_v38, 0.0  ;;  %v781_v35 = vadd.f32 %v780_v10, %v777_v24 }
 0x162   :  { %v3715_v29 = vstv %s3701_s1  ;;  %v3717_v17 = vstv %s3702_s27  ;;  %v3719_v42 = vstv %s3704_s14  ;;  %v3720_v9 = vstv %s3706_s28  ;;  %s3727_s1 = sld [smem:[#allocation152_spill]]  ;;  %s3728_s27 = sld [smem:[#allocation146_spill]] }
 0x163   :  { %v784_v37 = vmul.f32 %v3715_v29, %v2209_v5  ;;  %v604_v49 = vmul.f32 %v3717_v17, %v2566_v1  ;;  %v742_v11 = vadd.f32 %v741_v32, %v738_v55  ;;  %v824_v34 = vmul.f32 %v3719_v42, %v2205_v62  ;;  %s3731_s14 = sld [smem:[#allocation147_spill]]  ;;  %s3733_s28 = sld [smem:[#allocation148_spill]] }
 0x164   :  { %v827_v21 = vmul.f32 %v3720_v9, %v2207_v58  ;;  %v3721_v19 = vstv %s3707_s24  ;;  %v3723_v16 = vstv %s3708_s6  ;;  %v3725_v44 = vstv %s3710_s2  ;;  %s3735_s24 = sld [smem:[#allocation153_spill]]  ;;  %s3736_s6 = sld [smem:[#allocation142_spill]] }
 0x165   :  { %v702_v25 = vadd.f32 %v3721_v19, %v699_v36  ;;  %v749_v30 = vmul.f32 %v3723_v16, %v2203_v50  ;;  %v785_v52 = vadd.f32 %v784_v37, %v781_v35  ;;  %v788_v22 = vmul.f32 %v3725_v44, %v2197_v51  ;;  %s3738_s2 = sld [smem:[#allocation156_spill]] }
 0x166   :  { %v605_v27 = vadd.f32 %v604_v49, %v554_v28  ;;  %v746_v38 = vadd.f32 %v745_v47, %v742_v11  ;;  %v828_v46 = vadd.f32 %v827_v21, %v824_v34  ;;  %v3729_v24 = vstv %s3713_s21  ;;  %s3742_s21 = sld [smem:[#allocation161_spill]] }
 0x167   :  { %v831_v13 = vmul.f32 %v3729_v24, %v2195_v63  ;;  %v3730_v10 = vstv %s3714_s5  ;;  %v789_v33 = vadd.f32 %v788_v22, %v785_v52  ;;  %v3732_v32 = vstv %s3716_s18  ;;  %s3743_s5 = sld [smem:[#allocation163_spill]]  ;;  %s3746_s18 = sld [smem:[#allocation149_spill]] }
 0x168   :  { %v655_v55 = vmul.f32 %v3730_v10, %v2582_v18  ;;  %v792_v20 = vmul.f32 %v3732_v32, %v2199_v48  ;;  %v3734_v36 = vstv %s3718_s29  ;;  %v2616_v28 = vmax.f32 %v702_v25, 0.0  ;;  %s3747_s29 = sld [smem:[#allocation157_spill]] }
 0x169   :  { %v835_v35 = vmul.f32 %v3734_v36, %v2209_v5  ;;  %v750_v47 = vadd.f32 %v749_v30, %v746_v38  ;;  %v832_v29 = vadd.f32 %v831_v13, %v828_v46  ;;  %v3737_v37 = vstv %s3722_s15  ;;  %s3749_s15 = sld [smem:[#allocation155_spill]] }
 0x16a   :  { %v875_v17 = vmul.f32 %v3737_v37, %v2205_v62  ;;  %v793_v49 = vadd.f32 %v792_v20, %v789_v33  ;;  %v3739_v11 = vstv %s3724_s22  ;;  %v3740_v34 = vstv %s3726_s10  ;;  %s3752_s22 = sld [smem:[#allocation164_spill]]  ;;  %s3753_s10 = sld [smem:[#allocation154_spill]] }
 0x16b   :  { %v796_v42 = vmul.f32 %v3739_v11, %v2201_v56  ;;  %v800_v9 = vmul.f32 %v3740_v34, %v2203_v50  ;;  %v3741_v21 = vstv %s3727_s1  ;;  %v656_v25 = vadd.f32 %v655_v55, %v605_v27  ;;  %s3755_s1 = sld [smem:[#allocation150_spill]] }
 0x16c   :  { %v878_v19 = vmul.f32 %v3741_v21, %v2207_v58  ;;  %v3744_v16 = vstv %s3728_s27  ;;  %v836_v52 = vadd.f32 %v835_v35, %v832_v29  ;;  %v3745_v44 = vstv %s3731_s14  ;;  %s3756_s27 = sld [smem:[#allocation158_spill]]  ;;  %s3759_s14 = sld [smem:[#allocation165_spill]] }
 0x16d   :  { %v753_v30 = vadd.f32 %v3744_v16, %v750_v47  ;;  %v839_v22 = vmul.f32 %v3745_v44, %v2197_v51  ;;  %v797_v38 = vadd.f32 %v796_v42, %v793_v49  ;;  %v3748_v46 = vstv %s3733_s28  ;;  %s3762_s28 = sld [smem:[#allocation159_spill]] }
 0x16e   :  { %v843_v24 = vmul.f32 %v3748_v46, %v2199_v48  ;;  %v879_v13 = vadd.f32 %v878_v19, %v875_v17  ;;  %v3750_v10 = vstv %s3735_s24  ;;  %v3751_v32 = vstv %s3736_s6  ;;  %s3767_s24 = sld [smem:[#allocation167_spill]]  ;;  %s3769_s6 = sld [smem:[#allocation166_spill]] }
 0x16f   :  { %v882_v33 = vmul.f32 %v3750_v10, %v2195_v63  ;;  %v706_v27 = vmul.f32 %v3751_v32, %v2616_v28  ;;  %v2644_v55 = vmax.f32 %v753_v30, 0.0  ;;  %v840_v20 = vadd.f32 %v839_v22, %v836_v52 }
 0x170   :  { %v3754_v36 = vstv %s3738_s2  ;;  %v801_v47 = vadd.f32 %v800_v9, %v797_v38  ;;  %v3757_v37 = vstv %s3742_s21  ;;  %v3758_v49 = vstv %s3743_s5  ;;  %s2675_s2 = sld [smem:[#allocation8 + $0x182]]  ;;  %s3770_s21 = sld [smem:[#allocation160_spill]] }
 0x171   :  { %v886_v35 = vmul.f32 %v3754_v36, %v2209_v5  ;;  %v883_v29 = vadd.f32 %v882_v33, %v879_v13  ;;  %v926_v17 = vmul.f32 %v3757_v37, %v2205_v62  ;;  %v929_v11 = vmul.f32 %v3758_v49, %v2207_v58  ;;  %s3772_s5 = sld [smem:[#allocation162_spill]] }
 0x172   :  { %v707_v42 = vadd.f32 %v706_v27, %v656_v25  ;;  %v844_v34 = vadd.f32 %v843_v24, %v840_v20  ;;  %v3760_v21 = vstv %s3746_s18  ;;  %v3761_v16 = vstv %s3747_s29  ;;  %s3775_s18 = sld [smem:[#allocation168_spill]]  ;;  %s2691_s29 = sld [smem:[#allocation8 + $0x183]] }
 0x173   :  { %v847_v19 = vmul.f32 %v3760_v21, %v2201_v56  ;;  %v890_v30 = vmul.f32 %v3761_v16, %v2197_v51  ;;  %v3763_v52 = vstv %s3749_s15  ;;  %v887_v44 = vadd.f32 %v886_v35, %v883_v29  ;;  %s3777_s15 = sld [smem:[#allocation179_spill]] }
 0x174   :  { %v804_v9 = vadd.f32 %v3763_v52, %v801_v47  ;;  %v930_v22 = vadd.f32 %v929_v11, %v926_v17  ;;  %v3764_v62 = vstv %s3752_s22  ;;  %v3765_v58 = vstv %s3753_s10  ;;  %s2696_s22 = sld [smem:[#allocation8 + $0x184]] }
 0x175   :  { %v933_v38 = vmul.f32 %v3764_v62, %v2195_v63  ;;  %v757_v25 = vmul.f32 %v3765_v58, %v2644_v55  ;;  %v848_v46 = vadd.f32 %v847_v19, %v844_v34  ;;  %v3766_v24 = vstv %s3755_s1  ;;  %s3785_s10 = sld [smem:[#allocation180_spill]]  ;;  %s3787_s1 = sld [smem:[#allocation170_spill]] }
 0x176   :  { %v851_v13 = vmul.f32 %v3766_v24, %v2203_v50  ;;  %v3768_v10 = vstv %s3756_s27  ;;  %v2677_v32 = vmax.f32 %v804_v9, 0.0  ;;  %v891_v27 = vadd.f32 %v890_v30, %v887_v44  ;;  %s2712_s27 = sld [smem:[#allocation8 + $0x185]] }
 0x177   :  { %v894_v33 = vmul.f32 %v3768_v10, %v2199_v48  ;;  %v934_v63 = vadd.f32 %v933_v38, %v930_v22  ;;  %v3771_v20 = vstv %s3759_s14  ;;  %v3773_v47 = vstv %s3762_s28  ;;  %s3788_s14 = sld [smem:[#allocation172_spill]]  ;;  %s2724_s28 = sld [smem:[#allocation8 + $0x186]] }
 0x178   :  { %v937_v36 = vmul.f32 %v3771_v20, %v2209_v5  ;;  %v852_v35 = vadd.f32 %v851_v13, %v848_v46  ;;  %v898_v29 = vmul.f32 %v3773_v47, %v2201_v56  ;;  %v3774_v37 = vstv %s3487_s0  ;;  %s3781_s0 = sld [smem:[#allocation169_spill]] }
 0x179   :  { %v206_v17 = vmul.f32 %v3774_v37, %v2347_v14  ;;  %v3776_v49 = vstv %s3489_s19  ;;  %v758_v34 = vadd.f32 %v757_v25, %v707_v42  ;;  %v895_v21 = vadd.f32 %v894_v33, %v891_v27  ;;  %s3784_s19 = sld [smem:[#allocation171_spill]] }
 0x17a   :  { %v255_v11 = vmul.f32 %v3776_v49, %v2352_v31  ;;  %v938_v19 = vadd.f32 %v937_v36, %v934_v63  ;;  %v3778_v16 = vstv %s3767_s24  ;;  %v3779_v30 = vstv %s3769_s6  ;;  %s2726_s24 = sld [smem:[#allocation8 + $0x187]]  ;;  %s3796_s6 = sld [smem:[#allocation173_spill]] }
 0x17b   :  { %v941_v5 = vmul.f32 %v3778_v16, %v2197_v51  ;;  %v855_v52 = vadd.f32 %v3779_v30, %v852_v35  ;;  %v3780_v9 = vstv %s3770_s21  ;;  %v3782_v62 = vstv %s3490_s12  ;;  %s3790_s12 = sld [smem:[#allocation181_spill]]  ;;  %s3797_s21 = sld [smem:[#allocation174_spill]] }
 0x17c   :  { %v902_v44 = vmul.f32 %v3780_v9, %v2203_v50  ;;  %v256_v22 = vadd.f32 %v255_v11, %v206_v17  ;;  %v306_v38 = vmul.f32 %v3782_v62, %v2370_v43  ;;  %v3783_v42 = vstv %s3772_s5  ;;  %s2743_s5 = sld [smem:[#allocation8 + $0x188]] }
 0x17d   :  { %v808_v58 = vmul.f32 %v3783_v42, %v2677_v32  ;;  %v899_v25 = vadd.f32 %v898_v29, %v895_v21  ;;  %v942_v46 = vadd.f32 %v941_v5, %v938_v19  ;;  %v3786_v51 = vstv %s3775_s18  ;;  %s3843_s18 = sld [smem:[#allocation207_spill]] }
 0x17e   :  { %v945_v24 = vmul.f32 %v3786_v51, %v2199_v48  ;;  %v2714_v13 = vmax.f32 %v855_v52, 0.0  ;;  %v307_v10 = vadd.f32 %v306_v38, %v256_v22  ;;  %v3789_v33 = vstv %s3777_s15  ;;  %s3806_s15 = sld [smem:[#allocation175_spill]] }
 0x17f   :  { %v357_v27 = vmul.f32 %v3789_v33, %v2398_v15  ;;  %v1008_v63 = vsub.f32 %v2137_v59, %v2158_v3  ;;  %v809_v20 = vadd.f32 %v808_v58, %v758_v34  ;;  %v903_v36 = vadd.f32 %v902_v44, %v899_v25 }
 0x180   :  { %v946_v35 = vadd.f32 %v945_v24, %v942_v46  ;;  %v3791_v48 = vstv %s3781_s0  ;;  %v3792_v29 = vstv %s3784_s19  ;;  %v3793_v59 = vstv %s3785_s10  ;;  %s2803_s0 = sld [smem:[#allocation8 + $0x18a]]  ;;  %s3818_s19 = sld [smem:[#allocation177_spill]] }
 0x181   :  { %v949_v47 = vmul.f32 %v3791_v48, %v2201_v56  ;;  %v953_v37 = vmul.f32 %v3792_v29, %v2203_v50  ;;  %v358_v17 = vadd.f32 %v357_v27, %v307_v10  ;;  %v408_v3 = vmul.f32 %v3793_v59, %v2418_v41  ;;  %s3831_s10 = sld [smem:[#allocation194_spill]] }
 0x182   :  { %v309_v49 = vstv %s2675_s2  ;;  %v3794_v11 = vstv %s3787_s1  ;;  %v3795_v21 = vstv %s3788_s14  ;;  %v203_v16 = vmul.f32 %v202_v57, %v2347_v14  ;;  %s3834_s1 = sld [smem:[#allocation191_spill]]  ;;  %s2862_s14 = sld [smem:[#allocation8 + $0x18b]] }
 0x183   :  { %v859_v34 = vmul.f32 %v3794_v11, %v2714_v13  ;;  %v906_v19 = vadd.f32 %v3795_v21, %v903_v36  ;;  %v950_v56 = vadd.f32 %v949_v47, %v946_v35  ;;  %v409_v50 = vadd.f32 %v408_v3, %v358_v17  ;;  %s2888_s2 = sld [smem:[#allocation8 + $0x18e]] }
 0x184   :  { %v3798_v5 = vstv %s3790_s12  ;;  %v251_v52 = vmul.f32 %v250_v60, %v2352_v31  ;;  %v360_v9 = vstv %s2691_s29  ;;  %v411_v38 = vstv %s2696_s22  ;;  %s3804_s29 = sld [smem:[#allocation205_spill]]  ;;  %s3810_s22 = sld [smem:[#allocation176_spill]] }
 0x185   :  { %v459_v30 = vmul.f32 %v3798_v5, %v2461_v26  ;;  %v860_v44 = vadd.f32 %v859_v34, %v809_v20  ;;  %v2752_v22 = vmax.f32 %v906_v19, 0.0  ;;  %v954_v62 = vadd.f32 %v953_v37, %v950_v56 }
 0x186   :  { %v3799_v42 = vstv %s2011_s3  ;;  %v252_v25 = vadd.f32 %v251_v52, %v203_v16  ;;  %v3800_v46 = vstv %s3504_s13  ;;  %v3802_v51 = vstv %s3796_s6  ;;  %s3807_s3 = sld [smem:[#allocation185_spill]]  ;;  %s2783_s13 = sld [smem:[#allocation9 + $0x2]] }
 0x187   :  { %v460_v57 = vadd.f32 %v459_v30, %v409_v50  ;;  %v510_v58 = vmul.f32 %v3799_v42, %v2501_v40  ;;  %v302_v60 = vmul.f32 %v3800_v46, %v2370_v43  ;;  %v910_v24 = vmul.f32 %v3802_v51, %v2752_v22  ;;  %s3839_s6 = sld [smem:[#allocation206_spill]] }
 0x188   :  { %v3803_v10 = vstv %s3797_s21  ;;  %v462_v36 = vstv %s2712_s27  ;;  %v3808_v48 = vstv %s3494_s4  ;;  %v3809_v37 = vstv %s3506_s7  ;;  %s3816_s4 = sld [smem:[#allocation183_spill]]  ;;  %s3817_s7 = sld [smem:[#allocation187_spill]] }
 0x189   :  { %v957_v33 = vadd.f32 %v3803_v10, %v954_v62  ;;  %v511_v35 = vadd.f32 %v510_v58, %v460_v57  ;;  %v561_v47 = vmul.f32 %v3808_v48, %v2538_v53  ;;  %v303_v29 = vadd.f32 %v302_v60, %v252_v25  ;;  %s2879_s21 = sld [smem:[#allocation8 + $0x18d]] }
 0x18a   :  { %v3805_v27 = vstv %s3804_s29  ;;  %v353_v17 = vmul.f32 %v3809_v37, %v2398_v15  ;;  %v911_v59 = vadd.f32 %v910_v24, %v860_v44  ;;  %v564_v11 = vstv %s2726_s24 }
 0x18b   :  { %v2772_v20 = vmul.f32 %v1008_v63, %v3805_v27  ;;  %v2781_v3 = vmax.f32 %v957_v33, 0.0  ;;  %v513_v63 = vstv %s2724_s28  ;;  %v562_v34 = vadd.f32 %v561_v47, %v511_v35 }
 0x18c   :  { %v3811_v21 = vstv %s3801_s20  ;;  %v354_v56 = vadd.f32 %v353_v17, %v303_v29  ;;  %v3812_v16 = vstv %s2082_s25  ;;  %v3813_v5 = vstv %s3806_s15  ;;  %s3821_s25 = sld [smem:[#allocation188_spill]]  ;;  %s2883_s20 = sld [smem:[#allocation9 + $0x1]] }
 0x18d   :  { %v612_v19 = vmul.f32 %v3811_v21, %v2566_v1  ;;  %v404_v50 = vmul.f32 %v3812_v16, %v2418_v41  ;;  %v961_v30 = vmul.f32 %v3813_v5, %v2781_v3  ;;  %v3814_v52 = vstv %s3807_s3  ;;  %s3844_s3 = sld [smem:[#allocation208_spill]] }
 0x18e   :  { %v663_v44 = vmul.f32 %v3814_v52, %v2582_v18  ;;  %v3815_v62 = vstv %s2089_s30  ;;  %v615_v42 = vstv %s2743_s5  ;;  %v209_v46 = vmul.f32 %v208_v12, %v2347_v14  ;;  %s3822_s30 = sld [smem:[#allocation178_spill]] }
 0x18f   :  { %v455_v57 = vmul.f32 %v3815_v62, %v2461_v26  ;;  %v613_v58 = vadd.f32 %v612_v19, %v562_v34  ;;  %v405_v25 = vadd.f32 %v404_v50, %v354_v56  ;;  %v259_v60 = vmul.f32 %v258_v39, %v2352_v31 }
 0x190   :  { %v962_v51 = vadd.f32 %v961_v30, %v911_v59  ;;  %v3819_v24 = vstv %s3499_s26  ;;  %v3820_v33 = vstv %s3810_s22  ;;  %v666_v35 = vstv %s2755_s9  ;;  %s3826_s26 = sld [smem:[#allocation189_spill]] }
 0x191   :  { %v714_v10 = vmul.f32 %v3819_v24, %v2616_v28  ;;  %v506_v27 = vmul.f32 %v3820_v33, %v2501_v40  ;;  %v664_v48 = vadd.f32 %v663_v44, %v613_v58  ;;  %v456_v47 = vadd.f32 %v455_v57, %v405_v25 }
 0x192   :  { %v260_v29 = vadd.f32 %v259_v60, %v209_v46  ;;  %v310_v37 = vmul.f32 %v309_v49, %v2370_v43  ;;  %v2821_v14 = vrot.slane %v2057_v61, %v1761_v8  ;;  %v3823_v31 = vstv %s3816_s4  ;;  %s3845_s4 = sld [smem:[#allocation209_spill]] }
 0x193   :  { %v977_v12 = vadd.f32 %v3823_v31, %v962_v51  ;;  %v3824_v39 = vstv %s3817_s7  ;;  %v3825_v59 = vstv %s3818_s19  ;;  %v715_v21 = vadd.f32 %v714_v10, %v664_v48  ;;  %s1434_s7 = smov [#allocation11]  }
 0x194   :  { %v765_v17 = vmul.f32 %v3824_v39, %v2644_v55  ;;  %v557_v34 = vmul.f32 %v3825_v59, %v2538_v53  ;;  %v507_v19 = vadd.f32 %v506_v27, %v456_v47  ;;  %v311_v56 = vadd.f32 %v310_v37, %v260_v29 }
 0x195   :  { %v361_v43 = vmul.f32 %v360_v9, %v2398_v15  ;;  %v986_v8 = vmul.f32 %v2821_v14, %v977_v12  ;;  %v3828_v61 = vstv %s3821_s25  ;;  %v994_v16 = vstv %s2783_s13 }
 0x196   :  { %v816_v49 = vmul.f32 %v3828_v61, %v2677_v32  ;;  %v3830_v50 = vstv %s3822_s30  ;;  %v766_v30 = vadd.f32 %v765_v17, %v715_v21  ;;  %v558_v52 = vadd.f32 %v557_v34, %v507_v19 }
 0x197   :  { %v608_v5 = vmul.f32 %v3830_v50, %v2566_v1  ;;  %v362_v44 = vadd.f32 %v361_v43, %v311_v56  ;;  %v412_v62 = vmul.f32 %v411_v38, %v2418_v41  ;;  %v987_v57 = vadd.f32 %v986_v8, %v2143_v4 }
 0x198   :  { %v3832_v15 = vstv %s3826_s26  ;;  %v3833_v58 = vstv %s3827_s11  ;;  %v717_v46 = vstv %s2803_s0  ;;  %v817_v60 = vadd.f32 %v816_v49, %v766_v30  ;;  %s1109_s0 = sshll.u32 %s1434_s7, 4  ;;  %s1110_s0 = int_to_ptr.vmem [resolvable:$true] %s1109_s0 }
 0x199   :  { %v867_v9 = vmul.f32 %v3832_v15, %v2714_v13  ;;  %v659_v25 = vmul.f32 %v3833_v58, %v2582_v18  ;;  %v609_v51 = vadd.f32 %v608_v5, %v558_v52  ;;  %v413_v24 = vadd.f32 %v412_v62, %v362_v44  ;;  %s1396_s19 = scalar_lea.vmem %s1110_s0, 64  ;;  %p1401_p7 = scmp.lt.s32.totalorder %s1110_s0, %s1110_s0 }
 0x19a   :  { %v463_v10 = vmul.f32 %v462_v36, %v2461_v26  ;;  %v3836_v33 = vsub.f32 %v2148_v2, %v2113_v0  ;;  %v3837_v38 = vstv %s3829_s16  ;;  %v3838_v48 = vstv %s3831_s10  ;;  %p1397_p6 = scmp.ne.s32.totalorder %s1110_s0, %s1396_s19  ;;  %p1402_p8 = scmp.lt.s32.totalorder %s1396_s19, %s1396_s19 }
 0x19b   :  { %v918_v27 = vmul.f32 %v3837_v38, %v2752_v22  ;;  %v710_v47 = vmul.f32 %v3838_v48, %v2616_v28  ;;  %v761_v29 = vmul.f32 %v760_v54, %v2644_v55  ;;  %v868_v37 = vadd.f32 %v867_v9, %v817_v60 }
 0x19c   :  { %v1007_v41 = vsub.f32 %v3836_v33, %v987_v57  ;;  %v660_v31 = vadd.f32 %v659_v25, %v609_v51  ;;  %v464_v12 = vadd.f32 %v463_v10, %v413_v24  ;;  %v514_v26 = vmul.f32 %v513_v63, %v2501_v40  ;;  %p1403_p9 = por %p1402_p8, %p1401_p7 }
 0x19d   :  { %v3840_v36 = vstv %s3834_s1  ;;  %v812_v54 = vmul.f32 %v811_v6, %v2677_v32  ;;  %v919_v17 = vadd.f32 %v918_v27, %v868_v37  ;;  %v565_v40 = vmul.f32 %v564_v11, %v2538_v53 }
 0x19e   :  { %v1017_v0 = vcombine.high %v1007_v41, %v1007_v41  ;;  %1012 = vst [vmem:[%s3839_s6] sm:$0xff] %v1007_v41  ;;  %v1052_v2 = vmul.f32 %v1007_v41, %v1007_v41  ;;  %v969_v39 = vmul.f32 %v3840_v36, %v2781_v3  ;;  %v711_v59 = vadd.f32 %v710_v47, %v660_v31  ;;  %p1404_p10 = pnand %p1403_p9, %p1397_p6 }
 0x19f   :  { %v515_v34 = vadd.f32 %v514_v26, %v464_v12  ;;  %v1020_v63 = vsel %vm1019_vm0, %v1007_v41, 0.0  ;;  %v616_v6 = vmul.f32 %v615_v42, %v2566_v1  ;;  %v3841_v49 = vstv %s2167_s8  ;;  %s2904_s8 = sld [smem:[#allocation8 + $0x18f]] }
 0x1a0   :  { %v1021_v21 = vsel %vm1019_vm0, %v1017_v0, 0.0  ;;  %v1054_v19 = vcombine.high %v1052_v2, %v1052_v2  ;;  %v970_v43 = vadd.f32 %v969_v39, %v919_v17  ;;  %v762_v8 = vadd.f32 %v761_v29, %v711_v59 }
 0x1a1   :  { %v1022_v56 = vadd.f32 %v1021_v21, %v1020_v63  ;;  %v566_v53 = vadd.f32 %v565_v40, %v515_v34  ;;  %v1056_v11 = vsel %vm1019_vm0, %v1052_v2, 0.0  ;;  %v863_v50 = vmul.f32 %v3841_v49, %v2714_v13 }
 0x1a2   :  { %v1057_v61 = vsel %vm1019_vm0, %v1054_v19, 0.0  ;;  %v667_v5 = vmul.f32 %v666_v35, %v2582_v18  ;;  %v995_v42 = vadd.f32 %v994_v16, %v970_v43  ;;  %v813_v30 = vadd.f32 %v812_v54, %v762_v8 }
 0x1a3   :  { %1023 = vadd.xlane.f32.xlu1 %v1022_v56  ;;  %v1058_v1 = vadd.f32 %v1057_v61, %v1056_v11  ;;  %v617_v52 = vadd.f32 %v616_v6, %v566_v53  ;;  %v1010_v44 = vsub.f32 %v2132_v7, %v2772_v20  ;;  %v914_v62 = vmul.f32 %v913_v45, %v2752_v22 }
 0x1a4   :  { %v768_v57 = vstv %s2862_s14  ;;  %v996_v18 = vmul.f32 %v995_v42, %v2821_v14  ;;  %v864_v35 = vadd.f32 %v863_v50, %v813_v30  ;;  %v718_v16 = vmul.f32 %v717_v46, %v2616_v28 }
 0x1a5   :  { %1059 = vadd.xlane.f32.xlu0 %v1058_v1  ;;  %v668_v15 = vadd.f32 %v667_v5, %v617_v52  ;;  %v965_v9 = vmul.f32 %v964_v23, %v2781_v3  ;;  %v819_v58 = vstv %s2874_s23  ;;  %v769_v45 = vmul.f32 %v768_v57, %v2644_v55 }
 0x1a6   :  { %v997_v7 = vadd.f32 %v996_v18, %v2143_v4  ;;  %v915_v20 = vadd.f32 %v914_v62, %v864_v35  ;;  %v989_v60 = vstv %s2883_s20  ;;  %v870_v51 = vstv %s2879_s21 }
 0x1a7   :  { %v719_v25 = vadd.f32 %v718_v16, %v668_v15  ;;  %v921_v24 = vstv %s2888_s2  ;;  %v820_v28 = vmul.f32 %v819_v58, %v2677_v32  ;;  %v871_v27 = vmul.f32 %v870_v51, %v2714_v13 }
 0x1a8   :  { %v1011_v10 = vsub.f32 %v1010_v44, %v997_v7  ;;  %v966_v33 = vadd.f32 %v965_v9, %v915_v20  ;;  %v922_v55 = vmul.f32 %v921_v24, %v2752_v22  ;;  %v972_v48 = vstv %s2904_s8 }
 0x1a9   :  { %v770_v41 = vadd.f32 %v769_v45, %v719_v25  ;;  %v973_v0 = vmul.f32 %v972_v48, %v2781_v3  ;;  %v999_v2 = vstv %s1335_s17 }
 0x1aa   :  { %1013 = vst [vmem:[%s3843_s18] sm:$0xff] %v1011_v10  ;;  %v1026_v23 = vcombine.high %v1011_v10, %v1011_v10  ;;  %v990_v46 = vadd.f32 %v989_v60, %v966_v33  ;;  %v1028_v47 = vsel %vm1019_vm0, %v1011_v10, 0.0  ;;  %v1061_v63 = vmul.f32 %v1011_v10, %v1011_v10 }
 0x1ab   :  { %v821_v38 = vadd.f32 %v820_v28, %v770_v41 }
 0x1ac   :  { %v1029_v29 = vsel %vm1019_vm0, %v1026_v23, 0.0  ;;  %v991_v37 = vmul.f32 %v990_v46, %v2821_v14  ;;  %v1063_v43 = vcombine.high %v1061_v63, %v1061_v63 }
 0x1ad   :  { %v872_v31 = vadd.f32 %v871_v27, %v821_v38  ;;  %v1030_v32 = vadd.f32 %v1029_v29, %v1028_v47 }
 0x1ae   :  { %v992_v12 = vadd.f32 %v991_v37, %v2143_v4  ;;  %v1066_v61 = vsel %vm1019_vm0, %v1063_v43, 0.0 }
 0x1af   :  { %v923_v26 = vadd.f32 %v922_v55, %v872_v31  ;;  %1031 = vadd.xlane.f32.xlu1 %v1030_v32 }
 0x1b0   :  { %1014 = vst [vmem:[%s3844_s3] sm:$0xff] %v992_v12  ;;  %v1035_v13 = vcombine.high %v992_v12, %v992_v12  ;;  %v1071_v22 = vmul.f32 %v992_v12, %v992_v12  ;;  %v1037_v39 = vsel %vm1019_vm0, %v992_v12, 0.0 }
 0x1b1   :  { %v974_v36 = vadd.f32 %v973_v0, %v923_v26 }
 0x1b2   :  { %v1038_v54 = vsel %vm1019_vm0, %v1035_v13, 0.0  ;;  %v1073_v17 = vcombine.high %v1071_v22, %v1071_v22  ;;  %v1075_v21 = vsel %vm1019_vm0, %v1071_v22, 0.0 }
 0x1b3   :  { %v1000_v59 = vadd.f32 %v999_v2, %v974_v36  ;;  %v1039_v34 = vadd.f32 %v1038_v54, %v1037_v39 }
 0x1b4   :  { %v1076_v40 = vsel %vm1019_vm0, %v1073_v17, 0.0 }
 0x1b5   :  { %v1001_v3 = vmul.f32 %v1000_v59, %v2821_v14  ;;  %1040 = vadd.xlane.f32.xlu1 %v1039_v34  ;;  %v1077_v6 = vadd.f32 %v1076_v40, %v1075_v21 }
 0x1b7   :  { %v1002_v19 = vadd.f32 %v1001_v3, %v2143_v4  ;;  %v1065_v4 = vsel %vm1019_vm0, %v1061_v63, 0.0 }
 0x1b8   :  { %v1067_v50 = vadd.f32 %v1066_v61, %v1065_v4 }
 0x1b9   :  { %1015 = vst [vmem:[%s3845_s4] sm:$0xff] %v1002_v19  ;;  %v1044_v56 = vcombine.high %v1002_v19, %v1002_v19  ;;  %v1081_v8 = vmul.f32 %v1002_v19, %v1002_v19  ;;  %1078 = vadd.xlane.f32.xlu1 %v1077_v6  ;;  %v1046_v53 = vsel %vm1019_vm0, %v1002_v19, 0.0 }
 0x1bb   :  { %v1047_v11 = vsel %vm1019_vm0, %v1044_v56, 0.0  ;;  %v1083_v49 = vcombine.high %v1081_v8, %v1081_v8  ;;  %v1085_v1 = vsel %vm1019_vm0, %v1081_v8, 0.0 }
 0x1bc   :  { %v1048_v14 = vadd.f32 %v1047_v11, %v1046_v53 }
 0x1bd   :  { %v1086_v5 = vsel %vm1019_vm0, %v1083_v49, 0.0 }
 0x1be   :  { %1049 = vadd.xlane.f32.xlu1 %v1048_v14  ;;  %v1087_v42 = vadd.f32 %v1086_v5, %v1085_v1 }
 0x1c2   :  { %1068 = vadd.xlane.f32.xlu1 %v1067_v50 }
 0x1c6   :  { %1088 = vadd.xlane.f32.xlu1 %v1087_v42 }
 0x230   :  { %v1024_v30 = vpop.xlane.xlu1 %1023 }
 0x232   :  { %v1060_v16 = vpop.xlane.xlu0 %1059 }
 0x23c   :  { %v1032_v52 = vpop.xlane.xlu1 %1031 }
 0x23d   :  { %v1033_v57 = vadd.f32 %v1032_v52, %v1024_v30 }
 0x242   :  { %v1041_v44 = vpop.xlane.xlu1 %1040 }
 0x243   :  { %v1042_v18 = vadd.f32 %v1041_v44, %v1033_v57 }
 0x246   :  { %v1079_v62 = vpop.xlane.xlu1 %1078 }
 0x24b   :  { %v1050_v35 = vpop.xlane.xlu1 %1049 }
 0x24c   :  { %v1051_v15 = vadd.f32 %v1050_v35, %v1042_v18 }
 0x24e   :  { %1092 = vst.msk [vmem:[#allocation11] sm:$0xf] %vm1091_vm1, %v1051_v15 }
 0x24f   :  { %v1069_v9 = vpop.xlane.xlu1 %1068 }
 0x250   :  { %v1070_v58 = vadd.f32 %v1069_v9, %v1060_v16 }
 0x252   :  { %v1080_v7 = vadd.f32 %v1079_v62, %v1070_v58 }
 0x253   :  { %v1089_v20 = vpop.xlane.xlu1 %1088 }
 0x254   :  { %v1090_v25 = vadd.f32 %v1089_v20, %v1080_v7 }
 0x256   :  { %1094 = vst.msk [vmem:[#allocation11] sm:$0xf] %vm1093_vm2, %v1090_v25 }
 0x257   :  { %1407 = shalt.err (!%p1404_p10)
}
 0x258   :  { %s3846_s26 = sld [smem:[#allocation210_spill]] }
 0x25e   :  { %s1408_s11 = scalar_lea.hbm %s3846_s26, 64 }
 0x25f   :  { %p1409_p11 = scmp.ne.s32.totalorder %s3846_s26, %s1408_s11  ;;  %p1412_p12 = scmp.lt.u32.totalorder %s1408_s11, %s3846_s26 }
 0x261   :  { %p1414_p13 = pnand %p1412_p12, %p1409_p11 }
 0x263   :  { %1417 = shalt.err (!%p1414_p13)
}
 0x264   :  { %1112 = dma.vmem_to_hbm [thread:$0]  %s1110_s0, 64, %s3846_s26, [#allocation4]  }
 0x265   :  { %1424 = dma.done.wait [#allocation4], 64  }
 0x266   :  { %1425 = vsyncadd [#allocation4], 4294967232 }
 0x267   :  { %1124 = vsyncpa [#allocation4], 1 }
 0x268   :  { %1125 = vsyncpa [#allocation5], 1 }
 0x269   :  { %1126 = vsyncpa [#allocation7], 1 }
 0x26a   :  { %1127 = vsyncpa [#allocation10], 1 }

// kernel: vve_forward.14
= control target key start
LH: loop header
LB: loop body
LE: loop exit
PB: predicated region body
PF: predicated region fallthrough
CT: control target
= control target key end

     0   :  { %s2916_s0 = inlined_call_operand.vmem [shape: f32[4,1], index: 0, kind: input, shape index: {}]   ;;  %s2917_s1 = inlined_call_operand.vmem [shape: f32[4,1], index: 1, kind: input, shape index: {}]   ;;  %s2918_s2 = inlined_call_operand.vmem [shape: f32[4,256], index: 2, kind: input, shape index: {}, may-alias: {2,6,8}]   ;;  %s2919_s3 = inlined_call_operand.vmem [shape: f32[4,256], index: 3, kind: input, shape index: {}, may-alias: {3,7,9}]   ;;  %s2920_s4 = inlined_call_operand.vmem [shape: f32[4,256], index: 4, kind: input, shape index: {}]   ;;  %s2921_s5 = inlined_call_operand.vmem [shape: f32[4,256], index: 5, kind: input, shape index: {}]   ;;  %s2922_s6 = inlined_call_operand.vmem [shape: f32[4,256], index: 6, kind: input, shape index: {}, may-alias: {2,6,8}]   ;;  %s2923_s7 = inlined_call_operand.vmem [shape: f32[4,256], index: 7, kind: input, shape index: {}, may-alias: {3,7,9}]   ;;  %s2924_s8 = inlined_call_operand.vmem [shape: f32[4,256], index: 8, kind: input, shape index: {}, may-alias: {2,6,8}]   ;;  %s2925_s9 = inlined_call_operand.vmem [shape: f32[4,256], index: 9, kind: input, shape index: {}, may-alias: {3,7,9}]   ;;  %s2926_s10 = inlined_call_operand.<no memory space> [shape: f32[1], index: 10, kind: input, shape index: {}]   ;;  %s2927_s11 = inlined_call_operand.vmem [shape: f32[16,8], index: 11, kind: input, shape index: {}]   ;;  %s2928_s12 = inlined_call_operand.vmem [shape: f32[16], index: 12, kind: input, shape index: {}]   ;;  %s2929_s13 = inlined_call_operand.vmem [shape: f32[4,16], index: 13, kind: input, shape index: {}]   ;;  %s2930_s14 = inlined_call_operand.vmem [shape: f32[4], index: 14, kind: input, shape index: {}]   ;;  %s2931_s15 = inlined_call_operand.vmem [shape: f32[4,256], index: 15, kind: output, shape index: {0}]   ;;  %s2932_s16 = inlined_call_operand.vmem [shape: f32[4,256], index: 16, kind: output, shape index: {1}]   ;;  %s2933_s17 = inlined_call_operand.vmem [shape: f32[4,256], index: 17, kind: output, shape index: {2}]   ;;  %s2934_s18 = inlined_call_operand.vmem [shape: f32[4,256], index: 18, kind: output, shape index: {3}]   ;;  %s2935_s19 = inlined_call_operand.vmem [shape: f32[4,2], index: 19, kind: output, shape index: {4}]  }
   0x1   :  { %3125 = sst [smem:[#allocation192_spill]] %s2916_s0 }
   0x2   :  { %3126 = sst [smem:[#allocation193_spill]] %s2917_s1 }
   0x3   :  { %3127 = sst [smem:[#allocation194_spill]] %s2918_s2 }
   0x4   :  { %3128 = sst [smem:[#allocation195_spill]] %s2919_s3 }
   0x5   :  { %3129 = sst [smem:[#allocation196_spill]] %s2920_s4 }
   0x6   :  { %3130 = sst [smem:[#allocation197_spill]] %s2921_s5 }
   0x7   :  { %3131 = sst [smem:[#allocation198_spill]] %s2922_s6 }
   0x8   :  { %3132 = sst [smem:[#allocation199_spill]] %s2923_s7 }
   0x9   :  { %3133 = sst [smem:[#allocation200_spill]] %s2924_s8 }
   0xa   :  { %3134 = sst [smem:[#allocation201_spill]] %s2925_s9 }
   0xb   :  { %3135 = sst [smem:[#allocation202_spill]] %s2926_s10 }
   0xc   :  { %3136 = sst [smem:[#allocation203_spill]] %s2931_s15 }
   0xd   :  { %3137 = sst [smem:[#allocation204_spill]] %s2932_s16 }
   0xe   :  { %3138 = sst [smem:[#allocation205_spill]] %s2933_s17 }
   0xf   :  { %3139 = sst [smem:[#allocation206_spill]] %s2934_s18 }
  0x10   :  { %3140 = sst [smem:[#allocation207_spill]] %s2935_s19 }
  0x11   :  { %26 = vsyncpa [#allocation4], 0 }
  0x12   :  { %27 = vsyncpa [#allocation6], 0  ;;  %s69_s20 = sshll.u32 %s2928_s12, 4  ;;  %s70_s20 = int_to_ptr.vmem [resolvable:$true] %s69_s20 }
  0x13   :  { %28 = vsyncpa [#allocation9], 0  ;;  %s56_s22 = sshll.u32 %s2927_s11, 4  ;;  %s1336_s2 = scalar_lea.vmem %s70_s20, 16  ;;  %s57_s22 = int_to_ptr.vmem [resolvable:$true] %s56_s22 }
  0x14   :  { %p1337_p0 = scmp.ne.s32.totalorder %s70_s20, %s1336_s2  ;;  %p1341_p1 = scmp.lt.s32.totalorder %s70_s20, %s70_s20 }
  0x15   :  { %p1342_p2 = scmp.lt.s32.totalorder %s1336_s2, %s1336_s2 }
  0x17   :  { %p1343_p3 = por %p1342_p2, %p1341_p1 }
  0x19   :  { %p1344_p4 = pnand %p1343_p3, %p1337_p0 }
  0x1b   :  { %1347 = shalt.err (!%p1344_p4)
}
  0x1c   :  { %s1390_s23 = smov [#allocation5]   ;;  %s1348_s24 = scalar_lea.vmem %s57_s22, 256 }
  0x1d   :  { %72 = dma.vmem_to_smem %s70_s20, 16, %s1390_s23, [#allocation6]  }
  0x1e   :  { %p1349_p5 = scmp.ne.s32.totalorder %s57_s22, %s1348_s24  ;;  %p1353_p6 = scmp.lt.s32.totalorder %s57_s22, %s57_s22 }
  0x1f   :  { %p1354_p7 = scmp.lt.s32.totalorder %s1348_s24, %s1348_s24 }
  0x21   :  { %p1355_p8 = por %p1354_p7, %p1353_p6 }
  0x23   :  { %p1356_p9 = pnand %p1355_p8, %p1349_p5 }
  0x25   :  { %1359 = shalt.err (!%p1356_p9)
}
  0x26   :  { %s1391_s12 = smov [#allocation3]   ;;  %s1392_s25 = smov 128  }
  0x27   :  { %s1393_s11 = smov 8   ;;  %s79_s27 = sshll.u32 %s2929_s13, 4  ;;  %s80_s27 = int_to_ptr.vmem [resolvable:$true] %s79_s27 }
  0x28   :  { %62 = dma.vmem_to_smem %s57_s22, 256, %s1391_s12, [#allocation4], %s1392_s25, %s1392_s25, %s1393_s11  }
  0x29   :  { %s89_s0 = sshll.u32 %s2930_s14, 4  ;;  %s1360_s30 = scalar_lea.vmem %s80_s27, 64  ;;  %s90_s0 = int_to_ptr.vmem [resolvable:$true] %s89_s0 }
  0x2a   :  { %p1361_p10 = scmp.ne.s32.totalorder %s80_s27, %s1360_s30  ;;  %p1365_p11 = scmp.lt.s32.totalorder %s80_s27, %s80_s27 }
  0x2b   :  { %p1366_p12 = scmp.lt.s32.totalorder %s1360_s30, %s1360_s30 }
  0x2d   :  { %p1367_p13 = por %p1366_p12, %p1365_p11 }
  0x2f   :  { %p1368_p0 = pnand %p1367_p13, %p1361_p10 }
  0x31   :  { %1371 = shalt.err (!%p1368_p0)
}
  0x32   :  { %s1394_s20 = smov [#allocation7]   ;;  %s1372_s21 = scalar_lea.vmem %s90_s0, 16 }
  0x33   :  { %82 = dma.vmem_to_smem %s80_s27, 64, %s1394_s20, [#allocation6]  }
  0x34   :  { %p1373_p1 = scmp.ne.s32.totalorder %s90_s0, %s1372_s21  ;;  %p1377_p2 = scmp.lt.s32.totalorder %s90_s0, %s90_s0 }
  0x35   :  { %p1378_p3 = scmp.lt.s32.totalorder %s1372_s21, %s1372_s21 }
  0x37   :  { %p1379_p4 = por %p1378_p3, %p1377_p2 }
  0x39   :  { %p1380_p5 = pnand %p1379_p4, %p1373_p1 }
  0x3b   :  { %1383 = shalt.err (!%p1380_p5)
}
  0x3c   :  { %s1395_s13 = smov [#allocation8]  }
  0x3d   :  { %92 = dma.vmem_to_smem %s90_s0, 16, %s1395_s13, [#allocation9]  }
  0x3e   :  { %1384 = dma.done.wait [#allocation4], 256  }
  0x3f   :  { %1385 = vsyncadd [#allocation4], 4294967040 }
  0x40   :  { %1386 = dma.done.wait [#allocation6], 80  }
  0x41   :  { %1387 = vsyncadd [#allocation6], 4294967216 }
  0x42   :  { %1388 = dma.done.wait [#allocation9], 16  }
  0x43   :  { %1389 = vsyncadd [#allocation9], 4294967280 }
  0x44   :  { %105 = sfence }
  0x45   :  { %s3141_s22 = sld [smem:[#allocation193_spill]]  ;;  %v1396_v1 = vmov 0   ;;  %s3142_s24 = sld [smem:[#allocation192_spill]]  ;;  %v1397_v3 = vmov 839922192   ;;  %v132_v5 = vlaneseq  ;;  %vm1018_vm0 = vcmask 1043456  }
  0x46   :  { %1333 = vset.pattern.permute.xlu0 %v1396_v1  ;;  %s1516_s12 = sld [smem:[#allocation3]]  ;;  %s1518_s25 = sld [smem:[#allocation3 + $0x1]]  ;;  %v130_v4 = vunpack.c.l.s4 %v1397_v3  ;;  %vm1090_vm1 = vcmask 3072   ;;  %vm1092_vm2 = vcmask 11272  }
  0x47   :  { %s1520_s11 = sld [smem:[#allocation3 + $0x2]]  ;;  %s1522_s3 = sld [smem:[#allocation3 + $0x3]]  ;;  %v133_v7 = vshrl.u32 %v132_v5, 7 }
  0x48   :  { %s1524_s26 = sld [smem:[#allocation3 + $0x4]]  ;;  %s1526_s27 = sld [smem:[#allocation3 + $0x5]]  ;;  %v131_v6 = vunpack.c.0.s8 %v130_v4 }
  0x49   :  { %s1528_s28 = sld [smem:[#allocation3 + $0x6]]  ;;  %s1530_s29 = sld [smem:[#allocation3 + $0x7]] }
  0x4a   :  { %s1532_s0 = sld [smem:[#allocation3 + $0x80]]  ;;  %s1534_s30 = sld [smem:[#allocation3 + $0x81]]  ;;  %v1724_v8 = vsub.s32 %v131_v6, %v133_v7 }
  0x4b   :  { %v119_v0 = vld [vmem:[%s3141_s22] sm:$0xf]  ;;  %s1536_s20 = sld [smem:[#allocation3 + $0x82]]  ;;  %s1538_s21 = sld [smem:[#allocation3 + $0x83]] }
  0x4c   :  { %122 = vperm.xlu0 %1333, %v119_v0   ;;  %v114_v2 = vld [vmem:[%s3142_s24] sm:$0xf]  ;;  %3143 = sst [smem:[#allocation13_spill]] %s1516_s12  ;;  %s1540_s13 = sld [smem:[#allocation3 + $0x84]]  ;;  %v163_v9 = vstv %s1516_s12  ;;  %v166_v10 = vstv %s1518_s25 }
  0x4d   :  { %3144 = sst [smem:[#allocation14_spill]] %s1518_s25  ;;  %s1542_s14 = sld [smem:[#allocation3 + $0x85]]  ;;  %v170_v11 = vstv %s1520_s11  ;;  %v174_v12 = vstv %s1522_s3 }
  0x4e   :  { %3145 = sst [smem:[#allocation15_spill]] %s1520_s11  ;;  %s1544_s1 = sld [smem:[#allocation3 + $0x86]]  ;;  %v178_v13 = vstv %s1524_s26  ;;  %v182_v14 = vstv %s1526_s27 }
  0x4f   :  { %3146 = sst [smem:[#allocation16_spill]] %s1522_s3  ;;  %s1546_s22 = sld [smem:[#allocation3 + $0x87]]  ;;  %v186_v15 = vstv %s1528_s28  ;;  %v190_v16 = vstv %s1530_s29 }
  0x50   :  { %117 = vperm.xlu0 %1333, %v114_v2   ;;  %3147 = sst [smem:[#allocation17_spill]] %s1524_s26  ;;  %s1548_s2 = sld [smem:[#allocation3 + $0x100]]  ;;  %v210_v17 = vstv %s1532_s0  ;;  %v213_v18 = vstv %s1534_s30 }
  0x51   :  { %3148 = sst [smem:[#allocation18_spill]] %s1526_s27  ;;  %s1550_s23 = sld [smem:[#allocation3 + $0x101]]  ;;  %v217_v19 = vstv %s1536_s20  ;;  %v221_v20 = vstv %s1538_s21 }
  0x52   :  { %3149 = sst [smem:[#allocation19_spill]] %s1528_s28  ;;  %s1552_s24 = sld [smem:[#allocation3 + $0x102]]  ;;  %v225_v21 = vstv %s1540_s13 }
  0x53   :  { %3150 = sst [smem:[#allocation20_spill]] %s1530_s29  ;;  %s1554_s19 = sld [smem:[#allocation3 + $0x103]]  ;;  %v229_v22 = vstv %s1542_s14 }
  0x54   :  { %3151 = sst [smem:[#allocation21_spill]] %s1532_s0  ;;  %s1556_s18 = sld [smem:[#allocation3 + $0x104]]  ;;  %v233_v23 = vstv %s1544_s1 }
  0x55   :  { %3152 = sst [smem:[#allocation22_spill]] %s1534_s30  ;;  %s1558_s17 = sld [smem:[#allocation3 + $0x105]]  ;;  %v237_v24 = vstv %s1546_s22 }
  0x56   :  { %3153 = sst [smem:[#allocation23_spill]] %s1536_s20  ;;  %s1560_s16 = sld [smem:[#allocation3 + $0x106]]  ;;  %v261_v25 = vstv %s1548_s2 }
  0x57   :  { %3154 = sst [smem:[#allocation24_spill]] %s1538_s21  ;;  %s1562_s15 = sld [smem:[#allocation3 + $0x107]]  ;;  %v264_v26 = vstv %s1550_s23 }
  0x58   :  { %3155 = sst [smem:[#allocation25_spill]] %s1540_s13  ;;  %s1564_s9 = sld [smem:[#allocation3 + $0x180]]  ;;  %v268_v27 = vstv %s1552_s24 }
  0x59   :  { %3156 = sst [smem:[#allocation26_spill]] %s1542_s14  ;;  %s1566_s7 = sld [smem:[#allocation3 + $0x181]]  ;;  %v272_v28 = vstv %s1554_s19 }
  0x5a   :  { %3157 = sst [smem:[#allocation27_spill]] %s1544_s1  ;;  %s1568_s5 = sld [smem:[#allocation3 + $0x182]] }
  0x5b   :  { %3158 = sst [smem:[#allocation28_spill]] %s1546_s22  ;;  %s1570_s6 = sld [smem:[#allocation3 + $0x183]] }
  0x5c   :  { %3159 = sst [smem:[#allocation29_spill]] %s1548_s2  ;;  %s1572_s10 = sld [smem:[#allocation3 + $0x184]] }
  0x5d   :  { %3160 = sst [smem:[#allocation30_spill]] %s1550_s23  ;;  %s1574_s8 = sld [smem:[#allocation3 + $0x185]] }
  0x5e   :  { %3161 = sst [smem:[#allocation31_spill]] %s1552_s24  ;;  %s1576_s4 = sld [smem:[#allocation3 + $0x186]] }
  0x5f   :  { %3162 = sst [smem:[#allocation32_spill]] %s1554_s19  ;;  %s1744_s25 = sld [smem:[#allocation3 + $0x584]] }
  0x60   :  { %3163 = sst [smem:[#allocation33_spill]] %s1556_s18  ;;  %s1578_s18 = sld [smem:[#allocation3 + $0x187]] }
  0x61   :  { %3164 = sst [smem:[#allocation34_spill]] %s1558_s17  ;;  %s1580_s17 = sld [smem:[#allocation5]] }
  0x62   :  { %3165 = sst [smem:[#allocation35_spill]] %s1560_s16  ;;  %s1582_s16 = sld [smem:[#allocation3 + $0x200]] }
  0x63   :  { %3166 = sst [smem:[#allocation36_spill]] %s1562_s15  ;;  %s1584_s15 = sld [smem:[#allocation3 + $0x201]] }
  0x64   :  { %3167 = sst [smem:[#allocation37_spill]] %s1564_s9  ;;  %s1586_s9 = sld [smem:[#allocation3 + $0x202]] }
  0x65   :  { %3168 = sst [smem:[#allocation38_spill]] %s1566_s7  ;;  %s1588_s7 = sld [smem:[#allocation3 + $0x203]] }
  0x66   :  { %3169 = sst [smem:[#allocation39_spill]] %s1568_s5  ;;  %s1590_s5 = sld [smem:[#allocation3 + $0x204]] }
  0x67   :  { %3170 = sst [smem:[#allocation40_spill]] %s1570_s6  ;;  %s1592_s6 = sld [smem:[#allocation5 + $0x1]] }
  0x68   :  { %3171 = sst [smem:[#allocation41_spill]] %s1572_s10  ;;  %s1594_s10 = sld [smem:[#allocation3 + $0x205]] }
  0x69   :  { %3172 = sst [smem:[#allocation42_spill]] %s1574_s8  ;;  %s1596_s8 = sld [smem:[#allocation7]] }
  0x6a   :  { %3173 = sst [smem:[#allocation43_spill]] %s1576_s4  ;;  %s3253_s3 = sld [smem:[#allocation33_spill]] }
  0x6b   :  { %3174 = sst [smem:[#allocation44_spill]] %s1578_s18  ;;  %s1598_s4 = sld [smem:[#allocation3 + $0x206]] }
  0x6c   :  { %3175 = sst [smem:[#allocation45_spill]] %s1580_s17  ;;  %s1600_s18 = sld [smem:[#allocation3 + $0x207]] }
  0x6d   :  { %3176 = sst [smem:[#allocation46_spill]] %s1582_s16  ;;  %s1602_s17 = sld [smem:[#allocation3 + $0x280]] }
  0x6e   :  { %3177 = sst [smem:[#allocation47_spill]] %s1584_s15  ;;  %s1606_s15 = sld [smem:[#allocation3 + $0x281]] }
  0x6f   :  { %3178 = sst [smem:[#allocation48_spill]] %s1586_s9  ;;  %s1604_s16 = sld [smem:[#allocation5 + $0x2]] }
  0x70   :  { %3179 = sst [smem:[#allocation49_spill]] %s1588_s7  ;;  %s1608_s9 = sld [smem:[#allocation7 + $0x1]]  ;;  %v276_v29 = vstv %s3253_s3 }
  0x71   :  { %3180 = sst [smem:[#allocation50_spill]] %s1590_s5  ;;  %s1610_s7 = sld [smem:[#allocation3 + $0x282]] }
  0x72   :  { %3181 = sst [smem:[#allocation51_spill]] %s1592_s6  ;;  %s1612_s5 = sld [smem:[#allocation3 + $0x283]] }
  0x73   :  { %3182 = sst [smem:[#allocation52_spill]] %s1594_s10  ;;  %s1614_s6 = sld [smem:[#allocation3 + $0x284]] }
  0x74   :  { %3183 = sst [smem:[#allocation53_spill]] %s1596_s8  ;;  %s1616_s10 = sld [smem:[#allocation5 + $0x3]] }
  0x75   :  { %3184 = sst [smem:[#allocation54_spill]] %s1598_s4  ;;  %s1618_s8 = sld [smem:[#allocation3 + $0x285]] }
  0x76   :  { %3185 = sst [smem:[#allocation55_spill]] %s1600_s18  ;;  %s1622_s18 = sld [smem:[#allocation3 + $0x286]] }
  0x77   :  { %3186 = sst [smem:[#allocation56_spill]] %s1602_s17  ;;  %s1620_s4 = sld [smem:[#allocation7 + $0x2]] }
  0x78   :  { %3187 = sst [smem:[#allocation57_spill]] %s1604_s16  ;;  %s1624_s17 = sld [smem:[#allocation3 + $0x287]] }
  0x79   :  { %3188 = sst [smem:[#allocation58_spill]] %s1606_s15  ;;  %s1626_s16 = sld [smem:[#allocation3 + $0x300]] }
  0x7a   :  { %3189 = sst [smem:[#allocation59_spill]] %s1608_s9  ;;  %s1628_s15 = sld [smem:[#allocation3 + $0x301]] }
  0x7b   :  { %3190 = sst [smem:[#allocation60_spill]] %s1610_s7  ;;  %s1630_s9 = sld [smem:[#allocation3 + $0x302]] }
  0x7c   :  { %3191 = sst [smem:[#allocation61_spill]] %s1612_s5  ;;  %s1632_s7 = sld [smem:[#allocation7 + $0x3]] }
  0x7d   :  { %3192 = sst [smem:[#allocation62_spill]] %s1614_s6  ;;  %s1634_s5 = sld [smem:[#allocation3 + $0x303]] }
  0x7e   :  { %3193 = sst [smem:[#allocation63_spill]] %s1616_s10  ;;  %s1636_s6 = sld [smem:[#allocation5 + $0x4]] }
  0x7f   :  { %3194 = sst [smem:[#allocation64_spill]] %s1618_s8  ;;  %s1638_s10 = sld [smem:[#allocation3 + $0x304]] }
  0x80   :  { %3195 = sst [smem:[#allocation65_spill]] %s1620_s4  ;;  %s1640_s8 = sld [smem:[#allocation3 + $0x305]] }
  0x81   :  { %3196 = sst [smem:[#allocation66_spill]] %s1622_s18  ;;  %s1642_s4 = sld [smem:[#allocation3 + $0x306]] }
  0x82   :  { %3197 = sst [smem:[#allocation67_spill]] %s1624_s17  ;;  %s1644_s18 = sld [smem:[#allocation3 + $0x307]] }
  0x83   :  { %3198 = sst [smem:[#allocation68_spill]] %s1626_s16  ;;  %s1646_s17 = sld [smem:[#allocation3 + $0x380]] }
  0x84   :  { %3199 = sst [smem:[#allocation69_spill]] %s1628_s15  ;;  %s1648_s16 = sld [smem:[#allocation3 + $0x381]] }
  0x85   :  { %3200 = sst [smem:[#allocation70_spill]] %s1630_s9  ;;  %s1650_s15 = sld [smem:[#allocation3 + $0x382]] }
  0x86   :  { %3201 = sst [smem:[#allocation71_spill]] %s1632_s7  ;;  %s1652_s9 = sld [smem:[#allocation7 + $0x4]] }
  0x87   :  { %3202 = sst [smem:[#allocation72_spill]] %s1634_s5  ;;  %s1656_s5 = sld [smem:[#allocation3 + $0x384]] }
  0x88   :  { %3203 = sst [smem:[#allocation73_spill]] %s1636_s6  ;;  %s1654_s7 = sld [smem:[#allocation3 + $0x383]] }
  0x89   :  { %3204 = sst [smem:[#allocation74_spill]] %s1638_s10  ;;  %s1660_s10 = sld [smem:[#allocation3 + $0x386]] }
  0x8a   :  { %3205 = sst [smem:[#allocation75_spill]] %s1640_s8  ;;  %s1658_s6 = sld [smem:[#allocation3 + $0x385]] }
  0x8b   :  { %3206 = sst [smem:[#allocation76_spill]] %s1642_s4  ;;  %s1664_s4 = sld [smem:[#allocation5 + $0x5]] }
  0x8c   :  { %3207 = sst [smem:[#allocation77_spill]] %s1644_s18  ;;  %s1662_s8 = sld [smem:[#allocation3 + $0x387]] }
  0x8d   :  { %3208 = sst [smem:[#allocation78_spill]] %s1646_s17  ;;  %s1666_s18 = sld [smem:[#allocation3 + $0x400]] }
  0x8e   :  { %3209 = sst [smem:[#allocation79_spill]] %s1648_s16  ;;  %s1668_s17 = sld [smem:[#allocation3 + $0x401]] }
  0x8f   :  { %3210 = sst [smem:[#allocation80_spill]] %s1650_s15  ;;  %s1670_s16 = sld [smem:[#allocation3 + $0x402]] }
  0x90   :  { %3211 = sst [smem:[#allocation81_spill]] %s1652_s9  ;;  %s1672_s15 = sld [smem:[#allocation3 + $0x403]] }
  0x91   :  { %3212 = sst [smem:[#allocation82_spill]] %s1654_s7  ;;  %s1674_s9 = sld [smem:[#allocation3 + $0x404]] }
  0x92   :  { %3213 = sst [smem:[#allocation83_spill]] %s1656_s5  ;;  %s1676_s7 = sld [smem:[#allocation7 + $0x5]] }
  0x93   :  { %3214 = sst [smem:[#allocation84_spill]] %s1658_s6  ;;  %s1678_s5 = sld [smem:[#allocation3 + $0x405]] }
  0x94   :  { %3215 = sst [smem:[#allocation85_spill]] %s1660_s10  ;;  %s1680_s6 = sld [smem:[#allocation3 + $0x406]] }
  0x95   :  { %3216 = sst [smem:[#allocation86_spill]] %s1662_s8  ;;  %s1682_s10 = sld [smem:[#allocation3 + $0x407]] }
  0x96   :  { %3217 = sst [smem:[#allocation87_spill]] %s1664_s4  ;;  %s1684_s8 = sld [smem:[#allocation3 + $0x480]] }
  0x97   :  { %3218 = sst [smem:[#allocation88_spill]] %s1666_s18  ;;  %s1686_s4 = sld [smem:[#allocation3 + $0x481]] }
  0x98   :  { %3219 = sst [smem:[#allocation89_spill]] %s1668_s17  ;;  %s1688_s18 = sld [smem:[#allocation5 + $0x6]] }
  0x99   :  { %3220 = sst [smem:[#allocation90_spill]] %s1670_s16  ;;  %s1690_s17 = sld [smem:[#allocation3 + $0x482]] }
  0x9a   :  { %3221 = sst [smem:[#allocation91_spill]] %s1672_s15  ;;  %s3254_s12 = sld [smem:[#allocation34_spill]] }
  0x9b   :  { %3222 = sst [smem:[#allocation92_spill]] %s1674_s9  ;;  %s1692_s9 = sld [smem:[#allocation3 + $0x483]] }
  0x9c   :  { %3223 = sst [smem:[#allocation93_spill]] %s1676_s7  ;;  %s1694_s7 = sld [smem:[#allocation3 + $0x484]] }
  0x9d   :  { %3224 = sst [smem:[#allocation94_spill]] %s1678_s5  ;;  %s1696_s5 = sld [smem:[#allocation3 + $0x485]] }
  0x9e   :  { %3225 = sst [smem:[#allocation95_spill]] %s1680_s6  ;;  %s1698_s6 = sld [smem:[#allocation3 + $0x486]] }
  0x9f   :  { %3226 = sst [smem:[#allocation96_spill]] %s1682_s10  ;;  %s1700_s10 = sld [smem:[#allocation3 + $0x487]] }
  0xa0   :  { %3227 = sst [smem:[#allocation97_spill]] %s1684_s8  ;;  %s1702_s8 = sld [smem:[#allocation3 + $0x500]]  ;;  %v280_v30 = vstv %s3254_s12 }
  0xa1   :  { %3228 = sst [smem:[#allocation98_spill]] %s1686_s4  ;;  %s1704_s4 = sld [smem:[#allocation7 + $0x6]] }
  0xa2   :  { %3229 = sst [smem:[#allocation99_spill]] %s1688_s18  ;;  %s1750_s11 = sld [smem:[#allocation7 + $0x8]] }
  0xa3   :  { %3230 = sst [smem:[#allocation100_spill]] %s1690_s17  ;;  %s3256_s26 = sld [smem:[#allocation35_spill]] }
  0xa4   :  { %3231 = sst [smem:[#allocation101_spill]] %s1692_s9  ;;  %s1706_s17 = sld [smem:[#allocation5 + $0x7]] }
  0xa5   :  { %3232 = sst [smem:[#allocation102_spill]] %s1694_s7  ;;  %s1710_s7 = sld [smem:[#allocation3 + $0x502]] }
  0xa6   :  { %3233 = sst [smem:[#allocation103_spill]] %s1696_s5  ;;  %s1708_s9 = sld [smem:[#allocation3 + $0x501]] }
  0xa7   :  { %3234 = sst [smem:[#allocation104_spill]] %s1698_s6  ;;  %s1722_s5 = sld [smem:[#allocation5 + $0x8]] }
  0xa8   :  { %3235 = sst [smem:[#allocation105_spill]] %s1700_s10  ;;  %s1712_s6 = sld [smem:[#allocation3 + $0x503]] }
  0xa9   :  { %3236 = sst [smem:[#allocation106_spill]] %s1702_s8  ;;  %s1714_s10 = sld [smem:[#allocation3 + $0x504]]  ;;  %v284_v31 = vstv %s3256_s26 }
  0xaa   :  { %3237 = sst [smem:[#allocation107_spill]] %s1704_s4  ;;  %s1716_s8 = sld [smem:[#allocation3 + $0x505]] }
  0xab   :  { %3238 = sst [smem:[#allocation108_spill]] %s1706_s17  ;;  %s1718_s4 = sld [smem:[#allocation3 + $0x506]] }
  0xac   :  { %3239 = sst [smem:[#allocation109_spill]] %s1708_s9  ;;  %s1720_s17 = sld [smem:[#allocation7 + $0x7]] }
  0xad   :  { %3240 = sst [smem:[#allocation110_spill]] %s1710_s7  ;;  %s1726_s7 = sld [smem:[#allocation3 + $0x507]] }
  0xae   :  { %3241 = sst [smem:[#allocation111_spill]] %s1712_s6  ;;  %s1728_s6 = sld [smem:[#allocation3 + $0x580]] }
  0xaf   :  { %3242 = sst [smem:[#allocation112_spill]] %s1714_s10  ;;  %s1752_s27 = sld [smem:[#allocation5 + $0x9]] }
  0xb0   :  { %3243 = sst [smem:[#allocation113_spill]] %s1716_s8  ;;  %s1736_s8 = sld [smem:[#allocation3 + $0x582]] }
  0xb1   :  { %3244 = sst [smem:[#allocation114_spill]] %s1718_s4  ;;  %s1734_s4 = sld [smem:[#allocation3 + $0x581]] }
  0xb2   :  { %3245 = sst [smem:[#allocation115_spill]] %s1720_s17  ;;  %s3258_s28 = sld [smem:[#allocation36_spill]] }
  0xb3   :  { %3246 = sst [smem:[#allocation116_spill]] %s1722_s5  ;;  %s3259_s29 = sld [smem:[#allocation37_spill]] }
  0xb4   :  { %3247 = sst [smem:[#allocation117_spill]] %s1726_s7  ;;  %s3262_s0 = sld [smem:[#allocation39_spill]] }
  0xb5   :  { %3248 = sst [smem:[#allocation118_spill]] %s1728_s6  ;;  %s1742_s6 = sld [smem:[#allocation3 + $0x583]] }
  0xb6   :  { %3250 = sst [smem:[#allocation120_spill]] %s1736_s8  ;;  %s1760_s30 = sld [smem:[#allocation3 + $0x586]] }
  0xb7   :  { %3249 = sst [smem:[#allocation119_spill]] %s1734_s4  ;;  %s3264_s20 = sld [smem:[#allocation40_spill]] }
  0xb8   :  { %3252 = sst [smem:[#allocation122_spill]] %s1744_s25  ;;  %s3265_s21 = sld [smem:[#allocation41_spill]]  ;;  %v288_v32 = vstv %s3258_s28 }
  0xb9   :  { %3255 = sst [smem:[#allocation123_spill]] %s1750_s11  ;;  %s1758_s25 = sld [smem:[#allocation3 + $0x585]]  ;;  %v312_v33 = vstv %s3259_s29 }
  0xba   :  { %3257 = sst [smem:[#allocation124_spill]] %s1752_s27  ;;  %s3266_s11 = sld [smem:[#allocation42_spill]]  ;;  %v319_v35 = vstv %s3262_s0 }
  0xbb   :  { %3251 = sst [smem:[#allocation121_spill]] %s1742_s6  ;;  %s3260_s6 = sld [smem:[#allocation38_spill]] }
  0xbc   :  { %3263 = sst [smem:[#allocation126_spill]] %s1760_s30  ;;  %s1766_s27 = sld [smem:[#allocation3 + $0x587]] }
  0xbd   :  { %s3268_s13 = sld [smem:[#allocation43_spill]]  ;;  %s1768_s14 = sld [smem:[#allocation3 + $0x600]]  ;;  %v323_v36 = vstv %s3264_s20 }
  0xbe   :  { %s3270_s1 = sld [smem:[#allocation44_spill]]  ;;  %s1774_s30 = sld [smem:[#allocation3 + $0x601]]  ;;  %v327_v37 = vstv %s3265_s21 }
  0xbf   :  { %3261 = sst [smem:[#allocation125_spill]] %s1758_s25  ;;  %s3272_s25 = sld [smem:[#allocation46_spill]] }
  0xc0   :  { %s3274_s2 = sld [smem:[#allocation47_spill]]  ;;  %s3276_s24 = sld [smem:[#allocation48_spill]]  ;;  %v331_v38 = vstv %s3266_s11 }
  0xc1   :  { %s1776_s23 = sld [smem:[#allocation3 + $0x602]]  ;;  %v315_v34 = vstv %s3260_s6  ;;  %s3280_s3 = sld [smem:[#allocation50_spill]] }
  0xc2   :  { %3267 = sst [smem:[#allocation127_spill]] %s1766_s27  ;;  %s3278_s27 = sld [smem:[#allocation49_spill]] }
  0xc3   :  { %3269 = sst [smem:[#allocation128_spill]] %s1768_s14  ;;  %s1782_s14 = sld [smem:[#allocation7 + $0x9]]  ;;  %v335_v39 = vstv %s3268_s13 }
  0xc4   :  { %3273 = sst [smem:[#allocation129_spill]] %s1774_s30  ;;  %s1784_s12 = sld [smem:[#allocation5 + $0xa]]  ;;  %v339_v40 = vstv %s3270_s1 }
  0xc5   :  { %s1792_s6 = sld [smem:[#allocation3 + $0x604]]  ;;  %v363_v42 = vstv %s3272_s25  ;;  %s1800_s11 = sld [smem:[#allocation3 + $0x606]] }
  0xc6   :  { %v366_v43 = vstv %s3274_s2  ;;  %v370_v44 = vstv %s3276_s24  ;;  %s1808_s25 = sld [smem:[#allocation3 + $0x680]]  ;;  %s1824_s30 = sld [smem:[#allocation3 + $0x683]] }
  0xc7   :  { %3275 = sst [smem:[#allocation130_spill]] %s1776_s23  ;;  %s1790_s23 = sld [smem:[#allocation3 + $0x603]]  ;;  %v378_v47 = vstv %s3280_s3 }
  0xc8   :  { %v374_v46 = vstv %s3278_s27  ;;  %s1816_s27 = sld [smem:[#allocation3 + $0x681]]  ;;  %s1904_s0 = sld [smem:[#allocation3 + $0x783]] }
  0xc9   :  { %3279 = sst [smem:[#allocation131_spill]] %s1782_s14  ;;  %s1832_s14 = sld [smem:[#allocation3 + $0x684]] }
  0xca   :  { %3281 = sst [smem:[#allocation132_spill]] %s1784_s12  ;;  %s1798_s12 = sld [smem:[#allocation3 + $0x605]] }
  0xcb   :  { %3287 = sst [smem:[#allocation134_spill]] %s1792_s6  ;;  %s1806_s6 = sld [smem:[#allocation3 + $0x607]]  ;;  %v2020_v61 = vpop.permute.xlu0 %122 }
  0xcc   :  { %3293 = sst [smem:[#allocation136_spill]] %s1800_s11  ;;  %s1814_s11 = sld [smem:[#allocation7 + $0xa]]  ;;  %v125_v63 = vmax.f32 %v2020_v61, 1e-12 }
  0xcd   :  { %3285 = sst [smem:[#allocation133_spill]] %s1790_s23  ;;  %s1840_s23 = sld [smem:[#allocation3 + $0x686]] }
  0xce   :  { %3299 = sst [smem:[#allocation138_spill]] %s1808_s25  ;;  %s1822_s25 = sld [smem:[#allocation3 + $0x682]]  ;;  %1334 = vrcp.f32 %v125_v63 }
  0xcf   :  { %3305 = sst [smem:[#allocation140_spill]] %s1816_s27  ;;  %s1830_s27 = sld [smem:[#allocation5 + $0xb]]  ;;  %v118_v3 = vpop.permute.xlu0 %117 }
  0xd0   :  { %3291 = sst [smem:[#allocation135_spill]] %s1798_s12  ;;  %s1848_s12 = sld [smem:[#allocation3 + $0x700]] }
  0xd1   :  { %3297 = sst [smem:[#allocation137_spill]] %s1806_s6  ;;  %s1856_s6 = sld [smem:[#allocation3 + $0x702]] }
  0xd2   :  { %3303 = sst [smem:[#allocation139_spill]] %s1814_s11  ;;  %s1864_s11 = sld [smem:[#allocation5 + $0xc]] }
  0xd3   :  { %3311 = sst [smem:[#allocation142_spill]] %s1824_s30  ;;  %s1838_s30 = sld [smem:[#allocation3 + $0x685]] }
  0xd4   :  { %3309 = sst [smem:[#allocation141_spill]] %s1822_s25  ;;  %s1872_s25 = sld [smem:[#allocation3 + $0x704]] }
  0xd5   :  { %3315 = sst [smem:[#allocation143_spill]] %s1830_s27  ;;  %s1880_s27 = sld [smem:[#allocation3 + $0x706]] }
  0xd6   :  { %3317 = sst [smem:[#allocation144_spill]] %s1832_s14  ;;  %s1846_s14 = sld [smem:[#allocation3 + $0x687]] }
  0xd7   :  { %3323 = sst [smem:[#allocation146_spill]] %s1840_s23  ;;  %s1854_s23 = sld [smem:[#allocation3 + $0x701]] }
  0xd8   :  { %3329 = sst [smem:[#allocation148_spill]] %s1848_s12  ;;  %s1862_s12 = sld [smem:[#allocation7 + $0xb]]  ;;  %v1335_v41 = vpop.eup %1334 }
  0xd9   :  { %3321 = sst [smem:[#allocation145_spill]] %s1838_s30  ;;  %s1888_s30 = sld [smem:[#allocation3 + $0x780]]  ;;  %v145_v49 = vrot.slane %v1335_v41, %v1724_v8 }
  0xda   :  { %3335 = sst [smem:[#allocation150_spill]] %s1856_s6  ;;  %s1870_s6 = sld [smem:[#allocation3 + $0x703]] }
  0xdb   :  { %3339 = sst [smem:[#allocation152_spill]] %s1864_s11  ;;  %s1896_s16 = sld [smem:[#allocation3 + $0x781]] }
  0xdc   :  { %3327 = sst [smem:[#allocation147_spill]] %s1846_s14  ;;  %s1910_s1 = sld [smem:[#allocation5 + $0xd]] }
  0xdd   :  { %3333 = sst [smem:[#allocation149_spill]] %s1854_s23  ;;  %s1878_s23 = sld [smem:[#allocation3 + $0x705]] }
  0xde   :  { %3338 = sst [smem:[#allocation151_spill]] %s1862_s12  ;;  %s1912_s18 = sld [smem:[#allocation3 + $0x784]] }
  0xdf   :  { %3345 = sst [smem:[#allocation154_spill]] %s1872_s25  ;;  %s1886_s25 = sld [smem:[#allocation3 + $0x707]] }
  0xe0   :  { %3343 = sst [smem:[#allocation153_spill]] %s1870_s6  ;;  %s1918_s22 = sld [smem:[#allocation3 + $0x785]] }
  0xe1   :  { %3350 = sst [smem:[#allocation156_spill]] %s1880_s27  ;;  %s1894_s27 = sld [smem:[#allocation7 + $0xc]] }
  0xe2   :  { %3356 = sst [smem:[#allocation158_spill]] %s1888_s30  ;;  %s1902_s30 = sld [smem:[#allocation3 + $0x782]] }
  0xe3   :  { %3348 = sst [smem:[#allocation155_spill]] %s1878_s23  ;;  %s1926_s19 = sld [smem:[#allocation7 + $0xd]] }
  0xe4   :  { %3362 = sst [smem:[#allocation160_spill]] %s1896_s16  ;;  %s1920_s6 = sld [smem:[#allocation3 + $0x786]] }
  0xe5   :  { %3354 = sst [smem:[#allocation157_spill]] %s1886_s25  ;;  %s1928_s23 = sld [smem:[#allocation3 + $0x787]] }
  0xe6   :  { %3367 = sst [smem:[#allocation162_spill]] %s1904_s0  ;;  %s1936_s20 = sld [smem:[#allocation7 + $0xe]] }
  0xe7   :  { %3360 = sst [smem:[#allocation159_spill]] %s1894_s27  ;;  %s1944_s5 = sld [smem:[#allocation7 + $0xf]] }
  0xe8   :  { %3365 = sst [smem:[#allocation161_spill]] %s1902_s30  ;;  %s1952_s24 = sld [smem:[#allocation7 + $0x101]] }
  0xe9   :  { %3368 = sst [smem:[#allocation163_spill]] %s1910_s1  ;;  %s1960_s3 = sld [smem:[#allocation7 + $0x103]] }
  0xea   :  { %3370 = sst [smem:[#allocation164_spill]] %s1912_s18  ;;  %s1982_s13 = sld [smem:[#allocation8]] }
  0xeb   :  { %3373 = sst [smem:[#allocation165_spill]] %s1918_s22  ;;  %s1968_s22 = sld [smem:[#allocation7 + $0x105]] }
  0xec   :  { %3374 = sst [smem:[#allocation166_spill]] %s1920_s6  ;;  %s1934_s6 = sld [smem:[#allocation5 + $0xe]] }
  0xed   :  { %3377 = sst [smem:[#allocation167_spill]] %s1926_s19  ;;  %s1976_s10 = sld [smem:[#allocation7 + $0x107]] }
  0xee   :  { %3379 = sst [smem:[#allocation168_spill]] %s1928_s23  ;;  %s1942_s23 = sld [smem:[#allocation5 + $0xf]] }
  0xef   :  { %3385 = sst [smem:[#allocation170_spill]] %s1936_s20  ;;  %s1950_s20 = sld [smem:[#allocation7 + $0x100]] }
  0xf0   :  { %3391 = sst [smem:[#allocation172_spill]] %s1944_s5  ;;  %s1958_s5 = sld [smem:[#allocation7 + $0x102]] }
  0xf1   :  { %3397 = sst [smem:[#allocation174_spill]] %s1952_s24  ;;  %s1966_s24 = sld [smem:[#allocation7 + $0x104]] }
  0xf2   :  { %3383 = sst [smem:[#allocation169_spill]] %s1934_s6  ;;  %s1984_s17 = sld [smem:[#allocation7 + $0x108]] }
  0xf3   :  { %3403 = sst [smem:[#allocation176_spill]] %s1960_s3  ;;  %s1974_s3 = sld [smem:[#allocation7 + $0x106]] }
  0xf4   :  { %3389 = sst [smem:[#allocation171_spill]] %s1942_s23  ;;  %s1990_s6 = sld [smem:[#allocation7 + $0x109]] }
  0xf5   :  { %3395 = sst [smem:[#allocation173_spill]] %s1950_s20  ;;  %s1992_s2 = sld [smem:[#allocation7 + $0x10a]] }
  0xf6   :  { %3401 = sst [smem:[#allocation175_spill]] %s1958_s5  ;;  %s2000_s29 = sld [smem:[#allocation7 + $0x10c]] }
  0xf7   :  { %3407 = sst [smem:[#allocation177_spill]] %s1966_s24  ;;  %s2016_s5 = sld [smem:[#allocation7 + $0x10d]] }
  0xf8   :  { %3409 = sst [smem:[#allocation178_spill]] %s1968_s22  ;;  %s3427_s15 = sld [smem:[#allocation196_spill]] }
  0xf9   :  { %3413 = sst [smem:[#allocation179_spill]] %s1976_s10  ;;  %s2028_s9 = sld [smem:[#allocation7 + $0x80]] }
  0xfa   :  { %3415 = sst [smem:[#allocation180_spill]] %s1982_s13  ;;  %s2018_s21 = sld [smem:[#allocation7 + $0x10e]] }
  0xfb   :  { %3416 = sst [smem:[#allocation181_spill]] %s1984_s17  ;;  %s1998_s17 = sld [smem:[#allocation7 + $0x10b]] }
  0xfc   :  { %3419 = sst [smem:[#allocation182_spill]] %s1990_s6  ;;  %s2026_s6 = sld [smem:[#allocation7 + $0x10f]] }
  0xfd   :  { %3420 = sst [smem:[#allocation183_spill]] %s1992_s2  ;;  %s3428_s2 = sld [smem:[#allocation200_spill]] }
  0xfe   :  { %3426 = sst [smem:[#allocation185_spill]] %s2000_s29  ;;  %v2005_v62 = vld [vmem:[%s3427_s15] sm:$0xff]  ;;  %s2034_s20 = sld [smem:[#allocation7 + $0x81]] }
  0xff   :  { %3430 = sst [smem:[#allocation186_spill]] %s2016_s5  ;;  %s2036_s12 = sld [smem:[#allocation7 + $0x82]]  ;;  %v201_v57 = vstv %s2028_s9 }
 0x100   :  { %3431 = sst [smem:[#allocation187_spill]] %s2018_s21  ;;  %s2043_s23 = sld [smem:[#allocation7 + $0x83]] }
 0x101   :  { %3425 = sst [smem:[#allocation184_spill]] %s1998_s17  ;;  %s2045_s25 = sld [smem:[#allocation7 + $0x84]] }
 0x102   :  { %3432 = sst [smem:[#allocation188_spill]] %s2026_s6  ;;  %s3443_s7 = sld [smem:[#allocation202_spill]] }
 0x103   :  { %v2010_v5 = vld [vmem:[%s3428_s2] sm:$0xff]  ;;  %s2052_s30 = sld [smem:[#allocation7 + $0x85]]  ;;  %s3444_s0 = sld [smem:[#allocation173_spill]] }
 0x104   :  { %v1002_v4 = vsub.f32 %v2005_v62, %v2010_v5  ;;  %s2054_s16 = sld [smem:[#allocation7 + $0x86]]  ;;  %s3446_s19 = sld [smem:[#allocation174_spill]]  ;;  %v249_v60 = vstv %s2034_s20 }
 0x105   :  { %3436 = sst [smem:[#allocation189_spill]] %s2036_s12  ;;  %s3447_s12 = sld [smem:[#allocation175_spill]] }
 0x106   :  { %3440 = sst [smem:[#allocation190_spill]] %s2043_s23  ;;  %s2060_s1 = sld [smem:[#allocation7 + $0x87]] }
 0x107   :  { %s2062_s18 = sld [smem:[#allocation7 + $0x88]]  ;;  %s3451_s4 = sld [smem:[#allocation179_spill]] }
 0x108   :  { %v3109_v2 = vstv %s3443_s7  ;;  %s2070_s15 = sld [smem:[#allocation7 + $0x8a]]  ;;  %s3457_s11 = sld [smem:[#allocation198_spill]] }
 0x109   :  { %v2076_v0 = vmul.f32 %v3109_v2, %v1002_v4  ;;  %s3456_s26 = sld [smem:[#allocation183_spill]]  ;;  %s3458_s7 = sld [smem:[#allocation195_spill]]  ;;  %v2106_v4 = vrot.slane %v118_v3, %v1724_v8 }
 0x10a   :  { %3445 = sst [smem:[#allocation173_spill]] %s2054_s16  ;;  %s2068_s16 = sld [smem:[#allocation7 + $0x89]] }
 0x10b   :  { %s3459_s22 = sld [smem:[#allocation197_spill]]  ;;  %s3460_s14 = sld [smem:[#allocation199_spill]]  ;;  %v148_v41 = vsub.f32 %v2005_v62, %v2106_v4  ;;  %v152_v55 = vsub.f32 %v2010_v5, %v2106_v4 }
 0x10c   :  { %3449 = sst [smem:[#allocation174_spill]] %s2060_s1  ;;  %s3461_s13 = sld [smem:[#allocation189_spill]] }
 0x10d   :  { %3450 = sst [smem:[#allocation175_spill]] %s2062_s18  ;;  %s2116_s23 = sld [smem:[#allocation7 + $0x8b]]  ;;  %v2170_v58 = vmul.f32 %v148_v41, %v145_v49  ;;  %v2172_v5 = vmul.f32 %v152_v55, %v145_v49 }
 0x10e   :  { %3455 = sst [smem:[#allocation191_spill]] %s2070_s15  ;;  %v110_v53 = vld [vmem:[%s3457_s11] sm:$0xff]  ;;  %s3465_s27 = sld [smem:[#allocation201_spill]] }
 0x10f   :  { %v2095_v7 = vld [vmem:[%s3458_s7] sm:$0xff]  ;;  %s3462_s28 = sld [smem:[#allocation194_spill]]  ;;  %s3463_s7 = sld [smem:[#allocation190_spill]]  ;;  %v150_v6 = vsub.f32 %v110_v53, %v2106_v4  ;;  %v175_v55 = vmul.f32 %v174_v12, %v2172_v5  ;;  %v222_v12 = vmul.f32 %v221_v20, %v2172_v5 }
 0x110   :  { %3454 = sst [smem:[#allocation179_spill]] %s2068_s16  ;;  %s2128_s10 = sld [smem:[#allocation7 + $0x8c]]  ;;  %v154_v52 = vsub.f32 %v2095_v7, %v2106_v4 }
 0x111   :  { %v2100_v59 = vld [vmem:[%s3459_s22] sm:$0xff]  ;;  %s2130_s8 = sld [smem:[#allocation7 + $0x8d]]  ;;  %v2158_v63 = vmul.f32 %v150_v6, %v145_v49  ;;  %s3504_s24 = sld [smem:[#allocation56_spill]] }
 0x112   :  { %v111_v51 = vld [vmem:[%s3460_s14] sm:$0xff]  ;;  %v156_v54 = vsub.f32 %v2100_v59, %v2106_v4  ;;  %s3505_s6 = sld [smem:[#allocation58_spill]]  ;;  %s3506_s2 = sld [smem:[#allocation45_spill]] }
 0x113   :  { %v158_v45 = vsub.f32 %v111_v51, %v2106_v4  ;;  %v2160_v51 = vmul.f32 %v154_v52, %v145_v49  ;;  %v171_v52 = vmul.f32 %v170_v11, %v2158_v63  ;;  %s3507_s16 = sld [smem:[#allocation52_spill]]  ;;  %s3508_s21 = sld [smem:[#allocation51_spill]] }
 0x114   :  { %v2121_v3 = vld [vmem:[%s3465_s27] sm:$0xff]  ;;  %v2162_v48 = vmul.f32 %v156_v54, %v145_v49  ;;  %v759_v54 = vstv %s2116_s23  ;;  %s3509_s5 = sld [smem:[#allocation60_spill]]  ;;  %s3512_s18 = sld [smem:[#allocation54_spill]] }
 0x115   :  { %v2111_v2 = vld [vmem:[%s3462_s28] sm:$0xff]  ;;  %v160_v53 = vsub.f32 %v2121_v3, %v2106_v4  ;;  %v2164_v56 = vmul.f32 %v158_v45, %v145_v49  ;;  %s2294_s17 = sld [smem:[#allocation7 + $0x8e]]  ;;  %s3513_s29 = sld [smem:[#allocation57_spill]] }
 0x116   :  { %3466 = sst [smem:[#allocation183_spill]] %s2128_s10  ;;  %v137_v1 = vsub.f32 %v2111_v2, %v2106_v4  ;;  %v810_v6 = vstv %s2128_s10  ;;  %v183_v11 = vmul.f32 %v182_v14, %v2162_v48  ;;  %v218_v14 = vmul.f32 %v217_v19, %v2158_v63  ;;  %s2296_s1 = sld [smem:[#allocation7 + $0x8f]] }
 0x117   :  { %v2166_v50 = vmul.f32 %v160_v53, %v145_v49  ;;  %v167_v53 = vmul.f32 %v166_v10, %v2170_v58  ;;  %v187_v41 = vmul.f32 %v186_v15, %v2164_v56  ;;  %v214_v10 = vmul.f32 %v213_v18, %v2170_v58  ;;  %s3516_s15 = sld [smem:[#allocation61_spill]]  ;;  %s3520_s10 = sld [smem:[#allocation55_spill]] }
 0x118   :  { %v2168_v62 = vmul.f32 %v145_v49, %v137_v1  ;;  %v179_v49 = vmul.f32 %v178_v13, %v2160_v51  ;;  %v230_v19 = vmul.f32 %v229_v22, %v2162_v48  ;;  %v234_v20 = vmul.f32 %v233_v23, %v2164_v56  ;;  %s3517_s22 = sld [smem:[#allocation53_spill]]  ;;  %s3522_s27 = sld [smem:[#allocation59_spill]] }
 0x119   :  { %v191_v45 = vmul.f32 %v190_v16, %v2166_v50  ;;  %v265_v16 = vmul.f32 %v264_v26, %v2170_v58  ;;  %v273_v26 = vmul.f32 %v272_v28, %v2172_v5  ;;  %v277_v22 = vmul.f32 %v276_v29, %v2160_v51  ;;  %s2308_s11 = sld [smem:[#allocation7 + $0x180]]  ;;  %s3523_s14 = sld [smem:[#allocation62_spill]] }
 0x11a   :  { %v164_v1 = vmul.f32 %v163_v9, %v2168_v62  ;;  %v211_v9 = vmul.f32 %v210_v17, %v2168_v62  ;;  %v226_v17 = vmul.f32 %v225_v21, %v2160_v51  ;;  %v262_v18 = vmul.f32 %v261_v25, %v2168_v62  ;;  %s3524_s28 = sld [smem:[#allocation63_spill]]  ;;  %s2718_s9 = sld [smem:[#allocation7 + $0x189]] }
 0x11b   :  { %v269_v25 = vmul.f32 %v268_v27, %v2158_v63  ;;  %v313_v23 = vmul.f32 %v312_v33, %v2168_v62  ;;  %v281_v27 = vmul.f32 %v280_v30, %v2162_v48  ;;  %v285_v28 = vmul.f32 %v284_v31, %v2164_v56  ;;  %s3758_s20 = sld [smem:[#allocation181_spill]]  ;;  %s2837_s23 = sld [smem:[#allocation7 + $0x18c]] }
 0x11c   :  { %v168_v13 = vadd.f32 %v167_v53, %v164_v1  ;;  %v215_v15 = vadd.f32 %v214_v10, %v211_v9  ;;  %v238_v53 = vmul.f32 %v237_v24, %v2166_v50  ;;  %v266_v9 = vadd.f32 %v265_v16, %v262_v18  ;;  %3514 = sst [smem:[#allocation189_spill]] %s2296_s1 }
 0x11d   :  { %v316_v24 = vmul.f32 %v315_v34, %v2170_v58  ;;  %v289_v29 = vmul.f32 %v288_v32, %v2166_v50  ;;  %v328_v30 = vmul.f32 %v327_v37, %v2160_v51  ;;  %v364_v32 = vmul.f32 %v363_v42, %v2168_v62 }
 0x11e   :  { %v172_v1 = vadd.f32 %v171_v52, %v168_v13  ;;  %v219_v21 = vadd.f32 %v218_v14, %v215_v15  ;;  %v270_v13 = vadd.f32 %v269_v25, %v266_v9  ;;  %v320_v14 = vmul.f32 %v319_v35, %v2158_v63 }
 0x11f   :  { %v317_v33 = vadd.f32 %v316_v24, %v313_v23  ;;  %v324_v15 = vmul.f32 %v323_v36, %v2172_v5  ;;  %v367_v18 = vmul.f32 %v366_v43, %v2170_v58  ;;  %v332_v16 = vmul.f32 %v331_v38, %v2162_v48 }
 0x120   :  { %v176_v52 = vadd.f32 %v175_v55, %v172_v1  ;;  %v223_v10 = vadd.f32 %v222_v12, %v219_v21  ;;  %v274_v12 = vadd.f32 %v273_v26, %v270_v13  ;;  %v336_v36 = vmul.f32 %v335_v39, %v2164_v56 }
 0x121   :  { %v368_v1 = vadd.f32 %v367_v18, %v364_v32  ;;  %v371_v42 = vmul.f32 %v370_v44, %v2158_v63  ;;  %v375_v38 = vmul.f32 %v374_v46, %v2172_v5  ;;  %v379_v25 = vmul.f32 %v378_v47, %v2160_v51 }
 0x122   :  { %v180_v55 = vadd.f32 %v179_v49, %v176_v52  ;;  %v227_v34 = vadd.f32 %v226_v17, %v223_v10  ;;  %v321_v49 = vadd.f32 %v320_v14, %v317_v33  ;;  %v278_v17 = vadd.f32 %v277_v22, %v274_v12 }
 0x123   :  { %v3510_v44 = vstv %s3504_s24  ;;  %v3511_v22 = vstv %s3505_s6  ;;  %v3515_v46 = vstv %s3506_s2  ;;  %v3519_v10 = vstv %s3508_s21  ;;  %s3526_s24 = sld [smem:[#allocation68_spill]]  ;;  %s3528_s6 = sld [smem:[#allocation69_spill]] }
 0x124   :  { %v184_v31 = vadd.f32 %v183_v11, %v180_v55  ;;  %v231_v35 = vadd.f32 %v230_v19, %v227_v34  ;;  %v325_v11 = vadd.f32 %v324_v15, %v321_v49  ;;  %v282_v43 = vadd.f32 %v281_v27, %v278_v17  ;;  %s3530_s2 = sld [smem:[#allocation64_spill]]  ;;  %s3534_s21 = sld [smem:[#allocation70_spill]] }
 0x125   :  { %v340_v19 = vmul.f32 %v339_v40, %v2166_v50  ;;  %v418_v40 = vmul.f32 %v3511_v22, %v2170_v58  ;;  %v3521_v55 = vstv %s3509_s5  ;;  %v3525_v15 = vstv %s3512_s18  ;;  %s3535_s5 = sld [smem:[#allocation65_spill]]  ;;  %s3537_s18 = sld [smem:[#allocation66_spill]] }
 0x126   :  { %v188_v37 = vadd.f32 %v187_v41, %v184_v31  ;;  %v235_v21 = vadd.f32 %v234_v20, %v231_v35  ;;  %v329_v39 = vadd.f32 %v328_v30, %v325_v11  ;;  %v372_v41 = vadd.f32 %v371_v42, %v368_v1 }
 0x127   :  { %v286_v52 = vadd.f32 %v285_v28, %v282_v43  ;;  %v415_v20 = vmul.f32 %v3510_v44, %v2168_v62  ;;  %v422_v33 = vmul.f32 %v3521_v55, %v2158_v63  ;;  %v387_v30 = vmul.f32 %v3525_v15, %v2164_v56 }
 0x128   :  { %v192_v9 = vadd.f32 %v191_v45, %v188_v37  ;;  %v239_v26 = vadd.f32 %v238_v53, %v235_v21  ;;  %v333_v23 = vadd.f32 %v332_v16, %v329_v39  ;;  %v376_v47 = vadd.f32 %v375_v38, %v372_v41 }
 0x129   :  { %v3518_v53 = vstv %s3507_s16  ;;  %v290_v27 = vadd.f32 %v289_v29, %v286_v52  ;;  %v419_v28 = vadd.f32 %v418_v40, %v415_v20  ;;  %v3527_v29 = vstv %s3513_s29  ;;  %s2328_s16 = sld [smem:[#allocation7 + $0x181]]  ;;  %s3540_s29 = sld [smem:[#allocation73_spill]] }
 0x12a   :  { %v195_v45 = vadd.f32 %v3515_v46, %v192_v9  ;;  %v383_v24 = vmul.f32 %v3518_v53, %v2162_v48  ;;  %v242_v13 = vadd.f32 %v3519_v10, %v239_v26  ;;  %v337_v34 = vadd.f32 %v336_v36, %v333_v23 }
 0x12b   :  { %v380_v12 = vadd.f32 %v379_v25, %v376_v47  ;;  %v293_v49 = vadd.f32 %v3527_v29, %v290_v27  ;;  %v423_v32 = vadd.f32 %v422_v33, %v419_v28  ;;  %v3529_v18 = vstv %s3516_s15  ;;  %s3542_s15 = sld [smem:[#allocation72_spill]] }
 0x12c   :  { %v2310_v14 = vmax.f32 %v195_v45, 0.0  ;;  %v2315_v31 = vmax.f32 %v242_v13, 0.0  ;;  %v426_v35 = vmul.f32 %v3529_v18, %v2172_v5  ;;  %v3531_v17 = vstv %s3517_s22  ;;  %s3544_s22 = sld [smem:[#allocation67_spill]] }
 0x12d   :  { %v341_v36 = vadd.f32 %v340_v19, %v337_v34  ;;  %v384_v37 = vadd.f32 %v383_v24, %v380_v12  ;;  %v3532_v11 = vstv %s3520_s10  ;;  %v3533_v42 = vstv %s3522_s27  ;;  %s3545_s10 = sld [smem:[#allocation78_spill]]  ;;  %s3546_s27 = sld [smem:[#allocation79_spill]] }
 0x12e   :  { %v199_v16 = vmul.f32 %v3531_v17, %v2310_v14  ;;  %v391_v1 = vmul.f32 %v3532_v11, %v2166_v50  ;;  %v246_v21 = vmul.f32 %v3533_v42, %v2315_v31  ;;  %v2333_v43 = vmax.f32 %v293_v49, 0.0 }
 0x12f   :  { %v427_v38 = vadd.f32 %v426_v35, %v423_v32  ;;  %v3536_v9 = vstv %s3523_s14  ;;  %v3538_v41 = vstv %s3524_s28  ;;  %v388_v25 = vadd.f32 %v387_v30, %v384_v37  ;;  %s3548_s14 = sld [smem:[#allocation74_spill]]  ;;  %s3551_s28 = sld [smem:[#allocation80_spill]] }
 0x130   :  { %v430_v39 = vmul.f32 %v3536_v9, %v2160_v51  ;;  %v344_v19 = vadd.f32 %v3538_v41, %v341_v36  ;;  %v3539_v26 = vstv %s3526_s24  ;;  %v3541_v44 = vstv %s3528_s6  ;;  %s3553_s24 = sld [smem:[#allocation71_spill]]  ;;  %s3555_s6 = sld [smem:[#allocation75_spill]] }
 0x131   :  { %v466_v52 = vmul.f32 %v3539_v26, %v2168_v62  ;;  %v469_v20 = vmul.f32 %v3541_v44, %v2170_v58  ;;  %v3543_v40 = vstv %s3530_s2  ;;  %v912_v45 = vstv %s2294_s17  ;;  %s3556_s2 = sld [smem:[#allocation76_spill]]  ;;  %s1324_s17 = sld [smem:[#allocation8 + $0x3]] }
 0x132   :  { %v431_v22 = vadd.f32 %v430_v39, %v427_v38  ;;  %v434_v46 = vmul.f32 %v3543_v40, %v2162_v48  ;;  %v963_v23 = vstv %s2296_s1  ;;  %v247_v47 = vadd.f32 %v246_v21, %v199_v16  ;;  %s3575_s1 = sld [smem:[#allocation90_spill]] }
 0x133   :  { %v392_v53 = vadd.f32 %v391_v1, %v388_v25  ;;  %v470_v24 = vadd.f32 %v469_v20, %v466_v52  ;;  %v3547_v10 = vstv %s3534_s21  ;;  %v3549_v27 = vstv %s3535_s5  ;;  %s3558_s21 = sld [smem:[#allocation87_spill]]  ;;  %s3561_s5 = sld [smem:[#allocation82_spill]] }
 0x134   :  { %v473_v13 = vmul.f32 %v3547_v10, %v2158_v63  ;;  %v297_v28 = vmul.f32 %v3549_v27, %v2333_v43  ;;  %v435_v55 = vadd.f32 %v434_v46, %v431_v22  ;;  %v3550_v33 = vstv %s3537_s18  ;;  %s3562_s18 = sld [smem:[#allocation88_spill]] }
 0x135   :  { %v438_v34 = vmul.f32 %v3550_v33, %v2164_v56  ;;  %v207_v12 = vstv %s2308_s11  ;;  %v2361_v15 = vmax.f32 %v344_v19, 0.0  ;;  %v3552_v30 = vstv %s3540_s29  ;;  %s3564_s29 = sld [smem:[#allocation77_spill]]  ;;  %s3784_s11 = sld [smem:[#allocation179_spill]] }
 0x136   :  { %v395_v29 = vadd.f32 %v3552_v30, %v392_v53  ;;  %v474_v49 = vadd.f32 %v473_v13, %v470_v24  ;;  %v3554_v32 = vstv %s3542_s15  ;;  %v3557_v17 = vstv %s3544_s22  ;;  %s3565_s15 = sld [smem:[#allocation89_spill]] }
 0x137   :  { %v477_v18 = vmul.f32 %v3554_v32, %v2172_v5  ;;  %v439_v35 = vadd.f32 %v438_v34, %v435_v55  ;;  %v442_v16 = vmul.f32 %v3557_v17, %v2166_v50  ;;  %v3559_v36 = vstv %s3545_s10  ;;  %s3566_s22 = sld [smem:[#allocation81_spill]]  ;;  %s3568_s10 = sld [smem:[#allocation83_spill]] }
 0x138   :  { %v517_v37 = vmul.f32 %v3559_v36, %v2168_v62  ;;  %v3560_v11 = vstv %s3546_s27  ;;  %v298_v42 = vadd.f32 %v297_v28, %v247_v47  ;;  %v3563_v38 = vstv %s3548_s14  ;;  %s3570_s27 = sld [smem:[#allocation84_spill]]  ;;  %s3572_s14 = sld [smem:[#allocation85_spill]] }
 0x139   :  { %v520_v1 = vmul.f32 %v3560_v11, %v2170_v58  ;;  %v478_v21 = vadd.f32 %v477_v18, %v474_v49  ;;  %v481_v9 = vmul.f32 %v3563_v38, %v2160_v51  ;;  %v257_v39 = vstv %s2328_s16  ;;  %s3786_s16 = sld [smem:[#allocation187_spill]] }
 0x13a   :  { %v2381_v41 = vmax.f32 %v395_v29, 0.0  ;;  %v443_v19 = vadd.f32 %v442_v16, %v439_v35  ;;  %v3567_v26 = vstv %s3551_s28  ;;  %v3569_v44 = vstv %s3553_s24  ;;  %s3578_s28 = sld [smem:[#allocation86_spill]]  ;;  %s3579_s24 = sld [smem:[#allocation97_spill]] }
 0x13b   :  { %v521_v25 = vadd.f32 %v520_v1, %v517_v37  ;;  %v524_v52 = vmul.f32 %v3567_v26, %v2158_v63  ;;  %v348_v20 = vmul.f32 %v3569_v44, %v2361_v15  ;;  %v482_v22 = vadd.f32 %v481_v9, %v478_v21 }
 0x13c   :  { %v3571_v40 = vstv %s3555_s6  ;;  %v3573_v47 = vstv %s3556_s2  ;;  %v3574_v24 = vstv %s3558_s21  ;;  %v3576_v27 = vstv %s3561_s5  ;;  %s3582_s6 = sld [smem:[#allocation91_spill]]  ;;  %s3584_s2 = sld [smem:[#allocation98_spill]] }
 0x13d   :  { %v485_v46 = vmul.f32 %v3571_v40, %v2162_v48  ;;  %v489_v53 = vmul.f32 %v3573_v47, %v2164_v56  ;;  %v446_v10 = vadd.f32 %v3574_v24, %v443_v19  ;;  %v525_v13 = vadd.f32 %v524_v52, %v521_v25  ;;  %s3587_s21 = sld [smem:[#allocation92_spill]]  ;;  %s3588_s5 = sld [smem:[#allocation94_spill]] }
 0x13e   :  { %v528_v28 = vmul.f32 %v3576_v27, %v2172_v5  ;;  %v3577_v55 = vstv %s3562_s18  ;;  %v349_v34 = vadd.f32 %v348_v20, %v298_v42  ;;  %v3580_v29 = vstv %s3564_s29  ;;  %s3590_s18 = sld [smem:[#allocation99_spill]]  ;;  %s3592_s29 = sld [smem:[#allocation100_spill]] }
 0x13f   :  { %v568_v33 = vmul.f32 %v3577_v55, %v2168_v62  ;;  %v486_v30 = vadd.f32 %v485_v46, %v482_v22  ;;  %v493_v49 = vmul.f32 %v3580_v29, %v2166_v50  ;;  %v3581_v32 = vstv %s3565_s15  ;;  %s3593_s15 = sld [smem:[#allocation93_spill]] }
 0x140   :  { %v571_v18 = vmul.f32 %v3581_v32, %v2170_v58  ;;  %v3583_v35 = vstv %s3566_s22  ;;  %v529_v16 = vadd.f32 %v528_v28, %v525_v13  ;;  %v3585_v36 = vstv %s3568_s10  ;;  %s3596_s22 = sld [smem:[#allocation95_spill]]  ;;  %s3597_s10 = sld [smem:[#allocation106_spill]] }
 0x141   :  { %v399_v17 = vmul.f32 %v3583_v35, %v2381_v41  ;;  %v532_v37 = vmul.f32 %v3585_v36, %v2160_v51  ;;  %v3586_v11 = vstv %s3570_s27  ;;  %v490_v42 = vadd.f32 %v489_v53, %v486_v30  ;;  %s3601_s27 = sld [smem:[#allocation109_spill]] }
 0x142   :  { %v536_v1 = vmul.f32 %v3586_v11, %v2162_v48  ;;  %v3589_v21 = vstv %s3572_s14  ;;  %v572_v9 = vadd.f32 %v571_v18, %v568_v33  ;;  %v3591_v19 = vstv %s3575_s1  ;;  %s3600_s1 = sld [smem:[#allocation101_spill]]  ;;  %s3604_s14 = sld [smem:[#allocation96_spill]] }
 0x143   :  { %v540_v38 = vmul.f32 %v3589_v21, %v2164_v56  ;;  %v575_v25 = vmul.f32 %v3591_v19, %v2158_v63  ;;  %v2424_v26 = vmax.f32 %v446_v10, 0.0  ;;  %v533_v52 = vadd.f32 %v532_v37, %v529_v16 }
 0x144   :  { %v3594_v44 = vstv %s3578_s28  ;;  %v3595_v22 = vstv %s3579_s24  ;;  %v494_v46 = vadd.f32 %v493_v49, %v490_v42  ;;  %v3598_v53 = vstv %s3582_s6  ;;  %s3606_s28 = sld [smem:[#allocation102_spill]]  ;;  %s3611_s6 = sld [smem:[#allocation108_spill]] }
 0x145   :  { %v544_v20 = vmul.f32 %v3594_v44, %v2166_v50  ;;  %v619_v40 = vmul.f32 %v3595_v22, %v2168_v62  ;;  %v576_v47 = vadd.f32 %v575_v25, %v572_v9  ;;  %v579_v24 = vmul.f32 %v3598_v53, %v2172_v5  ;;  %s3609_s24 = sld [smem:[#allocation110_spill]] }
 0x146   :  { %v3599_v13 = vstv %s3584_s2  ;;  %v400_v27 = vadd.f32 %v399_v17, %v349_v34  ;;  %v537_v28 = vadd.f32 %v536_v1, %v533_v52  ;;  %v3602_v55 = vstv %s3587_s21  ;;  %s3613_s2 = sld [smem:[#allocation103_spill]]  ;;  %s3614_s21 = sld [smem:[#allocation104_spill]] }
 0x147   :  { %v622_v10 = vmul.f32 %v3599_v13, %v2170_v58  ;;  %v583_v33 = vmul.f32 %v3602_v55, %v2160_v51  ;;  %v3603_v30 = vstv %s3588_s5  ;;  %v3605_v32 = vstv %s3590_s18  ;;  %s3617_s5 = sld [smem:[#allocation111_spill]]  ;;  %s3618_s18 = sld [smem:[#allocation105_spill]] }
 0x148   :  { %v587_v29 = vmul.f32 %v3603_v30, %v2162_v48  ;;  %v497_v49 = vadd.f32 %v3605_v32, %v494_v46  ;;  %v580_v18 = vadd.f32 %v579_v24, %v576_v47  ;;  %v3607_v16 = vstv %s3592_s29  ;;  %s3620_s29 = sld [smem:[#allocation112_spill]] }
 0x149   :  { %v623_v35 = vadd.f32 %v622_v10, %v619_v40  ;;  %v626_v36 = vmul.f32 %v3607_v16, %v2158_v63  ;;  %v3608_v37 = vstv %s3593_s15  ;;  %v541_v17 = vadd.f32 %v540_v38, %v537_v28  ;;  %s3622_s15 = sld [smem:[#allocation118_spill]] }
 0x14a   :  { %v450_v34 = vmul.f32 %v3608_v37, %v2424_v26  ;;  %v3610_v11 = vstv %s3596_s22  ;;  %v3612_v42 = vstv %s3597_s10  ;;  %v584_v9 = vadd.f32 %v583_v33, %v580_v18  ;;  %s3623_s22 = sld [smem:[#allocation119_spill]]  ;;  %s3624_s10 = sld [smem:[#allocation107_spill]] }
 0x14b   :  { %v591_v1 = vmul.f32 %v3610_v11, %v2164_v56  ;;  %v670_v21 = vmul.f32 %v3612_v42, %v2168_v62  ;;  %v627_v19 = vadd.f32 %v626_v36, %v623_v35  ;;  %v3615_v25 = vstv %s3600_s1  ;;  %s3628_s1 = sld [smem:[#allocation113_spill]] }
 0x14c   :  { %v630_v52 = vmul.f32 %v3615_v25, %v2172_v5  ;;  %v3616_v44 = vstv %s3601_s27  ;;  %v2464_v40 = vmax.f32 %v497_v49, 0.0  ;;  %v545_v38 = vadd.f32 %v544_v20, %v541_v17  ;;  %s3630_s27 = sld [smem:[#allocation120_spill]] }
 0x14d   :  { %v673_v22 = vmul.f32 %v3616_v44, %v2170_v58  ;;  %v3619_v46 = vstv %s3604_s14  ;;  %v3621_v53 = vstv %s3606_s28  ;;  %v588_v13 = vadd.f32 %v587_v29, %v584_v9  ;;  %s3631_s14 = sld [smem:[#allocation116_spill]]  ;;  %s3634_s28 = sld [smem:[#allocation114_spill]] }
 0x14e   :  { %v595_v47 = vmul.f32 %v3619_v46, %v2166_v50  ;;  %v634_v24 = vmul.f32 %v3621_v53, %v2160_v51  ;;  %v631_v10 = vadd.f32 %v630_v52, %v627_v19  ;;  %v3625_v55 = vstv %s3609_s24  ;;  %s3638_s24 = sld [smem:[#allocation121_spill]] }
 0x14f   :  { %v674_v28 = vadd.f32 %v673_v22, %v670_v21  ;;  %v677_v33 = vmul.f32 %v3625_v55, %v2158_v63  ;;  %v451_v30 = vadd.f32 %v450_v34, %v400_v27  ;;  %v3626_v32 = vstv %s3611_s6  ;;  %s3640_s6 = sld [smem:[#allocation128_spill]] }
 0x150   :  { %v548_v49 = vadd.f32 %v3626_v32, %v545_v38  ;;  %v3627_v20 = vstv %s3613_s2  ;;  %v3629_v35 = vstv %s3614_s21  ;;  %v592_v36 = vadd.f32 %v591_v1, %v588_v13  ;;  %s3641_s2 = sld [smem:[#allocation117_spill]]  ;;  %s3642_s21 = sld [smem:[#allocation129_spill]] }
 0x151   :  { %v638_v18 = vmul.f32 %v3627_v20, %v2162_v48  ;;  %v642_v16 = vmul.f32 %v3629_v35, %v2164_v56  ;;  %v635_v29 = vadd.f32 %v634_v24, %v631_v10  ;;  %v678_v37 = vadd.f32 %v677_v33, %v674_v28 }
 0x152   :  { %v3632_v17 = vstv %s3617_s5  ;;  %v3633_v42 = vstv %s3618_s18  ;;  %v3635_v34 = vstv %s3620_s29  ;;  %v3636_v9 = vstv %s3622_s15  ;;  %s3644_s5 = sld [smem:[#allocation115_spill]]  ;;  %s3647_s18 = sld [smem:[#allocation122_spill]] }
 0x153   :  { %v681_v11 = vmul.f32 %v3632_v17, %v2172_v5  ;;  %v646_v27 = vmul.f32 %v3633_v42, %v2166_v50  ;;  %v685_v21 = vmul.f32 %v3635_v34, %v2160_v51  ;;  %v721_v19 = vmul.f32 %v3636_v9, %v2168_v62  ;;  %s3648_s29 = sld [smem:[#allocation124_spill]]  ;;  %s3650_s15 = sld [smem:[#allocation130_spill]] }
 0x154   :  { %v3637_v25 = vstv %s3623_s22  ;;  %v3639_v52 = vstv %s3624_s10  ;;  %v596_v22 = vadd.f32 %v595_v47, %v592_v36  ;;  %v639_v38 = vadd.f32 %v638_v18, %v635_v29  ;;  %s3653_s22 = sld [smem:[#allocation125_spill]]  ;;  %s3654_s10 = sld [smem:[#allocation126_spill]] }
 0x155   :  { %v724_v1 = vmul.f32 %v3637_v25, %v2170_v58  ;;  %v501_v44 = vmul.f32 %v3639_v52, %v2464_v40  ;;  %v682_v46 = vadd.f32 %v681_v11, %v678_v37  ;;  %v2501_v53 = vmax.f32 %v548_v49, 0.0 }
 0x156   :  { %v3643_v24 = vstv %s3628_s1  ;;  %v3645_v28 = vstv %s3630_s27  ;;  %v3646_v33 = vstv %s3631_s14  ;;  %v643_v20 = vadd.f32 %v642_v16, %v639_v38  ;;  %s3658_s1 = sld [smem:[#allocation133_spill]]  ;;  %s3659_s27 = sld [smem:[#allocation123_spill]] }
 0x157   :  { %v689_v13 = vmul.f32 %v3643_v24, %v2162_v48  ;;  %v725_v10 = vadd.f32 %v724_v1, %v721_v19  ;;  %v728_v55 = vmul.f32 %v3645_v28, %v2158_v63  ;;  %v599_v32 = vadd.f32 %v3646_v33, %v596_v22  ;;  %s3661_s14 = sld [smem:[#allocation138_spill]] }
 0x158   :  { %v686_v47 = vadd.f32 %v685_v21, %v682_v46  ;;  %v3649_v18 = vstv %s3634_s28  ;;  %v502_v49 = vadd.f32 %v501_v44, %v451_v30  ;;  %v3651_v29 = vstv %s3638_s24  ;;  %s3663_s28 = sld [smem:[#allocation140_spill]] }
 0x159   :  { %v693_v35 = vmul.f32 %v3649_v18, %v2164_v56  ;;  %v729_v36 = vadd.f32 %v728_v55, %v725_v10  ;;  %v732_v37 = vmul.f32 %v3651_v29, %v2172_v5  ;;  %v3652_v17 = vstv %s3640_s6  ;;  %s3664_s24 = sld [smem:[#allocation132_spill]]  ;;  %s3665_s6 = sld [smem:[#allocation127_spill]] }
 0x15a   :  { %v772_v11 = vmul.f32 %v3652_v17, %v2168_v62  ;;  %v647_v42 = vadd.f32 %v646_v27, %v643_v20  ;;  %v690_v34 = vadd.f32 %v689_v13, %v686_v47  ;;  %v3655_v9 = vstv %s3641_s2  ;;  %s3667_s2 = sld [smem:[#allocation134_spill]] }
 0x15b   :  { %v697_v16 = vmul.f32 %v3655_v9, %v2166_v50  ;;  %v3656_v21 = vstv %s3642_s21  ;;  %v3657_v25 = vstv %s3644_s5  ;;  %v2529_v1 = vmax.f32 %v599_v32, 0.0  ;;  %s3670_s21 = sld [smem:[#allocation141_spill]]  ;;  %s3671_s5 = sld [smem:[#allocation131_spill]] }
 0x15c   :  { %v775_v19 = vmul.f32 %v3656_v21, %v2170_v58  ;;  %v552_v30 = vmul.f32 %v3657_v25, %v2501_v53  ;;  %v733_v52 = vadd.f32 %v732_v37, %v729_v36  ;;  %v3660_v44 = vstv %s3647_s18  ;;  %s3673_s18 = sld [smem:[#allocation135_spill]] }
 0x15d   :  { %v736_v22 = vmul.f32 %v3660_v44, %v2160_v51  ;;  %v3662_v27 = vstv %s3648_s29  ;;  %v694_v46 = vadd.f32 %v693_v35, %v690_v34  ;;  %v3666_v13 = vstv %s3650_s15  ;;  %s3675_s29 = sld [smem:[#allocation142_spill]]  ;;  %s3679_s15 = sld [smem:[#allocation148_spill]] }
 0x15e   :  { %v650_v38 = vadd.f32 %v3662_v27, %v647_v42  ;;  %v776_v24 = vadd.f32 %v775_v19, %v772_v11  ;;  %v779_v10 = vmul.f32 %v3666_v13, %v2158_v63  ;;  %v553_v28 = vadd.f32 %v552_v30, %v502_v49 }
 0x15f   :  { %v737_v55 = vadd.f32 %v736_v22, %v733_v52  ;;  %v3668_v33 = vstv %s3653_s22  ;;  %v3669_v20 = vstv %s3654_s10  ;;  %v698_v36 = vadd.f32 %v697_v16, %v694_v46  ;;  %s3681_s22 = sld [smem:[#allocation136_spill]]  ;;  %s3683_s10 = sld [smem:[#allocation137_spill]] }
 0x160   :  { %v740_v32 = vmul.f32 %v3668_v33, %v2162_v48  ;;  %v744_v47 = vmul.f32 %v3669_v20, %v2164_v56  ;;  %v2545_v18 = vmax.f32 %v650_v38, 0.0  ;;  %v780_v35 = vadd.f32 %v779_v10, %v776_v24 }
 0x161   :  { %v3672_v29 = vstv %s3658_s1  ;;  %v3674_v17 = vstv %s3659_s27  ;;  %v3676_v42 = vstv %s3661_s14  ;;  %v3677_v9 = vstv %s3663_s28  ;;  %s3684_s1 = sld [smem:[#allocation149_spill]]  ;;  %s3685_s27 = sld [smem:[#allocation143_spill]] }
 0x162   :  { %v783_v37 = vmul.f32 %v3672_v29, %v2172_v5  ;;  %v603_v49 = vmul.f32 %v3674_v17, %v2529_v1  ;;  %v741_v11 = vadd.f32 %v740_v32, %v737_v55  ;;  %v823_v34 = vmul.f32 %v3676_v42, %v2168_v62  ;;  %s3688_s14 = sld [smem:[#allocation144_spill]]  ;;  %s3690_s28 = sld [smem:[#allocation145_spill]] }
 0x163   :  { %v826_v21 = vmul.f32 %v3677_v9, %v2170_v58  ;;  %v3678_v19 = vstv %s3664_s24  ;;  %v3680_v16 = vstv %s3665_s6  ;;  %v3682_v44 = vstv %s3667_s2  ;;  %s3692_s24 = sld [smem:[#allocation150_spill]]  ;;  %s3693_s6 = sld [smem:[#allocation139_spill]] }
 0x164   :  { %v701_v25 = vadd.f32 %v3678_v19, %v698_v36  ;;  %v748_v30 = vmul.f32 %v3680_v16, %v2166_v50  ;;  %v784_v52 = vadd.f32 %v783_v37, %v780_v35  ;;  %v787_v22 = vmul.f32 %v3682_v44, %v2160_v51  ;;  %s3695_s2 = sld [smem:[#allocation153_spill]] }
 0x165   :  { %v604_v27 = vadd.f32 %v603_v49, %v553_v28  ;;  %v745_v38 = vadd.f32 %v744_v47, %v741_v11  ;;  %v827_v46 = vadd.f32 %v826_v21, %v823_v34  ;;  %v3686_v24 = vstv %s3670_s21  ;;  %s3699_s21 = sld [smem:[#allocation158_spill]] }
 0x166   :  { %v830_v13 = vmul.f32 %v3686_v24, %v2158_v63  ;;  %v3687_v10 = vstv %s3671_s5  ;;  %v788_v33 = vadd.f32 %v787_v22, %v784_v52  ;;  %v3689_v32 = vstv %s3673_s18  ;;  %s3700_s5 = sld [smem:[#allocation160_spill]]  ;;  %s3703_s18 = sld [smem:[#allocation146_spill]] }
 0x167   :  { %v654_v55 = vmul.f32 %v3687_v10, %v2545_v18  ;;  %v791_v20 = vmul.f32 %v3689_v32, %v2162_v48  ;;  %v3691_v36 = vstv %s3675_s29  ;;  %v2579_v28 = vmax.f32 %v701_v25, 0.0  ;;  %s3704_s29 = sld [smem:[#allocation154_spill]] }
 0x168   :  { %v834_v35 = vmul.f32 %v3691_v36, %v2172_v5  ;;  %v749_v47 = vadd.f32 %v748_v30, %v745_v38  ;;  %v831_v29 = vadd.f32 %v830_v13, %v827_v46  ;;  %v3694_v37 = vstv %s3679_s15  ;;  %s3706_s15 = sld [smem:[#allocation152_spill]] }
 0x169   :  { %v874_v17 = vmul.f32 %v3694_v37, %v2168_v62  ;;  %v792_v49 = vadd.f32 %v791_v20, %v788_v33  ;;  %v3696_v11 = vstv %s3681_s22  ;;  %v3697_v34 = vstv %s3683_s10  ;;  %s3709_s22 = sld [smem:[#allocation161_spill]]  ;;  %s3710_s10 = sld [smem:[#allocation151_spill]] }
 0x16a   :  { %v795_v42 = vmul.f32 %v3696_v11, %v2164_v56  ;;  %v799_v9 = vmul.f32 %v3697_v34, %v2166_v50  ;;  %v3698_v21 = vstv %s3684_s1  ;;  %v655_v25 = vadd.f32 %v654_v55, %v604_v27  ;;  %s3712_s1 = sld [smem:[#allocation147_spill]] }
 0x16b   :  { %v877_v19 = vmul.f32 %v3698_v21, %v2170_v58  ;;  %v3701_v16 = vstv %s3685_s27  ;;  %v835_v52 = vadd.f32 %v834_v35, %v831_v29  ;;  %v3702_v44 = vstv %s3688_s14  ;;  %s3713_s27 = sld [smem:[#allocation155_spill]]  ;;  %s3716_s14 = sld [smem:[#allocation162_spill]] }
 0x16c   :  { %v752_v30 = vadd.f32 %v3701_v16, %v749_v47  ;;  %v838_v22 = vmul.f32 %v3702_v44, %v2160_v51  ;;  %v796_v38 = vadd.f32 %v795_v42, %v792_v49  ;;  %v3705_v46 = vstv %s3690_s28  ;;  %s3719_s28 = sld [smem:[#allocation156_spill]] }
 0x16d   :  { %v842_v24 = vmul.f32 %v3705_v46, %v2162_v48  ;;  %v878_v13 = vadd.f32 %v877_v19, %v874_v17  ;;  %v3707_v10 = vstv %s3692_s24  ;;  %v3708_v32 = vstv %s3693_s6  ;;  %s3724_s24 = sld [smem:[#allocation164_spill]]  ;;  %s3726_s6 = sld [smem:[#allocation163_spill]] }
 0x16e   :  { %v881_v33 = vmul.f32 %v3707_v10, %v2158_v63  ;;  %v705_v27 = vmul.f32 %v3708_v32, %v2579_v28  ;;  %v2607_v55 = vmax.f32 %v752_v30, 0.0  ;;  %v839_v20 = vadd.f32 %v838_v22, %v835_v52 }
 0x16f   :  { %v3711_v36 = vstv %s3695_s2  ;;  %v800_v47 = vadd.f32 %v799_v9, %v796_v38  ;;  %v3714_v37 = vstv %s3699_s21  ;;  %v3715_v49 = vstv %s3700_s5  ;;  %s2638_s2 = sld [smem:[#allocation7 + $0x182]]  ;;  %s3727_s21 = sld [smem:[#allocation157_spill]] }
 0x170   :  { %v885_v35 = vmul.f32 %v3711_v36, %v2172_v5  ;;  %v882_v29 = vadd.f32 %v881_v33, %v878_v13  ;;  %v925_v17 = vmul.f32 %v3714_v37, %v2168_v62  ;;  %v928_v11 = vmul.f32 %v3715_v49, %v2170_v58  ;;  %s3729_s5 = sld [smem:[#allocation159_spill]] }
 0x171   :  { %v706_v42 = vadd.f32 %v705_v27, %v655_v25  ;;  %v843_v34 = vadd.f32 %v842_v24, %v839_v20  ;;  %v3717_v21 = vstv %s3703_s18  ;;  %v3718_v16 = vstv %s3704_s29  ;;  %s3732_s18 = sld [smem:[#allocation165_spill]]  ;;  %s2654_s29 = sld [smem:[#allocation7 + $0x183]] }
 0x172   :  { %v846_v19 = vmul.f32 %v3717_v21, %v2164_v56  ;;  %v889_v30 = vmul.f32 %v3718_v16, %v2160_v51  ;;  %v3720_v52 = vstv %s3706_s15  ;;  %v886_v44 = vadd.f32 %v885_v35, %v882_v29  ;;  %s3734_s15 = sld [smem:[#allocation176_spill]] }
 0x173   :  { %v803_v9 = vadd.f32 %v3720_v52, %v800_v47  ;;  %v929_v22 = vadd.f32 %v928_v11, %v925_v17  ;;  %v3721_v62 = vstv %s3709_s22  ;;  %v3722_v58 = vstv %s3710_s10  ;;  %s2659_s22 = sld [smem:[#allocation7 + $0x184]] }
 0x174   :  { %v932_v38 = vmul.f32 %v3721_v62, %v2158_v63  ;;  %v756_v25 = vmul.f32 %v3722_v58, %v2607_v55  ;;  %v847_v46 = vadd.f32 %v846_v19, %v843_v34  ;;  %v3723_v24 = vstv %s3712_s1  ;;  %s3742_s10 = sld [smem:[#allocation177_spill]]  ;;  %s3744_s1 = sld [smem:[#allocation167_spill]] }
 0x175   :  { %v850_v13 = vmul.f32 %v3723_v24, %v2166_v50  ;;  %v3725_v10 = vstv %s3713_s27  ;;  %v2640_v32 = vmax.f32 %v803_v9, 0.0  ;;  %v890_v27 = vadd.f32 %v889_v30, %v886_v44  ;;  %s2675_s27 = sld [smem:[#allocation7 + $0x185]] }
 0x176   :  { %v893_v33 = vmul.f32 %v3725_v10, %v2162_v48  ;;  %v933_v63 = vadd.f32 %v932_v38, %v929_v22  ;;  %v3728_v20 = vstv %s3716_s14  ;;  %v3730_v47 = vstv %s3719_s28  ;;  %s3745_s14 = sld [smem:[#allocation169_spill]]  ;;  %s2687_s28 = sld [smem:[#allocation7 + $0x186]] }
 0x177   :  { %v936_v36 = vmul.f32 %v3728_v20, %v2172_v5  ;;  %v851_v35 = vadd.f32 %v850_v13, %v847_v46  ;;  %v897_v29 = vmul.f32 %v3730_v47, %v2164_v56  ;;  %v3731_v37 = vstv %s3444_s0  ;;  %s3738_s0 = sld [smem:[#allocation166_spill]] }
 0x178   :  { %v205_v17 = vmul.f32 %v3731_v37, %v2310_v14  ;;  %v3733_v49 = vstv %s3446_s19  ;;  %v757_v34 = vadd.f32 %v756_v25, %v706_v42  ;;  %v894_v21 = vadd.f32 %v893_v33, %v890_v27  ;;  %s3741_s19 = sld [smem:[#allocation168_spill]] }
 0x179   :  { %v254_v11 = vmul.f32 %v3733_v49, %v2315_v31  ;;  %v937_v19 = vadd.f32 %v936_v36, %v933_v63  ;;  %v3735_v16 = vstv %s3724_s24  ;;  %v3736_v30 = vstv %s3726_s6  ;;  %s2689_s24 = sld [smem:[#allocation7 + $0x187]]  ;;  %s3753_s6 = sld [smem:[#allocation170_spill]] }
 0x17a   :  { %v940_v5 = vmul.f32 %v3735_v16, %v2160_v51  ;;  %v854_v52 = vadd.f32 %v3736_v30, %v851_v35  ;;  %v3737_v9 = vstv %s3727_s21  ;;  %v3739_v62 = vstv %s3447_s12  ;;  %s3747_s12 = sld [smem:[#allocation178_spill]]  ;;  %s3754_s21 = sld [smem:[#allocation171_spill]] }
 0x17b   :  { %v901_v44 = vmul.f32 %v3737_v9, %v2166_v50  ;;  %v255_v22 = vadd.f32 %v254_v11, %v205_v17  ;;  %v305_v38 = vmul.f32 %v3739_v62, %v2333_v43  ;;  %v3740_v42 = vstv %s3729_s5  ;;  %s2706_s5 = sld [smem:[#allocation7 + $0x188]] }
 0x17c   :  { %v807_v58 = vmul.f32 %v3740_v42, %v2640_v32  ;;  %v898_v25 = vadd.f32 %v897_v29, %v894_v21  ;;  %v941_v46 = vadd.f32 %v940_v5, %v937_v19  ;;  %v3743_v51 = vstv %s3732_s18  ;;  %s3800_s18 = sld [smem:[#allocation204_spill]] }
 0x17d   :  { %v944_v24 = vmul.f32 %v3743_v51, %v2162_v48  ;;  %v2677_v13 = vmax.f32 %v854_v52, 0.0  ;;  %v306_v10 = vadd.f32 %v305_v38, %v255_v22  ;;  %v3746_v33 = vstv %s3734_s15  ;;  %s3763_s15 = sld [smem:[#allocation172_spill]] }
 0x17e   :  { %v356_v27 = vmul.f32 %v3746_v33, %v2361_v15  ;;  %v1007_v63 = vsub.f32 %v2100_v59, %v2121_v3  ;;  %v808_v20 = vadd.f32 %v807_v58, %v757_v34  ;;  %v902_v36 = vadd.f32 %v901_v44, %v898_v25 }
 0x17f   :  { %v945_v35 = vadd.f32 %v944_v24, %v941_v46  ;;  %v3748_v48 = vstv %s3738_s0  ;;  %v3749_v29 = vstv %s3741_s19  ;;  %v3750_v59 = vstv %s3742_s10  ;;  %s2766_s0 = sld [smem:[#allocation7 + $0x18a]]  ;;  %s3775_s19 = sld [smem:[#allocation174_spill]] }
 0x180   :  { %v948_v47 = vmul.f32 %v3748_v48, %v2164_v56  ;;  %v952_v37 = vmul.f32 %v3749_v29, %v2166_v50  ;;  %v357_v17 = vadd.f32 %v356_v27, %v306_v10  ;;  %v407_v3 = vmul.f32 %v3750_v59, %v2381_v41  ;;  %s3788_s10 = sld [smem:[#allocation191_spill]] }
 0x181   :  { %v308_v49 = vstv %s2638_s2  ;;  %v3751_v11 = vstv %s3744_s1  ;;  %v3752_v21 = vstv %s3745_s14  ;;  %v202_v16 = vmul.f32 %v201_v57, %v2310_v14  ;;  %s3791_s1 = sld [smem:[#allocation188_spill]]  ;;  %s2825_s14 = sld [smem:[#allocation7 + $0x18b]] }
 0x182   :  { %v858_v34 = vmul.f32 %v3751_v11, %v2677_v13  ;;  %v905_v19 = vadd.f32 %v3752_v21, %v902_v36  ;;  %v949_v56 = vadd.f32 %v948_v47, %v945_v35  ;;  %v408_v50 = vadd.f32 %v407_v3, %v357_v17  ;;  %s2851_s2 = sld [smem:[#allocation7 + $0x18e]] }
 0x183   :  { %v3755_v5 = vstv %s3747_s12  ;;  %v250_v52 = vmul.f32 %v249_v60, %v2315_v31  ;;  %v359_v9 = vstv %s2654_s29  ;;  %v410_v38 = vstv %s2659_s22  ;;  %s3761_s29 = sld [smem:[#allocation202_spill]]  ;;  %s3767_s22 = sld [smem:[#allocation173_spill]] }
 0x184   :  { %v458_v30 = vmul.f32 %v3755_v5, %v2424_v26  ;;  %v859_v44 = vadd.f32 %v858_v34, %v808_v20  ;;  %v2715_v22 = vmax.f32 %v905_v19, 0.0  ;;  %v953_v62 = vadd.f32 %v952_v37, %v949_v56 }
 0x185   :  { %v3756_v42 = vstv %s1974_s3  ;;  %v251_v25 = vadd.f32 %v250_v52, %v202_v16  ;;  %v3757_v46 = vstv %s3461_s13  ;;  %v3759_v51 = vstv %s3753_s6  ;;  %s3764_s3 = sld [smem:[#allocation182_spill]]  ;;  %s2746_s13 = sld [smem:[#allocation8 + $0x2]] }
 0x186   :  { %v459_v57 = vadd.f32 %v458_v30, %v408_v50  ;;  %v509_v58 = vmul.f32 %v3756_v42, %v2464_v40  ;;  %v301_v60 = vmul.f32 %v3757_v46, %v2333_v43  ;;  %v909_v24 = vmul.f32 %v3759_v51, %v2715_v22  ;;  %s3796_s6 = sld [smem:[#allocation203_spill]] }
 0x187   :  { %v3760_v10 = vstv %s3754_s21  ;;  %v461_v36 = vstv %s2675_s27  ;;  %v3765_v48 = vstv %s3451_s4  ;;  %v3766_v37 = vstv %s3463_s7  ;;  %s3773_s4 = sld [smem:[#allocation180_spill]]  ;;  %s3774_s7 = sld [smem:[#allocation184_spill]] }
 0x188   :  { %v956_v33 = vadd.f32 %v3760_v10, %v953_v62  ;;  %v510_v35 = vadd.f32 %v509_v58, %v459_v57  ;;  %v560_v47 = vmul.f32 %v3765_v48, %v2501_v53  ;;  %v302_v29 = vadd.f32 %v301_v60, %v251_v25  ;;  %s2842_s21 = sld [smem:[#allocation7 + $0x18d]] }
 0x189   :  { %v3762_v27 = vstv %s3761_s29  ;;  %v352_v17 = vmul.f32 %v3766_v37, %v2361_v15  ;;  %v910_v59 = vadd.f32 %v909_v24, %v859_v44  ;;  %v563_v11 = vstv %s2689_s24 }
 0x18a   :  { %v2735_v20 = vmul.f32 %v1007_v63, %v3762_v27  ;;  %v2744_v3 = vmax.f32 %v956_v33, 0.0  ;;  %v512_v63 = vstv %s2687_s28  ;;  %v561_v34 = vadd.f32 %v560_v47, %v510_v35 }
 0x18b   :  { %v3768_v21 = vstv %s3758_s20  ;;  %v353_v56 = vadd.f32 %v352_v17, %v302_v29  ;;  %v3769_v16 = vstv %s2045_s25  ;;  %v3770_v5 = vstv %s3763_s15  ;;  %s3778_s25 = sld [smem:[#allocation185_spill]]  ;;  %s2846_s20 = sld [smem:[#allocation8 + $0x1]] }
 0x18c   :  { %v611_v19 = vmul.f32 %v3768_v21, %v2529_v1  ;;  %v403_v50 = vmul.f32 %v3769_v16, %v2381_v41  ;;  %v960_v30 = vmul.f32 %v3770_v5, %v2744_v3  ;;  %v3771_v52 = vstv %s3764_s3  ;;  %s3801_s3 = sld [smem:[#allocation205_spill]] }
 0x18d   :  { %v662_v44 = vmul.f32 %v3771_v52, %v2545_v18  ;;  %v3772_v62 = vstv %s2052_s30  ;;  %v614_v42 = vstv %s2706_s5  ;;  %v208_v46 = vmul.f32 %v207_v12, %v2310_v14  ;;  %s3779_s30 = sld [smem:[#allocation175_spill]] }
 0x18e   :  { %v454_v57 = vmul.f32 %v3772_v62, %v2424_v26  ;;  %v612_v58 = vadd.f32 %v611_v19, %v561_v34  ;;  %v404_v25 = vadd.f32 %v403_v50, %v353_v56  ;;  %v258_v60 = vmul.f32 %v257_v39, %v2315_v31 }
 0x18f   :  { %v961_v51 = vadd.f32 %v960_v30, %v910_v59  ;;  %v3776_v24 = vstv %s3456_s26  ;;  %v3777_v33 = vstv %s3767_s22  ;;  %v665_v35 = vstv %s2718_s9  ;;  %s3783_s26 = sld [smem:[#allocation186_spill]] }
 0x190   :  { %v713_v10 = vmul.f32 %v3776_v24, %v2579_v28  ;;  %v505_v27 = vmul.f32 %v3777_v33, %v2464_v40  ;;  %v663_v48 = vadd.f32 %v662_v44, %v612_v58  ;;  %v455_v47 = vadd.f32 %v454_v57, %v404_v25 }
 0x191   :  { %v259_v29 = vadd.f32 %v258_v60, %v208_v46  ;;  %v309_v37 = vmul.f32 %v308_v49, %v2333_v43  ;;  %v2784_v14 = vrot.slane %v2020_v61, %v1724_v8  ;;  %v3780_v31 = vstv %s3773_s4  ;;  %s3802_s4 = sld [smem:[#allocation206_spill]] }
 0x192   :  { %v976_v12 = vadd.f32 %v3780_v31, %v961_v51  ;;  %v3781_v39 = vstv %s3774_s7  ;;  %v3782_v59 = vstv %s3775_s19  ;;  %v714_v21 = vadd.f32 %v713_v10, %v663_v48  ;;  %s3803_s19 = sld [smem:[#allocation207_spill]] }
 0x193   :  { %v764_v17 = vmul.f32 %v3781_v39, %v2607_v55  ;;  %v556_v34 = vmul.f32 %v3782_v59, %v2501_v53  ;;  %v506_v19 = vadd.f32 %v505_v27, %v455_v47  ;;  %v310_v56 = vadd.f32 %v309_v37, %v259_v29 }
 0x194   :  { %v360_v43 = vmul.f32 %v359_v9, %v2361_v15  ;;  %v985_v8 = vmul.f32 %v2784_v14, %v976_v12  ;;  %v3785_v61 = vstv %s3778_s25  ;;  %v993_v16 = vstv %s2746_s13 }
 0x195   :  { %v815_v49 = vmul.f32 %v3785_v61, %v2640_v32  ;;  %v3787_v50 = vstv %s3779_s30  ;;  %v765_v30 = vadd.f32 %v764_v17, %v714_v21  ;;  %v557_v52 = vadd.f32 %v556_v34, %v506_v19 }
 0x196   :  { %v607_v5 = vmul.f32 %v3787_v50, %v2529_v1  ;;  %v361_v44 = vadd.f32 %v360_v43, %v310_v56  ;;  %v411_v62 = vmul.f32 %v410_v38, %v2381_v41  ;;  %v986_v57 = vadd.f32 %v985_v8, %v2106_v4 }
 0x197   :  { %v3789_v15 = vstv %s3783_s26  ;;  %v3790_v58 = vstv %s3784_s11  ;;  %v716_v46 = vstv %s2766_s0  ;;  %v816_v60 = vadd.f32 %v815_v49, %v765_v30 }
 0x198   :  { %v866_v9 = vmul.f32 %v3789_v15, %v2677_v13  ;;  %v658_v25 = vmul.f32 %v3790_v58, %v2545_v18  ;;  %v608_v51 = vadd.f32 %v607_v5, %v557_v52  ;;  %v412_v24 = vadd.f32 %v411_v62, %v361_v44 }
 0x199   :  { %v462_v10 = vmul.f32 %v461_v36, %v2424_v26  ;;  %v3793_v33 = vsub.f32 %v2111_v2, %v2076_v0  ;;  %v3794_v38 = vstv %s3786_s16  ;;  %v3795_v48 = vstv %s3788_s10 }
 0x19a   :  { %v917_v27 = vmul.f32 %v3794_v38, %v2715_v22  ;;  %v709_v47 = vmul.f32 %v3795_v48, %v2579_v28  ;;  %v760_v29 = vmul.f32 %v759_v54, %v2607_v55  ;;  %v867_v37 = vadd.f32 %v866_v9, %v816_v60 }
 0x19b   :  { %v1006_v41 = vsub.f32 %v3793_v33, %v986_v57  ;;  %v659_v31 = vadd.f32 %v658_v25, %v608_v51  ;;  %v463_v12 = vadd.f32 %v462_v10, %v412_v24  ;;  %v513_v26 = vmul.f32 %v512_v63, %v2464_v40 }
 0x19c   :  { %v3797_v36 = vstv %s3791_s1  ;;  %v811_v54 = vmul.f32 %v810_v6, %v2640_v32  ;;  %v918_v17 = vadd.f32 %v917_v27, %v867_v37  ;;  %v564_v40 = vmul.f32 %v563_v11, %v2501_v53 }
 0x19d   :  { %v1016_v0 = vcombine.high %v1006_v41, %v1006_v41  ;;  %1011 = vst [vmem:[%s3796_s6] sm:$0xff] %v1006_v41  ;;  %v1051_v2 = vmul.f32 %v1006_v41, %v1006_v41  ;;  %v968_v39 = vmul.f32 %v3797_v36, %v2744_v3  ;;  %v710_v59 = vadd.f32 %v709_v47, %v659_v31 }
 0x19e   :  { %v514_v34 = vadd.f32 %v513_v26, %v463_v12  ;;  %v1019_v63 = vsel %vm1018_vm0, %v1006_v41, 0.0  ;;  %v615_v6 = vmul.f32 %v614_v42, %v2529_v1  ;;  %v3798_v49 = vstv %s2130_s8  ;;  %s2867_s8 = sld [smem:[#allocation7 + $0x18f]] }
 0x19f   :  { %v1020_v21 = vsel %vm1018_vm0, %v1016_v0, 0.0  ;;  %v1053_v19 = vcombine.high %v1051_v2, %v1051_v2  ;;  %v969_v43 = vadd.f32 %v968_v39, %v918_v17  ;;  %v761_v8 = vadd.f32 %v760_v29, %v710_v59 }
 0x1a0   :  { %v1021_v56 = vadd.f32 %v1020_v21, %v1019_v63  ;;  %v565_v53 = vadd.f32 %v564_v40, %v514_v34  ;;  %v1055_v11 = vsel %vm1018_vm0, %v1051_v2, 0.0  ;;  %v862_v50 = vmul.f32 %v3798_v49, %v2677_v13 }
 0x1a1   :  { %v1056_v61 = vsel %vm1018_vm0, %v1053_v19, 0.0  ;;  %v666_v5 = vmul.f32 %v665_v35, %v2545_v18  ;;  %v994_v42 = vadd.f32 %v993_v16, %v969_v43  ;;  %v812_v30 = vadd.f32 %v811_v54, %v761_v8 }
 0x1a2   :  { %1022 = vadd.xlane.f32.xlu1 %v1021_v56  ;;  %v1057_v1 = vadd.f32 %v1056_v61, %v1055_v11  ;;  %v616_v52 = vadd.f32 %v615_v6, %v565_v53  ;;  %v1009_v44 = vsub.f32 %v2095_v7, %v2735_v20  ;;  %v913_v62 = vmul.f32 %v912_v45, %v2715_v22 }
 0x1a3   :  { %v767_v57 = vstv %s2825_s14  ;;  %v995_v18 = vmul.f32 %v994_v42, %v2784_v14  ;;  %v863_v35 = vadd.f32 %v862_v50, %v812_v30  ;;  %v717_v16 = vmul.f32 %v716_v46, %v2579_v28 }
 0x1a4   :  { %1058 = vadd.xlane.f32.xlu0 %v1057_v1  ;;  %v667_v15 = vadd.f32 %v666_v5, %v616_v52  ;;  %v964_v9 = vmul.f32 %v963_v23, %v2744_v3  ;;  %v818_v58 = vstv %s2837_s23  ;;  %v768_v45 = vmul.f32 %v767_v57, %v2607_v55 }
 0x1a5   :  { %v996_v7 = vadd.f32 %v995_v18, %v2106_v4  ;;  %v914_v20 = vadd.f32 %v913_v62, %v863_v35  ;;  %v988_v60 = vstv %s2846_s20  ;;  %v869_v51 = vstv %s2842_s21 }
 0x1a6   :  { %v718_v25 = vadd.f32 %v717_v16, %v667_v15  ;;  %v920_v24 = vstv %s2851_s2  ;;  %v819_v28 = vmul.f32 %v818_v58, %v2640_v32  ;;  %v870_v27 = vmul.f32 %v869_v51, %v2677_v13 }
 0x1a7   :  { %v1010_v10 = vsub.f32 %v1009_v44, %v996_v7  ;;  %v965_v33 = vadd.f32 %v964_v9, %v914_v20  ;;  %v921_v55 = vmul.f32 %v920_v24, %v2715_v22  ;;  %v971_v48 = vstv %s2867_s8 }
 0x1a8   :  { %v769_v41 = vadd.f32 %v768_v45, %v718_v25  ;;  %v972_v0 = vmul.f32 %v971_v48, %v2744_v3  ;;  %v998_v2 = vstv %s1324_s17 }
 0x1a9   :  { %1012 = vst [vmem:[%s3800_s18] sm:$0xff] %v1010_v10  ;;  %v1025_v23 = vcombine.high %v1010_v10, %v1010_v10  ;;  %v989_v46 = vadd.f32 %v988_v60, %v965_v33  ;;  %v1027_v47 = vsel %vm1018_vm0, %v1010_v10, 0.0  ;;  %v1060_v63 = vmul.f32 %v1010_v10, %v1010_v10 }
 0x1aa   :  { %v820_v38 = vadd.f32 %v819_v28, %v769_v41 }
 0x1ab   :  { %v1028_v29 = vsel %vm1018_vm0, %v1025_v23, 0.0  ;;  %v990_v37 = vmul.f32 %v989_v46, %v2784_v14  ;;  %v1062_v43 = vcombine.high %v1060_v63, %v1060_v63 }
 0x1ac   :  { %v871_v31 = vadd.f32 %v870_v27, %v820_v38  ;;  %v1029_v32 = vadd.f32 %v1028_v29, %v1027_v47 }
 0x1ad   :  { %v991_v12 = vadd.f32 %v990_v37, %v2106_v4  ;;  %v1065_v61 = vsel %vm1018_vm0, %v1062_v43, 0.0 }
 0x1ae   :  { %v922_v26 = vadd.f32 %v921_v55, %v871_v31  ;;  %1030 = vadd.xlane.f32.xlu1 %v1029_v32 }
 0x1af   :  { %1013 = vst [vmem:[%s3801_s3] sm:$0xff] %v991_v12  ;;  %v1034_v13 = vcombine.high %v991_v12, %v991_v12  ;;  %v1070_v22 = vmul.f32 %v991_v12, %v991_v12  ;;  %v1036_v39 = vsel %vm1018_vm0, %v991_v12, 0.0 }
 0x1b0   :  { %v973_v36 = vadd.f32 %v972_v0, %v922_v26 }
 0x1b1   :  { %v1037_v54 = vsel %vm1018_vm0, %v1034_v13, 0.0  ;;  %v1072_v17 = vcombine.high %v1070_v22, %v1070_v22  ;;  %v1074_v21 = vsel %vm1018_vm0, %v1070_v22, 0.0 }
 0x1b2   :  { %v999_v59 = vadd.f32 %v998_v2, %v973_v36  ;;  %v1038_v34 = vadd.f32 %v1037_v54, %v1036_v39 }
 0x1b3   :  { %v1075_v40 = vsel %vm1018_vm0, %v1072_v17, 0.0 }
 0x1b4   :  { %v1000_v3 = vmul.f32 %v999_v59, %v2784_v14  ;;  %1039 = vadd.xlane.f32.xlu1 %v1038_v34  ;;  %v1076_v6 = vadd.f32 %v1075_v40, %v1074_v21 }
 0x1b6   :  { %v1001_v19 = vadd.f32 %v1000_v3, %v2106_v4  ;;  %v1064_v4 = vsel %vm1018_vm0, %v1060_v63, 0.0 }
 0x1b7   :  { %v1066_v50 = vadd.f32 %v1065_v61, %v1064_v4 }
 0x1b8   :  { %1014 = vst [vmem:[%s3802_s4] sm:$0xff] %v1001_v19  ;;  %v1043_v56 = vcombine.high %v1001_v19, %v1001_v19  ;;  %v1080_v8 = vmul.f32 %v1001_v19, %v1001_v19  ;;  %1077 = vadd.xlane.f32.xlu1 %v1076_v6  ;;  %v1045_v53 = vsel %vm1018_vm0, %v1001_v19, 0.0 }
 0x1ba   :  { %v1046_v11 = vsel %vm1018_vm0, %v1043_v56, 0.0  ;;  %v1082_v49 = vcombine.high %v1080_v8, %v1080_v8  ;;  %v1084_v1 = vsel %vm1018_vm0, %v1080_v8, 0.0 }
 0x1bb   :  { %v1047_v14 = vadd.f32 %v1046_v11, %v1045_v53 }
 0x1bc   :  { %v1085_v5 = vsel %vm1018_vm0, %v1082_v49, 0.0 }
 0x1bd   :  { %1048 = vadd.xlane.f32.xlu1 %v1047_v14  ;;  %v1086_v42 = vadd.f32 %v1085_v5, %v1084_v1 }
 0x1c1   :  { %1067 = vadd.xlane.f32.xlu1 %v1066_v50 }
 0x1c5   :  { %1087 = vadd.xlane.f32.xlu1 %v1086_v42 }
 0x22f   :  { %v1023_v30 = vpop.xlane.xlu1 %1022 }
 0x231   :  { %v1059_v16 = vpop.xlane.xlu0 %1058 }
 0x23b   :  { %v1031_v52 = vpop.xlane.xlu1 %1030 }
 0x23c   :  { %v1032_v57 = vadd.f32 %v1031_v52, %v1023_v30 }
 0x241   :  { %v1040_v44 = vpop.xlane.xlu1 %1039 }
 0x242   :  { %v1041_v18 = vadd.f32 %v1040_v44, %v1032_v57 }
 0x245   :  { %v1078_v62 = vpop.xlane.xlu1 %1077 }
 0x24a   :  { %v1049_v35 = vpop.xlane.xlu1 %1048 }
 0x24b   :  { %v1050_v15 = vadd.f32 %v1049_v35, %v1041_v18 }
 0x24d   :  { %1091 = vst.msk [vmem:[%s3803_s19] sm:$0xf] %vm1090_vm1, %v1050_v15 }
 0x24e   :  { %v1068_v9 = vpop.xlane.xlu1 %1067 }
 0x24f   :  { %v1069_v58 = vadd.f32 %v1068_v9, %v1059_v16 }
 0x251   :  { %v1079_v7 = vadd.f32 %v1078_v62, %v1069_v58 }
 0x252   :  { %v1088_v20 = vpop.xlane.xlu1 %1087 }
 0x253   :  { %v1089_v25 = vadd.f32 %v1088_v20, %v1079_v7 }
 0x255   :  { %1093 = vst.msk [vmem:[%s3803_s19] sm:$0xf] %vm1092_vm2, %v1089_v25 }
 0x256   :  { %1114 = vsyncpa [#allocation4], 1 }
 0x257   :  { %1115 = vsyncpa [#allocation6], 1 }
 0x258   :  { %1116 = vsyncpa [#allocation9], 1 }

</bundles_post_ra>
